<compile_context>
chip_gen: v5e
topology: v5e:2x2
jax: 0.10.0
libtpu: 0.0.40
codegen_flags: <defaults>
</compile_context>

<pallas_src>
import functools
import math

import jax
import jax.numpy as jnp
from jax.experimental import pallas as pl
from jax.experimental.pallas import tpu as pltpu


_BN_INV_STD = 1.0 / math.sqrt(1e-5)   # F.batch_norm(x, zeros, zeros, eval) == x / sqrt(eps)
CPAD = 128                            # lane-dense channel padding for conv I/O


# -----------------------------------------------------------------------------
# Kernels
# -----------------------------------------------------------------------------
def _conv_kernel(x_ref, w_ref, b_ref, o_ref):
    # x_ref: (M, 9*Cin) bf16   w_ref: (9*Cin, 128) bf16   b_ref: (1, 128) f32
    y = jnp.dot(x_ref[...], w_ref[...], preferred_element_type=jnp.float32)
    y = jnp.maximum(y + b_ref[...], 0.0)                       # fused bias + ReLU
    o_ref[...] = y.astype(o_ref.dtype)


def _conv_pool_kernel(x_ref, w_ref, b_ref, o_ref, *, mo):
    # Rows are ordered (dy, dx, ho, wo) within this batch element, so the 2x2
    # max-pool is a max over four contiguous, sublane-aligned row blocks.
    y = jnp.dot(x_ref[...], w_ref[...], preferred_element_type=jnp.float32)
    y = jnp.maximum(y + b_ref[...], 0.0)                       # ReLU commutes with max-pool
    p = jnp.maximum(jnp.maximum(y[0 * mo:1 * mo], y[1 * mo:2 * mo]),
                    jnp.maximum(y[2 * mo:3 * mo], y[3 * mo:4 * mo]))
    o_ref[...] = p.astype(o_ref.dtype)


def _mlp_kernel(x_ref, w1_ref, b1_ref, w2_ref, b2_ref, o_ref):
    # fc1 -> batch_norm(mean=0, var=0, eval) -> ReLU -> fc2, fused.
    h = jnp.dot(x_ref[...], w1_ref[...], preferred_element_type=jnp.float32)
    h = jnp.maximum((h + b1_ref[...]) * _BN_INV_STD, 0.0)
    o = jnp.dot(h.astype(w2_ref.dtype), w2_ref[...],
                preferred_element_type=jnp.float32)
    o_ref[...] = o + b2_ref[...]


# -----------------------------------------------------------------------------
# Wrappers
# -----------------------------------------------------------------------------
def _im2col(x, pool_major):
    """x: (N, H, W, C) -> (rows, 9*C) im2col matrix (XLA glue, built once).

    pool_major=False: rows ordered (n, h, w).
    pool_major=True : rows ordered (n, dy, dx, ho, wo) so a 2x2 max-pool becomes a
                      max over 4 contiguous row blocks of size Ho*Wo in the kernel."""
    N, H, W, C = x.shape
    xp = jnp.pad(x, ((0, 0), (1, 1), (1, 1), (0, 0)))
    cols = jnp.stack([xp[:, ky:ky + H, kx:kx + W, :]
                      for ky in range(3) for kx in range(3)], axis=3)   # (N,H,W,9,C)
    K = 9 * C
    if pool_major:
        Ho, Wo = H // 2, W // 2
        cols = cols.reshape(N, Ho, 2, Wo, 2, K).transpose(0, 2, 4, 1, 3, 5)
        return cols.reshape(N * 4 * Ho * Wo, K)                         # (n,dy,dx,ho,wo)
    return cols.reshape(N * H * W, K)                                   # (n,h,w)


def conv3x3(x, w, b, *, fuse_pool):
    """x: (N,H,W,Cin_pad) bf16; w: (9*Cin_pad, 128) bf16; b: (1, 128) f32."""
    N, H, W, C = x.shape
    K = 9 * C
    xcol = _im2col(x, pool_major=fuse_pool)
    if fuse_pool:
        Ho, Wo = H // 2, W // 2
        mo = Ho * Wo
        kernel = functools.partial(_conv_pool_kernel, mo=mo)
        rows_in, rows_out = 4 * mo, mo
    else:
        Ho, Wo = H, W
        kernel = _conv_kernel
        rows_in, rows_out = H * W, H * W

    out = pl.pallas_call(
        kernel,
        out_shape=jax.ShapeDtypeStruct((N * rows_out, CPAD), jnp.bfloat16),
        grid=(N,),
        in_specs=[
            pl.BlockSpec((rows_in, K), lambda n: (n, 0)),
            pl.BlockSpec((K, CPAD), lambda n: (0, 0)),
            pl.BlockSpec((1, CPAD), lambda n: (0, 0)),
        ],
        out_specs=pl.BlockSpec((rows_out, CPAD), lambda n: (n, 0)),
        compiler_params=pltpu.CompilerParams(
            dimension_semantics=("parallel",)),    # 2 TCs on v7x; no-op on v5e/v6e
    )(xcol, w, b)
    return out.reshape(N, Ho, Wo, CPAD)


def mlp_head(x, w1, b1, w2, b2):
    N, Din = x.shape
    Dh = w1.shape[1]
    Dop = w2.shape[1]
    return pl.pallas_call(
        _mlp_kernel,
        out_shape=jax.ShapeDtypeStruct((N, Dop), jnp.float32),
        grid=(1,),
        in_specs=[
            pl.BlockSpec((N, Din), lambda i: (0, 0)),
            pl.BlockSpec((Din, Dh), lambda i: (0, 0)),
            pl.BlockSpec((1, Dh), lambda i: (0, 0)),
            pl.BlockSpec((Dh, Dop), lambda i: (0, 0)),
            pl.BlockSpec((1, Dop), lambda i: (0, 0)),
        ],
        out_specs=pl.BlockSpec((N, Dop), lambda i: (0, 0)),
        compiler_params=pltpu.CompilerParams(dimension_semantics=("arbitrary",)),
    )(x, w1, b1, w2, b2)


# -----------------------------------------------------------------------------
# Parameters: deterministic init in PyTorch-native shapes, then a one-time
# padding / permutation / bf16 pass into the kernel-friendly layouts.
# -----------------------------------------------------------------------------
def init_params(key, fc1_in_features):
    ks = jax.random.split(key, 12)

    def conv_p(kw, kb, cin, cout):
        bound = 1.0 / math.sqrt(cin * 9)
        w = jax.random.uniform(kw, (3, 3, cin, cout), jnp.float32, -bound, bound)
        b = jax.random.uniform(kb, (cout,), jnp.float32, -bound, bound)
        return w, b

    def fc_p(kw, kb, din, dout):
        bound = 1.0 / math.sqrt(din)
        w = jax.random.uniform(kw, (din, dout), jnp.float32, -bound, bound)
        b = jax.random.uniform(kb, (dout,), jnp.float32, -bound, bound)
        return w, b

    return {
        "conv1": conv_p(ks[0], ks[1], 3, 32),
        "conv2": conv_p(ks[2], ks[3], 32, 32),
        "conv3": conv_p(ks[4], ks[5], 32, 64),
        "conv4": conv_p(ks[6], ks[7], 64, 64),
        "fc1": fc_p(ks[8], ks[9], fc1_in_features, 512),   # LazyLinear(512)
        "fc2": fc_p(ks[10], ks[11], 512, 3),               # LazyLinear(3)
    }


def prepare_params(params, H, W):
    Ho2, Wo2 = H // 4, W // 4

    def prep_conv(w, b, cin_pad):
        cin, cout = w.shape[2], w.shape[3]
        wp = jnp.pad(w, ((0, 0), (0, 0), (0, cin_pad - cin), (0, CPAD - cout)))
        wp = wp.reshape(9 * cin_pad, CPAD).astype(jnp.bfloat16)   # tap-major (t, c) rows
        bp = jnp.pad(b, (0, CPAD - cout)).reshape(1, CPAD).astype(jnp.float32)
        return wp, bp

    w1, b1 = params["fc1"]
    w2, b2 = params["fc2"]
    c4 = params["conv4"][0].shape[3]          # real channel count entering the flatten
    dh = w1.shape[1]

    # fc1 rows are in PyTorch (C, H, W) flatten order; permute once to the kernels'
    # (H, W, C_pad) order -> no runtime transpose before the MLP head.
    w1_hwc = jnp.transpose(w1.reshape(c4, Ho2, Wo2, dh), (1, 2, 0, 3))
    w1_hwc = jnp.pad(w1_hwc, ((0, 0), (0, 0), (0, CPAD - c4), (0, 0)))
    w1p = w1_hwc.reshape(Ho2 * Wo2 * CPAD, dh).astype(jnp.bfloat16)
    b1p = b1.reshape(1, dh).astype(jnp.float32)

    dout = w2.shape[1]
    w2p = jnp.pad(w2, ((0, 0), (0, CPAD - dout))).astype(jnp.bfloat16)
    b2p = jnp.pad(b2, (0, CPAD - dout)).reshape(1, CPAD).astype(jnp.float32)

    return {
        "conv1": prep_conv(*params["conv1"], cin_pad=8),
        "conv2": prep_conv(*params["conv2"], cin_pad=CPAD),
        "conv3": prep_conv(*params["conv3"], cin_pad=CPAD),
        "conv4": prep_conv(*params["conv4"], cin_pad=CPAD),
        "fc1": (w1p, b1p),
        "fc2": (w2p, b2p),
    }


# -----------------------------------------------------------------------------
# Forward pass (matches Net.forward semantics).
# -----------------------------------------------------------------------------
def net_forward(x_nchw, p, num_classes):
    # NCHW -> NHWC, pad input channels to 8, bf16 MXU operands (f32 accumulation).
    x = jnp.transpose(x_nchw, (0, 2, 3, 1))
    cin = x.shape[-1]
    x = jnp.pad(x, ((0, 0), (0, 0), (0, 0), (0, 8 - cin))).astype(jnp.bfloat16)

    x = conv3x3(x, *p["conv1"], fuse_pool=False)   # conv1 + relu
    x = conv3x3(x, *p["conv2"], fuse_pool=True)    # conv2 + max_pool2d(2) + relu (fused)
    x = conv3x3(x, *p["conv3"], fuse_pool=False)   # conv3 + relu
    x = conv3x3(x, *p["conv4"], fuse_pool=True)    # conv4 + relu + max_pool2d(2) (fused)

    N = x.shape[0]
    x = x.reshape(N, -1)                           # NHWC flatten (contiguous, free)
    out = mlp_head(x, *p["fc1"], *p["fc2"])        # fc1 -> batch_norm -> relu -> fc2
    return out[:, :num_classes]                    # drop zero-padded logit columns


if __name__ == "__main__":
    key = jax.random.PRNGKey(0)
    k_in, k_par = jax.random.split(key)

    N, C, H, W = 2, 3, 16, 16
    x = jax.random.normal(k_in, (N, C, H, W), jnp.float32)

    fc1_in = 64 * (H // 4) * (W // 4)              # what LazyLinear(512) infers: 64*4*4
    params = init_params(k_par, fc1_in)
    prep = prepare_params(params, H, W)

    forward = jax.jit(net_forward, static_argnums=(2,))
    out = forward(x, prep, 3)
    out = jax.block_until_ready(out)

    assert out.shape == (N, 3), out.shape
    assert bool(jnp.all(jnp.isfinite(out)))
    print("KERNEL_OK")
</pallas_src>

<mosaic_0001>
module attributes {stable_mosaic.version = 11 : i64} {
  func.func @_conv_kernel(%arg0: i32, %arg1: memref<256x72xbf16, #tpu.memory_space<vmem>>, %arg2: memref<72x128xbf16, #tpu.memory_space<vmem>>, %arg3: memref<1x128xf32, #tpu.memory_space<vmem>>, %arg4: memref<256x128xbf16, #tpu.memory_space<vmem>>) attributes {dimension_semantics = [#tpu.dimension_semantics<parallel>], iteration_bounds = array<i64: 2>, scalar_prefetch = 0 : i64, scratch_operands = 0 : i64, tpu.core_type = #tpu.core_type<tc>, window_params = [{transform_indices = @transform_0, window_bounds = array<i64: 256, 72>}, {pipeline_mode = #tpu.pipeline_mode<synchronous>, transform_indices = @transform_1, window_bounds = array<i64: 72, 128>}, {pipeline_mode = #tpu.pipeline_mode<synchronous>, transform_indices = @transform_2, window_bounds = array<i64: 1, 128>}, {transform_indices = @transform_3, window_bounds = array<i64: 256, 128>}]} {
    %c0 = arith.constant 0 : index
    %c0_0 = arith.constant 0 : index
    %0 = vector.load %arg1[%c0, %c0_0] : memref<256x72xbf16, #tpu.memory_space<vmem>>, vector<256x72xbf16>
    %c0_1 = arith.constant 0 : index
    %c0_2 = arith.constant 0 : index
    %1 = vector.load %arg2[%c0_1, %c0_2] : memref<72x128xbf16, #tpu.memory_space<vmem>>, vector<72x128xbf16>
    %cst = arith.constant dense<0.000000e+00> : vector<256x128xf32>
    %2 = tpu.matmul %0, %1, %cst {dimension_numbers = #tpu.dot_dimension_numbers<[1], [0], [0], [1], [0, 0, 1, 1], [], []>} : vector<256x72xbf16>, vector<72x128xbf16>, vector<256x128xf32> -> vector<256x128xf32>
    %c0_3 = arith.constant 0 : index
    %c0_4 = arith.constant 0 : index
    %3 = vector.load %arg3[%c0_3, %c0_4] : memref<1x128xf32, #tpu.memory_space<vmem>>, vector<1x128xf32>
    %4 = vector.broadcast %3 : vector<1x128xf32> to vector<256x128xf32>
    %5 = arith.addf %2, %4 : vector<256x128xf32>
    %cst_5 = arith.constant 0.000000e+00 : f32
    %6 = vector.broadcast %cst_5 : f32 to vector<256x128xf32>
    %7 = arith.maximumf %5, %6 : vector<256x128xf32>
    %8 = arith.truncf %7 : vector<256x128xf32> to vector<256x128xbf16>
    %c0_6 = arith.constant 0 : index
    %c0_7 = arith.constant 0 : index
    %9 = vector.load %arg4[%c0_6, %c0_7] : memref<256x128xbf16, #tpu.memory_space<vmem>>, vector<256x128xbf16>
    tpu.vector_store %arg4[%c0_6, %c0_7], %8 {strides = array<i32>} : memref<256x128xbf16, #tpu.memory_space<vmem>>, vector<256x128xbf16>,
    return
  }
  func.func @transform_0(%arg0: i32) -> (i32, i32) {
    %c0_i32 = arith.constant 0 : i32
    %c0_i32_0 = arith.constant 0 : i32
    return %arg0, %c0_i32 : i32, i32
  }
  func.func @transform_1(%arg0: i32) -> (i32, i32) {
    %c0_i32 = arith.constant 0 : i32
    %c0_i32_0 = arith.constant 0 : i32
    %c0_i32_1 = arith.constant 0 : i32
    return %c0_i32, %c0_i32_0 : i32, i32
  }
  func.func @transform_2(%arg0: i32) -> (i32, i32) {
    %c0_i32 = arith.constant 0 : i32
    %c0_i32_0 = arith.constant 0 : i32
    %c0_i32_1 = arith.constant 0 : i32
    return %c0_i32, %c0_i32_0 : i32, i32
  }
  func.func @transform_3(%arg0: i32) -> (i32, i32) {
    %c0_i32 = arith.constant 0 : i32
    %c0_i32_0 = arith.constant 0 : i32
    return %arg0, %c0_i32 : i32, i32
  }
}

module attributes {stable_mosaic.version = 11 : i64} {
  func.func @_conv_pool_kernel(%arg0: i32, %arg1: memref<256x1152xbf16, #tpu.memory_space<vmem>>, %arg2: memref<1152x128xbf16, #tpu.memory_space<vmem>>, %arg3: memref<1x128xf32, #tpu.memory_space<vmem>>, %arg4: memref<64x128xbf16, #tpu.memory_space<vmem>>) attributes {dimension_semantics = [#tpu.dimension_semantics<parallel>], iteration_bounds = array<i64: 2>, scalar_prefetch = 0 : i64, scratch_operands = 0 : i64, tpu.core_type = #tpu.core_type<tc>, window_params = [{transform_indices = @transform_0, window_bounds = array<i64: 256, 1152>}, {pipeline_mode = #tpu.pipeline_mode<synchronous>, transform_indices = @transform_1, window_bounds = array<i64: 1152, 128>}, {pipeline_mode = #tpu.pipeline_mode<synchronous>, transform_indices = @transform_2, window_bounds = array<i64: 1, 128>}, {transform_indices = @transform_3, window_bounds = array<i64: 64, 128>}]} {
    %c0 = arith.constant 0 : index
    %c0_0 = arith.constant 0 : index
    %0 = vector.load %arg1[%c0, %c0_0] : memref<256x1152xbf16, #tpu.memory_space<vmem>>, vector<256x1152xbf16>
    %c0_1 = arith.constant 0 : index
    %c0_2 = arith.constant 0 : index
    %1 = vector.load %arg2[%c0_1, %c0_2] : memref<1152x128xbf16, #tpu.memory_space<vmem>>, vector<1152x128xbf16>
    %cst = arith.constant dense<0.000000e+00> : vector<256x128xf32>
    %2 = tpu.matmul %0, %1, %cst {dimension_numbers = #tpu.dot_dimension_numbers<[1], [0], [0], [1], [0, 0, 1, 1], [], []>} : vector<256x1152xbf16>, vector<1152x128xbf16>, vector<256x128xf32> -> vector<256x128xf32>
    %c0_3 = arith.constant 0 : index
    %c0_4 = arith.constant 0 : index
    %3 = vector.load %arg3[%c0_3, %c0_4] : memref<1x128xf32, #tpu.memory_space<vmem>>, vector<1x128xf32>
    %4 = vector.broadcast %3 : vector<1x128xf32> to vector<256x128xf32>
    %5 = arith.addf %2, %4 : vector<256x128xf32>
    %cst_5 = arith.constant 0.000000e+00 : f32
    %6 = vector.broadcast %cst_5 : f32 to vector<256x128xf32>
    %7 = arith.maximumf %5, %6 : vector<256x128xf32>
    %8 = vector.extract_strided_slice %7 {offsets = [0, 0], sizes = [64, 128], strides = [1, 1]} : vector<256x128xf32> to vector<64x128xf32>
    %9 = vector.extract_strided_slice %7 {offsets = [64, 0], sizes = [64, 128], strides = [1, 1]} : vector<256x128xf32> to vector<64x128xf32>
    %10 = arith.maximumf %8, %9 : vector<64x128xf32>
    %11 = vector.extract_strided_slice %7 {offsets = [128, 0], sizes = [64, 128], strides = [1, 1]} : vector<256x128xf32> to vector<64x128xf32>
    %12 = vector.extract_strided_slice %7 {offsets = [192, 0], sizes = [64, 128], strides = [1, 1]} : vector<256x128xf32> to vector<64x128xf32>
    %13 = arith.maximumf %11, %12 : vector<64x128xf32>
    %14 = arith.maximumf %10, %13 : vector<64x128xf32>
    %15 = arith.truncf %14 : vector<64x128xf32> to vector<64x128xbf16>
    %c0_6 = arith.constant 0 : index
    %c0_7 = arith.constant 0 : index
    %16 = vector.load %arg4[%c0_6, %c0_7] : memref<64x128xbf16, #tpu.memory_space<vmem>>, vector<64x128xbf16>
    tpu.vector_store %arg4[%c0_6, %c0_7], %15 {strides = array<i32>} : memref<64x128xbf16, #tpu.memory_space<vmem>>, vector<64x128xbf16>,
    return
  }
  func.func @transform_0(%arg0: i32) -> (i32, i32) {
    %c0_i32 = arith.constant 0 : i32
    %c0_i32_0 = arith.constant 0 : i32
    return %arg0, %c0_i32 : i32, i32
  }
  func.func @transform_1(%arg0: i32) -> (i32, i32) {
    %c0_i32 = arith.constant 0 : i32
    %c0_i32_0 = arith.constant 0 : i32
    %c0_i32_1 = arith.constant 0 : i32
    return %c0_i32, %c0_i32_0 : i32, i32
  }
  func.func @transform_2(%arg0: i32) -> (i32, i32) {
    %c0_i32 = arith.constant 0 : i32
    %c0_i32_0 = arith.constant 0 : i32
    %c0_i32_1 = arith.constant 0 : i32
    return %c0_i32, %c0_i32_0 : i32, i32
  }
  func.func @transform_3(%arg0: i32) -> (i32, i32) {
    %c0_i32 = arith.constant 0 : i32
    %c0_i32_0 = arith.constant 0 : i32
    return %arg0, %c0_i32 : i32, i32
  }
}

module attributes {stable_mosaic.version = 11 : i64} {
  func.func @_conv_kernel(%arg0: i32, %arg1: memref<64x1152xbf16, #tpu.memory_space<vmem>>, %arg2: memref<1152x128xbf16, #tpu.memory_space<vmem>>, %arg3: memref<1x128xf32, #tpu.memory_space<vmem>>, %arg4: memref<64x128xbf16, #tpu.memory_space<vmem>>) attributes {dimension_semantics = [#tpu.dimension_semantics<parallel>], iteration_bounds = array<i64: 2>, scalar_prefetch = 0 : i64, scratch_operands = 0 : i64, tpu.core_type = #tpu.core_type<tc>, window_params = [{transform_indices = @transform_0, window_bounds = array<i64: 64, 1152>}, {pipeline_mode = #tpu.pipeline_mode<synchronous>, transform_indices = @transform_1, window_bounds = array<i64: 1152, 128>}, {pipeline_mode = #tpu.pipeline_mode<synchronous>, transform_indices = @transform_2, window_bounds = array<i64: 1, 128>}, {transform_indices = @transform_3, window_bounds = array<i64: 64, 128>}]} {
    %c0 = arith.constant 0 : index
    %c0_0 = arith.constant 0 : index
    %0 = vector.load %arg1[%c0, %c0_0] : memref<64x1152xbf16, #tpu.memory_space<vmem>>, vector<64x1152xbf16>
    %c0_1 = arith.constant 0 : index
    %c0_2 = arith.constant 0 : index
    %1 = vector.load %arg2[%c0_1, %c0_2] : memref<1152x128xbf16, #tpu.memory_space<vmem>>, vector<1152x128xbf16>
    %cst = arith.constant dense<0.000000e+00> : vector<64x128xf32>
    %2 = tpu.matmul %0, %1, %cst {dimension_numbers = #tpu.dot_dimension_numbers<[1], [0], [0], [1], [0, 0, 1, 1], [], []>} : vector<64x1152xbf16>, vector<1152x128xbf16>, vector<64x128xf32> -> vector<64x128xf32>
    %c0_3 = arith.constant 0 : index
    %c0_4 = arith.constant 0 : index
    %3 = vector.load %arg3[%c0_3, %c0_4] : memref<1x128xf32, #tpu.memory_space<vmem>>, vector<1x128xf32>
    %4 = vector.broadcast %3 : vector<1x128xf32> to vector<64x128xf32>
    %5 = arith.addf %2, %4 : vector<64x128xf32>
    %cst_5 = arith.constant 0.000000e+00 : f32
    %6 = vector.broadcast %cst_5 : f32 to vector<64x128xf32>
    %7 = arith.maximumf %5, %6 : vector<64x128xf32>
    %8 = arith.truncf %7 : vector<64x128xf32> to vector<64x128xbf16>
    %c0_6 = arith.constant 0 : index
    %c0_7 = arith.constant 0 : index
    %9 = vector.load %arg4[%c0_6, %c0_7] : memref<64x128xbf16, #tpu.memory_space<vmem>>, vector<64x128xbf16>
    tpu.vector_store %arg4[%c0_6, %c0_7], %8 {strides = array<i32>} : memref<64x128xbf16, #tpu.memory_space<vmem>>, vector<64x128xbf16>,
    return
  }
  func.func @transform_0(%arg0: i32) -> (i32, i32) {
    %c0_i32 = arith.constant 0 : i32
    %c0_i32_0 = arith.constant 0 : i32
    return %arg0, %c0_i32 : i32, i32
  }
  func.func @transform_1(%arg0: i32) -> (i32, i32) {
    %c0_i32 = arith.constant 0 : i32
    %c0_i32_0 = arith.constant 0 : i32
    %c0_i32_1 = arith.constant 0 : i32
    return %c0_i32, %c0_i32_0 : i32, i32
  }
  func.func @transform_2(%arg0: i32) -> (i32, i32) {
    %c0_i32 = arith.constant 0 : i32
    %c0_i32_0 = arith.constant 0 : i32
    %c0_i32_1 = arith.constant 0 : i32
    return %c0_i32, %c0_i32_0 : i32, i32
  }
  func.func @transform_3(%arg0: i32) -> (i32, i32) {
    %c0_i32 = arith.constant 0 : i32
    %c0_i32_0 = arith.constant 0 : i32
    return %arg0, %c0_i32 : i32, i32
  }
}

module attributes {stable_mosaic.version = 11 : i64} {
  func.func @_conv_pool_kernel(%arg0: i32, %arg1: memref<64x1152xbf16, #tpu.memory_space<vmem>>, %arg2: memref<1152x128xbf16, #tpu.memory_space<vmem>>, %arg3: memref<1x128xf32, #tpu.memory_space<vmem>>, %arg4: memref<16x128xbf16, #tpu.memory_space<vmem>>) attributes {dimension_semantics = [#tpu.dimension_semantics<parallel>], iteration_bounds = array<i64: 2>, scalar_prefetch = 0 : i64, scratch_operands = 0 : i64, tpu.core_type = #tpu.core_type<tc>, window_params = [{transform_indices = @transform_0, window_bounds = array<i64: 64, 1152>}, {pipeline_mode = #tpu.pipeline_mode<synchronous>, transform_indices = @transform_1, window_bounds = array<i64: 1152, 128>}, {pipeline_mode = #tpu.pipeline_mode<synchronous>, transform_indices = @transform_2, window_bounds = array<i64: 1, 128>}, {transform_indices = @transform_3, window_bounds = array<i64: 16, 128>}]} {
    %c0 = arith.constant 0 : index
    %c0_0 = arith.constant 0 : index
    %0 = vector.load %arg1[%c0, %c0_0] : memref<64x1152xbf16, #tpu.memory_space<vmem>>, vector<64x1152xbf16>
    %c0_1 = arith.constant 0 : index
    %c0_2 = arith.constant 0 : index
    %1 = vector.load %arg2[%c0_1, %c0_2] : memref<1152x128xbf16, #tpu.memory_space<vmem>>, vector<1152x128xbf16>
    %cst = arith.constant dense<0.000000e+00> : vector<64x128xf32>
    %2 = tpu.matmul %0, %1, %cst {dimension_numbers = #tpu.dot_dimension_numbers<[1], [0], [0], [1], [0, 0, 1, 1], [], []>} : vector<64x1152xbf16>, vector<1152x128xbf16>, vector<64x128xf32> -> vector<64x128xf32>
    %c0_3 = arith.constant 0 : index
    %c0_4 = arith.constant 0 : index
    %3 = vector.load %arg3[%c0_3, %c0_4] : memref<1x128xf32, #tpu.memory_space<vmem>>, vector<1x128xf32>
    %4 = vector.broadcast %3 : vector<1x128xf32> to vector<64x128xf32>
    %5 = arith.addf %2, %4 : vector<64x128xf32>
    %cst_5 = arith.constant 0.000000e+00 : f32
    %6 = vector.broadcast %cst_5 : f32 to vector<64x128xf32>
    %7 = arith.maximumf %5, %6 : vector<64x128xf32>
    %8 = vector.extract_strided_slice %7 {offsets = [0, 0], sizes = [16, 128], strides = [1, 1]} : vector<64x128xf32> to vector<16x128xf32>
    %9 = vector.extract_strided_slice %7 {offsets = [16, 0], sizes = [16, 128], strides = [1, 1]} : vector<64x128xf32> to vector<16x128xf32>
    %10 = arith.maximumf %8, %9 : vector<16x128xf32>
    %11 = vector.extract_strided_slice %7 {offsets = [32, 0], sizes = [16, 128], strides = [1, 1]} : vector<64x128xf32> to vector<16x128xf32>
    %12 = vector.extract_strided_slice %7 {offsets = [48, 0], sizes = [16, 128], strides = [1, 1]} : vector<64x128xf32> to vector<16x128xf32>
    %13 = arith.maximumf %11, %12 : vector<16x128xf32>
    %14 = arith.maximumf %10, %13 : vector<16x128xf32>
    %15 = arith.truncf %14 : vector<16x128xf32> to vector<16x128xbf16>
    %c0_6 = arith.constant 0 : index
    %c0_7 = arith.constant 0 : index
    %16 = vector.load %arg4[%c0_6, %c0_7] : memref<16x128xbf16, #tpu.memory_space<vmem>>, vector<16x128xbf16>
    tpu.vector_store %arg4[%c0_6, %c0_7], %15 {strides = array<i32>} : memref<16x128xbf16, #tpu.memory_space<vmem>>, vector<16x128xbf16>,
    return
  }
  func.func @transform_0(%arg0: i32) -> (i32, i32) {
    %c0_i32 = arith.constant 0 : i32
    %c0_i32_0 = arith.constant 0 : i32
    return %arg0, %c0_i32 : i32, i32
  }
  func.func @transform_1(%arg0: i32) -> (i32, i32) {
    %c0_i32 = arith.constant 0 : i32
    %c0_i32_0 = arith.constant 0 : i32
    %c0_i32_1 = arith.constant 0 : i32
    return %c0_i32, %c0_i32_0 : i32, i32
  }
  func.func @transform_2(%arg0: i32) -> (i32, i32) {
    %c0_i32 = arith.constant 0 : i32
    %c0_i32_0 = arith.constant 0 : i32
    %c0_i32_1 = arith.constant 0 : i32
    return %c0_i32, %c0_i32_0 : i32, i32
  }
  func.func @transform_3(%arg0: i32) -> (i32, i32) {
    %c0_i32 = arith.constant 0 : i32
    %c0_i32_0 = arith.constant 0 : i32
    return %arg0, %c0_i32 : i32, i32
  }
}

module attributes {stable_mosaic.version = 11 : i64} {
  func.func @_mlp_kernel(%arg0: i32, %arg1: memref<2x2048xbf16, #tpu.memory_space<vmem>>, %arg2: memref<2048x512xbf16, #tpu.memory_space<vmem>>, %arg3: memref<1x512xf32, #tpu.memory_space<vmem>>, %arg4: memref<512x128xbf16, #tpu.memory_space<vmem>>, %arg5: memref<1x128xf32, #tpu.memory_space<vmem>>, %arg6: memref<2x128xf32, #tpu.memory_space<vmem>>) attributes {dimension_semantics = [#tpu.dimension_semantics<arbitrary>], iteration_bounds = array<i64: 1>, scalar_prefetch = 0 : i64, scratch_operands = 0 : i64, tpu.core_type = #tpu.core_type<tc>, window_params = [{pipeline_mode = #tpu.pipeline_mode<synchronous>, transform_indices = @transform_0, window_bounds = array<i64: 2, 2048>}, {pipeline_mode = #tpu.pipeline_mode<synchronous>, transform_indices = @transform_1, window_bounds = array<i64: 2048, 512>}, {pipeline_mode = #tpu.pipeline_mode<synchronous>, transform_indices = @transform_2, window_bounds = array<i64: 1, 512>}, {pipeline_mode = #tpu.pipeline_mode<synchronous>, transform_indices = @transform_3, window_bounds = array<i64: 512, 128>}, {pipeline_mode = #tpu.pipeline_mode<synchronous>, transform_indices = @transform_4, window_bounds = array<i64: 1, 128>}, {pipeline_mode = #tpu.pipeline_mode<synchronous>, transform_indices = @transform_5, window_bounds = array<i64: 2, 128>}]} {
    %c0 = arith.constant 0 : index
    %c0_0 = arith.constant 0 : index
    %0 = vector.load %arg1[%c0, %c0_0] : memref<2x2048xbf16, #tpu.memory_space<vmem>>, vector<2x2048xbf16>
    %c0_1 = arith.constant 0 : index
    %c0_2 = arith.constant 0 : index
    %1 = vector.load %arg2[%c0_1, %c0_2] : memref<2048x512xbf16, #tpu.memory_space<vmem>>, vector<2048x512xbf16>
    %cst = arith.constant dense<0.000000e+00> : vector<2x512xf32>
    %2 = tpu.matmul %0, %1, %cst {dimension_numbers = #tpu.dot_dimension_numbers<[1], [0], [0], [1], [0, 0, 1, 1], [], []>} : vector<2x2048xbf16>, vector<2048x512xbf16>, vector<2x512xf32> -> vector<2x512xf32>
    %c0_3 = arith.constant 0 : index
    %c0_4 = arith.constant 0 : index
    %3 = vector.load %arg3[%c0_3, %c0_4] : memref<1x512xf32, #tpu.memory_space<vmem>>, vector<1x512xf32>
    %4 = vector.broadcast %3 : vector<1x512xf32> to vector<2x512xf32>
    %5 = arith.addf %2, %4 : vector<2x512xf32>
    %cst_5 = arith.constant 316.227753 : f32
    %6 = vector.broadcast %cst_5 : f32 to vector<2x512xf32>
    %7 = arith.mulf %5, %6 : vector<2x512xf32>
    %cst_6 = arith.constant 0.000000e+00 : f32
    %8 = vector.broadcast %cst_6 : f32 to vector<2x512xf32>
    %9 = arith.maximumf %7, %8 : vector<2x512xf32>
    %10 = arith.truncf %9 : vector<2x512xf32> to vector<2x512xbf16>
    %c0_7 = arith.constant 0 : index
    %c0_8 = arith.constant 0 : index
    %11 = vector.load %arg4[%c0_7, %c0_8] : memref<512x128xbf16, #tpu.memory_space<vmem>>, vector<512x128xbf16>
    %cst_9 = arith.constant dense<0.000000e+00> : vector<2x128xf32>
    %12 = tpu.matmul %10, %11, %cst_9 {dimension_numbers = #tpu.dot_dimension_numbers<[1], [0], [0], [1], [0, 0, 1, 1], [], []>} : vector<2x512xbf16>, vector<512x128xbf16>, vector<2x128xf32> -> vector<2x128xf32>
    %c0_10 = arith.constant 0 : index
    %c0_11 = arith.constant 0 : index
    %13 = vector.load %arg5[%c0_10, %c0_11] : memref<1x128xf32, #tpu.memory_space<vmem>>, vector<1x128xf32>
    %14 = vector.broadcast %13 : vector<1x128xf32> to vector<2x128xf32>
    %15 = arith.addf %12, %14 : vector<2x128xf32>
    %c0_12 = arith.constant 0 : index
    %c0_13 = arith.constant 0 : index
    %16 = vector.load %arg6[%c0_12, %c0_13] : memref<2x128xf32, #tpu.memory_space<vmem>>, vector<2x128xf32>
    tpu.vector_store %arg6[%c0_12, %c0_13], %15 {strides = array<i32>} : memref<2x128xf32, #tpu.memory_space<vmem>>, vector<2x128xf32>,
    return
  }
  func.func @transform_0(%arg0: i32) -> (i32, i32) {
    %c0_i32 = arith.constant 0 : i32
    %c0_i32_0 = arith.constant 0 : i32
    %c0_i32_1 = arith.constant 0 : i32
    return %c0_i32, %c0_i32_0 : i32, i32
  }
  func.func @transform_1(%arg0: i32) -> (i32, i32) {
    %c0_i32 = arith.constant 0 : i32
    %c0_i32_0 = arith.constant 0 : i32
    %c0_i32_1 = arith.constant 0 : i32
    return %c0_i32, %c0_i32_0 : i32, i32
  }
  func.func @transform_2(%arg0: i32) -> (i32, i32) {
    %c0_i32 = arith.constant 0 : i32
    %c0_i32_0 = arith.constant 0 : i32
    %c0_i32_1 = arith.constant 0 : i32
    return %c0_i32, %c0_i32_0 : i32, i32
  }
  func.func @transform_3(%arg0: i32) -> (i32, i32) {
    %c0_i32 = arith.constant 0 : i32
    %c0_i32_0 = arith.constant 0 : i32
    %c0_i32_1 = arith.constant 0 : i32
    return %c0_i32, %c0_i32_0 : i32, i32
  }
  func.func @transform_4(%arg0: i32) -> (i32, i32) {
    %c0_i32 = arith.constant 0 : i32
    %c0_i32_0 = arith.constant 0 : i32
    %c0_i32_1 = arith.constant 0 : i32
    return %c0_i32, %c0_i32_0 : i32, i32
  }
  func.func @transform_5(%arg0: i32) -> (i32, i32) {
    %c0_i32 = arith.constant 0 : i32
    %c0_i32_0 = arith.constant 0 : i32
    %c0_i32_1 = arith.constant 0 : i32
    return %c0_i32, %c0_i32_0 : i32, i32
  }
}

</mosaic_0001>

<bundles_post_ra>
// kernel: net_forward.5
= control target key start
LH: loop header
LB: loop body
LE: loop exit
PB: predicated region body
PF: predicated region fallthrough
CT: control target
= control target key end

     0   :  { %s895_s12 = smov 0   ;;  %s1023_s0 = inlined_call_operand.vmem [shape: bf16[512,72], index: 0, kind: input, shape index: {}]   ;;  %s1024_s1 = inlined_call_operand.vmem [shape: bf16[72,128], index: 1, kind: input, shape index: {}]   ;;  %s1025_s2 = inlined_call_operand.vmem [shape: f32[1,128], index: 2, kind: input, shape index: {}]   ;;  %s1026_s3 = inlined_call_operand.vmem [shape: bf16[512,128], index: 3, kind: output, shape index: {}]  }
   0x1 LB: > { %s621_s13 = sadd.s32 4294967295, %s873_s12   ;;  %p625_p0 = scmp.ge.s32.totalorder %s873_s12, 1  ;;  %s873_s12 = sphi %s895_s12, %s13_s12  }
   0x2   : > { %p138_p1 = scmp.lt.s32.totalorder %s873_s12, 3 }
   0x4   : > { %p139_p2 = pnand %p625_p0, %p138_p1 }
   0x5   : > { %s626_s16 = sshll.u32 (!%p139_p2), %s621_s13, 5 }
   0x6   : > { %142 = sbr.rel (%p139_p2) target bundleno = 233 (0xe9), region = 32  ;;  %p163_p3 = scmp.lt.s32.totalorder (!%p139_p2), %s626_s16, 63 }
   0xb   : > { %v215_v0 = vld [vmem:[%s1024_s1 + $0x20] sm:$0xf]  ;;  %vm376_vm0 = vcmask 1043456   ;;  %v747_v4 = vld [vmem:[%s1024_s1 + $0x18] sm:$0xff]  ;;  %v746_v5 = vld [vmem:[%s1024_s1 + $0x10] sm:$0xff]  ;;  %s1028_s16 = smov (!%p163_p3, %s626_s16), 63 }
   0xc   : > { %v317_v1 = vunpack.c.l.b16 %v215_v0  ;;  %v745_v6 = vld [vmem:[%s1024_s1 + $0x8] sm:$0xff]  ;;  %s627_s23 = sshll.u32 %s1028_s16, 2  ;;  %v744_v7 = vld [vmem:[%s1024_s1] sm:$0xff]  ;;  %vm327_vm1 = vcmask 588800  }
   0xd   : > { %s926_s28 = scalar_lea.vmem %s1023_s0, %s627_s23  ;;  %v963_v26 = vld [vmem:[%s1025_s2] ss:$0 sm:$0xff]  ;;  %s974_s6 = scalar_lea.vmem %s1026_s3, %s627_s23 }
   0xe   : > { %v322_v2 = vpack.c.b16 %v317_v1, %v317_v1  ;;  %v728_v8 = vld [vmem:[%s926_s28] sm:$0xff]  ;;  %v729_v12 = vld [vmem:[%s926_s28 + $0x8] sm:$0xff]  ;;  %v730_v16 = vld [vmem:[%s926_s28 + $0x10] sm:$0xff] }
   0xf   : > { %v732_v9 = vld [vmem:[%s926_s28 + $0x20] sm:$0xff]  ;;  %v733_v13 = vld [vmem:[%s926_s28 + $0x28] sm:$0xff]  ;;  %v734_v17 = vld [vmem:[%s926_s28 + $0x30] sm:$0xff] }
  0x10   : > { %v378_v3 = vsel %vm376_vm0, %v322_v2, 0  ;;  %v736_v10 = vld [vmem:[%s926_s28 + $0x40] sm:$0xff]  ;;  %v737_v14 = vld [vmem:[%s926_s28 + $0x48] sm:$0xff]  ;;  %v738_v18 = vld [vmem:[%s926_s28 + $0x50] sm:$0xff] }
  0x11   : > { %383 = vmatpush.bf16.msra.mxu0 %v378_v3  ;;  %843 = vmatpush.bf16.msra.mxu1 %v378_v3  ;;  %v740_v11 = vld [vmem:[%s926_s28 + $0x60] sm:$0xff]  ;;  %v741_v15 = vld [vmem:[%s926_s28 + $0x68] sm:$0xff]  ;;  %v742_v19 = vld [vmem:[%s926_s28 + $0x70] sm:$0xff] }
  0x12   : > { %844 = vmatpush.bf16.msra.mxu2 %v378_v3  ;;  %845 = vmatpush.bf16.msra.mxu3 %v378_v3  ;;  %v731_v20 = vld [vmem:[%s926_s28 + $0x18] sm:$0xff] }
  0x13   : > { %v735_v21 = vld [vmem:[%s926_s28 + $0x38] sm:$0xff] }
  0x14   : > { %v739_v22 = vld [vmem:[%s926_s28 + $0x58] sm:$0xff] }
  0x15   : > { %384 = vmatpush.bf16.msra.mxu0 %v747_v4  ;;  %846 = vmatpush.bf16.msra.mxu1 %v747_v4  ;;  %v743_v23 = vld [vmem:[%s926_s28 + $0x78] sm:$0xff] }
  0x16   : > { %847 = vmatpush.bf16.msra.mxu2 %v747_v4  ;;  %848 = vmatpush.bf16.msra.mxu3 %v747_v4 }
  0x19   : > { %385 = vmatpush.bf16.msra.mxu0 %v746_v5  ;;  %849 = vmatpush.bf16.msra.mxu1 %v746_v5 }
  0x1a   : > { %850 = vmatpush.bf16.msra.mxu2 %v746_v5  ;;  %851 = vmatpush.bf16.msra.mxu3 %v746_v5 }
  0x1d   : > { %386 = vmatpush.bf16.msra.mxu0 %v745_v6  ;;  %852 = vmatpush.bf16.msra.mxu1 %v745_v6 }
  0x1e   : > { %853 = vmatpush.bf16.msra.mxu2 %v745_v6  ;;  %854 = vmatpush.bf16.msra.mxu3 %v745_v6 }
  0x21   : > { %387 = vmatpush.bf16.msra.mxu0 %v744_v7  ;;  %855 = vmatpush.bf16.msra.mxu1 %v744_v7 }
  0x22   : > { %856 = vmatpush.bf16.msra.mxu2 %v744_v7  ;;  %857 = vmatpush.bf16.msra.mxu3 %v744_v7 }
  0x24   : > { %710 = vmatmul.msk.bf16.vlgmr.msra.gmra.mxu0 %vm327_vm1, %v728_v8  ;;  %714 = vmatmul.msk.bf16.vlgmr.msra.gmra.mxu1 %vm327_vm1, %v732_v9 }
  0x25   : > { %718 = vmatmul.msk.bf16.vlgmr.msra.gmra.mxu2 %vm327_vm1, %v736_v10  ;;  %722 = vmatmul.msk.bf16.vlgmr.msra.gmra.mxu3 %vm327_vm1, %v740_v11 }
  0x34   : > { %711 = vmatmul.msk.bf16.gmra.mxu0 %vm327_vm1, %v729_v12  ;;  %715 = vmatmul.msk.bf16.gmra.mxu1 %vm327_vm1, %v733_v13 }
  0x35   : > { %719 = vmatmul.msk.bf16.gmra.mxu2 %vm327_vm1, %v737_v14  ;;  %723 = vmatmul.msk.bf16.gmra.mxu3 %vm327_vm1, %v741_v15 }
  0x44   : > { %712 = vmatmul.msk.bf16.gmra.mxu0 %vm327_vm1, %v730_v16  ;;  %716 = vmatmul.msk.bf16.gmra.mxu1 %vm327_vm1, %v734_v17 }
  0x45   : > { %720 = vmatmul.msk.bf16.gmra.mxu2 %vm327_vm1, %v738_v18  ;;  %724 = vmatmul.msk.bf16.gmra.mxu3 %vm327_vm1, %v742_v19 }
  0x54   : > { %713 = vmatmul.msk.bf16.gmra.mxu0 %vm327_vm1, %v731_v20  ;;  %717 = vmatmul.msk.bf16.gmra.mxu1 %vm327_vm1, %v735_v21 }
  0x55   : > { %721 = vmatmul.msk.bf16.gmra.mxu2 %vm327_vm1, %v739_v22  ;;  %725 = vmatmul.msk.bf16.gmra.mxu3 %vm327_vm1, %v743_v23 }
  0xa1   : > { %v389_v24 = vpop.f32.mrf.mxu0  ;;  %v409_v25 = vpop.f32.mrf.mxu1 }
  0xa2   : > { %v390_v27 = vadd.f32 %v963_v26, %v389_v24  ;;  %v410_v28 = vadd.f32 %v963_v26, %v409_v25 }
  0xa4   : > { %v469_v35 = vmax.f32 %v390_v27, 0.0  ;;  %v477_v36 = vmax.f32 %v410_v28, 0.0 }
  0xa8   : > { %v429_v29 = vpop.f32.mrf.mxu2  ;;  %v449_v30 = vpop.f32.mrf.mxu3 }
  0xa9   : > { %v391_v31 = vpop.f32.mrf.mxu0  ;;  %v411_v32 = vpop.f32.mrf.mxu1  ;;  %v430_v41 = vadd.f32 %v963_v26, %v429_v29  ;;  %v450_v42 = vadd.f32 %v963_v26, %v449_v30 }
  0xaa   : > { %v392_v33 = vadd.f32 %v963_v26, %v391_v31  ;;  %v412_v34 = vadd.f32 %v963_v26, %v411_v32 }
  0xab   : > { %v485_v49 = vmax.f32 %v430_v41, 0.0  ;;  %v493_v50 = vmax.f32 %v450_v42, 0.0 }
  0xac   : > { %v470_v37 = vmax.f32 %v392_v33, 0.0  ;;  %v478_v38 = vmax.f32 %v412_v34, 0.0 }
  0xae   : > { %v751_v39 = vpack.c.bf16 %v470_v37, %v469_v35  ;;  %v771_v40 = vpack.c.bf16 %v478_v38, %v477_v36 }
  0xb0   : > { %752 = vst [vmem:[%s974_s6] sm:$0xff] %v751_v39   ;;  %v431_v43 = vpop.f32.mrf.mxu2  ;;  %v451_v44 = vpop.f32.mrf.mxu3 }
  0xb1   : > { %831 = vst [vmem:[%s974_s6 + $0x20] sm:$0xff] %v771_v40   ;;  %v432_v45 = vadd.f32 %v963_v26, %v431_v43  ;;  %v452_v46 = vadd.f32 %v963_v26, %v451_v44  ;;  %v394_v47 = vpop.f32.mrf.mxu0  ;;  %v414_v48 = vpop.f32.mrf.mxu1 }
  0xb2   : > { %v395_v55 = vadd.f32 %v963_v26, %v394_v47  ;;  %v415_v56 = vadd.f32 %v963_v26, %v414_v48 }
  0xb3   : > { %v486_v51 = vmax.f32 %v432_v45, 0.0  ;;  %v494_v52 = vmax.f32 %v452_v46, 0.0 }
  0xb4   : > { %v471_v63 = vmax.f32 %v395_v55, 0.0  ;;  %v479_v0 = vmax.f32 %v415_v56, 0.0 }
  0xb5   : > { %v791_v53 = vpack.c.bf16 %v486_v51, %v485_v49  ;;  %v811_v54 = vpack.c.bf16 %v494_v52, %v493_v50 }
  0xb7   : > { %835 = vst [vmem:[%s974_s6 + $0x40] sm:$0xff] %v791_v53  }
  0xb8   : > { %839 = vst [vmem:[%s974_s6 + $0x60] sm:$0xff] %v811_v54   ;;  %v434_v57 = vpop.f32.mrf.mxu2  ;;  %v454_v58 = vpop.f32.mrf.mxu3 }
  0xb9   : > { %v396_v59 = vpop.f32.mrf.mxu0  ;;  %v416_v60 = vpop.f32.mrf.mxu1  ;;  %v435_v5 = vadd.f32 %v963_v26, %v434_v57  ;;  %v455_v6 = vadd.f32 %v963_v26, %v454_v58 }
  0xba   : > { %v397_v61 = vadd.f32 %v963_v26, %v396_v59  ;;  %v417_v62 = vadd.f32 %v963_v26, %v416_v60 }
  0xbb   : > { %v487_v13 = vmax.f32 %v435_v5, 0.0  ;;  %v495_v14 = vmax.f32 %v455_v6, 0.0 }
  0xbc   : > { %v472_v1 = vmax.f32 %v397_v61, 0.0  ;;  %v480_v2 = vmax.f32 %v417_v62, 0.0 }
  0xbe   : > { %v756_v3 = vpack.c.bf16 %v472_v1, %v471_v63  ;;  %v776_v4 = vpack.c.bf16 %v480_v2, %v479_v0 }
  0xc0   : > { %828 = vst [vmem:[%s974_s6 + $0x8] sm:$0xff] %v756_v3   ;;  %v436_v7 = vpop.f32.mrf.mxu2  ;;  %v456_v8 = vpop.f32.mrf.mxu3 }
  0xc1   : > { %832 = vst [vmem:[%s974_s6 + $0x28] sm:$0xff] %v776_v4   ;;  %v437_v9 = vadd.f32 %v963_v26, %v436_v7  ;;  %v457_v10 = vadd.f32 %v963_v26, %v456_v8  ;;  %v399_v11 = vpop.f32.mrf.mxu0  ;;  %v419_v12 = vpop.f32.mrf.mxu1 }
  0xc2   : > { %v400_v19 = vadd.f32 %v963_v26, %v399_v11  ;;  %v420_v20 = vadd.f32 %v963_v26, %v419_v12 }
  0xc3   : > { %v488_v15 = vmax.f32 %v437_v9, 0.0  ;;  %v496_v16 = vmax.f32 %v457_v10, 0.0 }
  0xc4   : > { %v473_v28 = vmax.f32 %v400_v19, 0.0  ;;  %v481_v29 = vmax.f32 %v420_v20, 0.0 }
  0xc5   : > { %v796_v17 = vpack.c.bf16 %v488_v15, %v487_v13  ;;  %v816_v18 = vpack.c.bf16 %v496_v16, %v495_v14 }
  0xc7   : > { %836 = vst [vmem:[%s974_s6 + $0x48] sm:$0xff] %v796_v17  }
  0xc8   : > { %840 = vst [vmem:[%s974_s6 + $0x68] sm:$0xff] %v816_v18   ;;  %v439_v21 = vpop.f32.mrf.mxu2  ;;  %v459_v22 = vpop.f32.mrf.mxu3 }
  0xc9   : > { %v401_v23 = vpop.f32.mrf.mxu0  ;;  %v421_v24 = vpop.f32.mrf.mxu1  ;;  %v440_v34 = vadd.f32 %v963_v26, %v439_v21  ;;  %v460_v35 = vadd.f32 %v963_v26, %v459_v22 }
  0xca   : > { %v402_v25 = vadd.f32 %v963_v26, %v401_v23  ;;  %v422_v27 = vadd.f32 %v963_v26, %v421_v24 }
  0xcb   : > { %v489_v42 = vmax.f32 %v440_v34, 0.0  ;;  %v497_v43 = vmax.f32 %v460_v35, 0.0 }
  0xcc   : > { %v474_v30 = vmax.f32 %v402_v25, 0.0  ;;  %v482_v31 = vmax.f32 %v422_v27, 0.0 }
  0xce   : > { %v761_v32 = vpack.c.bf16 %v474_v30, %v473_v28  ;;  %v781_v33 = vpack.c.bf16 %v482_v31, %v481_v29 }
  0xd0   : > { %829 = vst [vmem:[%s974_s6 + $0x10] sm:$0xff] %v761_v32   ;;  %v441_v36 = vpop.f32.mrf.mxu2  ;;  %v461_v37 = vpop.f32.mrf.mxu3 }
  0xd1   : > { %833 = vst [vmem:[%s974_s6 + $0x30] sm:$0xff] %v781_v33   ;;  %v442_v38 = vadd.f32 %v963_v26, %v441_v36  ;;  %v462_v39 = vadd.f32 %v963_v26, %v461_v37  ;;  %v404_v40 = vpop.f32.mrf.mxu0  ;;  %v424_v41 = vpop.f32.mrf.mxu1 }
  0xd2   : > { %v405_v48 = vadd.f32 %v963_v26, %v404_v40  ;;  %v425_v49 = vadd.f32 %v963_v26, %v424_v41 }
  0xd3   : > { %v490_v44 = vmax.f32 %v442_v38, 0.0  ;;  %v498_v45 = vmax.f32 %v462_v39, 0.0 }
  0xd4   : > { %v475_v56 = vmax.f32 %v405_v48, 0.0  ;;  %v483_v57 = vmax.f32 %v425_v49, 0.0 }
  0xd5   : > { %v801_v46 = vpack.c.bf16 %v490_v44, %v489_v42  ;;  %v821_v47 = vpack.c.bf16 %v498_v45, %v497_v43 }
  0xd7   : > { %837 = vst [vmem:[%s974_s6 + $0x50] sm:$0xff] %v801_v46  }
  0xd8   : > { %841 = vst [vmem:[%s974_s6 + $0x70] sm:$0xff] %v821_v47   ;;  %v444_v50 = vpop.f32.mrf.mxu2  ;;  %v464_v51 = vpop.f32.mrf.mxu3 }
  0xd9   : > { %v406_v52 = vpop.f32.mrf.mxu0  ;;  %v426_v53 = vpop.f32.mrf.mxu1  ;;  %v445_v62 = vadd.f32 %v963_v26, %v444_v50  ;;  %v465_v63 = vadd.f32 %v963_v26, %v464_v51 }
  0xda   : > { %v407_v54 = vadd.f32 %v963_v26, %v406_v52  ;;  %v427_v55 = vadd.f32 %v963_v26, %v426_v53 }
  0xdb   : > { %v491_v4 = vmax.f32 %v445_v62, 0.0  ;;  %v499_v5 = vmax.f32 %v465_v63, 0.0 }
  0xdc   : > { %v476_v58 = vmax.f32 %v407_v54, 0.0  ;;  %v484_v59 = vmax.f32 %v427_v55, 0.0 }
  0xde   : > { %v766_v60 = vpack.c.bf16 %v476_v58, %v475_v56  ;;  %v786_v61 = vpack.c.bf16 %v484_v59, %v483_v57 }
  0xe0   : > { %830 = vst [vmem:[%s974_s6 + $0x18] sm:$0xff] %v766_v60   ;;  %v446_v0 = vpop.f32.mrf.mxu2  ;;  %v466_v1 = vpop.f32.mrf.mxu3 }
  0xe1   : > { %834 = vst [vmem:[%s974_s6 + $0x38] sm:$0xff] %v786_v61   ;;  %v447_v2 = vadd.f32 %v963_v26, %v446_v0  ;;  %v467_v3 = vadd.f32 %v963_v26, %v466_v1 }
  0xe3   : > { %v492_v6 = vmax.f32 %v447_v2, 0.0  ;;  %v500_v7 = vmax.f32 %v467_v3, 0.0 }
  0xe5   : > { %v806_v8 = vpack.c.bf16 %v492_v6, %v491_v4  ;;  %v826_v9 = vpack.c.bf16 %v500_v7, %v499_v5 }
  0xe7   : > { %838 = vst [vmem:[%s974_s6 + $0x58] sm:$0xff] %v806_v8  }
  0xe8   : > { %842 = vst [vmem:[%s974_s6 + $0x78] sm:$0xff] %v826_v9  }
  0xe9 PF: > { %s13_s12 = sadd.s32 1, %s873_s12  }
  0xea   : > { %p10_p4 = scmp.ge.s32.totalorder %s13_s12, 4  }
  0xec   :  { %12 = sbr.rel (!%p10_p4) target bundleno = 1 (0x1), region = 62 }

// kernel: net_forward.6
= control target key start
LH: loop header
LB: loop body
LE: loop exit
PB: predicated region body
PF: predicated region fallthrough
CT: control target
= control target key end

     0   :  { %s3759_s12 = smov 0   ;;  %s4593_s0 = inlined_call_operand.vmem [shape: bf16[512,1152], index: 0, kind: input, shape index: {}]   ;;  %s4594_s1 = inlined_call_operand.vmem [shape: bf16[1152,128], index: 1, kind: input, shape index: {}]   ;;  %s4595_s2 = inlined_call_operand.vmem [shape: f32[1,128], index: 2, kind: input, shape index: {}]   ;;  %s4596_s3 = inlined_call_operand.vmem [shape: bf16[128,128], index: 3, kind: output, shape index: {}]  }
   0x1 LB: > { %s2582_s13 = sadd.s32 4294967295, %s3737_s12   ;;  %p2586_p0 = scmp.ge.s32.totalorder %s3737_s12, 1  ;;  %s3737_s12 = sphi %s3759_s12, %s13_s12  }
   0x2   : > { %p139_p1 = scmp.lt.s32.totalorder %s3737_s12, 3 }
   0x4   : > { %p140_p2 = pnand %p2586_p0, %p139_p1 }
   0x5   : > { %s2587_s20 = sshll.u32 (!%p140_p2), %s2582_s13, 5 }
   0x6   : > { %143 = sbr.rel (%p140_p2) target bundleno = 758 (0x2f6), region = 32  ;;  %p165_p3 = scmp.lt.s32.totalorder (!%p140_p2), %s2587_s20, 63 }
   0xb   : > { %v3608_v0 = vld [vmem:[%s4594_s1 + $0x38] sm:$0xff]  ;;  %v3607_v1 = vld [vmem:[%s4594_s1 + $0x30] sm:$0xff]  ;;  %v3606_v2 = vld [vmem:[%s4594_s1 + $0x28] sm:$0xff]  ;;  %s4598_s20 = smov (!%p165_p3, %s2587_s20), 63 }
   0xc   : > { %3696 = vmatpush.bf16.msra.mxu1 %v3608_v0  ;;  %3697 = vmatpush.bf16.msra.mxu2 %v3608_v0  ;;  %v3605_v3 = vld [vmem:[%s4594_s1 + $0x20] sm:$0xff]  ;;  %v3604_v4 = vld [vmem:[%s4594_s1 + $0x18] sm:$0xff]  ;;  %v3603_v5 = vld [vmem:[%s4594_s1 + $0x10] sm:$0xff]  ;;  %s3720_s27 = smul.u32 36, %s4598_s20 }
   0xd   : > { %3698 = vmatpush.bf16.msra.mxu3 %v3608_v0  ;;  %1653 = vmatpush.bf16.msra.mxu0 %v3608_v0  ;;  %v3602_v6 = vld [vmem:[%s4594_s1 + $0x8] sm:$0xff]  ;;  %v3601_v7 = vld [vmem:[%s4594_s1] sm:$0xff]  ;;  %v3624_v16 = vld [vmem:[%s4594_s1 + $0xb8] sm:$0xff] }
   0xe   : > { %s3793_s5 = scalar_lea.vmem %s4593_s0, %s3720_s27  ;;  %v3632_v17 = vld [vmem:[%s4594_s1 + $0xf8] sm:$0xff]  ;;  %v3623_v24 = vld [vmem:[%s4594_s1 + $0xb0] sm:$0xff]  ;;  %v3622_v28 = vld [vmem:[%s4594_s1 + $0xa8] sm:$0xff] }
   0xf   : > { %v2737_v8 = vld [vmem:[%s3793_s5 + $0x120] sm:$0xf]  ;;  %v3497_v9 = vld [vmem:[%s3793_s5 + $0x140] sm:$0xf0]  ;;  %v3616_v22 = vld [vmem:[%s4594_s1 + $0x78] sm:$0xff] }
  0x10   : > { %3699 = vmatpush.bf16.msra.mxu1 %v3607_v1  ;;  %3700 = vmatpush.bf16.msra.mxu2 %v3607_v1  ;;  %v2881_v10 = vld [vmem:[%s3793_s5 + $0x240] sm:$0xf]  ;;  %v3533_v11 = vld [vmem:[%s3793_s5 + $0x260] sm:$0xf0]  ;;  %v2738_v18 = vor.u32 %v3497_v9, %v2737_v8  ;;  %v3640_v23 = vld [vmem:[%s4594_s1 + $0x138] sm:$0xff] }
  0x11   : > { %3701 = vmatpush.bf16.msra.mxu3 %v3607_v1  ;;  %1654 = vmatpush.bf16.msra.mxu0 %v3607_v1  ;;  %v3025_v12 = vld [vmem:[%s3793_s5 + $0x360] sm:$0xf]  ;;  %v3569_v13 = vld [vmem:[%s3793_s5 + $0x380] sm:$0xf0]  ;;  %v2882_v19 = vor.u32 %v3533_v11, %v2881_v10  ;;  %v3631_v25 = vld [vmem:[%s4594_s1 + $0xf0] sm:$0xff] }
  0x12   : > { %v2593_v14 = vld [vmem:[%s3793_s5] sm:$0xf]  ;;  %v3461_v15 = vld [vmem:[%s3793_s5 + $0x20] sm:$0xf0]  ;;  %v3026_v20 = vor.u32 %v3569_v13, %v3025_v12  ;;  %v3615_v26 = vld [vmem:[%s4594_s1 + $0x70] sm:$0xff] }
  0x13   : > { %v2594_v21 = vor.u32 %v3461_v15, %v2593_v14  ;;  %v3639_v27 = vld [vmem:[%s4594_s1 + $0x130] sm:$0xff]  ;;  %v3630_v29 = vld [vmem:[%s4594_s1 + $0xe8] sm:$0xff]  ;;  %v3621_v33 = vld [vmem:[%s4594_s1 + $0xa0] sm:$0xff] }
  0x14   : > { %3702 = vmatpush.bf16.msra.mxu1 %v3606_v2  ;;  %3703 = vmatpush.bf16.msra.mxu2 %v3606_v2  ;;  %v3614_v30 = vld [vmem:[%s4594_s1 + $0x68] sm:$0xff]  ;;  %v3629_v34 = vld [vmem:[%s4594_s1 + $0xe0] sm:$0xff]  ;;  %v3620_v44 = vld [vmem:[%s4594_s1 + $0x98] sm:$0xff] }
  0x15   : > { %3704 = vmatpush.bf16.msra.mxu3 %v3606_v2  ;;  %1655 = vmatpush.bf16.msra.mxu0 %v3606_v2  ;;  %v3638_v31 = vld [vmem:[%s4594_s1 + $0x128] sm:$0xff]  ;;  %v3613_v42 = vld [vmem:[%s4594_s1 + $0x60] sm:$0xff]  ;;  %v3628_v45 = vld [vmem:[%s4594_s1 + $0xd8] sm:$0xff] }
  0x16   : > { %v2773_v32 = vld [vmem:[%s3793_s5 + $0x168] sm:$0xf]  ;;  %v3506_v35 = vld [vmem:[%s3793_s5 + $0x188] sm:$0xf0]  ;;  %v3637_v43 = vld [vmem:[%s4594_s1 + $0x120] sm:$0xff] }
  0x17   : > { %v2917_v36 = vld [vmem:[%s3793_s5 + $0x288] sm:$0xf]  ;;  %v3542_v37 = vld [vmem:[%s3793_s5 + $0x2a8] sm:$0xf0]  ;;  %v2774_v46 = vor.u32 %v3506_v35, %v2773_v32  ;;  %v3612_v50 = vld [vmem:[%s4594_s1 + $0x58] sm:$0xff] }
  0x18   : > { %3705 = vmatpush.bf16.msra.mxu1 %v3605_v3  ;;  %3706 = vmatpush.bf16.msra.mxu2 %v3605_v3  ;;  %v3061_v38 = vld [vmem:[%s3793_s5 + $0x3a8] sm:$0xf]  ;;  %v3578_v39 = vld [vmem:[%s3793_s5 + $0x3c8] sm:$0xf0]  ;;  %v2918_v47 = vor.u32 %v3542_v37, %v2917_v36  ;;  %v3636_v51 = vld [vmem:[%s4594_s1 + $0x118] sm:$0xff] }
  0x19   : > { %3707 = vmatpush.bf16.msra.mxu3 %v3605_v3  ;;  %1656 = vmatpush.bf16.msra.mxu0 %v3605_v3  ;;  %v2629_v40 = vld [vmem:[%s3793_s5 + $0x48] sm:$0xf]  ;;  %v3470_v41 = vld [vmem:[%s3793_s5 + $0x68] sm:$0xf0]  ;;  %v3062_v48 = vor.u32 %v3578_v39, %v3061_v38  ;;  %v3619_v52 = vld [vmem:[%s4594_s1 + $0x90] sm:$0xff] }
  0x1a   : > { %v2630_v49 = vor.u32 %v3470_v41, %v2629_v40  ;;  %v3627_v53 = vld [vmem:[%s4594_s1 + $0xd0] sm:$0xff]  ;;  %v3618_v56 = vld [vmem:[%s4594_s1 + $0x88] sm:$0xff]  ;;  %v3617_v61 = vld [vmem:[%s4594_s1 + $0x80] sm:$0xff] }
  0x1b   : > { %v3611_v54 = vld [vmem:[%s4594_s1 + $0x50] sm:$0xff]  ;;  %v3626_v57 = vld [vmem:[%s4594_s1 + $0xc8] sm:$0xff]  ;;  %v3625_v62 = vld [vmem:[%s4594_s1 + $0xc0] sm:$0xff] }
  0x1c   : > { %3708 = vmatpush.bf16.msra.mxu1 %v3604_v4  ;;  %3709 = vmatpush.bf16.msra.mxu2 %v3604_v4  ;;  %v3635_v55 = vld [vmem:[%s4594_s1 + $0x110] sm:$0xff]  ;;  %v3610_v58 = vld [vmem:[%s4594_s1 + $0x48] sm:$0xff]  ;;  %v3656_v12 = vld [vmem:[%s4594_s1 + $0x1b8] sm:$0xff] }
  0x1d   : > { %3710 = vmatpush.bf16.msra.mxu3 %v3604_v4  ;;  %1657 = vmatpush.bf16.msra.mxu0 %v3604_v4  ;;  %v3634_v59 = vld [vmem:[%s4594_s1 + $0x108] sm:$0xff]  ;;  %v2809_v60 = vld [vmem:[%s3793_s5 + $0x1b0] sm:$0xf]  ;;  %v3515_v63 = vld [vmem:[%s3793_s5 + $0x1d0] sm:$0xf0] }
  0x1e   : > { %v2953_v0 = vld [vmem:[%s3793_s5 + $0x2d0] sm:$0xf]  ;;  %v3551_v1 = vld [vmem:[%s3793_s5 + $0x2f0] sm:$0xf0]  ;;  %v2810_v8 = vor.u32 %v3515_v63, %v2809_v60  ;;  %v3664_v13 = vld [vmem:[%s4594_s1 + $0x1f8] sm:$0xff] }
  0x1f   : > { %v3097_v2 = vld [vmem:[%s3793_s5 + $0x3f0] sm:$0xf]  ;;  %v3587_v3 = vld [vmem:[%s3793_s5 + $0x410] sm:$0xf0]  ;;  %v2954_v9 = vor.u32 %v3551_v1, %v2953_v0  ;;  %v3648_v14 = vld [vmem:[%s4594_s1 + $0x178] sm:$0xff] }
  0x20   : > { %3711 = vmatpush.bf16.msra.mxu1 %v3603_v5  ;;  %3712 = vmatpush.bf16.msra.mxu2 %v3603_v5  ;;  %v2665_v4 = vld [vmem:[%s3793_s5 + $0x90] sm:$0xf]  ;;  %v3098_v10 = vor.u32 %v3587_v3, %v3097_v2  ;;  %v3672_v15 = vld [vmem:[%s4594_s1 + $0x238] sm:$0xff]  ;;  %v3458_v32 = vld [vmem:[%s3793_s5 + $0xc] sm:$0xf] }
  0x21   : > { %3713 = vmatpush.bf16.msra.mxu3 %v3603_v5  ;;  %1658 = vmatpush.bf16.msra.mxu0 %v3603_v5  ;;  %v3479_v5 = vld [vmem:[%s3793_s5 + $0xb0] sm:$0xf0]  ;;  %v3476_v60 = vld [vmem:[%s3793_s5 + $0x9c] sm:$0xf]  ;;  %v3481_v63 = vld [vmem:[%s3793_s5 + $0xc0] sm:$0xf0] }
  0x22   : > { %v2666_v11 = vor.u32 %v3479_v5, %v2665_v4  ;;  %v3463_v35 = vld [vmem:[%s3793_s5 + $0x30] sm:$0xf0]  ;;  %v3654_v4 = vld [vmem:[%s4594_s1 + $0x1a8] sm:$0xff] }
  0x23   : > { %v3655_v40 = vld [vmem:[%s4594_s1 + $0x1b0] sm:$0xff]  ;;  %v3662_v5 = vld [vmem:[%s4594_s1 + $0x1e8] sm:$0xff] }
  0x24   : > { %3714 = vmatpush.bf16.msra.mxu1 %v3602_v6  ;;  %3715 = vmatpush.bf16.msra.mxu2 %v3602_v6  ;;  %v3663_v41 = vld [vmem:[%s4594_s1 + $0x1f0] sm:$0xff] }
  0x25   : > { %3716 = vmatpush.bf16.msra.mxu3 %v3602_v6  ;;  %1659 = vmatpush.bf16.msra.mxu0 %v3602_v6  ;;  %v3609_v6 = vld [vmem:[%s4594_s1 + $0x40] sm:$0xff] }
  0x28   : > { %3717 = vmatpush.bf16.msra.mxu1 %v3601_v7  ;;  %3718 = vmatpush.bf16.msra.mxu2 %v3601_v7 }
  0x29   : > { %3719 = vmatpush.bf16.msra.mxu3 %v3601_v7  ;;  %1660 = vmatpush.bf16.msra.mxu0 %v3601_v7  ;;  %v3633_v7 = vld [vmem:[%s4594_s1 + $0x100] sm:$0xff] }
  0x2b   : > { %1681 = vmatmul.bf16.vlgmr.msra.gmra.mxu1 %v2738_v18  ;;  %1701 = vmatmul.bf16.vlgmr.msra.gmra.mxu2 %v2882_v19  ;;  %v2989_v18 = vld [vmem:[%s3793_s5 + $0x318] sm:$0xf]  ;;  %v3560_v19 = vld [vmem:[%s3793_s5 + $0x338] sm:$0xf0] }
  0x2c   : > { %1831 = vmatpush.bf16.msrb.mxu2 %v3624_v16  ;;  %1721 = vmatmul.bf16.vlgmr.msra.gmra.mxu3 %v3026_v20  ;;  %v2845_v16 = vld [vmem:[%s3793_s5 + $0x1f8] sm:$0xf] }
  0x2d   : > { %1920 = vmatpush.bf16.msrb.mxu3 %v3632_v17  ;;  %1661 = vmatmul.bf16.vlgmr.msra.gmra.mxu0 %v2594_v21  ;;  %v3524_v17 = vld [vmem:[%s3793_s5 + $0x218] sm:$0xf0]  ;;  %v3133_v20 = vld [vmem:[%s3793_s5 + $0x438] sm:$0xf] }
  0x2e   : > { %1742 = vmatpush.bf16.msrb.mxu1 %v3616_v22  ;;  %2009 = vmatpush.bf16.msrb.mxu0 %v3640_v23  ;;  %v3596_v21 = vld [vmem:[%s3793_s5 + $0x458] sm:$0xf0]  ;;  %v2701_v22 = vld [vmem:[%s3793_s5 + $0xd8] sm:$0xf] }
  0x2f   : > { %v3488_v23 = vld [vmem:[%s3793_s5 + $0xf8] sm:$0xf0] }
  0x30   : > { %1832 = vmatpush.bf16.msrb.mxu2 %v3623_v24  ;;  %v2846_v24 = vor.u32 %v3524_v17, %v2845_v16 }
  0x31   : > { %1921 = vmatpush.bf16.msrb.mxu3 %v3631_v25  ;;  %v2990_v25 = vor.u32 %v3560_v19, %v2989_v18 }
  0x32   : > { %1743 = vmatpush.bf16.msrb.mxu1 %v3615_v26  ;;  %2010 = vmatpush.bf16.msrb.mxu0 %v3639_v27  ;;  %v3134_v26 = vor.u32 %v3596_v21, %v3133_v20  ;;  %v2702_v27 = vor.u32 %v3488_v23, %v2701_v22  ;;  %v3493_v20 = vld [vmem:[%s3793_s5 + $0x124] sm:$0xf]  ;;  %v2739_v21 = vld [vmem:[%s3793_s5 + $0x144] sm:$0xf0]  ;;  %v3498_v23 = vld [vmem:[%s3793_s5 + $0x148] sm:$0xf0] }
  0x33   : > { %v2745_v22 = vld [vmem:[%s3793_s5 + $0x128] sm:$0xf] }
  0x34   : > { %1833 = vmatpush.bf16.msrb.mxu2 %v3622_v28  ;;  %v3457_v28 = vld [vmem:[%s3793_s5 + $0x4] sm:$0xf] }
  0x35   : > { %1922 = vmatpush.bf16.msrb.mxu3 %v3630_v29  ;;  %v2595_v29 = vld [vmem:[%s3793_s5 + $0x24] sm:$0xf0] }
  0x36   : > { %1744 = vmatpush.bf16.msrb.mxu1 %v3614_v30  ;;  %2011 = vmatpush.bf16.msrb.mxu0 %v3638_v31  ;;  %v2601_v30 = vld [vmem:[%s3793_s5 + $0x8] sm:$0xf]  ;;  %v3462_v31 = vld [vmem:[%s3793_s5 + $0x28] sm:$0xf0]  ;;  %v2598_v36 = vor.u32 %v3457_v28, %v2595_v29  ;;  %v2742_v28 = vor.u32 %v3493_v20, %v2739_v21  ;;  %v2746_v29 = vor.u32 %v3498_v23, %v2745_v22  ;;  %v3644_v20 = vld [vmem:[%s4594_s1 + $0x158] sm:$0xff] }
  0x37   : > { %v2602_v37 = vor.u32 %v3462_v31, %v2601_v30  ;;  %v3668_v21 = vld [vmem:[%s4594_s1 + $0x218] sm:$0xff]  ;;  %v2847_v23 = vld [vmem:[%s3793_s5 + $0x21c] sm:$0xf0] }
  0x38   : > { %1834 = vmatpush.bf16.msrb.mxu2 %v3621_v33  ;;  %v2603_v33 = vld [vmem:[%s3793_s5 + $0x2c] sm:$0xf0]  ;;  %v3520_v22 = vld [vmem:[%s3793_s5 + $0x1fc] sm:$0xf] }
  0x39   : > { %1923 = vmatpush.bf16.msrb.mxu3 %v3629_v34  ;;  %v2609_v34 = vld [vmem:[%s3793_s5 + $0x10] sm:$0xf]  ;;  %v2606_v38 = vor.u32 %v3458_v32, %v2603_v33 }
  0x3a   : > { %1745 = vmatpush.bf16.msrb.mxu1 %v3613_v42  ;;  %2012 = vmatpush.bf16.msrb.mxu0 %v3637_v43  ;;  %v2610_v39 = vor.u32 %v3463_v35, %v2609_v34  ;;  %v3647_v42 = vld [vmem:[%s4594_s1 + $0x170] sm:$0xff]  ;;  %v3653_v34 = vld [vmem:[%s4594_s1 + $0x1a0] sm:$0xff] }
  0x3b   : > { %1686 = vmatmul.bf16.gmra.mxu1 %v2774_v46  ;;  %1706 = vmatmul.bf16.gmra.mxu2 %v2918_v47  ;;  %v3671_v43 = vld [vmem:[%s4594_s1 + $0x230] sm:$0xff]  ;;  %v3661_v35 = vld [vmem:[%s4594_s1 + $0x1e0] sm:$0xff] }
  0x3c   : > { %1835 = vmatpush.bf16.msrb.mxu2 %v3620_v44  ;;  %1726 = vmatmul.bf16.gmra.mxu3 %v3062_v48  ;;  %v3466_v44 = vld [vmem:[%s3793_s5 + $0x4c] sm:$0xf]  ;;  %v2637_v46 = vld [vmem:[%s3793_s5 + $0x50] sm:$0xf]  ;;  %v3471_v47 = vld [vmem:[%s3793_s5 + $0x70] sm:$0xf0] }
  0x3d   : > { %1924 = vmatpush.bf16.msrb.mxu3 %v3628_v45  ;;  %1666 = vmatmul.bf16.gmra.mxu0 %v2630_v49  ;;  %v2631_v45 = vld [vmem:[%s3793_s5 + $0x6c] sm:$0xf0]  ;;  %v3467_v48 = vld [vmem:[%s3793_s5 + $0x54] sm:$0xf]  ;;  %v2639_v49 = vld [vmem:[%s3793_s5 + $0x74] sm:$0xf0] }
  0x3e   : > { %1746 = vmatpush.bf16.msrb.mxu1 %v3612_v50  ;;  %2013 = vmatpush.bf16.msrb.mxu0 %v3636_v51  ;;  %v2645_v50 = vld [vmem:[%s3793_s5 + $0x58] sm:$0xf]  ;;  %v3472_v51 = vld [vmem:[%s3793_s5 + $0x78] sm:$0xf0] }
  0x40   : > { %1836 = vmatpush.bf16.msrb.mxu2 %v3619_v52  ;;  %v2634_v52 = vor.u32 %v3466_v44, %v2631_v45  ;;  %v2781_v44 = vld [vmem:[%s3793_s5 + $0x170] sm:$0xf]  ;;  %v3507_v45 = vld [vmem:[%s3793_s5 + $0x190] sm:$0xf0] }
  0x41   : > { %1925 = vmatpush.bf16.msrb.mxu3 %v3627_v53  ;;  %v2638_v53 = vor.u32 %v3471_v47, %v2637_v46  ;;  %v3503_v46 = vld [vmem:[%s3793_s5 + $0x174] sm:$0xf]  ;;  %v2783_v47 = vld [vmem:[%s3793_s5 + $0x194] sm:$0xf0] }
  0x42   : > { %1747 = vmatpush.bf16.msrb.mxu1 %v3611_v54  ;;  %2014 = vmatpush.bf16.msrb.mxu0 %v3635_v55  ;;  %v2642_v54 = vor.u32 %v3467_v48, %v2639_v49  ;;  %v2646_v55 = vor.u32 %v3472_v51, %v2645_v50  ;;  %v2789_v48 = vld [vmem:[%s3793_s5 + $0x178] sm:$0xf]  ;;  %v3508_v49 = vld [vmem:[%s3793_s5 + $0x198] sm:$0xf0] }
  0x44   : > { %1837 = vmatpush.bf16.msrb.mxu2 %v3618_v56  ;;  %v3475_v56 = vld [vmem:[%s3793_s5 + $0x94] sm:$0xf] }
  0x45   : > { %1926 = vmatpush.bf16.msrb.mxu3 %v3626_v57  ;;  %v2667_v57 = vld [vmem:[%s3793_s5 + $0xb4] sm:$0xf0] }
  0x46   : > { %1748 = vmatpush.bf16.msrb.mxu1 %v3610_v58  ;;  %2015 = vmatpush.bf16.msrb.mxu0 %v3634_v59  ;;  %v2673_v58 = vld [vmem:[%s3793_s5 + $0x98] sm:$0xf]  ;;  %v3480_v59 = vld [vmem:[%s3793_s5 + $0xb8] sm:$0xf0]  ;;  %v2670_v0 = vor.u32 %v3475_v56, %v2667_v57  ;;  %v2790_v56 = vor.u32 %v3508_v49, %v2789_v48  ;;  %v4113_v48 = vld [vmem:[%s4595_s2] ss:$0 sm:$0xff] }
  0x47   : > { %v2674_v1 = vor.u32 %v3480_v59, %v2673_v58  ;;  %v3529_v49 = vld [vmem:[%s3793_s5 + $0x244] sm:$0xf] }
  0x48   : > { %1838 = vmatpush.bf16.msrb.mxu2 %v3617_v61  ;;  %v2675_v61 = vld [vmem:[%s3793_s5 + $0xbc] sm:$0xf0] }
  0x49   : > { %1927 = vmatpush.bf16.msrb.mxu3 %v3625_v62  ;;  %v2681_v62 = vld [vmem:[%s3793_s5 + $0xa0] sm:$0xf]  ;;  %v2678_v2 = vor.u32 %v3476_v60, %v2675_v61 }
  0x4a   : > { %1749 = vmatpush.bf16.msrb.mxu1 %v3609_v6  ;;  %2016 = vmatpush.bf16.msrb.mxu0 %v3633_v7  ;;  %v2682_v3 = vor.u32 %v3481_v63, %v2681_v62  ;;  %v3646_v6 = vld [vmem:[%s4594_s1 + $0x168] sm:$0xff]  ;;  %v3511_v62 = vld [vmem:[%s3793_s5 + $0x1b4] sm:$0xf]  ;;  %v2811_v63 = vld [vmem:[%s3793_s5 + $0x1d4] sm:$0xf0] }
  0x4b   : > { %1691 = vmatmul.bf16.gmra.mxu1 %v2810_v8  ;;  %1711 = vmatmul.bf16.gmra.mxu2 %v2954_v9  ;;  %v3670_v7 = vld [vmem:[%s4594_s1 + $0x228] sm:$0xff]  ;;  %v3484_v8 = vld [vmem:[%s3793_s5 + $0xdc] sm:$0xf]  ;;  %v2703_v9 = vld [vmem:[%s3793_s5 + $0xfc] sm:$0xf0] }
  0x4c   : > { %1731 = vmatmul.bf16.gmra.mxu3 %v3098_v10  ;;  %2187 = vmatpush.bf16.msra.mxu2 %v3656_v12  ;;  %v2709_v10 = vld [vmem:[%s3793_s5 + $0xe0] sm:$0xf]  ;;  %v3485_v12 = vld [vmem:[%s3793_s5 + $0xe4] sm:$0xf]  ;;  %v2706_v16 = vor.u32 %v3484_v8, %v2703_v9  ;;  %v2814_v8 = vor.u32 %v3511_v62, %v2811_v63  ;;  %v2891_v62 = vld [vmem:[%s3793_s5 + $0x26c] sm:$0xf0] }
  0x4d   : > { %1671 = vmatmul.bf16.gmra.mxu0 %v2666_v11  ;;  %2276 = vmatpush.bf16.msra.mxu3 %v3664_v13  ;;  %v3489_v11 = vld [vmem:[%s3793_s5 + $0x100] sm:$0xf0]  ;;  %v2711_v13 = vld [vmem:[%s3793_s5 + $0x104] sm:$0xf0]  ;;  %v2897_v63 = vld [vmem:[%s3793_s5 + $0x250] sm:$0xf] }
  0x4e   : > { %2098 = vmatpush.bf16.msra.mxu1 %v3648_v14  ;;  %2365 = vmatpush.bf16.msra.mxu0 %v3672_v15  ;;  %v2717_v14 = vld [vmem:[%s3793_s5 + $0xe8] sm:$0xf]  ;;  %v3490_v15 = vld [vmem:[%s3793_s5 + $0x108] sm:$0xf0]  ;;  %v2710_v17 = vor.u32 %v3489_v11, %v2709_v10  ;;  %v2714_v18 = vor.u32 %v3485_v12, %v2711_v13 }
  0x4f   : > { %v2718_v19 = vor.u32 %v3490_v15, %v2717_v14  ;;  %v3652_v14 = vld [vmem:[%s4594_s1 + $0x198] sm:$0xff] }
  0x50   : > { %2188 = vmatpush.bf16.msra.mxu2 %v3655_v40  ;;  %v3660_v15 = vld [vmem:[%s4594_s1 + $0x1d8] sm:$0xff] }
  0x51   : > { %2277 = vmatpush.bf16.msra.mxu3 %v3663_v41  ;;  %v3669_v41 = vld [vmem:[%s4594_s1 + $0x220] sm:$0xff] }
  0x52   : > { %2099 = vmatpush.bf16.msra.mxu1 %v3647_v42  ;;  %2366 = vmatpush.bf16.msra.mxu0 %v3671_v43  ;;  %v3502_v42 = vld [vmem:[%s3793_s5 + $0x16c] sm:$0xf]  ;;  %v2775_v43 = vld [vmem:[%s3793_s5 + $0x18c] sm:$0xf0] }
  0x54   : > { %2189 = vmatpush.bf16.msra.mxu2 %v3654_v4  ;;  %v2825_v4 = vld [vmem:[%s3793_s5 + $0x1c0] sm:$0xf] }
  0x55   : > { %2278 = vmatpush.bf16.msra.mxu3 %v3662_v5  ;;  %v3517_v5 = vld [vmem:[%s3793_s5 + $0x1e0] sm:$0xf0] }
  0x56   : > { %2100 = vmatpush.bf16.msra.mxu1 %v3646_v6  ;;  %2367 = vmatpush.bf16.msra.mxu0 %v3670_v7  ;;  %v2826_v12 = vor.u32 %v3517_v5, %v2825_v4 }
  0x58   : > { %2190 = vmatpush.bf16.msra.mxu2 %v3653_v34  ;;  %v2850_v34 = vor.u32 %v3520_v22, %v2847_v23 }
  0x59   : > { %2279 = vmatpush.bf16.msra.mxu3 %v3661_v35 }
  0x5a   : > { %2368 = vmatpush.bf16.msra.mxu0 %v3669_v41 }
  0x5b   : > { %1696 = vmatmul.bf16.gmra.mxu1 %v2846_v24  ;;  %1716 = vmatmul.bf16.gmra.mxu2 %v2990_v25  ;;  %v3494_v24 = vld [vmem:[%s3793_s5 + $0x12c] sm:$0xf]  ;;  %v2747_v25 = vld [vmem:[%s3793_s5 + $0x14c] sm:$0xf0] }
  0x5c   : > { %1736 = vmatmul.bf16.gmra.mxu3 %v3134_v26  ;;  %v2753_v26 = vld [vmem:[%s3793_s5 + $0x130] sm:$0xf]  ;;  %v2750_v31 = vor.u32 %v3494_v24, %v2747_v25  ;;  %2191 = vmatpush.bf16.msra.mxu2 %v3652_v14  ;;  %v2853_v24 = vld [vmem:[%s3793_s5 + $0x200] sm:$0xf]  ;;  %v3525_v25 = vld [vmem:[%s3793_s5 + $0x220] sm:$0xf0] }
  0x5d   : > { %1676 = vmatmul.bf16.gmra.mxu0 %v2702_v27  ;;  %v3499_v27 = vld [vmem:[%s3793_s5 + $0x150] sm:$0xf0]  ;;  %2280 = vmatpush.bf16.msra.mxu3 %v3660_v15  ;;  %v2854_v35 = vor.u32 %v3525_v25, %v2853_v24 }
  0x5e   : > { %v2754_v32 = vor.u32 %v3499_v27, %v2753_v26  ;;  %2369 = vmatpush.bf16.msra.mxu0 %v3668_v21  ;;  %v3521_v26 = vld [vmem:[%s3793_s5 + $0x204] sm:$0xf]  ;;  %v2855_v27 = vld [vmem:[%s3793_s5 + $0x224] sm:$0xf0]  ;;  %v3651_v15 = vld [vmem:[%s4594_s1 + $0x190] sm:$0xff] }
  0x5f   : > { %v2858_v41 = vor.u32 %v3521_v26, %v2855_v27 }
  0x60   : > { %2192 = vmatpush.bf16.msra.mxu2 %v3651_v15 }
  0x6b   : > { %1750 = vmatmul.bf16.vlgmr.msrb.gmra.mxu1 %v2598_v36  ;;  %1839 = vmatmul.bf16.vlgmr.msrb.gmra.mxu2 %v2602_v37 }
  0x6c   : > { %1928 = vmatmul.bf16.vlgmr.msrb.gmra.mxu3 %v2606_v38 }
  0x6d   : > { %2017 = vmatmul.bf16.vlgmr.msrb.gmra.mxu0 %v2610_v39  ;;  %v3645_v39 = vld [vmem:[%s4594_s1 + $0x160] sm:$0xff] }
  0x6e   : > { %2101 = vmatpush.bf16.msra.mxu1 %v3645_v39 }
  0x72   : > { %2102 = vmatpush.bf16.msra.mxu1 %v3644_v20 }
  0x7b   : > { %1755 = vmatmul.bf16.gmra.mxu1 %v2634_v52  ;;  %1844 = vmatmul.bf16.gmra.mxu2 %v2638_v53  ;;  %v2778_v52 = vor.u32 %v3502_v42, %v2775_v43  ;;  %v2782_v53 = vor.u32 %v3507_v45, %v2781_v44 }
  0x7c   : > { %1933 = vmatmul.bf16.gmra.mxu3 %v2642_v54 }
  0x7d   : > { %2022 = vmatmul.bf16.gmra.mxu0 %v2646_v55  ;;  %v2786_v55 = vor.u32 %v3503_v46, %v2783_v47 }
  0x8b   : > { %1760 = vmatmul.bf16.gmra.mxu1 %v2670_v0  ;;  %1849 = vmatmul.bf16.gmra.mxu2 %v2674_v1  ;;  %v2817_v0 = vld [vmem:[%s3793_s5 + $0x1b8] sm:$0xf]  ;;  %v3516_v1 = vld [vmem:[%s3793_s5 + $0x1d8] sm:$0xf0] }
  0x8c   : > { %1938 = vmatmul.bf16.gmra.mxu3 %v2678_v2  ;;  %v3512_v2 = vld [vmem:[%s3793_s5 + $0x1bc] sm:$0xf]  ;;  %v2818_v9 = vor.u32 %v3516_v1, %v2817_v0  ;;  %v3535_v0 = vld [vmem:[%s3793_s5 + $0x270] sm:$0xf0] }
  0x8d   : > { %2027 = vmatmul.bf16.gmra.mxu0 %v2682_v3  ;;  %v2819_v3 = vld [vmem:[%s3793_s5 + $0x1dc] sm:$0xf0] }
  0x8e   : > { %v2822_v11 = vor.u32 %v3512_v2, %v2819_v3 }
  0x9b   : > { %1765 = vmatmul.bf16.gmra.mxu1 %v2706_v16  ;;  %1854 = vmatmul.bf16.gmra.mxu2 %v2710_v17 }
  0x9c   : > { %1943 = vmatmul.bf16.gmra.mxu3 %v2714_v18 }
  0x9d   : > { %2032 = vmatmul.bf16.gmra.mxu0 %v2718_v19 }
  0xa8   : > { %v4002_v30 = vpop.f32.mrf.mxu1 }
  0xaa   : > { %v4004_v33 = vpop.f32.mrf.mxu0 }
  0xab   : > { %1770 = vmatmul.bf16.gmra.mxu1 %v2742_v28  ;;  %1859 = vmatmul.bf16.gmra.mxu2 %v2746_v29  ;;  %v2861_v28 = vld [vmem:[%s3793_s5 + $0x208] sm:$0xf]  ;;  %v3526_v29 = vld [vmem:[%s3793_s5 + $0x228] sm:$0xf0]  ;;  %v1663_v2 = vadd.f32 %v4113_v48, %v4004_v33  ;;  %v3659_v33 = vld [vmem:[%s4594_s1 + $0x1d0] sm:$0xff] }
  0xac   : > { %1948 = vmatmul.bf16.gmra.mxu3 %v2750_v31  ;;  %v2862_v42 = vor.u32 %v3526_v29, %v2861_v28  ;;  %v3643_v28 = vld [vmem:[%s4594_s1 + $0x150] sm:$0xff] }
  0xad   : > { %2037 = vmatmul.bf16.gmra.mxu0 %v2754_v32  ;;  %2281 = vmatpush.bf16.msra.mxu3 %v3659_v33  ;;  %v3667_v29 = vld [vmem:[%s4594_s1 + $0x210] sm:$0xff] }
  0xae   : > { %v4012_v36 = vpop.f32.mrf.mxu2  ;;  %2103 = vmatpush.bf16.msra.mxu1 %v3643_v28  ;;  %2370 = vmatpush.bf16.msra.mxu0 %v3667_v29  ;;  %v2955_v28 = vld [vmem:[%s3793_s5 + $0x2f4] sm:$0xf0] }
  0xaf   : > { %v4014_v37 = vpop.f32.mrf.mxu3  ;;  %v2961_v29 = vld [vmem:[%s3793_s5 + $0x2d8] sm:$0xf] }
  0xb0   : > { %v4016_v38 = vpop.f32.mrf.mxu1 }
  0xb2   : > { %v4021_v40 = vpop.f32.mrf.mxu0 }
  0xb3   : > { %v1665_v21 = vadd.f32 %v4113_v48, %v4021_v40  ;;  %v2919_v40 = vld [vmem:[%s3793_s5 + $0x2ac] sm:$0xf0] }
  0xb6   : > { %v4034_v50 = vpop.f32.mrf.mxu2 }
  0xb7   : > { %v4036_v51 = vpop.f32.mrf.mxu3 }
  0xb8   : > { %v4038_v54 = vpop.f32.mrf.mxu1 }
  0xba   : > { %v4040_v57 = vpop.f32.mrf.mxu0 }
  0xbb   : > { %1775 = vmatmul.bf16.gmra.mxu1 %v2778_v52  ;;  %1864 = vmatmul.bf16.gmra.mxu2 %v2782_v53  ;;  %v2883_v52 = vld [vmem:[%s3793_s5 + $0x264] sm:$0xf0] }
  0xbc   : > { %1953 = vmatmul.bf16.gmra.mxu3 %v2786_v55  ;;  %v2889_v53 = vld [vmem:[%s3793_s5 + $0x248] sm:$0xf]  ;;  %v3534_v55 = vld [vmem:[%s3793_s5 + $0x268] sm:$0xf0]  ;;  %v2886_v4 = vor.u32 %v3529_v49, %v2883_v52  ;;  %v3539_v49 = vld [vmem:[%s3793_s5 + $0x294] sm:$0xf] }
  0xbd   : > { %2042 = vmatmul.bf16.gmra.mxu0 %v2790_v56  ;;  %v3530_v56 = vld [vmem:[%s3793_s5 + $0x24c] sm:$0xf]  ;;  %v2890_v5 = vor.u32 %v3534_v55, %v2889_v53  ;;  %v2927_v52 = vld [vmem:[%s3793_s5 + $0x2b4] sm:$0xf0]  ;;  %v3544_v55 = vld [vmem:[%s3793_s5 + $0x2b8] sm:$0xf0] }
  0xbe   : > { %v4042_v58 = vpop.f32.mrf.mxu2  ;;  %v2933_v53 = vld [vmem:[%s3793_s5 + $0x298] sm:$0xf] }
  0xbf   : > { %v4044_v59 = vpop.f32.mrf.mxu3 }
  0xc0   : > { %v4046_v60 = vpop.f32.mrf.mxu1 }
  0xc2   : > { %v4048_v61 = vpop.f32.mrf.mxu0 }
  0xc3   : > { %v1670_v33 = vadd.f32 %v4113_v48, %v4048_v61 }
  0xc6   : > { %v4058_v6 = vpop.f32.mrf.mxu2 }
  0xc7   : > { %v4060_v7 = vpop.f32.mrf.mxu3 }
  0xc8   : > { %v4062_v10 = vpop.f32.mrf.mxu1 }
  0xca   : > { %v4064_v13 = vpop.f32.mrf.mxu0 }
  0xcb   : > { %1780 = vmatmul.bf16.gmra.mxu1 %v2814_v8  ;;  %1869 = vmatmul.bf16.gmra.mxu2 %v2818_v9  ;;  %v2894_v9 = vor.u32 %v3530_v56, %v2891_v62  ;;  %v1668_v62 = vadd.f32 %v4113_v48, %v4040_v57  ;;  %v1673_v61 = vadd.f32 %v4113_v48, %v4064_v13  ;;  %v3650_v13 = vld [vmem:[%s4594_s1 + $0x188] sm:$0xff] }
  0xcc   : > { %1958 = vmatmul.bf16.gmra.mxu3 %v2822_v11  ;;  %v2898_v11 = vor.u32 %v3535_v0, %v2897_v63  ;;  %2193 = vmatpush.bf16.msra.mxu2 %v3650_v13 }
  0xcd   : > { %2047 = vmatmul.bf16.gmra.mxu0 %v2826_v12 }
  0xce   : > { %v4072_v16 = vpop.f32.mrf.mxu2 }
  0xcf   : > { %v4074_v17 = vpop.f32.mrf.mxu3 }
  0xd0   : > { %v4076_v18 = vpop.f32.mrf.mxu1 }
  0xd2   : > { %v4078_v19 = vpop.f32.mrf.mxu0 }
  0xd6   : > { %v4094_v31 = vpop.f32.mrf.mxu2 }
  0xd7   : > { %v4096_v32 = vpop.f32.mrf.mxu3 }
  0xd8   : > { %v4098_v39 = vpop.f32.mrf.mxu1 }
  0xda   : > { %v4100_v43 = vpop.f32.mrf.mxu0 }
  0xdb   : > { %1785 = vmatmul.bf16.gmra.mxu1 %v2850_v34  ;;  %1874 = vmatmul.bf16.gmra.mxu2 %v2854_v35  ;;  %v3538_v34 = vld [vmem:[%s3793_s5 + $0x28c] sm:$0xf] }
  0xdc   : > { %1963 = vmatmul.bf16.gmra.mxu3 %v2858_v41  ;;  %v2925_v41 = vld [vmem:[%s3793_s5 + $0x290] sm:$0xf] }
  0xdd   : > { %2052 = vmatmul.bf16.gmra.mxu0 %v2862_v42  ;;  %v3543_v42 = vld [vmem:[%s3793_s5 + $0x2b0] sm:$0xf0] }
  0xde   : > { %v4102_v44 = vpop.f32.mrf.mxu2 }
  0xdf   : > { %v4104_v45 = vpop.f32.mrf.mxu3 }
  0xe0   : > { %v4106_v46 = vpop.f32.mrf.mxu1 }
  0xe2   : > { %v4108_v47 = vpop.f32.mrf.mxu0 }
  0xe6   : > { %v4123_v1 = vpop.f32.mrf.mxu2 }
  0xe7   : > { %v4127_v3 = vpop.f32.mrf.mxu3 }
  0xe8   : > { %v1751_v8 = vpop.f32.mrf.mxu1 }
  0xe9   : > { %v1752_v12 = vadd.f32 %v1751_v8, %v1663_v2  ;;  %v2922_v2 = vor.u32 %v3538_v34, %v2919_v40  ;;  %v2930_v8 = vor.u32 %v3539_v49, %v2927_v52  ;;  %v3552_v34 = vld [vmem:[%s3793_s5 + $0x2f8] sm:$0xf0]  ;;  %v3553_v49 = vld [vmem:[%s3793_s5 + $0x300] sm:$0xf0] }
  0xea   : > { %v2018_v14 = vpop.f32.mrf.mxu0  ;;  %v3548_v40 = vld [vmem:[%s3793_s5 + $0x2dc] sm:$0xf] }
  0xeb   : > { %1790 = vmatmul.bf16.gmra.mxu1 %v2886_v4  ;;  %1879 = vmatmul.bf16.gmra.mxu2 %v2890_v5  ;;  %v2926_v4 = vor.u32 %v3543_v42, %v2925_v41  ;;  %v2963_v41 = vld [vmem:[%s3793_s5 + $0x2fc] sm:$0xf0] }
  0xec   : > { %1968 = vmatmul.bf16.gmra.mxu3 %v2894_v9  ;;  %v2934_v9 = vor.u32 %v3544_v55, %v2933_v53  ;;  %v2969_v42 = vld [vmem:[%s3793_s5 + $0x2e0] sm:$0xf] }
  0xed   : > { %2057 = vmatmul.bf16.gmra.mxu0 %v2898_v11 }
  0xee   : > { %v1840_v20 = vpop.f32.mrf.mxu2 }
  0xef   : > { %v1841_v22 = vadd.f32 %v1840_v20, %v1752_v12  ;;  %v1929_v23 = vpop.f32.mrf.mxu3 }
  0xf0   : > { %v1753_v24 = vpop.f32.mrf.mxu1 }
  0xf1   : > { %v1930_v25 = vadd.f32 %v1929_v23, %v1841_v22  ;;  %v1754_v26 = vadd.f32 %v1753_v24, %v1665_v21 }
  0xf2   : > { %v2020_v27 = vpop.f32.mrf.mxu0 }
  0xf3   : > { %v4145_v35 = vadd.f32 %v2018_v14, %v1930_v25 }
  0xf6   : > { %v1842_v56 = vpop.f32.mrf.mxu2 }
  0xf7   : > { %v1843_v63 = vadd.f32 %v1842_v56, %v1754_v26  ;;  %v1931_v0 = vpop.f32.mrf.mxu3  ;;  %v3547_v26 = vld [vmem:[%s3793_s5 + $0x2d4] sm:$0xf] }
  0xf8   : > { %v1756_v5 = vpop.f32.mrf.mxu1  ;;  %v2958_v56 = vor.u32 %v3547_v26, %v2955_v28  ;;  %v3556_v26 = vld [vmem:[%s3793_s5 + $0x31c] sm:$0xf] }
  0xf9   : > { %v1932_v11 = vadd.f32 %v1931_v0, %v1843_v63  ;;  %v1757_v12 = vadd.f32 %v1756_v5, %v1668_v62  ;;  %v2962_v62 = vor.u32 %v3552_v34, %v2961_v29  ;;  %v2966_v0 = vor.u32 %v3548_v40, %v2963_v41  ;;  %v2997_v29 = vld [vmem:[%s3793_s5 + $0x320] sm:$0xf]  ;;  %v3561_v34 = vld [vmem:[%s3793_s5 + $0x340] sm:$0xf0]  ;;  %v2999_v41 = vld [vmem:[%s3793_s5 + $0x344] sm:$0xf0] }
  0xfa   : > { %v2023_v14 = vpop.f32.mrf.mxu0  ;;  %v3557_v40 = vld [vmem:[%s3793_s5 + $0x324] sm:$0xf] }
  0xfb   : > { %1795 = vmatmul.bf16.gmra.mxu1 %v2922_v2  ;;  %1884 = vmatmul.bf16.gmra.mxu2 %v2926_v4  ;;  %v4155_v15 = vadd.f32 %v2020_v27, %v1932_v11  ;;  %v2970_v2 = vor.u32 %v3553_v49, %v2969_v42  ;;  %v3658_v11 = vld [vmem:[%s4594_s1 + $0x1c8] sm:$0xff] }
  0xfc   : > { %1973 = vmatmul.bf16.gmra.mxu3 %v2930_v8  ;;  %v3005_v42 = vld [vmem:[%s3793_s5 + $0x328] sm:$0xf]  ;;  %v3562_v49 = vld [vmem:[%s3793_s5 + $0x348] sm:$0xf0] }
  0xfd   : > { %2062 = vmatmul.bf16.gmra.mxu0 %v2934_v9  ;;  %2282 = vmatpush.bf16.msra.mxu3 %v3658_v11  ;;  %v1680_v11 = vadd.f32 %v4113_v48, %v4108_v47  ;;  %v1683_v47 = vadd.f32 %v4113_v48, %v4002_v30  ;;  %v3649_v30 = vld [vmem:[%s4594_s1 + $0x180] sm:$0xff] }
  0xfe   : > { %v1845_v57 = vpop.f32.mrf.mxu2  ;;  %2194 = vmatpush.bf16.msra.mxu2 %v3649_v30 }
  0xff   : > { %v1846_v20 = vadd.f32 %v1845_v57, %v1757_v12  ;;  %v1934_v21 = vpop.f32.mrf.mxu3 }
 0x100   : > { %v1758_v22 = vpop.f32.mrf.mxu1 }
 0x101   : > { %v1935_v23 = vadd.f32 %v1934_v21, %v1846_v20  ;;  %v1759_v24 = vadd.f32 %v1758_v22, %v1670_v33 }
 0x102   : > { %v2025_v25 = vpop.f32.mrf.mxu0 }
 0x103   : > { %v4161_v27 = vadd.f32 %v2023_v14, %v1935_v23  ;;  %v1675_v14 = vadd.f32 %v4113_v48, %v4078_v19  ;;  %v2991_v19 = vld [vmem:[%s3793_s5 + $0x33c] sm:$0xf0] }
 0x106   : > { %v1847_v52 = vpop.f32.mrf.mxu2 }
 0x107   : > { %v1848_v53 = vadd.f32 %v1847_v52, %v1759_v24  ;;  %v1936_v55 = vpop.f32.mrf.mxu3  ;;  %v3642_v24 = vld [vmem:[%s4594_s1 + $0x148] sm:$0xff] }
 0x108   : > { %v1761_v63 = vpop.f32.mrf.mxu1  ;;  %2104 = vmatpush.bf16.msra.mxu1 %v3642_v24  ;;  %v3027_v24 = vld [vmem:[%s3793_s5 + $0x384] sm:$0xf0] }
 0x109   : > { %v1937_v4 = vadd.f32 %v1936_v55, %v1848_v53  ;;  %v1762_v5 = vadd.f32 %v1761_v63, %v1673_v61  ;;  %v1678_v61 = vadd.f32 %v4113_v48, %v4100_v43 }
 0x10a   : > { %v2028_v8 = vpop.f32.mrf.mxu0 }
 0x10b   : > { %1800 = vmatmul.bf16.gmra.mxu1 %v2958_v56  ;;  %1889 = vmatmul.bf16.gmra.mxu2 %v2962_v62  ;;  %v4171_v9 = vadd.f32 %v2025_v25, %v1937_v4  ;;  %v3666_v25 = vld [vmem:[%s4594_s1 + $0x208] sm:$0xff]  ;;  %v2994_v56 = vor.u32 %v3556_v26, %v2991_v19  ;;  %v2998_v62 = vor.u32 %v3561_v34, %v2997_v29  ;;  %v3035_v29 = vld [vmem:[%s3793_s5 + $0x38c] sm:$0xf0] }
 0x10c   : > { %1978 = vmatmul.bf16.gmra.mxu3 %v2966_v0  ;;  %2371 = vmatpush.bf16.msra.mxu0 %v3666_v25  ;;  %v3002_v0 = vor.u32 %v3557_v40, %v2999_v41  ;;  %v3033_v25 = vld [vmem:[%s3793_s5 + $0x368] sm:$0xf]  ;;  %v3570_v26 = vld [vmem:[%s3793_s5 + $0x388] sm:$0xf0]  ;;  %v3041_v34 = vld [vmem:[%s3793_s5 + $0x370] sm:$0xf] }
 0x10d   : > { %2067 = vmatmul.bf16.gmra.mxu0 %v2970_v2  ;;  %v3006_v2 = vor.u32 %v3562_v49, %v3005_v42  ;;  %v3566_v19 = vld [vmem:[%s3793_s5 + $0x36c] sm:$0xf]  ;;  %v3571_v40 = vld [vmem:[%s3793_s5 + $0x390] sm:$0xf0] }
 0x10e   : > { %v1850_v12 = vpop.f32.mrf.mxu2 }
 0x10f   : > { %v1851_v57 = vadd.f32 %v1850_v12, %v1762_v5  ;;  %v1939_v33 = vpop.f32.mrf.mxu3 }
 0x110   : > { %v1763_v20 = vpop.f32.mrf.mxu1 }
 0x111   : > { %v1940_v21 = vadd.f32 %v1939_v33, %v1851_v57  ;;  %v1764_v22 = vadd.f32 %v1763_v20, %v1675_v14 }
 0x112   : > { %v2030_v23 = vpop.f32.mrf.mxu0 }
 0x113   : > { %v4189_v28 = vadd.f32 %v2028_v8, %v1940_v21 }
 0x116   : > { %v1852_v52 = vpop.f32.mrf.mxu2 }
 0x117   : > { %v1853_v53 = vadd.f32 %v1852_v52, %v1764_v22  ;;  %v1941_v55 = vpop.f32.mrf.mxu3  ;;  %v3565_v22 = vld [vmem:[%s3793_s5 + $0x364] sm:$0xf] }
 0x118   : > { %v1766_v63 = vpop.f32.mrf.mxu1  ;;  %v3030_v52 = vor.u32 %v3565_v22, %v3027_v24  ;;  %v3574_v22 = vld [vmem:[%s3793_s5 + $0x3ac] sm:$0xf] }
 0x119   : > { %v1942_v4 = vadd.f32 %v1941_v55, %v1853_v53  ;;  %v1767_v5 = vadd.f32 %v1766_v63, %v1678_v61  ;;  %v3034_v61 = vor.u32 %v3570_v26, %v3033_v25  ;;  %v3038_v55 = vor.u32 %v3566_v19, %v3035_v29  ;;  %v3069_v25 = vld [vmem:[%s3793_s5 + $0x3b0] sm:$0xf]  ;;  %v3579_v26 = vld [vmem:[%s3793_s5 + $0x3d0] sm:$0xf0]  ;;  %v3071_v29 = vld [vmem:[%s3793_s5 + $0x3d4] sm:$0xf0] }
 0x11a   : > { %v2033_v8 = vpop.f32.mrf.mxu0  ;;  %v3575_v19 = vld [vmem:[%s3793_s5 + $0x3b4] sm:$0xf] }
 0x11b   : > { %1805 = vmatmul.bf16.gmra.mxu1 %v2994_v56  ;;  %1894 = vmatmul.bf16.gmra.mxu2 %v2998_v62  ;;  %v4199_v13 = vadd.f32 %v2030_v23, %v1942_v4  ;;  %v3042_v56 = vor.u32 %v3571_v40, %v3041_v34  ;;  %v3657_v4 = vld [vmem:[%s4594_s1 + $0x1c0] sm:$0xff]  ;;  %v3077_v34 = vld [vmem:[%s3793_s5 + $0x3b8] sm:$0xf]  ;;  %v3580_v40 = vld [vmem:[%s3793_s5 + $0x3d8] sm:$0xf0] }
 0x11c   : > { %1983 = vmatmul.bf16.gmra.mxu3 %v3002_v0 }
 0x11d   : > { %2072 = vmatmul.bf16.gmra.mxu0 %v3006_v2  ;;  %2283 = vmatpush.bf16.msra.mxu3 %v3657_v4  ;;  %v1690_v4 = vadd.f32 %v4113_v48, %v4046_v60  ;;  %v1693_v60 = vadd.f32 %v4113_v48, %v4062_v10 }
 0x11e   : > { %v1855_v43 = vpop.f32.mrf.mxu2 }
 0x11f   : > { %v1856_v12 = vadd.f32 %v1855_v43, %v1767_v5  ;;  %v1944_v14 = vpop.f32.mrf.mxu3 }
 0x120   : > { %v1768_v57 = vpop.f32.mrf.mxu1 }
 0x121   : > { %v1945_v33 = vadd.f32 %v1944_v14, %v1856_v12  ;;  %v1769_v20 = vadd.f32 %v1768_v57, %v1680_v11 }
 0x122   : > { %v2035_v21 = vpop.f32.mrf.mxu0 }
 0x123   : > { %v4205_v23 = vadd.f32 %v2033_v8, %v1945_v33  ;;  %v1685_v8 = vadd.f32 %v4113_v48, %v4016_v38  ;;  %v3063_v38 = vld [vmem:[%s3793_s5 + $0x3cc] sm:$0xf0] }
 0x126   : > { %v1857_v41 = vpop.f32.mrf.mxu2 }
 0x127   : > { %v1858_v42 = vadd.f32 %v1857_v41, %v1769_v20  ;;  %v1946_v49 = vpop.f32.mrf.mxu3  ;;  %v3641_v20 = vld [vmem:[%s4594_s1 + $0x140] sm:$0xff] }
 0x128   : > { %v1771_v53 = vpop.f32.mrf.mxu1  ;;  %2105 = vmatpush.bf16.msra.mxu1 %v3641_v20  ;;  %v3099_v20 = vld [vmem:[%s3793_s5 + $0x414] sm:$0xf0] }
 0x129   : > { %v1947_v62 = vadd.f32 %v1946_v49, %v1858_v42  ;;  %v1772_v63 = vadd.f32 %v1771_v53, %v1683_v47  ;;  %v1688_v47 = vadd.f32 %v4113_v48, %v4038_v54 }
 0x12a   : > { %v2038_v0 = vpop.f32.mrf.mxu0 }
 0x12b   : > { %1810 = vmatmul.bf16.gmra.mxu1 %v3030_v52  ;;  %1899 = vmatmul.bf16.gmra.mxu2 %v3034_v61  ;;  %v4215_v2 = vadd.f32 %v2035_v21, %v1947_v62  ;;  %v3665_v21 = vld [vmem:[%s4594_s1 + $0x200] sm:$0xff]  ;;  %v3066_v52 = vor.u32 %v3574_v22, %v3063_v38  ;;  %v3070_v61 = vor.u32 %v3579_v26, %v3069_v25  ;;  %v3588_v22 = vld [vmem:[%s3793_s5 + $0x418] sm:$0xf0] }
 0x12c   : > { %1988 = vmatmul.bf16.gmra.mxu3 %v3038_v55  ;;  %2372 = vmatpush.bf16.msra.mxu0 %v3665_v21  ;;  %v3074_v55 = vor.u32 %v3575_v19, %v3071_v29  ;;  %v3105_v21 = vld [vmem:[%s3793_s5 + $0x3f8] sm:$0xf]  ;;  %v3584_v38 = vld [vmem:[%s3793_s5 + $0x3fc] sm:$0xf]  ;;  %v3107_v25 = vld [vmem:[%s3793_s5 + $0x41c] sm:$0xf0] }
 0x12d   : > { %2077 = vmatmul.bf16.gmra.mxu0 %v3042_v56  ;;  %v3078_v56 = vor.u32 %v3580_v40, %v3077_v34  ;;  %v3113_v26 = vld [vmem:[%s3793_s5 + $0x400] sm:$0xf]  ;;  %v3589_v19 = vld [vmem:[%s3793_s5 + $0x420] sm:$0xf0] }
 0x12e   : > { %v1860_v5 = vpop.f32.mrf.mxu2 }
 0x12f   : > { %v1861_v43 = vadd.f32 %v1860_v5, %v1772_v63  ;;  %v1949_v11 = vpop.f32.mrf.mxu3 }
 0x130   : > { %v1773_v12 = vpop.f32.mrf.mxu1 }
 0x131   : > { %v1950_v14 = vadd.f32 %v1949_v11, %v1861_v43  ;;  %v1774_v57 = vadd.f32 %v1773_v12, %v1685_v8 }
 0x132   : > { %v2040_v33 = vpop.f32.mrf.mxu0 }
 0x133   : > { %v4233_v24 = vadd.f32 %v2038_v0, %v1950_v14 }
 0x136   : > { %v1862_v41 = vpop.f32.mrf.mxu2 }
 0x137   : > { %v1863_v42 = vadd.f32 %v1862_v41, %v1774_v57  ;;  %v1951_v49 = vpop.f32.mrf.mxu3  ;;  %v3583_v57 = vld [vmem:[%s3793_s5 + $0x3f4] sm:$0xf] }
 0x138   : > { %v1776_v53 = vpop.f32.mrf.mxu1  ;;  %v3102_v41 = vor.u32 %v3583_v57, %v3099_v20  ;;  %v3597_v57 = vld [vmem:[%s3793_s5 + $0x460] sm:$0xf0] }
 0x139   : > { %v1952_v62 = vadd.f32 %v1951_v49, %v1863_v42  ;;  %v1777_v63 = vadd.f32 %v1776_v53, %v1688_v47  ;;  %v3106_v47 = vor.u32 %v3588_v22, %v3105_v21  ;;  %v3110_v49 = vor.u32 %v3584_v38, %v3107_v25  ;;  %v3593_v20 = vld [vmem:[%s3793_s5 + $0x444] sm:$0xf]  ;;  %v3143_v21 = vld [vmem:[%s3793_s5 + $0x464] sm:$0xf0]  ;;  %v3598_v38 = vld [vmem:[%s3793_s5 + $0x468] sm:$0xf0] }
 0x13a   : > { %v2043_v0 = vpop.f32.mrf.mxu0  ;;  %v3149_v22 = vld [vmem:[%s3793_s5 + $0x448] sm:$0xf] }
 0x13b   : > { %1815 = vmatmul.bf16.gmra.mxu1 %v3066_v52  ;;  %1904 = vmatmul.bf16.gmra.mxu2 %v3070_v61  ;;  %v4243_v30 = vadd.f32 %v2040_v33, %v1952_v62  ;;  %v3114_v52 = vor.u32 %v3589_v19, %v3113_v26  ;;  %v1695_v62 = vadd.f32 %v4113_v48, %v4076_v18 }
 0x13c   : > { %1993 = vmatmul.bf16.gmra.mxu3 %v3074_v55  ;;  %v1698_v18 = vadd.f32 %v4113_v48, %v4098_v39 }
 0x13d   : > { %2082 = vmatmul.bf16.gmra.mxu0 %v3078_v56 }
 0x13e   : > { %v1865_v54 = vpop.f32.mrf.mxu2 }
 0x13f   : > { %v1866_v5 = vadd.f32 %v1865_v54, %v1777_v63  ;;  %v1954_v8 = vpop.f32.mrf.mxu3 }
 0x140   : > { %v1778_v43 = vpop.f32.mrf.mxu1 }
 0x141   : > { %v1955_v11 = vadd.f32 %v1954_v8, %v1866_v5  ;;  %v1779_v12 = vadd.f32 %v1778_v43, %v1690_v4  ;;  %v3592_v43 = vld [vmem:[%s3793_s5 + $0x43c] sm:$0xf] }
 0x142   : > { %v2045_v14 = vpop.f32.mrf.mxu0 }
 0x143   : > { %v4249_v33 = vadd.f32 %v2043_v0, %v1955_v11  ;;  %v3135_v11 = vld [vmem:[%s3793_s5 + $0x45c] sm:$0xf0] }
 0x146   : > { %v1867_v29 = vpop.f32.mrf.mxu2 }
 0x147   : > { %v1868_v34 = vadd.f32 %v1867_v29, %v1779_v12  ;;  %v1956_v40 = vpop.f32.mrf.mxu3  ;;  %v3138_v29 = vor.u32 %v3592_v43, %v3135_v11  ;;  %v3464_v43 = vld [vmem:[%s3793_s5 + $0x38] sm:$0xf0] }
 0x148   : > { %v1781_v42 = vpop.f32.mrf.mxu1  ;;  %v3460_v11 = vld [vmem:[%s3793_s5 + $0x1c] sm:$0xf] }
 0x149   : > { %v1957_v61 = vadd.f32 %v1956_v40, %v1868_v34  ;;  %v1782_v53 = vadd.f32 %v1781_v42, %v1693_v60  ;;  %v3146_v40 = vor.u32 %v3593_v20, %v3143_v21  ;;  %v3465_v20 = vld [vmem:[%s3793_s5 + $0x40] sm:$0xf0] }
 0x14a   : > { %v2048_v55 = vpop.f32.mrf.mxu0 }
 0x14b   : > { %1820 = vmatmul.bf16.gmra.mxu1 %v3102_v41  ;;  %1909 = vmatmul.bf16.gmra.mxu2 %v3106_v47  ;;  %v4259_v56 = vadd.f32 %v2045_v14, %v1957_v61  ;;  %v3141_v14 = vld [vmem:[%s3793_s5 + $0x440] sm:$0xf]  ;;  %v3150_v41 = vor.u32 %v3598_v38, %v3149_v22  ;;  %v1700_v61 = vadd.f32 %v4113_v48, %v4106_v46 }
 0x14c   : > { %1998 = vmatmul.bf16.gmra.mxu3 %v3110_v49  ;;  %v3142_v60 = vor.u32 %v3597_v57, %v3141_v14  ;;  %v2619_v14 = vld [vmem:[%s3793_s5 + $0x3c] sm:$0xf0]  ;;  %v1703_v46 = vadd.f32 %v4113_v48, %v4012_v36 }
 0x14d   : > { %2087 = vmatmul.bf16.gmra.mxu0 %v3114_v52  ;;  %v2625_v57 = vld [vmem:[%s3793_s5 + $0x20] sm:$0xf] }
 0x14e   : > { %v1870_v10 = vpop.f32.mrf.mxu2 }
 0x14f   : > { %v1871_v63 = vadd.f32 %v1870_v10, %v1782_v53  ;;  %v1959_v0 = vpop.f32.mrf.mxu3 }
 0x150   : > { %v1783_v54 = vpop.f32.mrf.mxu1 }
 0x151   : > { %v1960_v4 = vadd.f32 %v1959_v0, %v1871_v63  ;;  %v1784_v5 = vadd.f32 %v1783_v54, %v1695_v62  ;;  %v3459_v54 = vld [vmem:[%s3793_s5 + $0x14] sm:$0xf] }
 0x152   : > { %v2050_v8 = vpop.f32.mrf.mxu0 }
 0x153   : > { %v4265_v12 = vadd.f32 %v2048_v55, %v1960_v4  ;;  %v2611_v4 = vld [vmem:[%s3793_s5 + $0x34] sm:$0xf0] }
 0x156   : > { %v1872_v25 = vpop.f32.mrf.mxu2 }
 0x157   : > { %v1873_v26 = vadd.f32 %v1872_v25, %v1784_v5  ;;  %v1961_v19 = vpop.f32.mrf.mxu3  ;;  %v2614_v25 = vor.u32 %v3459_v54, %v2611_v4  ;;  %v3473_v54 = vld [vmem:[%s3793_s5 + $0x80] sm:$0xf0] }
 0x158   : > { %v1786_v34 = vpop.f32.mrf.mxu1  ;;  %v3469_v4 = vld [vmem:[%s3793_s5 + $0x64] sm:$0xf] }
 0x159   : > { %v1962_v47 = vadd.f32 %v1961_v19, %v1873_v26  ;;  %v1787_v42 = vadd.f32 %v1786_v34, %v1698_v18  ;;  %v2622_v19 = vor.u32 %v3460_v11, %v2619_v14  ;;  %v3474_v11 = vld [vmem:[%s3793_s5 + $0x88] sm:$0xf0] }
 0x15a   : > { %v2053_v49 = vpop.f32.mrf.mxu0 }
 0x15b   : > { %1825 = vmatmul.bf16.gmra.mxu1 %v3138_v29  ;;  %1914 = vmatmul.bf16.gmra.mxu2 %v3142_v60  ;;  %v4275_v52 = vadd.f32 %v2050_v8, %v1962_v47  ;;  %v2617_v8 = vld [vmem:[%s3793_s5 + $0x18] sm:$0xf]  ;;  %v2626_v29 = vor.u32 %v3465_v20, %v2625_v57  ;;  %v1705_v47 = vadd.f32 %v4113_v48, %v4034_v50 }
 0x15c   : > { %2003 = vmatmul.bf16.gmra.mxu3 %v3146_v40  ;;  %v2618_v18 = vor.u32 %v3464_v43, %v2617_v8  ;;  %v2655_v8 = vld [vmem:[%s3793_s5 + $0x84] sm:$0xf0]  ;;  %v1708_v50 = vadd.f32 %v4113_v48, %v4042_v58 }
 0x15d   : > { %2092 = vmatmul.bf16.gmra.mxu0 %v3150_v41  ;;  %v2661_v43 = vld [vmem:[%s3793_s5 + $0x68] sm:$0xf] }
 0x15e   : > { %v1875_v39 = vpop.f32.mrf.mxu2 }
 0x15f   : > { %v1876_v53 = vadd.f32 %v1875_v39, %v1787_v42  ;;  %v1964_v55 = vpop.f32.mrf.mxu3 }
 0x160   : > { %v1788_v10 = vpop.f32.mrf.mxu1 }
 0x161   : > { %v1965_v62 = vadd.f32 %v1964_v55, %v1876_v53  ;;  %v1789_v63 = vadd.f32 %v1788_v10, %v1700_v61  ;;  %v3468_v10 = vld [vmem:[%s3793_s5 + $0x5c] sm:$0xf] }
 0x162   : > { %v2055_v0 = vpop.f32.mrf.mxu0 }
 0x163   : > { %v4281_v5 = vadd.f32 %v2053_v49, %v1965_v62  ;;  %v2647_v62 = vld [vmem:[%s3793_s5 + $0x7c] sm:$0xf0] }
 0x166   : > { %v1877_v21 = vpop.f32.mrf.mxu2 }
 0x167   : > { %v1878_v22 = vadd.f32 %v1877_v21, %v1789_v63  ;;  %v1966_v38 = vpop.f32.mrf.mxu3  ;;  %v2650_v21 = vor.u32 %v3468_v10, %v2647_v62  ;;  %v3482_v10 = vld [vmem:[%s3793_s5 + $0xc8] sm:$0xf0] }
 0x168   : > { %v1791_v26 = vpop.f32.mrf.mxu1  ;;  %v3478_v62 = vld [vmem:[%s3793_s5 + $0xac] sm:$0xf] }
 0x169   : > { %v1967_v60 = vadd.f32 %v1966_v38, %v1878_v22  ;;  %v1792_v34 = vadd.f32 %v1791_v26, %v1703_v46  ;;  %v2658_v38 = vor.u32 %v3469_v4, %v2655_v8  ;;  %v3483_v4 = vld [vmem:[%s3793_s5 + $0xd0] sm:$0xf0] }
 0x16a   : > { %v2058_v40 = vpop.f32.mrf.mxu0 }
 0x16b   : > { %2106 = vmatmul.bf16.vlgmr.msra.gmra.mxu1 %v2614_v25  ;;  %2195 = vmatmul.bf16.vlgmr.msra.gmra.mxu2 %v2618_v18  ;;  %v4291_v41 = vadd.f32 %v2055_v0, %v1967_v60  ;;  %v2653_v0 = vld [vmem:[%s3793_s5 + $0x60] sm:$0xf]  ;;  %v2662_v25 = vor.u32 %v3474_v11, %v2661_v43  ;;  %v1710_v60 = vadd.f32 %v4113_v48, %v4058_v6 }
 0x16c   : > { %2284 = vmatmul.bf16.vlgmr.msra.gmra.mxu3 %v2622_v19  ;;  %v2654_v46 = vor.u32 %v3473_v54, %v2653_v0  ;;  %v2691_v0 = vld [vmem:[%s3793_s5 + $0xcc] sm:$0xf0]  ;;  %v1713_v6 = vadd.f32 %v4113_v48, %v4072_v16 }
 0x16d   : > { %2373 = vmatmul.bf16.vlgmr.msra.gmra.mxu0 %v2626_v29  ;;  %v2697_v54 = vld [vmem:[%s3793_s5 + $0xb0] sm:$0xf] }
 0x16e   : > { %v1880_v36 = vpop.f32.mrf.mxu2 }
 0x16f   : > { %v1881_v42 = vadd.f32 %v1880_v36, %v1792_v34  ;;  %v1969_v49 = vpop.f32.mrf.mxu3 }
 0x170   : > { %v1793_v39 = vpop.f32.mrf.mxu1 }
 0x171   : > { %v1970_v61 = vadd.f32 %v1969_v49, %v1881_v42  ;;  %v1794_v53 = vadd.f32 %v1793_v39, %v1705_v47  ;;  %v3477_v39 = vld [vmem:[%s3793_s5 + $0xa4] sm:$0xf] }
 0x172   : > { %v2060_v55 = vpop.f32.mrf.mxu0 }
 0x173   : > { %v4297_v63 = vadd.f32 %v2058_v40, %v1970_v61  ;;  %v2683_v61 = vld [vmem:[%s3793_s5 + $0xc4] sm:$0xf0] }
 0x176   : > { %v1882_v14 = vpop.f32.mrf.mxu2 }
 0x177   : > { %v1883_v57 = vadd.f32 %v1882_v14, %v1794_v53  ;;  %v1971_v20 = vpop.f32.mrf.mxu3  ;;  %v2686_v14 = vor.u32 %v3477_v39, %v2683_v61  ;;  %v3491_v39 = vld [vmem:[%s3793_s5 + $0x110] sm:$0xf0] }
 0x178   : > { %v1796_v22 = vpop.f32.mrf.mxu1  ;;  %v3487_v61 = vld [vmem:[%s3793_s5 + $0xf4] sm:$0xf] }
 0x179   : > { %v1972_v18 = vadd.f32 %v1971_v20, %v1883_v57  ;;  %v1797_v26 = vadd.f32 %v1796_v22, %v1708_v50  ;;  %v2694_v20 = vor.u32 %v3478_v62, %v2691_v0  ;;  %v3492_v62 = vld [vmem:[%s3793_s5 + $0x118] sm:$0xf0] }
 0x17a   : > { %v2063_v19 = vpop.f32.mrf.mxu0 }
 0x17b   : > { %2111 = vmatmul.bf16.gmra.mxu1 %v2650_v21  ;;  %2200 = vmatmul.bf16.gmra.mxu2 %v2654_v46  ;;  %v4307_v29 = vadd.f32 %v2060_v55, %v1972_v18  ;;  %v2689_v55 = vld [vmem:[%s3793_s5 + $0xa8] sm:$0xf]  ;;  %v2698_v21 = vor.u32 %v3483_v4, %v2697_v54  ;;  %v1715_v18 = vadd.f32 %v4113_v48, %v4094_v31 }
 0x17c   : > { %2289 = vmatmul.bf16.gmra.mxu3 %v2658_v38  ;;  %v2690_v50 = vor.u32 %v3482_v10, %v2689_v55  ;;  %v2727_v55 = vld [vmem:[%s3793_s5 + $0x114] sm:$0xf0]  ;;  %v1718_v31 = vadd.f32 %v4113_v48, %v4102_v44 }
 0x17d   : > { %2378 = vmatmul.bf16.gmra.mxu0 %v2662_v25  ;;  %v2733_v10 = vld [vmem:[%s3793_s5 + $0xf8] sm:$0xf] }
 0x17e   : > { %v1885_v58 = vpop.f32.mrf.mxu2 }
 0x17f   : > { %v1886_v34 = vadd.f32 %v1885_v58, %v1797_v26  ;;  %v1974_v40 = vpop.f32.mrf.mxu3 }
 0x180   : > { %v1798_v36 = vpop.f32.mrf.mxu1 }
 0x181   : > { %v1975_v47 = vadd.f32 %v1974_v40, %v1886_v34  ;;  %v1799_v42 = vadd.f32 %v1798_v36, %v1710_v60  ;;  %v3486_v36 = vld [vmem:[%s3793_s5 + $0xec] sm:$0xf] }
 0x182   : > { %v2065_v49 = vpop.f32.mrf.mxu0 }
 0x183   : > { %v4313_v53 = vadd.f32 %v2063_v19, %v1975_v47  ;;  %v2719_v47 = vld [vmem:[%s3793_s5 + $0x10c] sm:$0xf0] }
 0x186   : > { %v1887_v8 = vpop.f32.mrf.mxu2 }
 0x187   : > { %v1888_v43 = vadd.f32 %v1887_v8, %v1799_v42  ;;  %v1976_v11 = vpop.f32.mrf.mxu3  ;;  %v2722_v8 = vor.u32 %v3486_v36, %v2719_v47  ;;  %v3500_v36 = vld [vmem:[%s3793_s5 + $0x158] sm:$0xf0] }
 0x188   : > { %v1801_v57 = vpop.f32.mrf.mxu1  ;;  %v3496_v47 = vld [vmem:[%s3793_s5 + $0x13c] sm:$0xf] }
 0x189   : > { %v1977_v46 = vadd.f32 %v1976_v11, %v1888_v43  ;;  %v1802_v22 = vadd.f32 %v1801_v57, %v1713_v6  ;;  %v2730_v11 = vor.u32 %v3487_v61, %v2727_v55  ;;  %v3501_v61 = vld [vmem:[%s3793_s5 + $0x160] sm:$0xf0] }
 0x18a   : > { %v2068_v38 = vpop.f32.mrf.mxu0 }
 0x18b   : > { %2116 = vmatmul.bf16.gmra.mxu1 %v2686_v14  ;;  %2205 = vmatmul.bf16.gmra.mxu2 %v2690_v50  ;;  %v4323_v25 = vadd.f32 %v2065_v49, %v1977_v46  ;;  %v2725_v49 = vld [vmem:[%s3793_s5 + $0xf0] sm:$0xf]  ;;  %v2734_v14 = vor.u32 %v3492_v62, %v2733_v10  ;;  %v1720_v46 = vadd.f32 %v4113_v48, %v4123_v1 }
 0x18c   : > { %2294 = vmatmul.bf16.gmra.mxu3 %v2694_v20  ;;  %v2726_v6 = vor.u32 %v3491_v39, %v2725_v49  ;;  %v2763_v49 = vld [vmem:[%s3793_s5 + $0x15c] sm:$0xf0]  ;;  %v1723_v1 = vadd.f32 %v4113_v48, %v4014_v37 }
 0x18d   : > { %2383 = vmatmul.bf16.gmra.mxu0 %v2698_v21  ;;  %v2769_v39 = vld [vmem:[%s3793_s5 + $0x140] sm:$0xf] }
 0x18e   : > { %v1890_v16 = vpop.f32.mrf.mxu2 }
 0x18f   : > { %v1891_v26 = vadd.f32 %v1890_v16, %v1802_v22  ;;  %v1979_v19 = vpop.f32.mrf.mxu3 }
 0x190   : > { %v1803_v58 = vpop.f32.mrf.mxu1 }
 0x191   : > { %v1980_v60 = vadd.f32 %v1979_v19, %v1891_v26  ;;  %v1804_v34 = vadd.f32 %v1803_v58, %v1715_v18  ;;  %v3495_v58 = vld [vmem:[%s3793_s5 + $0x134] sm:$0xf] }
 0x192   : > { %v2070_v40 = vpop.f32.mrf.mxu0 }
 0x193   : > { %v4329_v42 = vadd.f32 %v2068_v38, %v1980_v60  ;;  %v2755_v60 = vld [vmem:[%s3793_s5 + $0x154] sm:$0xf0] }
 0x196   : > { %v1892_v0 = vpop.f32.mrf.mxu2 }
 0x197   : > { %v1893_v54 = vadd.f32 %v1892_v0, %v1804_v34  ;;  %v1981_v4 = vpop.f32.mrf.mxu3  ;;  %v2758_v0 = vor.u32 %v3495_v58, %v2755_v60  ;;  %v3509_v58 = vld [vmem:[%s3793_s5 + $0x1a0] sm:$0xf0] }
 0x198   : > { %v1806_v43 = vpop.f32.mrf.mxu1  ;;  %v3505_v60 = vld [vmem:[%s3793_s5 + $0x184] sm:$0xf] }
 0x199   : > { %v1982_v50 = vadd.f32 %v1981_v4, %v1893_v54  ;;  %v1807_v57 = vadd.f32 %v1806_v43, %v1718_v31  ;;  %v2766_v4 = vor.u32 %v3496_v47, %v2763_v49  ;;  %v3510_v47 = vld [vmem:[%s3793_s5 + $0x1a8] sm:$0xf0] }
 0x19a   : > { %v2073_v20 = vpop.f32.mrf.mxu0 }
 0x19b   : > { %2121 = vmatmul.bf16.gmra.mxu1 %v2722_v8  ;;  %2210 = vmatmul.bf16.gmra.mxu2 %v2726_v6  ;;  %v4339_v21 = vadd.f32 %v2070_v40, %v1982_v50  ;;  %v2761_v40 = vld [vmem:[%s3793_s5 + $0x138] sm:$0xf]  ;;  %v2770_v8 = vor.u32 %v3501_v61, %v2769_v39  ;;  %v1725_v50 = vadd.f32 %v4113_v48, %v4036_v51 }
 0x19c   : > { %2299 = vmatmul.bf16.gmra.mxu3 %v2730_v11  ;;  %v2762_v31 = vor.u32 %v3500_v36, %v2761_v40  ;;  %v2799_v40 = vld [vmem:[%s3793_s5 + $0x1a4] sm:$0xf0]  ;;  %v1728_v51 = vadd.f32 %v4113_v48, %v4044_v59 }
 0x19d   : > { %2388 = vmatmul.bf16.gmra.mxu0 %v2734_v14  ;;  %v2805_v36 = vld [vmem:[%s3793_s5 + $0x188] sm:$0xf] }
 0x19e   : > { %v1895_v44 = vpop.f32.mrf.mxu2 }
 0x19f   : > { %v1896_v22 = vadd.f32 %v1895_v44, %v1807_v57  ;;  %v1984_v38 = vpop.f32.mrf.mxu3 }
 0x1a0   : > { %v1808_v16 = vpop.f32.mrf.mxu1 }
 0x1a1   : > { %v1985_v18 = vadd.f32 %v1984_v38, %v1896_v22  ;;  %v1809_v26 = vadd.f32 %v1808_v16, %v1720_v46  ;;  %v3504_v16 = vld [vmem:[%s3793_s5 + $0x17c] sm:$0xf] }
 0x1a2   : > { %v2075_v19 = vpop.f32.mrf.mxu0 }
 0x1a3   : > { %v4345_v34 = vadd.f32 %v2073_v20, %v1985_v18  ;;  %v2791_v18 = vld [vmem:[%s3793_s5 + $0x19c] sm:$0xf0] }
 0x1a6   : > { %v1897_v55 = vpop.f32.mrf.mxu2 }
 0x1a7   : > { %v1898_v10 = vadd.f32 %v1897_v55, %v1809_v26  ;;  %v1986_v62 = vpop.f32.mrf.mxu3  ;;  %v2794_v55 = vor.u32 %v3504_v16, %v2791_v18  ;;  %v3518_v16 = vld [vmem:[%s3793_s5 + $0x1e8] sm:$0xf0] }
 0x1a8   : > { %v1811_v54 = vpop.f32.mrf.mxu1  ;;  %v3514_v18 = vld [vmem:[%s3793_s5 + $0x1cc] sm:$0xf] }
 0x1a9   : > { %v1987_v6 = vadd.f32 %v1986_v62, %v1898_v10  ;;  %v1812_v43 = vadd.f32 %v1811_v54, %v1723_v1  ;;  %v2802_v62 = vor.u32 %v3505_v60, %v2799_v40  ;;  %v3519_v60 = vld [vmem:[%s3793_s5 + $0x1f0] sm:$0xf0] }
 0x1aa   : > { %v2078_v11 = vpop.f32.mrf.mxu0 }
 0x1ab   : > { %2126 = vmatmul.bf16.gmra.mxu1 %v2758_v0  ;;  %2215 = vmatmul.bf16.gmra.mxu2 %v2762_v31  ;;  %v4355_v14 = vadd.f32 %v2075_v19, %v1987_v6  ;;  %v2797_v19 = vld [vmem:[%s3793_s5 + $0x180] sm:$0xf]  ;;  %v2806_v0 = vor.u32 %v3510_v47, %v2805_v36  ;;  %v1730_v6 = vadd.f32 %v4113_v48, %v4060_v7 }
 0x1ac   : > { %2304 = vmatmul.bf16.gmra.mxu3 %v2766_v4  ;;  %v2798_v1 = vor.u32 %v3509_v58, %v2797_v19  ;;  %v2835_v19 = vld [vmem:[%s3793_s5 + $0x1ec] sm:$0xf0]  ;;  %v1733_v7 = vadd.f32 %v4113_v48, %v4074_v17  ;;  %v3730_v48 = vld [vmem:[%s4595_s2] ss:$0 sm:$0xff] }
 0x1ad   : > { %2393 = vmatmul.bf16.gmra.mxu0 %v2770_v8  ;;  %v2841_v58 = vld [vmem:[%s3793_s5 + $0x1d0] sm:$0xf] }
 0x1ae   : > { %v1900_v37 = vpop.f32.mrf.mxu2 }
 0x1af   : > { %v1901_v57 = vadd.f32 %v1900_v37, %v1812_v43  ;;  %v1989_v20 = vpop.f32.mrf.mxu3 }
 0x1b0   : > { %v1813_v44 = vpop.f32.mrf.mxu1 }
 0x1b1   : > { %v1990_v46 = vadd.f32 %v1989_v20, %v1901_v57  ;;  %v1814_v22 = vadd.f32 %v1813_v44, %v1725_v50  ;;  %v3513_v44 = vld [vmem:[%s3793_s5 + $0x1c4] sm:$0xf] }
 0x1b2   : > { %v2080_v38 = vpop.f32.mrf.mxu0 }
 0x1b3   : > { %v4361_v26 = vadd.f32 %v2078_v11, %v1990_v46  ;;  %v2827_v46 = vld [vmem:[%s3793_s5 + $0x1e4] sm:$0xf0] }
 0x1b6   : > { %v1902_v49 = vpop.f32.mrf.mxu2 }
 0x1b7   : > { %v1903_v39 = vadd.f32 %v1902_v49, %v1814_v22  ;;  %v1991_v61 = vpop.f32.mrf.mxu3  ;;  %v2830_v49 = vor.u32 %v3513_v44, %v2827_v46  ;;  %v3527_v44 = vld [vmem:[%s3793_s5 + $0x230] sm:$0xf0] }
 0x1b8   : > { %v1816_v10 = vpop.f32.mrf.mxu1  ;;  %v3523_v46 = vld [vmem:[%s3793_s5 + $0x214] sm:$0xf] }
 0x1b9   : > { %v1992_v31 = vadd.f32 %v1991_v61, %v1903_v39  ;;  %v1817_v54 = vadd.f32 %v1816_v10, %v1728_v51  ;;  %v2838_v61 = vor.u32 %v3514_v18, %v2835_v19  ;;  %v3528_v18 = vld [vmem:[%s3793_s5 + $0x238] sm:$0xf0] }
 0x1ba   : > { %v2083_v4 = vpop.f32.mrf.mxu0 }
 0x1bb   : > { %2131 = vmatmul.bf16.gmra.mxu1 %v2794_v55  ;;  %2220 = vmatmul.bf16.gmra.mxu2 %v2798_v1  ;;  %v4371_v8 = vadd.f32 %v2080_v38, %v1992_v31  ;;  %v2833_v38 = vld [vmem:[%s3793_s5 + $0x1c8] sm:$0xf]  ;;  %v2842_v55 = vor.u32 %v3519_v60, %v2841_v58  ;;  %v1735_v31 = vadd.f32 %v3730_v48, %v4096_v32 }
 0x1bc   : > { %2309 = vmatmul.bf16.gmra.mxu3 %v2802_v62  ;;  %v2834_v51 = vor.u32 %v3518_v16, %v2833_v38  ;;  %v2871_v38 = vld [vmem:[%s3793_s5 + $0x234] sm:$0xf0]  ;;  %v1738_v58 = vadd.f32 %v3730_v48, %v4104_v45 }
 0x1bd   : > { %2398 = vmatmul.bf16.gmra.mxu0 %v2806_v0  ;;  %v2877_v16 = vld [vmem:[%s3793_s5 + $0x218] sm:$0xf] }
 0x1be   : > { %v1905_v59 = vpop.f32.mrf.mxu2 }
 0x1bf   : > { %v1906_v43 = vadd.f32 %v1905_v59, %v1817_v54  ;;  %v1994_v11 = vpop.f32.mrf.mxu3 }
 0x1c0   : > { %v1818_v37 = vpop.f32.mrf.mxu1 }
 0x1c1   : > { %v1995_v50 = vadd.f32 %v1994_v11, %v1906_v43  ;;  %v1819_v57 = vadd.f32 %v1818_v37, %v1730_v6  ;;  %v3522_v37 = vld [vmem:[%s3793_s5 + $0x20c] sm:$0xf] }
 0x1c2   : > { %v2085_v20 = vpop.f32.mrf.mxu0 }
 0x1c3   : > { %v4377_v22 = vadd.f32 %v2083_v4, %v1995_v50  ;;  %v2863_v50 = vld [vmem:[%s3793_s5 + $0x22c] sm:$0xf0] }
 0x1c6   : > { %v1907_v40 = vpop.f32.mrf.mxu2 }
 0x1c7   : > { %v1908_v36 = vadd.f32 %v1907_v40, %v1819_v57  ;;  %v1996_v47 = vpop.f32.mrf.mxu3  ;;  %v2866_v40 = vor.u32 %v3522_v37, %v2863_v50  ;;  %v3536_v37 = vld [vmem:[%s3793_s5 + $0x278] sm:$0xf0] }
 0x1c8   : > { %v1821_v39 = vpop.f32.mrf.mxu1  ;;  %v3532_v50 = vld [vmem:[%s3793_s5 + $0x25c] sm:$0xf] }
 0x1c9   : > { %v1997_v1 = vadd.f32 %v1996_v47, %v1908_v36  ;;  %v1822_v10 = vadd.f32 %v1821_v39, %v1733_v7  ;;  %v2874_v47 = vor.u32 %v3523_v46, %v2871_v38  ;;  %v3537_v46 = vld [vmem:[%s3793_s5 + $0x280] sm:$0xf0] }
 0x1ca   : > { %v2088_v62 = vpop.f32.mrf.mxu0 }
 0x1cb   : > { %2136 = vmatmul.bf16.gmra.mxu1 %v2830_v49  ;;  %2225 = vmatmul.bf16.gmra.mxu2 %v2834_v51  ;;  %v4387_v0 = vadd.f32 %v2085_v20, %v1997_v1  ;;  %v2869_v20 = vld [vmem:[%s3793_s5 + $0x210] sm:$0xf]  ;;  %v2878_v49 = vor.u32 %v3528_v18, %v2877_v16  ;;  %v1740_v1 = vadd.f32 %v3730_v48, %v4127_v3 }
 0x1cc   : > { %2314 = vmatmul.bf16.gmra.mxu3 %v2838_v61  ;;  %v2870_v7 = vor.u32 %v3527_v44, %v2869_v20  ;;  %v2907_v20 = vld [vmem:[%s3793_s5 + $0x27c] sm:$0xf0] }
 0x1cd   : > { %2403 = vmatmul.bf16.gmra.mxu0 %v2842_v55  ;;  %v2913_v44 = vld [vmem:[%s3793_s5 + $0x260] sm:$0xf] }
 0x1ce   : > { %v1910_v17 = vpop.f32.mrf.mxu2 }
 0x1cf   : > { %v1911_v54 = vadd.f32 %v1910_v17, %v1822_v10  ;;  %v1999_v4 = vpop.f32.mrf.mxu3 }
 0x1d0   : > { %v1823_v59 = vpop.f32.mrf.mxu1 }
 0x1d1   : > { %v2000_v6 = vadd.f32 %v1999_v4, %v1911_v54  ;;  %v1824_v43 = vadd.f32 %v1823_v59, %v1735_v31  ;;  %v3531_v59 = vld [vmem:[%s3793_s5 + $0x254] sm:$0xf] }
 0x1d2   : > { %v2090_v11 = vpop.f32.mrf.mxu0 }
 0x1d3   : > { %v4395_v57 = vadd.f32 %v2088_v62, %v2000_v6  ;;  %v2899_v6 = vld [vmem:[%s3793_s5 + $0x274] sm:$0xf0] }
 0x1d4   : > { %v2902_v3 = vor.u32 %v3531_v59, %v2899_v6  ;;  %v2949_v59 = vld [vmem:[%s3793_s5 + $0x2a8] sm:$0xf]  ;;  %v3546_v6 = vld [vmem:[%s3793_s5 + $0x2c8] sm:$0xf0] }
 0x1d6   : > { %v1912_v19 = vpop.f32.mrf.mxu2 }
 0x1d7   : > { %v1913_v32 = vadd.f32 %v1912_v19, %v1824_v43  ;;  %v2001_v60 = vpop.f32.mrf.mxu3 }
 0x1d8   : > { %v1826_v36 = vpop.f32.mrf.mxu1 }
 0x1d9   : > { %v2002_v51 = vadd.f32 %v2001_v60, %v1913_v32  ;;  %v1827_v39 = vadd.f32 %v1826_v36, %v1738_v58  ;;  %v2910_v58 = vor.u32 %v3532_v50, %v2907_v20  ;;  %v2914_v32 = vor.u32 %v3537_v46, %v2913_v44 }
 0x1da   : > { %v2093_v61 = vpop.f32.mrf.mxu0 }
 0x1db   : > { %2141 = vmatmul.bf16.gmra.mxu1 %v2866_v40  ;;  %2230 = vmatmul.bf16.gmra.mxu2 %v2870_v7  ;;  %v4404_v55 = vadd.f32 %v2090_v11, %v2002_v51  ;;  %v2905_v11 = vld [vmem:[%s3793_s5 + $0x258] sm:$0xf] }
 0x1dc   : > { %2319 = vmatmul.bf16.gmra.mxu3 %v2874_v47  ;;  %v2906_v48 = vor.u32 %v3536_v37, %v2905_v11 }
 0x1dd   : > { %2408 = vmatmul.bf16.gmra.mxu0 %v2878_v49 }
 0x1de   : > { %v1915_v45 = vpop.f32.mrf.mxu2 }
 0x1df   : > { %v1916_v10 = vadd.f32 %v1915_v45, %v1827_v39  ;;  %v2004_v62 = vpop.f32.mrf.mxu3 }
 0x1e0   : > { %v1828_v17 = vpop.f32.mrf.mxu1 }
 0x1e1   : > { %v2005_v31 = vadd.f32 %v2004_v62, %v1916_v10  ;;  %v1829_v54 = vadd.f32 %v1828_v17, %v1740_v1  ;;  %v3540_v10 = vld [vmem:[%s3793_s5 + $0x29c] sm:$0xf]  ;;  %v2935_v62 = vld [vmem:[%s3793_s5 + $0x2bc] sm:$0xf0] }
 0x1e2   : > { %v2095_v4 = vpop.f32.mrf.mxu0  ;;  %v2941_v17 = vld [vmem:[%s3793_s5 + $0x2a0] sm:$0xf]  ;;  %v2938_v20 = vor.u32 %v3540_v10, %v2935_v62  ;;  %v2985_v10 = vld [vmem:[%s3793_s5 + $0x2f0] sm:$0xf]  ;;  %v3555_v62 = vld [vmem:[%s3793_s5 + $0x310] sm:$0xf0] }
 0x1e3   : > { %v4409_v43 = vadd.f32 %v2093_v61, %v2005_v31  ;;  %v3545_v31 = vld [vmem:[%s3793_s5 + $0x2c0] sm:$0xf0] }
 0x1e4   : > { %v2942_v44 = vor.u32 %v3545_v31, %v2941_v17 }
 0x1e6   : > { %v1917_v38 = vpop.f32.mrf.mxu2 }
 0x1e7   : > { %v1918_v16 = vadd.f32 %v1917_v38, %v1829_v54  ;;  %v2006_v18 = vpop.f32.mrf.mxu3  ;;  %v3541_v54 = vld [vmem:[%s3793_s5 + $0x2a4] sm:$0xf] }
 0x1e8   : > { %v2107_v19 = vpop.f32.mrf.mxu1 }
 0x1e9   : > { %v2007_v60 = vadd.f32 %v2006_v18, %v1918_v16  ;;  %v2108_v40 = vadd.f32 %v2107_v19, %v4145_v35  ;;  %v2950_v16 = vor.u32 %v3546_v6, %v2949_v59 }
 0x1ea   : > { %v2374_v7 = vpop.f32.mrf.mxu0 }
 0x1eb   : > { %2146 = vmatmul.bf16.gmra.mxu1 %v2902_v3  ;;  %2235 = vmatmul.bf16.gmra.mxu2 %v2906_v48  ;;  %v4418_v36 = vadd.f32 %v2095_v4, %v2007_v60  ;;  %v2943_v4 = vld [vmem:[%s3793_s5 + $0x2c4] sm:$0xf0] }
 0x1ec   : > { %2324 = vmatmul.bf16.gmra.mxu3 %v2910_v58  ;;  %v2946_v38 = vor.u32 %v3541_v54, %v2943_v4 }
 0x1ed   : > { %2413 = vmatmul.bf16.gmra.mxu0 %v2914_v32 }
 0x1ee   : > { %v2196_v47 = vpop.f32.mrf.mxu2 }
 0x1ef   : > { %v2197_v49 = vadd.f32 %v2196_v47, %v2108_v40  ;;  %v2285_v51 = vpop.f32.mrf.mxu3 }
 0x1f0   : > { %v2109_v39 = vpop.f32.mrf.mxu1 }
 0x1f1   : > { %v2286_v61 = vadd.f32 %v2285_v51, %v2197_v49  ;;  %v2110_v35 = vadd.f32 %v2109_v39, %v4155_v15  ;;  %v3549_v49 = vld [vmem:[%s3793_s5 + $0x2e4] sm:$0xf]  ;;  %v2971_v51 = vld [vmem:[%s3793_s5 + $0x304] sm:$0xf0] }
 0x1f2   : > { %v2376_v45 = vpop.f32.mrf.mxu0  ;;  %v2977_v39 = vld [vmem:[%s3793_s5 + $0x2e8] sm:$0xf]  ;;  %v2974_v4 = vor.u32 %v3549_v49, %v2971_v51  ;;  %v3021_v49 = vld [vmem:[%s3793_s5 + $0x338] sm:$0xf]  ;;  %v3564_v51 = vld [vmem:[%s3793_s5 + $0x358] sm:$0xf0] }
 0x1f3   : > { %v4421_v1 = vadd.f32 %v2374_v7, %v2286_v61  ;;  %v3554_v61 = vld [vmem:[%s3793_s5 + $0x308] sm:$0xf0] }
 0x1f4   : > { %v2978_v59 = vor.u32 %v3554_v61, %v2977_v39 }
 0x1f6   : > { %v2198_v11 = vpop.f32.mrf.mxu2 }
 0x1f7   : > { %v2199_v37 = vadd.f32 %v2198_v11, %v2110_v35  ;;  %v2287_v50 = vpop.f32.mrf.mxu3  ;;  %v3550_v35 = vld [vmem:[%s3793_s5 + $0x2ec] sm:$0xf] }
 0x1f8   : > { %v2112_v46 = vpop.f32.mrf.mxu1 }
 0x1f9   : > { %v2288_v15 = vadd.f32 %v2287_v50, %v2199_v37  ;;  %v2113_v18 = vadd.f32 %v2112_v46, %v4161_v27  ;;  %v2986_v37 = vor.u32 %v3555_v62, %v2985_v10 }
 0x1fa   : > { %v2379_v3 = vpop.f32.mrf.mxu0 }
 0x1fb   : > { %v4432_v48 = vadd.f32 %v2376_v45, %v2288_v15  ;;  %2151 = vmatmul.bf16.gmra.mxu1 %v2938_v20  ;;  %2240 = vmatmul.bf16.gmra.mxu2 %v2942_v44  ;;  %v2979_v45 = vld [vmem:[%s3793_s5 + $0x30c] sm:$0xf0] }
 0x1fc   : > { %2329 = vmatmul.bf16.gmra.mxu3 %v2946_v38  ;;  %v2982_v11 = vor.u32 %v3550_v35, %v2979_v45 }
 0x1fd   : > { %2418 = vmatmul.bf16.gmra.mxu0 %v2950_v16 }
 0x1fe   : > { %v2201_v19 = vpop.f32.mrf.mxu2 }
 0x1ff   : > { %v2202_v58 = vadd.f32 %v2201_v19, %v2113_v18  ;;  %v2290_v32 = vpop.f32.mrf.mxu3 }
 0x200   : > { %v2114_v60 = vpop.f32.mrf.mxu1 }
 0x201   : > { %v2291_v40 = vadd.f32 %v2290_v32, %v2202_v58  ;;  %v2115_v27 = vadd.f32 %v2114_v60, %v4171_v9  ;;  %v3558_v58 = vld [vmem:[%s3793_s5 + $0x32c] sm:$0xf]  ;;  %v3007_v32 = vld [vmem:[%s3793_s5 + $0x34c] sm:$0xf0] }
 0x202   : > { %v2381_v7 = vpop.f32.mrf.mxu0  ;;  %v3013_v60 = vld [vmem:[%s3793_s5 + $0x330] sm:$0xf]  ;;  %v3010_v45 = vor.u32 %v3558_v58, %v3007_v32  ;;  %v3057_v58 = vld [vmem:[%s3793_s5 + $0x380] sm:$0xf]  ;;  %v3573_v32 = vld [vmem:[%s3793_s5 + $0x3a0] sm:$0xf0] }
 0x203   : > { %v4435_v47 = vadd.f32 %v2379_v3, %v2291_v40  ;;  %v3563_v40 = vld [vmem:[%s3793_s5 + $0x350] sm:$0xf0] }
 0x204   : > { %v3014_v10 = vor.u32 %v3563_v40, %v3013_v60 }
 0x206   : > { %v2203_v17 = vpop.f32.mrf.mxu2 }
 0x207   : > { %v2204_v31 = vadd.f32 %v2203_v17, %v2115_v27  ;;  %v2292_v54 = vpop.f32.mrf.mxu3  ;;  %v3559_v27 = vld [vmem:[%s3793_s5 + $0x334] sm:$0xf] }
 0x208   : > { %v2117_v6 = vpop.f32.mrf.mxu1 }
 0x209   : > { %v2293_v9 = vadd.f32 %v2292_v54, %v2204_v31  ;;  %v2118_v50 = vadd.f32 %v2117_v6, %v4189_v28  ;;  %v3022_v31 = vor.u32 %v3564_v51, %v3021_v49 }
 0x20a   : > { %v2384_v20 = vpop.f32.mrf.mxu0 }
 0x20b   : > { %v4446_v44 = vadd.f32 %v2381_v7, %v2293_v9  ;;  %2156 = vmatmul.bf16.gmra.mxu1 %v2974_v4  ;;  %2245 = vmatmul.bf16.gmra.mxu2 %v2978_v59  ;;  %v3015_v7 = vld [vmem:[%s3793_s5 + $0x354] sm:$0xf0] }
 0x20c   : > { %2334 = vmatmul.bf16.gmra.mxu3 %v2982_v11  ;;  %v3018_v17 = vor.u32 %v3559_v27, %v3015_v7 }
 0x20d   : > { %2423 = vmatmul.bf16.gmra.mxu0 %v2986_v37 }
 0x20e   : > { %v2206_v46 = vpop.f32.mrf.mxu2 }
 0x20f   : > { %v2207_v38 = vadd.f32 %v2206_v46, %v2118_v50  ;;  %v2295_v16 = vpop.f32.mrf.mxu3 }
 0x210   : > { %v2119_v15 = vpop.f32.mrf.mxu1 }
 0x211   : > { %v2296_v18 = vadd.f32 %v2295_v16, %v2207_v38  ;;  %v2120_v28 = vadd.f32 %v2119_v15, %v4199_v13  ;;  %v3567_v38 = vld [vmem:[%s3793_s5 + $0x374] sm:$0xf]  ;;  %v3043_v16 = vld [vmem:[%s3793_s5 + $0x394] sm:$0xf0] }
 0x212   : > { %v2386_v3 = vpop.f32.mrf.mxu0  ;;  %v3049_v15 = vld [vmem:[%s3793_s5 + $0x378] sm:$0xf]  ;;  %v3046_v7 = vor.u32 %v3567_v38, %v3043_v16  ;;  %v2454_v38 = vmax.f32 %v4421_v1, 0.0  ;;  %v2455_v1 = vmax.f32 %v4432_v48, 0.0  ;;  %v3586_v48 = vld [vmem:[%s3793_s5 + $0x40c] sm:$0xf] }
 0x213   : > { %v4449_v19 = vadd.f32 %v2384_v20, %v2296_v18  ;;  %v3572_v18 = vld [vmem:[%s3793_s5 + $0x398] sm:$0xf0] }
 0x214   : > { %v3050_v49 = vor.u32 %v3572_v18, %v3049_v15  ;;  %v3093_v15 = vld [vmem:[%s3793_s5 + $0x3c8] sm:$0xf]  ;;  %v3582_v18 = vld [vmem:[%s3793_s5 + $0x3e8] sm:$0xf0] }
 0x216   : > { %v2208_v39 = vpop.f32.mrf.mxu2 }
 0x217   : > { %v2209_v61 = vadd.f32 %v2208_v39, %v2120_v28  ;;  %v2297_v35 = vpop.f32.mrf.mxu3  ;;  %v3568_v28 = vld [vmem:[%s3793_s5 + $0x37c] sm:$0xf] }
 0x218   : > { %v2122_v62 = vpop.f32.mrf.mxu1 }
 0x219   : > { %v2298_v13 = vadd.f32 %v2297_v35, %v2209_v61  ;;  %v2123_v54 = vadd.f32 %v2122_v62, %v4205_v23  ;;  %v3058_v61 = vor.u32 %v3573_v32, %v3057_v58 }
 0x21a   : > { %v2389_v4 = vpop.f32.mrf.mxu0 }
 0x21b   : > { %v4460_v59 = vadd.f32 %v2386_v3, %v2298_v13  ;;  %2161 = vmatmul.bf16.gmra.mxu1 %v3010_v45  ;;  %2250 = vmatmul.bf16.gmra.mxu2 %v3014_v10  ;;  %v3051_v3 = vld [vmem:[%s3793_s5 + $0x39c] sm:$0xf0] }
 0x21c   : > { %2339 = vmatmul.bf16.gmra.mxu3 %v3018_v17  ;;  %v3054_v39 = vor.u32 %v3568_v28, %v3051_v3 }
 0x21d   : > { %2428 = vmatmul.bf16.gmra.mxu0 %v3022_v31 }
 0x21e   : > { %v2211_v6 = vpop.f32.mrf.mxu2 }
 0x21f   : > { %v2212_v11 = vadd.f32 %v2211_v6, %v2123_v54  ;;  %v2300_v37 = vpop.f32.mrf.mxu3 }
 0x220   : > { %v2124_v9 = vpop.f32.mrf.mxu1 }
 0x221   : > { %v2301_v50 = vadd.f32 %v2300_v37, %v2212_v11  ;;  %v2125_v23 = vadd.f32 %v2124_v9, %v4215_v2  ;;  %v3576_v11 = vld [vmem:[%s3793_s5 + $0x3bc] sm:$0xf]  ;;  %v3079_v37 = vld [vmem:[%s3793_s5 + $0x3dc] sm:$0xf0] }
 0x222   : > { %v2391_v20 = vpop.f32.mrf.mxu0  ;;  %v3085_v9 = vld [vmem:[%s3793_s5 + $0x3c0] sm:$0xf] }
 0x223   : > { %v4463_v46 = vadd.f32 %v2389_v4, %v2301_v50  ;;  %v3581_v50 = vld [vmem:[%s3793_s5 + $0x3e0] sm:$0xf0] }
 0x226   : > { %v2213_v60 = vpop.f32.mrf.mxu2 }
 0x227   : > { %v2214_v40 = vadd.f32 %v2213_v60, %v2125_v23  ;;  %v2302_v27 = vpop.f32.mrf.mxu3  ;;  %v3577_v23 = vld [vmem:[%s3793_s5 + $0x3c4] sm:$0xf]  ;;  %v3082_v60 = vor.u32 %v3576_v11, %v3079_v37  ;;  %v3121_v11 = vld [vmem:[%s3793_s5 + $0x408] sm:$0xf]  ;;  %v3590_v37 = vld [vmem:[%s3793_s5 + $0x428] sm:$0xf0] }
 0x228   : > { %v2127_v51 = vpop.f32.mrf.mxu1 }
 0x229   : > { %v2303_v2 = vadd.f32 %v2302_v27, %v2214_v40  ;;  %v2128_v35 = vadd.f32 %v2127_v51, %v4233_v24 }
 0x22a   : > { %v2394_v45 = vpop.f32.mrf.mxu0 }
 0x22b   : > { %v4474_v10 = vadd.f32 %v2391_v20, %v2303_v2  ;;  %2166 = vmatmul.bf16.gmra.mxu1 %v3046_v7  ;;  %2255 = vmatmul.bf16.gmra.mxu2 %v3050_v49  ;;  %v3087_v20 = vld [vmem:[%s3793_s5 + $0x3e4] sm:$0xf0]  ;;  %v3094_v7 = vor.u32 %v3582_v18, %v3093_v15 }
 0x22c   : > { %2344 = vmatmul.bf16.gmra.mxu3 %v3054_v39  ;;  %v3090_v27 = vor.u32 %v3577_v23, %v3087_v20  ;;  %v3129_v20 = vld [vmem:[%s3793_s5 + $0x410] sm:$0xf] }
 0x22d   : > { %2433 = vmatmul.bf16.gmra.mxu0 %v3058_v61 }
 0x22e   : > { %v2216_v62 = vpop.f32.mrf.mxu2 }
 0x22f   : > { %v2217_v17 = vadd.f32 %v2216_v62, %v2128_v35  ;;  %v2305_v31 = vpop.f32.mrf.mxu3 }
 0x230   : > { %v2129_v13 = vpop.f32.mrf.mxu1 }
 0x231   : > { %v2306_v54 = vadd.f32 %v2305_v31, %v2217_v17  ;;  %v2130_v24 = vadd.f32 %v2129_v13, %v4243_v30  ;;  %v3086_v30 = vor.u32 %v3581_v50, %v3085_v9  ;;  %v3123_v9 = vld [vmem:[%s3793_s5 + $0x42c] sm:$0xf0]  ;;  %v2456_v50 = vmax.f32 %v4435_v47, 0.0 }
 0x232   : > { %v2396_v4 = vpop.f32.mrf.mxu0  ;;  %v2457_v47 = vmax.f32 %v4446_v44, 0.0  ;;  %v3595_v44 = vld [vmem:[%s3793_s5 + $0x454] sm:$0xf] }
 0x233   : > { %v2395_v6 = vadd.f32 %v2394_v45, %v2306_v54 }
 0x235   : > { %v2462_v16 = vmax.f32 %v2395_v6, 0.0  ;;  %v3115_v6 = vld [vmem:[%s3793_s5 + $0x424] sm:$0xf0] }
 0x236   : > { %v2218_v28 = vpop.f32.mrf.mxu2 }
 0x237   : > { %v4486_v3 = vmax.f32 %v2454_v38, %v2462_v16  ;;  %v2219_v58 = vadd.f32 %v2218_v28, %v2130_v24  ;;  %v2307_v32 = vpop.f32.mrf.mxu3  ;;  %v3591_v38 = vld [vmem:[%s3793_s5 + $0x430] sm:$0xf0] }
 0x238   : > { %v2132_v40 = vpop.f32.mrf.mxu1 }
 0x239   : > { %v2308_v49 = vadd.f32 %v2307_v32, %v2219_v58  ;;  %v2133_v51 = vadd.f32 %v2132_v40, %v4249_v33 }
 0x23a   : > { %v2399_v39 = vpop.f32.mrf.mxu0 }
 0x23b   : > { %v2397_v61 = vadd.f32 %v2396_v4, %v2308_v49  ;;  %2171 = vmatmul.bf16.gmra.mxu1 %v3082_v60  ;;  %2260 = vmatmul.bf16.gmra.mxu2 %v3086_v30  ;;  %v3585_v4 = vld [vmem:[%s3793_s5 + $0x404] sm:$0xf]  ;;  %v3126_v60 = vor.u32 %v3586_v48, %v3123_v9  ;;  %v3130_v30 = vor.u32 %v3591_v38, %v3129_v20  ;;  %v3600_v48 = vld [vmem:[%s3793_s5 + $0x478] sm:$0xf0] }
 0x23c   : > { %2349 = vmatmul.bf16.gmra.mxu3 %v3090_v27  ;;  %v3118_v58 = vor.u32 %v3585_v4, %v3115_v6  ;;  %v3159_v4 = vld [vmem:[%s3793_s5 + $0x474] sm:$0xf0]  ;;  %v2458_v6 = vmax.f32 %v4449_v19, 0.0  ;;  %v2459_v19 = vmax.f32 %v4460_v59, 0.0 }
 0x23d   : > { %2438 = vmatmul.bf16.gmra.mxu0 %v3094_v7  ;;  %v2463_v2 = vmax.f32 %v2397_v61, 0.0 }
 0x23e   : > { %v2221_v35 = vpop.f32.mrf.mxu2 }
 0x23f   : > { %v4490_v45 = vmax.f32 %v2455_v1, %v2463_v2  ;;  %v2222_v33 = vadd.f32 %v2221_v35, %v2133_v51  ;;  %v2310_v62 = vpop.f32.mrf.mxu3 }
 0x240   : > { %v2134_v17 = vpop.f32.mrf.mxu1 }
 0x241   : > { %v2311_v31 = vadd.f32 %v2310_v62, %v2222_v33  ;;  %v2135_v13 = vadd.f32 %v2134_v17, %v4259_v56  ;;  %v3122_v56 = vor.u32 %v3590_v37, %v3121_v11  ;;  %v3165_v37 = vld [vmem:[%s3793_s5 + $0x458] sm:$0xf] }
 0x242   : > { %v2401_v54 = vpop.f32.mrf.mxu0 }
 0x243   : > { %v2400_v24 = vadd.f32 %v2399_v39, %v2311_v31  ;;  %v3594_v31 = vld [vmem:[%s3793_s5 + $0x44c] sm:$0xf] }
 0x245   : > { %v2464_v23 = vmax.f32 %v2400_v24, 0.0  ;;  %v3599_v24 = vld [vmem:[%s3793_s5 + $0x470] sm:$0xf0] }
 0x246   : > { %v2223_v16 = vpop.f32.mrf.mxu2 }
 0x247   : > { %v4502_v15 = vmax.f32 %v2456_v50, %v2464_v23  ;;  %v2224_v18 = vadd.f32 %v2223_v16, %v2135_v13  ;;  %v2312_v28 = vpop.f32.mrf.mxu3  ;;  %v3151_v13 = vld [vmem:[%s3793_s5 + $0x46c] sm:$0xf0] }
 0x248   : > { %v2137_v32 = vpop.f32.mrf.mxu1  ;;  %v3154_v38 = vor.u32 %v3594_v31, %v3151_v13 }
 0x249   : > { %v2313_v40 = vadd.f32 %v2312_v28, %v2224_v18  ;;  %v2138_v27 = vadd.f32 %v2137_v32, %v4265_v12  ;;  %v3162_v18 = vor.u32 %v3595_v44, %v3159_v4  ;;  %v3166_v28 = vor.u32 %v3600_v48, %v3165_v37 }
 0x24a   : > { %v2404_v7 = vpop.f32.mrf.mxu0  ;;  %v2461_v44 = vmax.f32 %v4474_v10, 0.0 }
 0x24b   : > { %v2402_v49 = vadd.f32 %v2401_v54, %v2313_v40  ;;  %2176 = vmatmul.bf16.gmra.mxu1 %v3118_v58  ;;  %2265 = vmatmul.bf16.gmra.mxu2 %v3122_v56  ;;  %v3157_v54 = vld [vmem:[%s3793_s5 + $0x450] sm:$0xf]  ;;  %s2589_s5 = sshll.u32 %s2582_s13, 3 }
 0x24c   : > { %2354 = vmatmul.bf16.gmra.mxu3 %v3126_v60  ;;  %p172_p4 = scmp.lt.s32.totalorder %s2589_s5, 15 }
 0x24d   : > { %2443 = vmatmul.bf16.gmra.mxu0 %v3130_v30  ;;  %v2465_v51 = vmax.f32 %v2402_v49, 0.0 }
 0x24e   : > { %v2226_v39 = vpop.f32.mrf.mxu2  ;;  %s4600_s5 = smov (!%p172_p4, %s2589_s5), 15 }
 0x24f   : > { %v4506_v61 = vmax.f32 %v2457_v47, %v2465_v51  ;;  %v2227_v12 = vadd.f32 %v2226_v39, %v2138_v27  ;;  %v2315_v1 = vpop.f32.mrf.mxu3  ;;  %s2590_s13 = sshll.u32 %s4600_s5, 2 }
 0x250   : > { %v2139_v2 = vpop.f32.mrf.mxu1  ;;  %s4567_s24 = scalar_lea.vmem %s4596_s3, %s2590_s13 }
 0x251   : > { %v2316_v35 = vadd.f32 %v2315_v1, %v2227_v12  ;;  %v2140_v33 = vadd.f32 %v2139_v2, %v4275_v52  ;;  %v3158_v52 = vor.u32 %v3599_v24, %v3157_v54  ;;  %v2460_v1 = vmax.f32 %v4463_v46, 0.0 }
 0x252   : > { %v2406_v62 = vpop.f32.mrf.mxu0 }
 0x253   : > { %v2405_v17 = vadd.f32 %v2404_v7, %v2316_v35 }
 0x255   : > { %v2466_v11 = vmax.f32 %v2405_v17, 0.0 }
 0x256   : > { %v2228_v9 = vpop.f32.mrf.mxu2 }
 0x257   : > { %v4518_v50 = vmax.f32 %v2458_v6, %v2466_v11  ;;  %v2229_v23 = vadd.f32 %v2228_v9, %v2140_v33  ;;  %v2317_v20 = vpop.f32.mrf.mxu3 }
 0x258   : > { %v2142_v16 = vpop.f32.mrf.mxu1 }
 0x259   : > { %v2318_v58 = vadd.f32 %v2317_v20, %v2229_v23  ;;  %v2143_v56 = vadd.f32 %v2142_v16, %v4281_v5 }
 0x25a   : > { %v2409_v32 = vpop.f32.mrf.mxu0 }
 0x25b   : > { %v2407_v60 = vadd.f32 %v2406_v62, %v2318_v58  ;;  %2181 = vmatmul.bf16.gmra.mxu1 %v3154_v38  ;;  %2270 = vmatmul.bf16.gmra.mxu2 %v3158_v52 }
 0x25c   : > { %2359 = vmatmul.bf16.gmra.mxu3 %v3162_v18 }
 0x25d   : > { %2448 = vmatmul.bf16.gmra.mxu0 %v3166_v28  ;;  %v2467_v30 = vmax.f32 %v2407_v60, 0.0 }
 0x25e   : > { %v2231_v40 = vpop.f32.mrf.mxu2 }
 0x25f   : > { %v4522_v27 = vmax.f32 %v2459_v19, %v2467_v30  ;;  %v2232_v7 = vadd.f32 %v2231_v40, %v2143_v56  ;;  %v2320_v49 = vpop.f32.mrf.mxu3 }
 0x260   : > { %v2144_v47 = vpop.f32.mrf.mxu1 }
 0x261   : > { %v2321_v51 = vadd.f32 %v2320_v49, %v2232_v7  ;;  %v2145_v39 = vadd.f32 %v2144_v47, %v4291_v41 }
 0x262   : > { %v2411_v12 = vpop.f32.mrf.mxu0 }
 0x263   : > { %v2410_v5 = vadd.f32 %v2409_v32, %v2321_v51 }
 0x265   : > { %v2468_v2 = vmax.f32 %v2410_v5, 0.0 }
 0x266   : > { %v2233_v35 = vpop.f32.mrf.mxu2 }
 0x267   : > { %v4526_v33 = vmax.f32 %v2460_v1, %v2468_v2  ;;  %v2234_v62 = vadd.f32 %v2233_v35, %v2145_v39  ;;  %v2322_v59 = vpop.f32.mrf.mxu3 }
 0x268   : > { %v2147_v17 = vpop.f32.mrf.mxu1 }
 0x269   : > { %v2323_v31 = vadd.f32 %v2322_v59, %v2234_v62  ;;  %v2148_v13 = vadd.f32 %v2147_v17, %v4297_v63 }
 0x26a   : > { %v2414_v54 = vpop.f32.mrf.mxu0 }
 0x26b   : > { %v2412_v24 = vadd.f32 %v2411_v12, %v2323_v31 }
 0x26d   : > { %v2469_v4 = vmax.f32 %v2412_v24, 0.0 }
 0x26e   : > { %v2236_v41 = vpop.f32.mrf.mxu2 }
 0x26f   : > { %v4530_v6 = vmax.f32 %v2461_v44, %v2469_v4  ;;  %v2237_v11 = vadd.f32 %v2236_v41, %v2148_v13  ;;  %v2325_v46 = vpop.f32.mrf.mxu3 }
 0x270   : > { %v2149_v37 = vpop.f32.mrf.mxu1 }
 0x271   : > { %v2326_v48 = vadd.f32 %v2325_v46, %v2237_v11  ;;  %v2150_v9 = vadd.f32 %v2149_v37, %v4307_v29 }
 0x272   : > { %v2416_v23 = vpop.f32.mrf.mxu0 }
 0x273   : > { %v4533_v20 = vadd.f32 %v2414_v54, %v2326_v48 }
 0x276   : > { %v2238_v38 = vpop.f32.mrf.mxu2 }
 0x277   : > { %v2239_v52 = vadd.f32 %v2238_v38, %v2150_v9  ;;  %v2327_v63 = vpop.f32.mrf.mxu3 }
 0x278   : > { %v2152_v16 = vpop.f32.mrf.mxu1 }
 0x279   : > { %v2328_v18 = vadd.f32 %v2327_v63, %v2239_v52  ;;  %v2153_v10 = vadd.f32 %v2152_v16, %v4313_v53 }
 0x27a   : > { %v2419_v28 = vpop.f32.mrf.mxu0 }
 0x27b   : > { %v4536_v58 = vadd.f32 %v2416_v23, %v2328_v18 }
 0x27e   : > { %v2241_v56 = vpop.f32.mrf.mxu2 }
 0x27f   : > { %v2242_v32 = vadd.f32 %v2241_v56, %v2153_v10  ;;  %v2330_v60 = vpop.f32.mrf.mxu3 }
 0x280   : > { %v2154_v19 = vpop.f32.mrf.mxu1 }
 0x281   : > { %v2331_v30 = vadd.f32 %v2330_v60, %v2242_v32  ;;  %v2155_v29 = vadd.f32 %v2154_v19, %v4323_v25 }
 0x282   : > { %v2421_v40 = vpop.f32.mrf.mxu0 }
 0x283   : > { %v4539_v7 = vadd.f32 %v2419_v28, %v2331_v30 }
 0x286   : > { %v2243_v49 = vpop.f32.mrf.mxu2 }
 0x287   : > { %v2244_v47 = vadd.f32 %v2243_v49, %v2155_v29  ;;  %v2332_v51 = vpop.f32.mrf.mxu3 }
 0x288   : > { %v2157_v39 = vpop.f32.mrf.mxu1 }
 0x289   : > { %v2333_v12 = vadd.f32 %v2332_v51, %v2244_v47  ;;  %v2158_v53 = vadd.f32 %v2157_v39, %v4329_v42  ;;  %v2470_v51 = vmax.f32 %v4533_v20, 0.0 }
 0x28a   : > { %v2424_v5 = vpop.f32.mrf.mxu0 }
 0x28b   : > { %v4542_v1 = vadd.f32 %v2421_v40, %v2333_v12 }
 0x28e   : > { %v2246_v2 = vpop.f32.mrf.mxu2 }
 0x28f   : > { %v2247_v35 = vadd.f32 %v2246_v2, %v2158_v53  ;;  %v2335_v62 = vpop.f32.mrf.mxu3 }
 0x290   : > { %v2159_v59 = vpop.f32.mrf.mxu1 }
 0x291   : > { %v2336_v17 = vadd.f32 %v2335_v62, %v2247_v35  ;;  %v2160_v25 = vadd.f32 %v2159_v59, %v4339_v21 }
 0x292   : > { %v2426_v31 = vpop.f32.mrf.mxu0 }
 0x293   : > { %v4545_v13 = vadd.f32 %v2424_v5, %v2336_v17 }
 0x296   : > { %v2248_v54 = vpop.f32.mrf.mxu2 }
 0x297   : > { %v2249_v24 = vadd.f32 %v2248_v54, %v2160_v25  ;;  %v2337_v44 = vpop.f32.mrf.mxu3 }
 0x298   : > { %v2162_v4 = vpop.f32.mrf.mxu1 }
 0x299   : > { %v2338_v41 = vadd.f32 %v2337_v44, %v2249_v24  ;;  %v2163_v42 = vadd.f32 %v2162_v4, %v4345_v34 }
 0x29a   : > { %v2429_v11 = vpop.f32.mrf.mxu0 }
 0x29b   : > { %v4548_v46 = vadd.f32 %v2426_v31, %v2338_v41  ;;  %v2471_v31 = vmax.f32 %v4536_v58, 0.0 }
 0x29e   : > { %v2251_v37 = vpop.f32.mrf.mxu2 }
 0x29f   : > { %v2252_v48 = vadd.f32 %v2251_v37, %v2163_v42  ;;  %v2340_v9 = vpop.f32.mrf.mxu3 }
 0x2a0   : > { %v2164_v23 = vpop.f32.mrf.mxu1 }
 0x2a1   : > { %v2341_v38 = vadd.f32 %v2340_v9, %v2252_v48  ;;  %v2165_v21 = vadd.f32 %v2164_v23, %v4355_v14 }
 0x2a2   : > { %v2431_v52 = vpop.f32.mrf.mxu0 }
 0x2a3   : > { %v4551_v63 = vadd.f32 %v2429_v11, %v2341_v38 }
 0x2a6   : > { %v2253_v16 = vpop.f32.mrf.mxu2 }
 0x2a7   : > { %v2254_v18 = vadd.f32 %v2253_v16, %v2165_v21  ;;  %v2342_v10 = vpop.f32.mrf.mxu3 }
 0x2a8   : > { %v2167_v28 = vpop.f32.mrf.mxu1 }
 0x2a9   : > { %v2343_v56 = vadd.f32 %v2342_v10, %v2254_v18  ;;  %v2168_v60 = vadd.f32 %v2167_v28, %v4361_v26 }
 0x2aa   : > { %v2434_v34 = vpop.f32.mrf.mxu0 }
 0x2ab   : > { %v4553_v32 = vadd.f32 %v2431_v52, %v2343_v56  ;;  %v2473_v56 = vmax.f32 %v4542_v1, 0.0 }
 0x2ae   : > { %v2256_v19 = vpop.f32.mrf.mxu2 }
 0x2af   : > { %v2257_v30 = vadd.f32 %v2256_v19, %v2168_v60  ;;  %v2345_v29 = vpop.f32.mrf.mxu3 }
 0x2b0   : > { %v2169_v40 = vpop.f32.mrf.mxu1 }
 0x2b1   : > { %v2346_v49 = vadd.f32 %v2345_v29, %v2257_v30  ;;  %v2170_v12 = vadd.f32 %v2169_v40, %v4371_v8 }
 0x2b2   : > { %v2436_v14 = vpop.f32.mrf.mxu0 }
 0x2b3   : > { %v2435_v47 = vadd.f32 %v2434_v34, %v2346_v49 }
 0x2b5   : > { %v2478_v39 = vmax.f32 %v2435_v47, 0.0 }
 0x2b6   : > { %v2258_v53 = vpop.f32.mrf.mxu2 }
 0x2b7   : > { %v2494_v5 = vmax.f32 %v2470_v51, %v2478_v39  ;;  %v2259_v2 = vadd.f32 %v2258_v53, %v2170_v12  ;;  %v2347_v35 = vpop.f32.mrf.mxu3 }
 0x2b8   : > { %v2172_v26 = vpop.f32.mrf.mxu1 }
 0x2b9   : > { %v2502_v62 = vmax.f32 %v4486_v3, %v2494_v5  ;;  %v2348_v59 = vadd.f32 %v2347_v35, %v2259_v2  ;;  %v2173_v20 = vadd.f32 %v2172_v26, %v4377_v22  ;;  %v2472_v22 = vmax.f32 %v4539_v7, 0.0 }
 0x2ba   : > { %v2439_v17 = vpop.f32.mrf.mxu0 }
 0x2bb   : > { %v2437_v25 = vadd.f32 %v2436_v14, %v2348_v59 }
 0x2bd   : > { %v2479_v54 = vmax.f32 %v2437_v25, 0.0 }
 0x2be   : > { %v2261_v24 = vpop.f32.mrf.mxu2 }
 0x2bf   : > { %v2495_v8 = vmax.f32 %v2471_v31, %v2479_v54  ;;  %v2262_v44 = vadd.f32 %v2261_v24, %v2173_v20  ;;  %v2350_v4 = vpop.f32.mrf.mxu3 }
 0x2c0   : > { %v2174_v41 = vpop.f32.mrf.mxu1 }
 0x2c1   : > { %v2503_v42 = vmax.f32 %v4490_v45, %v2495_v8  ;;  %v2351_v11 = vadd.f32 %v2350_v4, %v2262_v44  ;;  %v2175_v9 = vadd.f32 %v2174_v41, %v4387_v0 }
 0x2c2   : > { %v2441_v3 = vpop.f32.mrf.mxu0 }
 0x2c3   : > { %v3676_v58 = vpack.c.bf16 %v2503_v42, %v2502_v62  ;;  %v2440_v37 = vadd.f32 %v2439_v17, %v2351_v11  ;;  %v2475_v62 = vmax.f32 %v4548_v46, 0.0 }
 0x2c5   : > { %3677 = vst [vmem:[%s4567_s24] sm:$0xff] %v3676_v58   ;;  %v2480_v48 = vmax.f32 %v2440_v37, 0.0 }
 0x2c6   : > { %v2263_v23 = vpop.f32.mrf.mxu2 }
 0x2c7   : > { %v2496_v38 = vmax.f32 %v2472_v22, %v2480_v48  ;;  %v2264_v21 = vadd.f32 %v2263_v23, %v2175_v9  ;;  %v2352_v45 = vpop.f32.mrf.mxu3  ;;  %v2477_v48 = vmax.f32 %v4553_v32, 0.0 }
 0x2c8   : > { %v2177_v52 = vpop.f32.mrf.mxu1 }
 0x2c9   : > { %v2504_v16 = vmax.f32 %v4502_v15, %v2496_v38  ;;  %v2353_v18 = vadd.f32 %v2352_v45, %v2264_v21  ;;  %v2178_v7 = vadd.f32 %v2177_v52, %v4395_v57  ;;  %v2474_v15 = vmax.f32 %v4545_v13, 0.0 }
 0x2ca   : > { %v2444_v28 = vpop.f32.mrf.mxu0 }
 0x2cb   : > { %v2442_v10 = vadd.f32 %v2441_v3, %v2353_v18 }
 0x2cd   : > { %v2481_v34 = vmax.f32 %v2442_v10, 0.0 }
 0x2ce   : > { %v2266_v60 = vpop.f32.mrf.mxu2 }
 0x2cf   : > { %v2497_v19 = vmax.f32 %v2473_v56, %v2481_v34  ;;  %v2267_v30 = vadd.f32 %v2266_v60, %v2178_v7  ;;  %v2355_v0 = vpop.f32.mrf.mxu3 }
 0x2d0   : > { %v2179_v29 = vpop.f32.mrf.mxu1 }
 0x2d1   : > { %v2505_v40 = vmax.f32 %v4506_v61, %v2497_v19  ;;  %v2356_v49 = vadd.f32 %v2355_v0, %v2267_v30  ;;  %v2180_v39 = vadd.f32 %v2179_v29, %v4404_v55 }
 0x2d2   : > { %v2446_v1 = vpop.f32.mrf.mxu0 }
 0x2d3   : > { %v3681_v14 = vpack.c.bf16 %v2505_v40, %v2504_v16  ;;  %v2445_v47 = vadd.f32 %v2444_v28, %v2356_v49 }
 0x2d5   : > { %3693 = vst [vmem:[%s4567_s24 + $0x8] sm:$0xff] %v3681_v14   ;;  %v2482_v51 = vmax.f32 %v2445_v47, 0.0 }
 0x2d6   : > { %v2268_v12 = vpop.f32.mrf.mxu2 }
 0x2d7   : > { %v2498_v53 = vmax.f32 %v2474_v15, %v2482_v51  ;;  %v2269_v57 = vadd.f32 %v2268_v12, %v2180_v39  ;;  %v2357_v5 = vpop.f32.mrf.mxu3 }
 0x2d8   : > { %v2182_v2 = vpop.f32.mrf.mxu1 }
 0x2d9   : > { %v2506_v35 = vmax.f32 %v4518_v50, %v2498_v53  ;;  %v2358_v26 = vadd.f32 %v2357_v5, %v2269_v57  ;;  %v2183_v13 = vadd.f32 %v2182_v2, %v4409_v43  ;;  %v2476_v50 = vmax.f32 %v4551_v63, 0.0 }
 0x2da   : > { %v2449_v54 = vpop.f32.mrf.mxu0 }
 0x2db   : > { %v2447_v61 = vadd.f32 %v2446_v1, %v2358_v26 }
 0x2dd   : > { %v2483_v59 = vmax.f32 %v2447_v61, 0.0 }
 0x2de   : > { %v2271_v17 = vpop.f32.mrf.mxu2 }
 0x2df   : > { %v2499_v25 = vmax.f32 %v2475_v62, %v2483_v59  ;;  %v2272_v31 = vadd.f32 %v2271_v17, %v2183_v13  ;;  %v2360_v55 = vpop.f32.mrf.mxu3 }
 0x2e0   : > { %v2184_v8 = vpop.f32.mrf.mxu1 }
 0x2e1   : > { %v2507_v20 = vmax.f32 %v4522_v27, %v2499_v25  ;;  %v2361_v24 = vadd.f32 %v2360_v55, %v2272_v31  ;;  %v2185_v46 = vadd.f32 %v2184_v8, %v4418_v36 }
 0x2e2   : > { %v2451_v22 = vpop.f32.mrf.mxu0 }
 0x2e3   : > { %v3686_v44 = vpack.c.bf16 %v2507_v20, %v2506_v35  ;;  %v2450_v4 = vadd.f32 %v2449_v54, %v2361_v24 }
 0x2e5   : > { %3694 = vst [vmem:[%s4567_s24 + $0x10] sm:$0xff] %v3686_v44   ;;  %v2484_v41 = vmax.f32 %v2450_v4, 0.0 }
 0x2e6   : > { %v2273_v42 = vpop.f32.mrf.mxu2 }
 0x2e7   : > { %v2500_v43 = vmax.f32 %v2476_v50, %v2484_v41  ;;  %v2274_v11 = vadd.f32 %v2273_v42, %v2185_v46  ;;  %v2362_v3 = vpop.f32.mrf.mxu3 }
 0x2e9   : > { %v2508_v58 = vmax.f32 %v4526_v33, %v2500_v43  ;;  %v2363_v37 = vadd.f32 %v2362_v3, %v2274_v11 }
 0x2eb   : > { %v2452_v27 = vadd.f32 %v2451_v22, %v2363_v37 }
 0x2ed   : > { %v2485_v9 = vmax.f32 %v2452_v27, 0.0 }
 0x2ef   : > { %v2501_v23 = vmax.f32 %v2477_v48, %v2485_v9 }
 0x2f1   : > { %v2509_v63 = vmax.f32 %v4530_v6, %v2501_v23 }
 0x2f3   : > { %v3691_v38 = vpack.c.bf16 %v2509_v63, %v2508_v58 }
 0x2f5   : > { %3695 = vst [vmem:[%s4567_s24 + $0x18] sm:$0xff] %v3691_v38  }
 0x2f6 PF: > { %s13_s12 = sadd.s32 1, %s3737_s12  }
 0x2f7   : > { %p10_p5 = scmp.ge.s32.totalorder %s13_s12, 4  }
 0x2f9   :  { %12 = sbr.rel (!%p10_p5) target bundleno = 1 (0x1), region = 62 }

// kernel: net_forward.7
= control target key start
LH: loop header
LB: loop body
LE: loop exit
PB: predicated region body
PF: predicated region fallthrough
CT: control target
= control target key end

     0   :  { %s1950_s12 = smov 0   ;;  %s2303_s0 = inlined_call_operand.vmem [shape: bf16[128,1152], index: 0, kind: input, shape index: {}]   ;;  %s2304_s1 = inlined_call_operand.vmem [shape: bf16[1152,128], index: 1, kind: input, shape index: {}]   ;;  %s2305_s2 = inlined_call_operand.vmem [shape: f32[1,128], index: 2, kind: input, shape index: {}]   ;;  %s2306_s3 = inlined_call_operand.vmem [shape: bf16[128,128], index: 3, kind: output, shape index: {}]  }
   0x1 LB: > { %s1322_s13 = sadd.s32 4294967295, %s1928_s12   ;;  %p1326_p0 = scmp.ge.s32.totalorder %s1928_s12, 1  ;;  %s1928_s12 = sphi %s1950_s12, %s13_s12  }
   0x2   : > { %p139_p1 = scmp.lt.s32.totalorder %s1928_s12, 3 }
   0x4   : > { %p140_p2 = pnand %p1326_p0, %p139_p1 }
   0x5   : > { %s1327_s30 = sshll.u32 (!%p140_p2), %s1322_s13, 3 }
   0x6   : > { %143 = sbr.rel (%p140_p2) target bundleno = 334 (0x14e), region = 32  ;;  %p165_p3 = scmp.lt.s32.totalorder (!%p140_p2), %s1327_s30, 15 }
   0xb   : > { %v1808_v0 = vld [vmem:[%s2304_s1 + $0x38] sm:$0xff]  ;;  %v1807_v2 = vld [vmem:[%s2304_s1 + $0x30] sm:$0xff]  ;;  %v1806_v6 = vld [vmem:[%s2304_s1 + $0x28] sm:$0xff]  ;;  %s2308_s30 = smov (!%p165_p3, %s1327_s30), 15 }
   0xc   : > { %v1824_v1 = vld [vmem:[%s2304_s1 + $0xb8] sm:$0xff]  ;;  %1896 = vmatpush.bf16.msra.mxu1 %v1808_v0  ;;  %981 = vmatpush.bf16.msra.mxu0 %v1808_v0  ;;  %v1823_v3 = vld [vmem:[%s2304_s1 + $0xb0] sm:$0xff]  ;;  %v1822_v7 = vld [vmem:[%s2304_s1 + $0xa8] sm:$0xff]  ;;  %s1912_s21 = smul.u32 36, %s2308_s30 }
   0xd   : > { %1039 = vmatpush.bf16.msra.mxu2 %v1824_v1  ;;  %v1832_v4 = vld [vmem:[%s2304_s1 + $0xf8] sm:$0xff]  ;;  %v1831_v5 = vld [vmem:[%s2304_s1 + $0xf0] sm:$0xff]  ;;  %v1830_v8 = vld [vmem:[%s2304_s1 + $0xe8] sm:$0xff] }
   0xe   : > { %1068 = vmatpush.bf16.msra.mxu3 %v1832_v4  ;;  %v1805_v9 = vld [vmem:[%s2304_s1 + $0x20] sm:$0xff]  ;;  %v1804_v12 = vld [vmem:[%s2304_s1 + $0x18] sm:$0xff]  ;;  %v1803_v15 = vld [vmem:[%s2304_s1 + $0x10] sm:$0xff]  ;;  %s2021_s4 = scalar_lea.vmem %s2303_s0, %s1912_s21 }
   0xf   : > { %v1821_v10 = vld [vmem:[%s2304_s1 + $0xa0] sm:$0xff]  ;;  %v1820_v13 = vld [vmem:[%s2304_s1 + $0x98] sm:$0xff]  ;;  %v1819_v16 = vld [vmem:[%s2304_s1 + $0x90] sm:$0xff] }
  0x10   : > { %1897 = vmatpush.bf16.msra.mxu1 %v1807_v2  ;;  %982 = vmatpush.bf16.msra.mxu0 %v1807_v2  ;;  %v1829_v11 = vld [vmem:[%s2304_s1 + $0xe0] sm:$0xff]  ;;  %v1828_v14 = vld [vmem:[%s2304_s1 + $0xd8] sm:$0xff]  ;;  %v1827_v17 = vld [vmem:[%s2304_s1 + $0xd0] sm:$0xff] }
  0x11   : > { %1040 = vmatpush.bf16.msra.mxu2 %v1823_v3  ;;  %v1802_v18 = vld [vmem:[%s2304_s1 + $0x8] sm:$0xff]  ;;  %v1801_v20 = vld [vmem:[%s2304_s1] sm:$0xff]  ;;  %v1405_v21 = vld [vmem:[%s2021_s4 + $0x90] sm:$0xf] }
  0x12   : > { %1069 = vmatpush.bf16.msra.mxu3 %v1831_v5  ;;  %v1818_v19 = vld [vmem:[%s2304_s1 + $0x88] sm:$0xff]  ;;  %v1816_v22 = vld [vmem:[%s2304_s1 + $0x78] sm:$0xff]  ;;  %v1787_v24 = vld [vmem:[%s2021_s4 + $0xb0] sm:$0xf0] }
  0x13   : > { %v1826_v23 = vld [vmem:[%s2304_s1 + $0xc8] sm:$0xff]  ;;  %v1333_v25 = vld [vmem:[%s2021_s4] sm:$0xf]  ;;  %v1769_v26 = vld [vmem:[%s2021_s4 + $0x20] sm:$0xf0]  ;;  %v1406_v32 = vor.u32 %v1787_v24, %v1405_v21 }
  0x14   : > { %1898 = vmatpush.bf16.msra.mxu1 %v1806_v6  ;;  %983 = vmatpush.bf16.msra.mxu0 %v1806_v6  ;;  %v1817_v27 = vld [vmem:[%s2304_s1 + $0x80] sm:$0xff]  ;;  %v1341_v28 = vld [vmem:[%s2021_s4 + $0x8] sm:$0xf]  ;;  %v1770_v29 = vld [vmem:[%s2021_s4 + $0x28] sm:$0xf0]  ;;  %v1334_v33 = vor.u32 %v1769_v26, %v1333_v25 }
  0x15   : > { %1041 = vmatpush.bf16.msra.mxu2 %v1822_v7  ;;  %v1840_v30 = vld [vmem:[%s2304_s1 + $0x138] sm:$0xff]  ;;  %v1342_v34 = vor.u32 %v1770_v29, %v1341_v28  ;;  %v1825_v35 = vld [vmem:[%s2304_s1 + $0xc0] sm:$0xff]  ;;  %v1766_v36 = vld [vmem:[%s2021_s4 + $0xc] sm:$0xf] }
  0x16   : > { %1070 = vmatpush.bf16.msra.mxu3 %v1830_v8  ;;  %v1856_v31 = vld [vmem:[%s2304_s1 + $0x1b8] sm:$0xff]  ;;  %v1343_v37 = vld [vmem:[%s2021_s4 + $0x2c] sm:$0xf0]  ;;  %v1814_v43 = vld [vmem:[%s2304_s1 + $0x68] sm:$0xff] }
  0x17   : > { %v1815_v38 = vld [vmem:[%s2304_s1 + $0x70] sm:$0xff]  ;;  %v1864_v39 = vld [vmem:[%s2304_s1 + $0x1f8] sm:$0xff]  ;;  %v1346_v42 = vor.u32 %v1766_v36, %v1343_v37  ;;  %v1838_v45 = vld [vmem:[%s2304_s1 + $0x128] sm:$0xff] }
  0x18   : > { %1899 = vmatpush.bf16.msra.mxu1 %v1805_v9  ;;  %984 = vmatpush.bf16.msra.mxu0 %v1805_v9  ;;  %v1839_v40 = vld [vmem:[%s2304_s1 + $0x130] sm:$0xff]  ;;  %v1854_v46 = vld [vmem:[%s2304_s1 + $0x1a8] sm:$0xff]  ;;  %v1813_v47 = vld [vmem:[%s2304_s1 + $0x60] sm:$0xff] }
  0x19   : > { %1042 = vmatpush.bf16.msra.mxu2 %v1821_v10  ;;  %v1855_v41 = vld [vmem:[%s2304_s1 + $0x1b0] sm:$0xff]  ;;  %v1862_v48 = vld [vmem:[%s2304_s1 + $0x1e8] sm:$0xff]  ;;  %v1837_v49 = vld [vmem:[%s2304_s1 + $0x120] sm:$0xff] }
  0x1a   : > { %1071 = vmatpush.bf16.msra.mxu3 %v1829_v11  ;;  %v1863_v44 = vld [vmem:[%s2304_s1 + $0x1f0] sm:$0xff]  ;;  %v1853_v50 = vld [vmem:[%s2304_s1 + $0x1a0] sm:$0xff]  ;;  %v1441_v51 = vld [vmem:[%s2021_s4 + $0xd8] sm:$0xf] }
  0x1b   : > { %v1796_v52 = vld [vmem:[%s2021_s4 + $0xf8] sm:$0xf0]  ;;  %v1369_v53 = vld [vmem:[%s2021_s4 + $0x48] sm:$0xf]  ;;  %v1778_v54 = vld [vmem:[%s2021_s4 + $0x68] sm:$0xf0] }
  0x1c   : > { %1900 = vmatpush.bf16.msra.mxu1 %v1804_v12  ;;  %985 = vmatpush.bf16.msra.mxu0 %v1804_v12  ;;  %v1812_v55 = vld [vmem:[%s2304_s1 + $0x58] sm:$0xff]  ;;  %v1377_v56 = vld [vmem:[%s2021_s4 + $0x50] sm:$0xf]  ;;  %v1779_v57 = vld [vmem:[%s2021_s4 + $0x70] sm:$0xf0]  ;;  %v1442_v59 = vor.u32 %v1796_v52, %v1441_v51  ;;  %v1370_v60 = vor.u32 %v1778_v54, %v1369_v53 }
  0x1d   : > { %1043 = vmatpush.bf16.msra.mxu2 %v1820_v13  ;;  %v1836_v58 = vld [vmem:[%s2304_s1 + $0x118] sm:$0xff]  ;;  %v1378_v61 = vor.u32 %v1779_v57, %v1377_v56  ;;  %v1775_v62 = vld [vmem:[%s2021_s4 + $0x54] sm:$0xf]  ;;  %v1810_v4 = vld [vmem:[%s2304_s1 + $0x48] sm:$0xff] }
  0x1e   : > { %1072 = vmatpush.bf16.msra.mxu3 %v1828_v14  ;;  %v1379_v63 = vld [vmem:[%s2021_s4 + $0x74] sm:$0xf0]  ;;  %v1811_v0 = vld [vmem:[%s2304_s1 + $0x50] sm:$0xff]  ;;  %v1861_v5 = vld [vmem:[%s2304_s1 + $0x1e0] sm:$0xff] }
  0x1f   : > { %v1835_v1 = vld [vmem:[%s2304_s1 + $0x110] sm:$0xff]  ;;  %v1382_v2 = vor.u32 %v1775_v62, %v1379_v63  ;;  %v1852_v3 = vld [vmem:[%s2304_s1 + $0x198] sm:$0xff]  ;;  %v1834_v6 = vld [vmem:[%s2304_s1 + $0x108] sm:$0xff] }
  0x20   : > { %1901 = vmatpush.bf16.msra.mxu1 %v1803_v15  ;;  %986 = vmatpush.bf16.msra.mxu0 %v1803_v15  ;;  %v1851_v7 = vld [vmem:[%s2304_s1 + $0x190] sm:$0xff]  ;;  %v1860_v8 = vld [vmem:[%s2304_s1 + $0x1d8] sm:$0xff]  ;;  %v1809_v9 = vld [vmem:[%s2304_s1 + $0x40] sm:$0xff] }
  0x21   : > { %1044 = vmatpush.bf16.msra.mxu2 %v1819_v16  ;;  %v1848_v10 = vld [vmem:[%s2304_s1 + $0x178] sm:$0xff]  ;;  %v1833_v11 = vld [vmem:[%s2304_s1 + $0x100] sm:$0xff]  ;;  %v1335_v14 = vld [vmem:[%s2021_s4 + $0x24] sm:$0xf0] }
  0x22   : > { %1073 = vmatpush.bf16.msra.mxu3 %v1827_v17  ;;  %v1765_v12 = vld [vmem:[%s2021_s4 + $0x4] sm:$0xf]  ;;  %v1872_v13 = vld [vmem:[%s2304_s1 + $0x238] sm:$0xff]  ;;  %v1349_v15 = vld [vmem:[%s2021_s4 + $0x10] sm:$0xf] }
  0x23   : > { %v1771_v16 = vld [vmem:[%s2021_s4 + $0x30] sm:$0xf0]  ;;  %v1413_v17 = vld [vmem:[%s2021_s4 + $0x98] sm:$0xf]  ;;  %v1415_v24 = vld [vmem:[%s2021_s4 + $0xbc] sm:$0xf0] }
  0x24   : > { %1902 = vmatpush.bf16.msra.mxu1 %v1802_v18  ;;  %987 = vmatpush.bf16.msra.mxu0 %v1802_v18  ;;  %v1788_v18 = vld [vmem:[%s2021_s4 + $0xb8] sm:$0xf0]  ;;  %v1350_v21 = vor.u32 %v1771_v16, %v1349_v15  ;;  %v1871_v25 = vld [vmem:[%s2304_s1 + $0x230] sm:$0xff]  ;;  %v1846_v26 = vld [vmem:[%s2304_s1 + $0x168] sm:$0xff] }
  0x25   : > { %1045 = vmatpush.bf16.msra.mxu2 %v1818_v19  ;;  %v1847_v19 = vld [vmem:[%s2304_s1 + $0x170] sm:$0xff]  ;;  %v1849_v29 = vld [vmem:[%s2304_s1 + $0x180] sm:$0xff]  ;;  %v1774_v36 = vld [vmem:[%s2021_s4 + $0x4c] sm:$0xf] }
  0x26   : > { %1074 = vmatpush.bf16.msra.mxu3 %v1826_v23  ;;  %v1784_v23 = vld [vmem:[%s2021_s4 + $0x9c] sm:$0xf]  ;;  %v1371_v37 = vld [vmem:[%s2021_s4 + $0x6c] sm:$0xf0]  ;;  %v1841_v52 = vld [vmem:[%s2304_s1 + $0x140] sm:$0xff] }
  0x27   : > { %v1418_v28 = vor.u32 %v1784_v23, %v1415_v24  ;;  %v1868_v51 = vld [vmem:[%s2304_s1 + $0x218] sm:$0xff]  ;;  %v1867_v53 = vld [vmem:[%s2304_s1 + $0x210] sm:$0xff]  ;;  %v1421_v57 = vld [vmem:[%s2021_s4 + $0xa0] sm:$0xf] }
  0x28   : > { %1903 = vmatpush.bf16.msra.mxu1 %v1801_v20  ;;  %988 = vmatpush.bf16.msra.mxu0 %v1801_v20  ;;  %v1338_v20 = vor.u32 %v1765_v12, %v1335_v14  ;;  %v1783_v54 = vld [vmem:[%s2021_s4 + $0x94] sm:$0xf]  ;;  %v1407_v56 = vld [vmem:[%s2021_s4 + $0xb4] sm:$0xf0]  ;;  %v1395_v14 = vld [vmem:[%s2021_s4 + $0x84] sm:$0xf0] }
  0x29   : > { %1046 = vmatpush.bf16.msra.mxu2 %v1817_v27  ;;  %v1850_v27 = vld [vmem:[%s2304_s1 + $0x188] sm:$0xff]  ;;  %v1767_v16 = vld [vmem:[%s2021_s4 + $0x14] sm:$0xf] }
  0x2a   : > { %1075 = vmatpush.bf16.msra.mxu3 %v1825_v35  ;;  %v1844_v35 = vld [vmem:[%s2304_s1 + $0x158] sm:$0xff] }
  0x2b   : > { %999 = vmatmul.bf16.vlgmr.msra.gmra.mxu1 %v1406_v32  ;;  %989 = vmatmul.bf16.vlgmr.msra.gmra.mxu0 %v1334_v33  ;;  %v1845_v32 = vld [vmem:[%s2304_s1 + $0x160] sm:$0xff]  ;;  %v1858_v33 = vld [vmem:[%s2304_s1 + $0x1c8] sm:$0xff] }
  0x2c   : > { %1010 = vmatpush.bf16.msrb.mxu1 %v1816_v22  ;;  %1097 = vmatpush.bf16.msrb.mxu0 %v1840_v30  ;;  %v1414_v22 = vor.u32 %v1788_v18, %v1413_v17  ;;  %v1859_v30 = vld [vmem:[%s2304_s1 + $0x1d0] sm:$0xff]  ;;  %v1351_v17 = vld [vmem:[%s2021_s4 + $0x34] sm:$0xf0]  ;;  %v1365_v18 = vld [vmem:[%s2021_s4 + $0x20] sm:$0xf] }
  0x2d   : > { %1155 = vmatpush.bf16.msrb.mxu2 %v1856_v31  ;;  %1076 = vmatmul.bf16.vlgmr.msra.gmra.mxu3 %v1346_v42  ;;  %v1870_v31 = vld [vmem:[%s2304_s1 + $0x228] sm:$0xff]  ;;  %v1843_v42 = vld [vmem:[%s2304_s1 + $0x150] sm:$0xff] }
  0x2e   : > { %1047 = vmatmul.bf16.vlgmr.msra.gmra.mxu2 %v1342_v34  ;;  %1184 = vmatpush.bf16.msrb.mxu3 %v1864_v39  ;;  %v1869_v34 = vld [vmem:[%s2304_s1 + $0x220] sm:$0xff]  ;;  %v1780_v39 = vld [vmem:[%s2021_s4 + $0x78] sm:$0xf0] }
  0x30   : > { %1011 = vmatpush.bf16.msrb.mxu1 %v1815_v38  ;;  %1098 = vmatpush.bf16.msrb.mxu0 %v1839_v40  ;;  %v1385_v38 = vld [vmem:[%s2021_s4 + $0x58] sm:$0xf]  ;;  %v1449_v40 = vld [vmem:[%s2021_s4 + $0xe0] sm:$0xf] }
  0x31   : > { %1156 = vmatpush.bf16.msrb.mxu2 %v1855_v41  ;;  %v1797_v41 = vld [vmem:[%s2021_s4 + $0x100] sm:$0xf0] }
  0x32   : > { %1185 = vmatpush.bf16.msrb.mxu3 %v1863_v44  ;;  %v1386_v44 = vor.u32 %v1780_v39, %v1385_v38  ;;  %v1467_v38 = vld [vmem:[%s2021_s4 + $0x114] sm:$0xf0] }
  0x34   : > { %1012 = vmatpush.bf16.msrb.mxu1 %v1814_v43  ;;  %1099 = vmatpush.bf16.msrb.mxu0 %v1838_v45  ;;  %v1374_v43 = vor.u32 %v1774_v36, %v1371_v37  ;;  %v1450_v45 = vor.u32 %v1797_v41, %v1449_v40  ;;  %v1795_v37 = vld [vmem:[%s2021_s4 + $0xf4] sm:$0xf]  ;;  %v1785_v40 = vld [vmem:[%s2021_s4 + $0xa4] sm:$0xf]  ;;  %v1423_v41 = vld [vmem:[%s2021_s4 + $0xc4] sm:$0xf0] }
  0x35   : > { %1157 = vmatpush.bf16.msrb.mxu2 %v1854_v46  ;;  %v1793_v46 = vld [vmem:[%s2021_s4 + $0xe4] sm:$0xf]  ;;  %v1470_v39 = vor.u32 %v1795_v37, %v1467_v38 }
  0x36   : > { %1186 = vmatpush.bf16.msrb.mxu3 %v1862_v48 }
  0x38   : > { %1013 = vmatpush.bf16.msrb.mxu1 %v1813_v47  ;;  %1100 = vmatpush.bf16.msrb.mxu0 %v1837_v49  ;;  %v1451_v47 = vld [vmem:[%s2021_s4 + $0x104] sm:$0xf0] }
  0x39   : > { %1158 = vmatpush.bf16.msrb.mxu2 %v1853_v50  ;;  %v1454_v48 = vor.u32 %v1793_v46, %v1451_v47  ;;  %v1842_v49 = vld [vmem:[%s2304_s1 + $0x148] sm:$0xff]  ;;  %v1857_v50 = vld [vmem:[%s2304_s1 + $0x1c0] sm:$0xff]  ;;  %v1426_v46 = vor.u32 %v1785_v40, %v1423_v41 }
  0x3a   : > { %1187 = vmatpush.bf16.msrb.mxu3 %v1861_v5  ;;  %v1443_v5 = vld [vmem:[%s2021_s4 + $0xfc] sm:$0xf0] }
  0x3b   : > { %1004 = vmatmul.bf16.gmra.mxu1 %v1442_v59  ;;  %994 = vmatmul.bf16.gmra.mxu0 %v1370_v60  ;;  %v1357_v59 = vld [vmem:[%s2021_s4 + $0x18] sm:$0xf]  ;;  %v1772_v60 = vld [vmem:[%s2021_s4 + $0x38] sm:$0xf0] }
  0x3c   : > { %1014 = vmatpush.bf16.msrb.mxu1 %v1812_v55  ;;  %1101 = vmatpush.bf16.msrb.mxu0 %v1836_v58  ;;  %v1866_v55 = vld [vmem:[%s2304_s1 + $0x208] sm:$0xff]  ;;  %v1789_v58 = vld [vmem:[%s2021_s4 + $0xc0] sm:$0xf0]  ;;  %v1358_v63 = vor.u32 %v1772_v60, %v1357_v59 }
  0x3d   : > { %1159 = vmatpush.bf16.msrb.mxu2 %v1852_v3  ;;  %1081 = vmatmul.bf16.gmra.mxu3 %v1382_v2  ;;  %v1422_v62 = vor.u32 %v1789_v58, %v1421_v57  ;;  %v1865_v3 = vld [vmem:[%s2304_s1 + $0x200] sm:$0xff] }
  0x3e   : > { %1052 = vmatmul.bf16.gmra.mxu2 %v1378_v61  ;;  %1188 = vmatpush.bf16.msrb.mxu3 %v1860_v8  ;;  %v1410_v61 = vor.u32 %v1783_v54, %v1407_v56  ;;  %v1393_v8 = vld [vmem:[%s2021_s4 + $0x60] sm:$0xf]  ;;  %v1459_v56 = vld [vmem:[%s2021_s4 + $0x10c] sm:$0xf0] }
  0x40   : > { %1015 = vmatpush.bf16.msrb.mxu1 %v1811_v0  ;;  %1102 = vmatpush.bf16.msrb.mxu0 %v1835_v1  ;;  %v1768_v0 = vld [vmem:[%s2021_s4 + $0x1c] sm:$0xf]  ;;  %v1359_v1 = vld [vmem:[%s2021_s4 + $0x3c] sm:$0xf0] }
  0x41   : > { %1160 = vmatpush.bf16.msrb.mxu2 %v1851_v7  ;;  %v1362_v2 = vor.u32 %v1768_v0, %v1359_v1  ;;  %v1798_v7 = vld [vmem:[%s2021_s4 + $0x108] sm:$0xf0] }
  0x42   : > { %1189 = vmatpush.bf16.msrb.mxu3 %v1859_v30  ;;  %v1401_v30 = vld [vmem:[%s2021_s4 + $0x68] sm:$0xf] }
  0x44   : > { %1016 = vmatpush.bf16.msrb.mxu1 %v1810_v4  ;;  %1103 = vmatpush.bf16.msrb.mxu0 %v1834_v6  ;;  %v1792_v4 = vld [vmem:[%s2021_s4 + $0xdc] sm:$0xf]  ;;  %v1457_v6 = vld [vmem:[%s2021_s4 + $0xe8] sm:$0xf] }
  0x45   : > { %1161 = vmatpush.bf16.msrb.mxu2 %v1850_v27 }
  0x46   : > { %1190 = vmatpush.bf16.msrb.mxu3 %v1858_v33  ;;  %v1799_v33 = vld [vmem:[%s2021_s4 + $0x110] sm:$0xf0] }
  0x48   : > { %1017 = vmatpush.bf16.msrb.mxu1 %v1809_v9  ;;  %1104 = vmatpush.bf16.msrb.mxu0 %v1833_v11  ;;  %v1781_v9 = vld [vmem:[%s2021_s4 + $0x80] sm:$0xf0]  ;;  %v1458_v11 = vor.u32 %v1798_v7, %v1457_v6 }
  0x49   : > { %1162 = vmatpush.bf16.msrb.mxu2 %v1849_v29  ;;  %v1394_v12 = vor.u32 %v1781_v9, %v1393_v8  ;;  %v1387_v29 = vld [vmem:[%s2021_s4 + $0x7c] sm:$0xf0] }
  0x4a   : > { %1191 = vmatpush.bf16.msrb.mxu3 %v1857_v50 }
  0x4b   : > { %1018 = vmatmul.bf16.vlgmr.msrb.gmra.mxu1 %v1338_v20  ;;  %1105 = vmatmul.bf16.vlgmr.msrb.gmra.mxu0 %v1350_v21  ;;  %v1429_v20 = vld [vmem:[%s2021_s4 + $0xa8] sm:$0xf]  ;;  %v1790_v21 = vld [vmem:[%s2021_s4 + $0xc8] sm:$0xf0] }
  0x4c   : > { %1126 = vmatpush.bf16.msra.mxu1 %v1848_v10  ;;  %1213 = vmatpush.bf16.msra.mxu0 %v1872_v13  ;;  %v1446_v10 = vor.u32 %v1792_v4, %v1443_v5  ;;  %v1430_v24 = vor.u32 %v1790_v21, %v1429_v20 }
  0x4d   : > { %1086 = vmatmul.bf16.gmra.mxu3 %v1418_v28  ;;  %1904 = vmatpush.bf16.msra.mxu2 %v1872_v13  ;;  %v1777_v13 = vld [vmem:[%s2021_s4 + $0x64] sm:$0xf]  ;;  %v1776_v28 = vld [vmem:[%s2021_s4 + $0x5c] sm:$0xf] }
  0x4e   : > { %1057 = vmatmul.bf16.gmra.mxu2 %v1414_v22  ;;  %v1398_v15 = vor.u32 %v1777_v13, %v1395_v14  ;;  %v1354_v22 = vor.u32 %v1767_v16, %v1351_v17 }
  0x50   : > { %1127 = vmatpush.bf16.msra.mxu1 %v1847_v19  ;;  %1214 = vmatpush.bf16.msra.mxu0 %v1871_v25  ;;  %v1773_v19 = vld [vmem:[%s2021_s4 + $0x40] sm:$0xf0] }
  0x51   : > { %1905 = vmatpush.bf16.msra.mxu2 %v1871_v25  ;;  %v1366_v23 = vor.u32 %v1773_v19, %v1365_v18  ;;  %v1786_v25 = vld [vmem:[%s2021_s4 + $0xac] sm:$0xf] }
  0x54   : > { %1128 = vmatpush.bf16.msra.mxu1 %v1846_v26  ;;  %1215 = vmatpush.bf16.msra.mxu0 %v1870_v31  ;;  %v1431_v26 = vld [vmem:[%s2021_s4 + $0xcc] sm:$0xf0] }
  0x55   : > { %1906 = vmatpush.bf16.msra.mxu2 %v1870_v31  ;;  %v1434_v27 = vor.u32 %v1786_v25, %v1431_v26  ;;  %v1782_v31 = vld [vmem:[%s2021_s4 + $0x88] sm:$0xf0] }
  0x58   : > { %1129 = vmatpush.bf16.msra.mxu1 %v1845_v32  ;;  %1216 = vmatpush.bf16.msra.mxu0 %v1869_v34  ;;  %v1465_v32 = vld [vmem:[%s2021_s4 + $0xf0] sm:$0xf] }
  0x59   : > { %1907 = vmatpush.bf16.msra.mxu2 %v1869_v34  ;;  %v1390_v34 = vor.u32 %v1776_v28, %v1387_v29  ;;  %v1466_v36 = vor.u32 %v1799_v33, %v1465_v32 }
  0x5b   : > { %1023 = vmatmul.bf16.gmra.mxu1 %v1374_v43  ;;  %1110 = vmatmul.bf16.gmra.mxu0 %v1386_v44  ;;  %v1791_v43 = vld [vmem:[%s2021_s4 + $0xd0] sm:$0xf0]  ;;  %v1473_v44 = vld [vmem:[%s2021_s4 + $0xf8] sm:$0xf] }
  0x5c   : > { %1130 = vmatpush.bf16.msra.mxu1 %v1844_v35  ;;  %1217 = vmatpush.bf16.msra.mxu0 %v1868_v51  ;;  %v1402_v35 = vor.u32 %v1782_v31, %v1401_v30 }
  0x5d   : > { %1091 = vmatmul.bf16.gmra.mxu3 %v1454_v48  ;;  %1908 = vmatpush.bf16.msra.mxu2 %v1868_v51 }
  0x5e   : > { %1062 = vmatmul.bf16.gmra.mxu2 %v1450_v45  ;;  %v1800_v45 = vld [vmem:[%s2021_s4 + $0x118] sm:$0xf0] }
  0x5f   : > { %v1474_v50 = vor.u32 %v1800_v45, %v1473_v44 }
  0x60   : > { %1131 = vmatpush.bf16.msra.mxu1 %v1843_v42  ;;  %1218 = vmatpush.bf16.msra.mxu0 %v1867_v53  ;;  %v1437_v42 = vld [vmem:[%s2021_s4 + $0xb0] sm:$0xf] }
  0x61   : > { %1909 = vmatpush.bf16.msra.mxu2 %v1867_v53  ;;  %v1438_v47 = vor.u32 %v1791_v43, %v1437_v42 }
  0x64   : > { %1132 = vmatpush.bf16.msra.mxu1 %v1842_v49  ;;  %1219 = vmatpush.bf16.msra.mxu0 %v1866_v55 }
  0x65   : > { %1910 = vmatpush.bf16.msra.mxu2 %v1866_v55  ;;  %v1794_v55 = vld [vmem:[%s2021_s4 + $0xec] sm:$0xf]  ;;  %s1330_s4 = sshll.u32 %s2308_s30, 2 }
  0x66   : > { %v1462_v57 = vor.u32 %v1794_v55, %v1459_v56  ;;  %s2284_s20 = scalar_lea.vmem %s2306_s3, %s1330_s4 }
  0x68   : > { %1133 = vmatpush.bf16.msra.mxu1 %v1841_v52  ;;  %1220 = vmatpush.bf16.msra.mxu0 %v1865_v3 }
  0x69   : > { %1911 = vmatpush.bf16.msra.mxu2 %v1865_v3 }
  0x6b   : > { %1028 = vmatmul.bf16.gmra.mxu1 %v1410_v61  ;;  %1115 = vmatmul.bf16.gmra.mxu0 %v1422_v62 }
  0x6d   : > { %1192 = vmatmul.bf16.vlgmr.msrb.gmra.mxu3 %v1362_v2  ;;  %v1921_v2 = vld [vmem:[%s2305_s2] ss:$0 sm:$0xff] }
  0x6e   : > { %1163 = vmatmul.bf16.vlgmr.msrb.gmra.mxu2 %v1358_v63 }
  0x7b   : > { %1033 = vmatmul.bf16.gmra.mxu1 %v1446_v10  ;;  %1120 = vmatmul.bf16.gmra.mxu0 %v1458_v11 }
  0x7d   : > { %1197 = vmatmul.bf16.gmra.mxu3 %v1398_v15 }
  0x7e   : > { %1168 = vmatmul.bf16.gmra.mxu2 %v1394_v12 }
  0x8b   : > { %1134 = vmatmul.bf16.vlgmr.msra.gmra.mxu1 %v1354_v22  ;;  %1221 = vmatmul.bf16.vlgmr.msra.gmra.mxu0 %v1366_v23 }
  0x8d   : > { %1202 = vmatmul.bf16.gmra.mxu3 %v1434_v27 }
  0x8e   : > { %1173 = vmatmul.bf16.gmra.mxu2 %v1430_v24 }
  0x9b   : > { %1139 = vmatmul.bf16.gmra.mxu1 %v1390_v34  ;;  %1226 = vmatmul.bf16.gmra.mxu0 %v1402_v35 }
  0x9d   : > { %1207 = vmatmul.bf16.gmra.mxu3 %v1470_v39 }
  0x9e   : > { %1178 = vmatmul.bf16.gmra.mxu2 %v1466_v36 }
  0xa8   : > { %v1000_v48 = vpop.f32.mrf.mxu1  ;;  %v990_v49 = vpop.f32.mrf.mxu0 }
  0xa9   : > { %v991_v3 = vadd.f32 %v1921_v2, %v990_v49  ;;  %v1001_v34 = vadd.f32 %v1921_v2, %v1000_v48 }
  0xab   : > { %1144 = vmatmul.bf16.gmra.mxu1 %v1426_v46  ;;  %1231 = vmatmul.bf16.gmra.mxu0 %v1438_v47 }
  0xae   : > { %1236 = vmatmul.bf16.vlgmr.msra.gmra.mxu2 %v1474_v50 }
  0xb0   : > { %v1002_v52 = vpop.f32.mrf.mxu1  ;;  %v992_v53 = vpop.f32.mrf.mxu0 }
  0xb1   : > { %v1048_v51 = vpop.f32.mrf.mxu2  ;;  %v1077_v54 = vpop.f32.mrf.mxu3  ;;  %v993_v11 = vadd.f32 %v1921_v2, %v992_v53  ;;  %v1003_v42 = vadd.f32 %v1921_v2, %v1002_v52 }
  0xb8   : > { %v1005_v59 = vpop.f32.mrf.mxu1  ;;  %v995_v60 = vpop.f32.mrf.mxu0 }
  0xb9   : > { %v1050_v58 = vpop.f32.mrf.mxu2  ;;  %v2254_v61 = vpop.f32.mrf.mxu3  ;;  %v996_v19 = vadd.f32 %v1921_v2, %v995_v60  ;;  %v1006_v48 = vadd.f32 %v1921_v2, %v1005_v59 }
  0xbb   : > { %1149 = vmatmul.bf16.gmra.mxu1 %v1462_v57 }
  0xc0   : > { %v1007_v63 = vpop.f32.mrf.mxu1  ;;  %v997_v0 = vpop.f32.mrf.mxu0 }
  0xc1   : > { %v1053_v62 = vpop.f32.mrf.mxu2  ;;  %v1082_v1 = vpop.f32.mrf.mxu3  ;;  %v998_v26 = vadd.f32 %v1921_v2, %v997_v0  ;;  %v1008_v52 = vadd.f32 %v1921_v2, %v1007_v63 }
  0xc8   : > { %v1019_v5 = vpop.f32.mrf.mxu1  ;;  %v1106_v6 = vpop.f32.mrf.mxu0 }
  0xc9   : > { %v1055_v4 = vpop.f32.mrf.mxu2  ;;  %v1020_v7 = vadd.f32 %v1019_v5, %v991_v3  ;;  %v2259_v9 = vpop.f32.mrf.mxu3 }
  0xcb   : > { %v1049_v8 = vadd.f32 %v1048_v51, %v1020_v7 }
  0xcd   : > { %v1078_v10 = vadd.f32 %v1077_v54, %v1049_v8 }
  0xcf   : > { %v1107_v12 = vadd.f32 %v1106_v6, %v1078_v10 }
  0xd0   : > { %v1021_v14 = vpop.f32.mrf.mxu1  ;;  %v1108_v15 = vpop.f32.mrf.mxu0 }
  0xd1   : > { %v1058_v13 = vpop.f32.mrf.mxu2  ;;  %v1022_v16 = vadd.f32 %v1021_v14, %v993_v11  ;;  %v1087_v18 = vpop.f32.mrf.mxu3 }
  0xd3   : > { %v1051_v17 = vadd.f32 %v1050_v58, %v1022_v16 }
  0xd5   : > { %v1080_v10 = vadd.f32 %v2254_v61, %v1051_v17 }
  0xd8   : > { %v1024_v21 = vpop.f32.mrf.mxu1  ;;  %v1111_v22 = vpop.f32.mrf.mxu0 }
  0xd9   : > { %v1060_v20 = vpop.f32.mrf.mxu2  ;;  %v1025_v23 = vadd.f32 %v1024_v21, %v996_v19  ;;  %v2261_v29 = vpop.f32.mrf.mxu3 }
  0xdb   : > { %v1054_v24 = vadd.f32 %v1053_v62, %v1025_v23 }
  0xdd   : > { %v1083_v25 = vadd.f32 %v1082_v1, %v1054_v24 }
  0xdf   : > { %v1112_v27 = vadd.f32 %v1111_v22, %v1083_v25 }
  0xe0   : > { %v1026_v30 = vpop.f32.mrf.mxu1  ;;  %v2263_v31 = vpop.f32.mrf.mxu0 }
  0xe1   : > { %v1063_v28 = vpop.f32.mrf.mxu2  ;;  %v1027_v32 = vadd.f32 %v1026_v30, %v998_v26  ;;  %v1092_v39 = vpop.f32.mrf.mxu3 }
  0xe3   : > { %v1056_v33 = vadd.f32 %v1055_v4, %v1027_v32 }
  0xe5   : > { %v1085_v61 = vadd.f32 %v2259_v9, %v1056_v33 }
  0xe8   : > { %v1029_v36 = vpop.f32.mrf.mxu1  ;;  %v1116_v37 = vpop.f32.mrf.mxu0 }
  0xe9   : > { %v1065_v35 = vpop.f32.mrf.mxu2  ;;  %v1030_v38 = vadd.f32 %v1029_v36, %v1001_v34  ;;  %v2271_v50 = vpop.f32.mrf.mxu3  ;;  %v1114_v34 = vadd.f32 %v2263_v31, %v1085_v61 }
  0xeb   : > { %v1059_v40 = vadd.f32 %v1058_v13, %v1030_v38  ;;  %v1109_v13 = vadd.f32 %v1108_v15, %v1080_v10 }
  0xed   : > { %v1088_v41 = vadd.f32 %v1087_v18, %v1059_v40 }
  0xef   : > { %v2265_v43 = vadd.f32 %v1116_v37, %v1088_v41 }
  0xf0   : > { %v1031_v45 = vpop.f32.mrf.mxu1  ;;  %v2267_v46 = vpop.f32.mrf.mxu0 }
  0xf1   : > { %v1164_v44 = vpop.f32.mrf.mxu2  ;;  %v1032_v47 = vadd.f32 %v1031_v45, %v1003_v42  ;;  %v1193_v58 = vpop.f32.mrf.mxu3 }
  0xf3   : > { %v2269_v49 = vadd.f32 %v1060_v20, %v1032_v47 }
  0xf5   : > { %v1090_v31 = vadd.f32 %v2261_v29, %v2269_v49 }
  0xf8   : > { %v1034_v53 = vpop.f32.mrf.mxu1  ;;  %v1121_v54 = vpop.f32.mrf.mxu0 }
  0xf9   : > { %v1166_v51 = vpop.f32.mrf.mxu2  ;;  %v1035_v55 = vadd.f32 %v1034_v53, %v1006_v48  ;;  %v1195_v5 = vpop.f32.mrf.mxu3 }
  0xfb   : > { %v1064_v56 = vadd.f32 %v1063_v28, %v1035_v55 }
  0xfd   : > { %v1093_v57 = vadd.f32 %v1092_v39, %v1064_v56 }
  0xff   : > { %v2273_v60 = vadd.f32 %v1121_v54, %v1093_v57  ;;  %v1119_v54 = vadd.f32 %v2267_v46, %v1090_v31 }
 0x100   : > { %v1036_v0 = vpop.f32.mrf.mxu1  ;;  %v2275_v1 = vpop.f32.mrf.mxu0 }
 0x101   : > { %v1169_v62 = vpop.f32.mrf.mxu2  ;;  %v1037_v3 = vadd.f32 %v1036_v0, %v1008_v52  ;;  %v1198_v18 = vpop.f32.mrf.mxu3 }
 0x103   : > { %v2277_v4 = vadd.f32 %v1065_v35, %v1037_v3 }
 0x105   : > { %v1095_v46 = vadd.f32 %v2271_v50, %v2277_v4 }
 0x108   : > { %v1135_v6 = vpop.f32.mrf.mxu1  ;;  %v1222_v59 = vpop.f32.mrf.mxu0 }
 0x109   : > { %v1136_v7 = vadd.f32 %v1135_v6, %v1107_v12  ;;  %v1171_v8 = vpop.f32.mrf.mxu2  ;;  %v1200_v17 = vpop.f32.mrf.mxu3 }
 0x10b   : > { %v1165_v11 = vadd.f32 %v1164_v44, %v1136_v7 }
 0x10d   : > { %v1194_v14 = vadd.f32 %v1193_v58, %v1165_v11 }
 0x10f   : > { %v1223_v21 = vadd.f32 %v1222_v59, %v1194_v14 }
 0x110   : > { %v1137_v63 = vpop.f32.mrf.mxu1  ;;  %v1224_v2 = vpop.f32.mrf.mxu0 }
 0x111   : > { %v1138_v16 = vadd.f32 %v1137_v63, %v1109_v13  ;;  %v1174_v20 = vpop.f32.mrf.mxu2  ;;  %v1242_v26 = vmax.f32 %v1223_v21, 0.0  ;;  %v1203_v41 = vpop.f32.mrf.mxu3  ;;  %v1124_v13 = vadd.f32 %v2275_v1, %v1095_v46 }
 0x113   : > { %v1167_v19 = vadd.f32 %v1166_v51, %v1138_v16 }
 0x115   : > { %v1196_v22 = vadd.f32 %v1195_v5, %v1167_v19 }
 0x117   : > { %v1225_v23 = vadd.f32 %v1224_v2, %v1196_v22 }
 0x118   : > { %v1140_v24 = vpop.f32.mrf.mxu1  ;;  %v1227_v25 = vpop.f32.mrf.mxu0 }
 0x119   : > { %v1243_v12 = vmax.f32 %v1225_v23, 0.0  ;;  %v1141_v28 = vadd.f32 %v1140_v24, %v1112_v27  ;;  %v1176_v32 = vpop.f32.mrf.mxu2  ;;  %v1205_v55 = vpop.f32.mrf.mxu3 }
 0x11b   : > { %v1876_v15 = vpack.c.bf16 %v1243_v12, %v1242_v26  ;;  %v1170_v30 = vadd.f32 %v1169_v62, %v1141_v28 }
 0x11d   : > { %1877 = vst [vmem:[%s2284_s20] sm:$0xff] %v1876_v15   ;;  %v1199_v37 = vadd.f32 %v1198_v18, %v1170_v30 }
 0x11f   : > { %v1228_v39 = vadd.f32 %v1227_v25, %v1199_v37 }
 0x120   : > { %v1142_v35 = vpop.f32.mrf.mxu1  ;;  %v1229_v36 = vpop.f32.mrf.mxu0 }
 0x121   : > { %v1143_v27 = vadd.f32 %v1142_v35, %v1114_v34  ;;  %v1179_v44 = vpop.f32.mrf.mxu2  ;;  %v1244_v9 = vmax.f32 %v1228_v39, 0.0  ;;  %v1208_v49 = vpop.f32.mrf.mxu3 }
 0x123   : > { %v1172_v38 = vadd.f32 %v1171_v8, %v1143_v27 }
 0x125   : > { %v1201_v40 = vadd.f32 %v1200_v17, %v1172_v38 }
 0x127   : > { %v1230_v42 = vadd.f32 %v1229_v36, %v1201_v40 }
 0x128   : > { %v1145_v45 = vpop.f32.mrf.mxu1  ;;  %v1232_v48 = vpop.f32.mrf.mxu0 }
 0x129   : > { %v1245_v33 = vmax.f32 %v1230_v42, 0.0  ;;  %v1146_v47 = vadd.f32 %v1145_v45, %v2265_v43  ;;  %v1181_v52 = vpop.f32.mrf.mxu2  ;;  %v1210_v18 = vpop.f32.mrf.mxu3 }
 0x12b   : > { %v1881_v51 = vpack.c.bf16 %v1245_v33, %v1244_v9  ;;  %v1175_v53 = vadd.f32 %v1174_v20, %v1146_v47 }
 0x12d   : > { %1893 = vst [vmem:[%s2284_s20 + $0x8] sm:$0xff] %v1881_v51   ;;  %v1204_v57 = vadd.f32 %v1203_v41, %v1175_v53 }
 0x12f   : > { %v1233_v3 = vadd.f32 %v1232_v48, %v1204_v57 }
 0x130   : > { %v1147_v56 = vpop.f32.mrf.mxu1  ;;  %v1234_v0 = vpop.f32.mrf.mxu0 }
 0x131   : > { %v1148_v58 = vadd.f32 %v1147_v56, %v1119_v54  ;;  %v1246_v59 = vmax.f32 %v1233_v3, 0.0  ;;  %v1237_v10 = vpop.f32.mrf.mxu2 }
 0x133   : > { %v1177_v62 = vadd.f32 %v1176_v32, %v1148_v58 }
 0x135   : > { %v1206_v5 = vadd.f32 %v1205_v55, %v1177_v62 }
 0x137   : > { %v1235_v43 = vadd.f32 %v1234_v0, %v1206_v5 }
 0x138   : > { %v1150_v6 = vpop.f32.mrf.mxu1 }
 0x139   : > { %v1247_v7 = vmax.f32 %v1235_v43, 0.0  ;;  %v1151_v29 = vadd.f32 %v1150_v6, %v2273_v60  ;;  %v1239_v21 = vpop.f32.mrf.mxu2 }
 0x13b   : > { %v1886_v8 = vpack.c.bf16 %v1247_v7, %v1246_v59  ;;  %v1180_v11 = vadd.f32 %v1179_v44, %v1151_v29 }
 0x13d   : > { %1894 = vst [vmem:[%s2284_s20 + $0x10] sm:$0xff] %v1886_v8   ;;  %v1209_v2 = vadd.f32 %v1208_v49, %v1180_v11 }
 0x13f   : > { %v1238_v19 = vadd.f32 %v1237_v10, %v1209_v2 }
 0x140   : > { %v1152_v63 = vpop.f32.mrf.mxu1 }
 0x141   : > { %v1153_v14 = vadd.f32 %v1152_v63, %v1124_v13  ;;  %v1248_v22 = vmax.f32 %v1238_v19, 0.0 }
 0x143   : > { %v1182_v16 = vadd.f32 %v1181_v52, %v1153_v14 }
 0x145   : > { %v1211_v20 = vadd.f32 %v1210_v18, %v1182_v16 }
 0x147   : > { %v1240_v60 = vadd.f32 %v1239_v21, %v1211_v20 }
 0x149   : > { %v1249_v23 = vmax.f32 %v1240_v60, 0.0 }
 0x14b   : > { %v1891_v24 = vpack.c.bf16 %v1249_v23, %v1248_v22 }
 0x14d   : > { %1895 = vst [vmem:[%s2284_s20 + $0x18] sm:$0xff] %v1891_v24  }
 0x14e PF: > { %s13_s12 = sadd.s32 1, %s1928_s12  }
 0x14f   : > { %p10_p4 = scmp.ge.s32.totalorder %s13_s12, 4  }
 0x151   :  { %12 = sbr.rel (!%p10_p4) target bundleno = 1 (0x1), region = 62 }

// kernel: net_forward.8
= control target key start
LH: loop header
LB: loop body
LE: loop exit
PB: predicated region body
PF: predicated region fallthrough
CT: control target
= control target key end

     0   :  { %s1926_s12 = smov 0   ;;  %s2252_s0 = inlined_call_operand.vmem [shape: bf16[128,1152], index: 0, kind: input, shape index: {}]   ;;  %s2253_s1 = inlined_call_operand.vmem [shape: bf16[1152,128], index: 1, kind: input, shape index: {}]   ;;  %s2254_s2 = inlined_call_operand.vmem [shape: f32[1,128], index: 2, kind: input, shape index: {}]   ;;  %s2255_s3 = inlined_call_operand.vmem [shape: bf16[32,128], index: 3, kind: output, shape index: {}]  }
   0x1 LB: > { %s1316_s13 = sadd.s32 4294967295, %s1904_s12   ;;  %p1320_p0 = scmp.ge.s32.totalorder %s1904_s12, 1  ;;  %s1904_s12 = sphi %s1926_s12, %s13_s12  }
   0x2   : > { %p139_p1 = scmp.lt.s32.totalorder %s1904_s12, 3 }
   0x4   : > { %p140_p2 = pnand %p1320_p0, %p139_p1 }
   0x5   : > { %s1321_s30 = sshll.u32 (!%p140_p2), %s1316_s13, 3 }
   0x6   : > { %143 = sbr.rel (%p140_p2) target bundleno = 338 (0x152), region = 32  ;;  %p165_p3 = scmp.lt.s32.totalorder (!%p140_p2), %s1321_s30, 15 }
   0xb   : > { %v1802_v0 = vld [vmem:[%s2253_s1 + $0x38] sm:$0xff]  ;;  %v1801_v2 = vld [vmem:[%s2253_s1 + $0x30] sm:$0xff]  ;;  %v1800_v6 = vld [vmem:[%s2253_s1 + $0x28] sm:$0xff]  ;;  %s2257_s30 = smov (!%p165_p3, %s1321_s30), 15 }
   0xc   : > { %v1818_v1 = vld [vmem:[%s2253_s1 + $0xb8] sm:$0xff]  ;;  %1872 = vmatpush.bf16.msra.mxu1 %v1802_v0  ;;  %981 = vmatpush.bf16.msra.mxu0 %v1802_v0  ;;  %v1817_v3 = vld [vmem:[%s2253_s1 + $0xb0] sm:$0xff]  ;;  %v1816_v7 = vld [vmem:[%s2253_s1 + $0xa8] sm:$0xff]  ;;  %s1888_s22 = smul.u32 36, %s2257_s30 }
   0xd   : > { %1039 = vmatpush.bf16.msra.mxu2 %v1818_v1  ;;  %v1826_v4 = vld [vmem:[%s2253_s1 + $0xf8] sm:$0xff]  ;;  %v1825_v5 = vld [vmem:[%s2253_s1 + $0xf0] sm:$0xff]  ;;  %v1824_v8 = vld [vmem:[%s2253_s1 + $0xe8] sm:$0xff] }
   0xe   : > { %1068 = vmatpush.bf16.msra.mxu3 %v1826_v4  ;;  %v1799_v9 = vld [vmem:[%s2253_s1 + $0x20] sm:$0xff]  ;;  %v1798_v12 = vld [vmem:[%s2253_s1 + $0x18] sm:$0xff]  ;;  %v1797_v15 = vld [vmem:[%s2253_s1 + $0x10] sm:$0xff]  ;;  %s1996_s30 = scalar_lea.vmem %s2252_s0, %s1888_s22 }
   0xf   : > { %v1815_v10 = vld [vmem:[%s2253_s1 + $0xa0] sm:$0xff]  ;;  %v1814_v13 = vld [vmem:[%s2253_s1 + $0x98] sm:$0xff]  ;;  %v1813_v16 = vld [vmem:[%s2253_s1 + $0x90] sm:$0xff] }
  0x10   : > { %1873 = vmatpush.bf16.msra.mxu1 %v1801_v2  ;;  %982 = vmatpush.bf16.msra.mxu0 %v1801_v2  ;;  %v1823_v11 = vld [vmem:[%s2253_s1 + $0xe0] sm:$0xff]  ;;  %v1822_v14 = vld [vmem:[%s2253_s1 + $0xd8] sm:$0xff]  ;;  %v1821_v17 = vld [vmem:[%s2253_s1 + $0xd0] sm:$0xff] }
  0x11   : > { %1040 = vmatpush.bf16.msra.mxu2 %v1817_v3  ;;  %v1796_v18 = vld [vmem:[%s2253_s1 + $0x8] sm:$0xff]  ;;  %v1795_v20 = vld [vmem:[%s2253_s1] sm:$0xff]  ;;  %v1399_v21 = vld [vmem:[%s1996_s30 + $0x90] sm:$0xf] }
  0x12   : > { %1069 = vmatpush.bf16.msra.mxu3 %v1825_v5  ;;  %v1812_v19 = vld [vmem:[%s2253_s1 + $0x88] sm:$0xff]  ;;  %v1810_v22 = vld [vmem:[%s2253_s1 + $0x78] sm:$0xff]  ;;  %v1781_v24 = vld [vmem:[%s1996_s30 + $0xb0] sm:$0xf0] }
  0x13   : > { %v1820_v23 = vld [vmem:[%s2253_s1 + $0xc8] sm:$0xff]  ;;  %v1327_v25 = vld [vmem:[%s1996_s30] sm:$0xf]  ;;  %v1763_v26 = vld [vmem:[%s1996_s30 + $0x20] sm:$0xf0]  ;;  %v1400_v32 = vor.u32 %v1781_v24, %v1399_v21 }
  0x14   : > { %1874 = vmatpush.bf16.msra.mxu1 %v1800_v6  ;;  %983 = vmatpush.bf16.msra.mxu0 %v1800_v6  ;;  %v1811_v27 = vld [vmem:[%s2253_s1 + $0x80] sm:$0xff]  ;;  %v1335_v28 = vld [vmem:[%s1996_s30 + $0x8] sm:$0xf]  ;;  %v1764_v29 = vld [vmem:[%s1996_s30 + $0x28] sm:$0xf0]  ;;  %v1328_v33 = vor.u32 %v1763_v26, %v1327_v25 }
  0x15   : > { %1041 = vmatpush.bf16.msra.mxu2 %v1816_v7  ;;  %v1834_v30 = vld [vmem:[%s2253_s1 + $0x138] sm:$0xff]  ;;  %v1336_v34 = vor.u32 %v1764_v29, %v1335_v28  ;;  %v1819_v35 = vld [vmem:[%s2253_s1 + $0xc0] sm:$0xff]  ;;  %v1760_v36 = vld [vmem:[%s1996_s30 + $0xc] sm:$0xf] }
  0x16   : > { %1070 = vmatpush.bf16.msra.mxu3 %v1824_v8  ;;  %v1850_v31 = vld [vmem:[%s2253_s1 + $0x1b8] sm:$0xff]  ;;  %v1337_v37 = vld [vmem:[%s1996_s30 + $0x2c] sm:$0xf0]  ;;  %v1808_v43 = vld [vmem:[%s2253_s1 + $0x68] sm:$0xff] }
  0x17   : > { %v1809_v38 = vld [vmem:[%s2253_s1 + $0x70] sm:$0xff]  ;;  %v1858_v39 = vld [vmem:[%s2253_s1 + $0x1f8] sm:$0xff]  ;;  %v1340_v42 = vor.u32 %v1760_v36, %v1337_v37  ;;  %v1832_v45 = vld [vmem:[%s2253_s1 + $0x128] sm:$0xff] }
  0x18   : > { %1875 = vmatpush.bf16.msra.mxu1 %v1799_v9  ;;  %984 = vmatpush.bf16.msra.mxu0 %v1799_v9  ;;  %v1833_v40 = vld [vmem:[%s2253_s1 + $0x130] sm:$0xff]  ;;  %v1848_v46 = vld [vmem:[%s2253_s1 + $0x1a8] sm:$0xff]  ;;  %v1807_v47 = vld [vmem:[%s2253_s1 + $0x60] sm:$0xff] }
  0x19   : > { %1042 = vmatpush.bf16.msra.mxu2 %v1815_v10  ;;  %v1849_v41 = vld [vmem:[%s2253_s1 + $0x1b0] sm:$0xff]  ;;  %v1856_v48 = vld [vmem:[%s2253_s1 + $0x1e8] sm:$0xff]  ;;  %v1831_v49 = vld [vmem:[%s2253_s1 + $0x120] sm:$0xff] }
  0x1a   : > { %1071 = vmatpush.bf16.msra.mxu3 %v1823_v11  ;;  %v1857_v44 = vld [vmem:[%s2253_s1 + $0x1f0] sm:$0xff]  ;;  %v1847_v50 = vld [vmem:[%s2253_s1 + $0x1a0] sm:$0xff]  ;;  %v1435_v51 = vld [vmem:[%s1996_s30 + $0xd8] sm:$0xf] }
  0x1b   : > { %v1790_v52 = vld [vmem:[%s1996_s30 + $0xf8] sm:$0xf0]  ;;  %v1363_v53 = vld [vmem:[%s1996_s30 + $0x48] sm:$0xf]  ;;  %v1772_v54 = vld [vmem:[%s1996_s30 + $0x68] sm:$0xf0] }
  0x1c   : > { %1876 = vmatpush.bf16.msra.mxu1 %v1798_v12  ;;  %985 = vmatpush.bf16.msra.mxu0 %v1798_v12  ;;  %v1806_v55 = vld [vmem:[%s2253_s1 + $0x58] sm:$0xff]  ;;  %v1371_v56 = vld [vmem:[%s1996_s30 + $0x50] sm:$0xf]  ;;  %v1773_v57 = vld [vmem:[%s1996_s30 + $0x70] sm:$0xf0]  ;;  %v1436_v59 = vor.u32 %v1790_v52, %v1435_v51  ;;  %v1364_v60 = vor.u32 %v1772_v54, %v1363_v53 }
  0x1d   : > { %1043 = vmatpush.bf16.msra.mxu2 %v1814_v13  ;;  %v1830_v58 = vld [vmem:[%s2253_s1 + $0x118] sm:$0xff]  ;;  %v1372_v61 = vor.u32 %v1773_v57, %v1371_v56  ;;  %v1769_v62 = vld [vmem:[%s1996_s30 + $0x54] sm:$0xf]  ;;  %v1804_v4 = vld [vmem:[%s2253_s1 + $0x48] sm:$0xff] }
  0x1e   : > { %1072 = vmatpush.bf16.msra.mxu3 %v1822_v14  ;;  %v1373_v63 = vld [vmem:[%s1996_s30 + $0x74] sm:$0xf0]  ;;  %v1805_v0 = vld [vmem:[%s2253_s1 + $0x50] sm:$0xff]  ;;  %v1855_v5 = vld [vmem:[%s2253_s1 + $0x1e0] sm:$0xff] }
  0x1f   : > { %v1829_v1 = vld [vmem:[%s2253_s1 + $0x110] sm:$0xff]  ;;  %v1376_v2 = vor.u32 %v1769_v62, %v1373_v63  ;;  %v1846_v3 = vld [vmem:[%s2253_s1 + $0x198] sm:$0xff]  ;;  %v1828_v6 = vld [vmem:[%s2253_s1 + $0x108] sm:$0xff] }
  0x20   : > { %1877 = vmatpush.bf16.msra.mxu1 %v1797_v15  ;;  %986 = vmatpush.bf16.msra.mxu0 %v1797_v15  ;;  %v1845_v7 = vld [vmem:[%s2253_s1 + $0x190] sm:$0xff]  ;;  %v1854_v8 = vld [vmem:[%s2253_s1 + $0x1d8] sm:$0xff]  ;;  %v1803_v9 = vld [vmem:[%s2253_s1 + $0x40] sm:$0xff] }
  0x21   : > { %1044 = vmatpush.bf16.msra.mxu2 %v1813_v16  ;;  %v1842_v10 = vld [vmem:[%s2253_s1 + $0x178] sm:$0xff]  ;;  %v1827_v11 = vld [vmem:[%s2253_s1 + $0x100] sm:$0xff]  ;;  %v1329_v14 = vld [vmem:[%s1996_s30 + $0x24] sm:$0xf0] }
  0x22   : > { %1073 = vmatpush.bf16.msra.mxu3 %v1821_v17  ;;  %v1759_v12 = vld [vmem:[%s1996_s30 + $0x4] sm:$0xf]  ;;  %v1866_v13 = vld [vmem:[%s2253_s1 + $0x238] sm:$0xff]  ;;  %v1343_v15 = vld [vmem:[%s1996_s30 + $0x10] sm:$0xf] }
  0x23   : > { %v1765_v16 = vld [vmem:[%s1996_s30 + $0x30] sm:$0xf0]  ;;  %v1407_v17 = vld [vmem:[%s1996_s30 + $0x98] sm:$0xf]  ;;  %v1409_v24 = vld [vmem:[%s1996_s30 + $0xbc] sm:$0xf0] }
  0x24   : > { %1878 = vmatpush.bf16.msra.mxu1 %v1796_v18  ;;  %987 = vmatpush.bf16.msra.mxu0 %v1796_v18  ;;  %v1782_v18 = vld [vmem:[%s1996_s30 + $0xb8] sm:$0xf0]  ;;  %v1344_v21 = vor.u32 %v1765_v16, %v1343_v15  ;;  %v1865_v25 = vld [vmem:[%s2253_s1 + $0x230] sm:$0xff]  ;;  %v1840_v26 = vld [vmem:[%s2253_s1 + $0x168] sm:$0xff] }
  0x25   : > { %1045 = vmatpush.bf16.msra.mxu2 %v1812_v19  ;;  %v1841_v19 = vld [vmem:[%s2253_s1 + $0x170] sm:$0xff]  ;;  %v1843_v29 = vld [vmem:[%s2253_s1 + $0x180] sm:$0xff]  ;;  %v1768_v36 = vld [vmem:[%s1996_s30 + $0x4c] sm:$0xf] }
  0x26   : > { %1074 = vmatpush.bf16.msra.mxu3 %v1820_v23  ;;  %v1778_v23 = vld [vmem:[%s1996_s30 + $0x9c] sm:$0xf]  ;;  %v1365_v37 = vld [vmem:[%s1996_s30 + $0x6c] sm:$0xf0]  ;;  %v1835_v52 = vld [vmem:[%s2253_s1 + $0x140] sm:$0xff] }
  0x27   : > { %v1412_v28 = vor.u32 %v1778_v23, %v1409_v24  ;;  %v1862_v51 = vld [vmem:[%s2253_s1 + $0x218] sm:$0xff]  ;;  %v1861_v53 = vld [vmem:[%s2253_s1 + $0x210] sm:$0xff]  ;;  %v1415_v57 = vld [vmem:[%s1996_s30 + $0xa0] sm:$0xf] }
  0x28   : > { %1879 = vmatpush.bf16.msra.mxu1 %v1795_v20  ;;  %988 = vmatpush.bf16.msra.mxu0 %v1795_v20  ;;  %v1332_v20 = vor.u32 %v1759_v12, %v1329_v14  ;;  %v1777_v54 = vld [vmem:[%s1996_s30 + $0x94] sm:$0xf]  ;;  %v1401_v56 = vld [vmem:[%s1996_s30 + $0xb4] sm:$0xf0]  ;;  %v1389_v14 = vld [vmem:[%s1996_s30 + $0x84] sm:$0xf0] }
  0x29   : > { %1046 = vmatpush.bf16.msra.mxu2 %v1811_v27  ;;  %v1844_v27 = vld [vmem:[%s2253_s1 + $0x188] sm:$0xff]  ;;  %v1761_v16 = vld [vmem:[%s1996_s30 + $0x14] sm:$0xf] }
  0x2a   : > { %1075 = vmatpush.bf16.msra.mxu3 %v1819_v35  ;;  %v1838_v35 = vld [vmem:[%s2253_s1 + $0x158] sm:$0xff] }
  0x2b   : > { %999 = vmatmul.bf16.vlgmr.msra.gmra.mxu1 %v1400_v32  ;;  %989 = vmatmul.bf16.vlgmr.msra.gmra.mxu0 %v1328_v33  ;;  %v1839_v32 = vld [vmem:[%s2253_s1 + $0x160] sm:$0xff]  ;;  %v1852_v33 = vld [vmem:[%s2253_s1 + $0x1c8] sm:$0xff] }
  0x2c   : > { %1010 = vmatpush.bf16.msrb.mxu1 %v1810_v22  ;;  %1097 = vmatpush.bf16.msrb.mxu0 %v1834_v30  ;;  %v1408_v22 = vor.u32 %v1782_v18, %v1407_v17  ;;  %v1853_v30 = vld [vmem:[%s2253_s1 + $0x1d0] sm:$0xff]  ;;  %v1345_v17 = vld [vmem:[%s1996_s30 + $0x34] sm:$0xf0]  ;;  %v1359_v18 = vld [vmem:[%s1996_s30 + $0x20] sm:$0xf] }
  0x2d   : > { %1155 = vmatpush.bf16.msrb.mxu2 %v1850_v31  ;;  %1076 = vmatmul.bf16.vlgmr.msra.gmra.mxu3 %v1340_v42  ;;  %v1864_v31 = vld [vmem:[%s2253_s1 + $0x228] sm:$0xff]  ;;  %v1837_v42 = vld [vmem:[%s2253_s1 + $0x150] sm:$0xff] }
  0x2e   : > { %1047 = vmatmul.bf16.vlgmr.msra.gmra.mxu2 %v1336_v34  ;;  %1184 = vmatpush.bf16.msrb.mxu3 %v1858_v39  ;;  %v1863_v34 = vld [vmem:[%s2253_s1 + $0x220] sm:$0xff]  ;;  %v1774_v39 = vld [vmem:[%s1996_s30 + $0x78] sm:$0xf0] }
  0x30   : > { %1011 = vmatpush.bf16.msrb.mxu1 %v1809_v38  ;;  %1098 = vmatpush.bf16.msrb.mxu0 %v1833_v40  ;;  %v1379_v38 = vld [vmem:[%s1996_s30 + $0x58] sm:$0xf]  ;;  %v1443_v40 = vld [vmem:[%s1996_s30 + $0xe0] sm:$0xf] }
  0x31   : > { %1156 = vmatpush.bf16.msrb.mxu2 %v1849_v41  ;;  %v1791_v41 = vld [vmem:[%s1996_s30 + $0x100] sm:$0xf0] }
  0x32   : > { %1185 = vmatpush.bf16.msrb.mxu3 %v1857_v44  ;;  %v1380_v44 = vor.u32 %v1774_v39, %v1379_v38  ;;  %v1461_v38 = vld [vmem:[%s1996_s30 + $0x114] sm:$0xf0] }
  0x34   : > { %1012 = vmatpush.bf16.msrb.mxu1 %v1808_v43  ;;  %1099 = vmatpush.bf16.msrb.mxu0 %v1832_v45  ;;  %v1368_v43 = vor.u32 %v1768_v36, %v1365_v37  ;;  %v1444_v45 = vor.u32 %v1791_v41, %v1443_v40  ;;  %v1789_v37 = vld [vmem:[%s1996_s30 + $0xf4] sm:$0xf]  ;;  %v1779_v40 = vld [vmem:[%s1996_s30 + $0xa4] sm:$0xf]  ;;  %v1417_v41 = vld [vmem:[%s1996_s30 + $0xc4] sm:$0xf0] }
  0x35   : > { %1157 = vmatpush.bf16.msrb.mxu2 %v1848_v46  ;;  %v1787_v46 = vld [vmem:[%s1996_s30 + $0xe4] sm:$0xf]  ;;  %v1464_v39 = vor.u32 %v1789_v37, %v1461_v38 }
  0x36   : > { %1186 = vmatpush.bf16.msrb.mxu3 %v1856_v48 }
  0x38   : > { %1013 = vmatpush.bf16.msrb.mxu1 %v1807_v47  ;;  %1100 = vmatpush.bf16.msrb.mxu0 %v1831_v49  ;;  %v1445_v47 = vld [vmem:[%s1996_s30 + $0x104] sm:$0xf0] }
  0x39   : > { %1158 = vmatpush.bf16.msrb.mxu2 %v1847_v50  ;;  %v1448_v48 = vor.u32 %v1787_v46, %v1445_v47  ;;  %v1836_v49 = vld [vmem:[%s2253_s1 + $0x148] sm:$0xff]  ;;  %v1851_v50 = vld [vmem:[%s2253_s1 + $0x1c0] sm:$0xff]  ;;  %v1420_v46 = vor.u32 %v1779_v40, %v1417_v41 }
  0x3a   : > { %1187 = vmatpush.bf16.msrb.mxu3 %v1855_v5  ;;  %v1437_v5 = vld [vmem:[%s1996_s30 + $0xfc] sm:$0xf0] }
  0x3b   : > { %1004 = vmatmul.bf16.gmra.mxu1 %v1436_v59  ;;  %994 = vmatmul.bf16.gmra.mxu0 %v1364_v60  ;;  %v1351_v59 = vld [vmem:[%s1996_s30 + $0x18] sm:$0xf]  ;;  %v1766_v60 = vld [vmem:[%s1996_s30 + $0x38] sm:$0xf0] }
  0x3c   : > { %1014 = vmatpush.bf16.msrb.mxu1 %v1806_v55  ;;  %1101 = vmatpush.bf16.msrb.mxu0 %v1830_v58  ;;  %v1860_v55 = vld [vmem:[%s2253_s1 + $0x208] sm:$0xff]  ;;  %v1783_v58 = vld [vmem:[%s1996_s30 + $0xc0] sm:$0xf0]  ;;  %v1352_v63 = vor.u32 %v1766_v60, %v1351_v59 }
  0x3d   : > { %1159 = vmatpush.bf16.msrb.mxu2 %v1846_v3  ;;  %1081 = vmatmul.bf16.gmra.mxu3 %v1376_v2  ;;  %v1416_v62 = vor.u32 %v1783_v58, %v1415_v57  ;;  %v1859_v3 = vld [vmem:[%s2253_s1 + $0x200] sm:$0xff] }
  0x3e   : > { %1052 = vmatmul.bf16.gmra.mxu2 %v1372_v61  ;;  %1188 = vmatpush.bf16.msrb.mxu3 %v1854_v8  ;;  %v1404_v61 = vor.u32 %v1777_v54, %v1401_v56  ;;  %v1387_v8 = vld [vmem:[%s1996_s30 + $0x60] sm:$0xf]  ;;  %v1453_v56 = vld [vmem:[%s1996_s30 + $0x10c] sm:$0xf0] }
  0x40   : > { %1015 = vmatpush.bf16.msrb.mxu1 %v1805_v0  ;;  %1102 = vmatpush.bf16.msrb.mxu0 %v1829_v1  ;;  %v1762_v0 = vld [vmem:[%s1996_s30 + $0x1c] sm:$0xf]  ;;  %v1353_v1 = vld [vmem:[%s1996_s30 + $0x3c] sm:$0xf0] }
  0x41   : > { %1160 = vmatpush.bf16.msrb.mxu2 %v1845_v7  ;;  %v1356_v2 = vor.u32 %v1762_v0, %v1353_v1  ;;  %v1792_v7 = vld [vmem:[%s1996_s30 + $0x108] sm:$0xf0] }
  0x42   : > { %1189 = vmatpush.bf16.msrb.mxu3 %v1853_v30  ;;  %v1395_v30 = vld [vmem:[%s1996_s30 + $0x68] sm:$0xf] }
  0x44   : > { %1016 = vmatpush.bf16.msrb.mxu1 %v1804_v4  ;;  %1103 = vmatpush.bf16.msrb.mxu0 %v1828_v6  ;;  %v1786_v4 = vld [vmem:[%s1996_s30 + $0xdc] sm:$0xf]  ;;  %v1451_v6 = vld [vmem:[%s1996_s30 + $0xe8] sm:$0xf] }
  0x45   : > { %1161 = vmatpush.bf16.msrb.mxu2 %v1844_v27 }
  0x46   : > { %1190 = vmatpush.bf16.msrb.mxu3 %v1852_v33  ;;  %v1793_v33 = vld [vmem:[%s1996_s30 + $0x110] sm:$0xf0] }
  0x48   : > { %1017 = vmatpush.bf16.msrb.mxu1 %v1803_v9  ;;  %1104 = vmatpush.bf16.msrb.mxu0 %v1827_v11  ;;  %v1775_v9 = vld [vmem:[%s1996_s30 + $0x80] sm:$0xf0]  ;;  %v1452_v11 = vor.u32 %v1792_v7, %v1451_v6 }
  0x49   : > { %1162 = vmatpush.bf16.msrb.mxu2 %v1843_v29  ;;  %v1388_v12 = vor.u32 %v1775_v9, %v1387_v8  ;;  %v1381_v29 = vld [vmem:[%s1996_s30 + $0x7c] sm:$0xf0] }
  0x4a   : > { %1191 = vmatpush.bf16.msrb.mxu3 %v1851_v50 }
  0x4b   : > { %1018 = vmatmul.bf16.vlgmr.msrb.gmra.mxu1 %v1332_v20  ;;  %1105 = vmatmul.bf16.vlgmr.msrb.gmra.mxu0 %v1344_v21  ;;  %v1423_v20 = vld [vmem:[%s1996_s30 + $0xa8] sm:$0xf]  ;;  %v1784_v21 = vld [vmem:[%s1996_s30 + $0xc8] sm:$0xf0] }
  0x4c   : > { %1126 = vmatpush.bf16.msra.mxu1 %v1842_v10  ;;  %1213 = vmatpush.bf16.msra.mxu0 %v1866_v13  ;;  %v1440_v10 = vor.u32 %v1786_v4, %v1437_v5  ;;  %v1424_v24 = vor.u32 %v1784_v21, %v1423_v20 }
  0x4d   : > { %1086 = vmatmul.bf16.gmra.mxu3 %v1412_v28  ;;  %1880 = vmatpush.bf16.msra.mxu2 %v1866_v13  ;;  %v1771_v13 = vld [vmem:[%s1996_s30 + $0x64] sm:$0xf]  ;;  %v1770_v28 = vld [vmem:[%s1996_s30 + $0x5c] sm:$0xf] }
  0x4e   : > { %1057 = vmatmul.bf16.gmra.mxu2 %v1408_v22  ;;  %v1392_v15 = vor.u32 %v1771_v13, %v1389_v14  ;;  %v1348_v22 = vor.u32 %v1761_v16, %v1345_v17 }
  0x50   : > { %1127 = vmatpush.bf16.msra.mxu1 %v1841_v19  ;;  %1214 = vmatpush.bf16.msra.mxu0 %v1865_v25  ;;  %v1767_v19 = vld [vmem:[%s1996_s30 + $0x40] sm:$0xf0] }
  0x51   : > { %1881 = vmatpush.bf16.msra.mxu2 %v1865_v25  ;;  %v1360_v23 = vor.u32 %v1767_v19, %v1359_v18  ;;  %v1780_v25 = vld [vmem:[%s1996_s30 + $0xac] sm:$0xf] }
  0x54   : > { %1128 = vmatpush.bf16.msra.mxu1 %v1840_v26  ;;  %1215 = vmatpush.bf16.msra.mxu0 %v1864_v31  ;;  %v1425_v26 = vld [vmem:[%s1996_s30 + $0xcc] sm:$0xf0] }
  0x55   : > { %1882 = vmatpush.bf16.msra.mxu2 %v1864_v31  ;;  %v1428_v27 = vor.u32 %v1780_v25, %v1425_v26  ;;  %v1776_v31 = vld [vmem:[%s1996_s30 + $0x88] sm:$0xf0] }
  0x58   : > { %1129 = vmatpush.bf16.msra.mxu1 %v1839_v32  ;;  %1216 = vmatpush.bf16.msra.mxu0 %v1863_v34  ;;  %v1459_v32 = vld [vmem:[%s1996_s30 + $0xf0] sm:$0xf] }
  0x59   : > { %1883 = vmatpush.bf16.msra.mxu2 %v1863_v34  ;;  %v1384_v34 = vor.u32 %v1770_v28, %v1381_v29  ;;  %v1460_v36 = vor.u32 %v1793_v33, %v1459_v32 }
  0x5b   : > { %1023 = vmatmul.bf16.gmra.mxu1 %v1368_v43  ;;  %1110 = vmatmul.bf16.gmra.mxu0 %v1380_v44  ;;  %v1785_v43 = vld [vmem:[%s1996_s30 + $0xd0] sm:$0xf0]  ;;  %v1467_v44 = vld [vmem:[%s1996_s30 + $0xf8] sm:$0xf] }
  0x5c   : > { %1130 = vmatpush.bf16.msra.mxu1 %v1838_v35  ;;  %1217 = vmatpush.bf16.msra.mxu0 %v1862_v51  ;;  %v1396_v35 = vor.u32 %v1776_v31, %v1395_v30 }
  0x5d   : > { %1091 = vmatmul.bf16.gmra.mxu3 %v1448_v48  ;;  %1884 = vmatpush.bf16.msra.mxu2 %v1862_v51 }
  0x5e   : > { %1062 = vmatmul.bf16.gmra.mxu2 %v1444_v45  ;;  %v1794_v45 = vld [vmem:[%s1996_s30 + $0x118] sm:$0xf0] }
  0x5f   : > { %v1468_v50 = vor.u32 %v1794_v45, %v1467_v44 }
  0x60   : > { %1131 = vmatpush.bf16.msra.mxu1 %v1837_v42  ;;  %1218 = vmatpush.bf16.msra.mxu0 %v1861_v53  ;;  %v1431_v42 = vld [vmem:[%s1996_s30 + $0xb0] sm:$0xf] }
  0x61   : > { %1885 = vmatpush.bf16.msra.mxu2 %v1861_v53  ;;  %v1432_v47 = vor.u32 %v1785_v43, %v1431_v42 }
  0x64   : > { %1132 = vmatpush.bf16.msra.mxu1 %v1836_v49  ;;  %1219 = vmatpush.bf16.msra.mxu0 %v1860_v55 }
  0x65   : > { %1886 = vmatpush.bf16.msra.mxu2 %v1860_v55  ;;  %v1788_v55 = vld [vmem:[%s1996_s30 + $0xec] sm:$0xf]  ;;  %s1323_s30 = sshll.u32 %s1316_s13, 1 }
  0x66   : > { %v1456_v57 = vor.u32 %v1788_v55, %v1453_v56  ;;  %p172_p4 = scmp.lt.s32.totalorder %s1323_s30, 3 }
  0x68   : > { %1133 = vmatpush.bf16.msra.mxu1 %v1835_v52  ;;  %1220 = vmatpush.bf16.msra.mxu0 %v1859_v3  ;;  %s2259_s30 = smov (!%p172_p4, %s1323_s30), 3 }
  0x69   : > { %1887 = vmatpush.bf16.msra.mxu2 %v1859_v3  ;;  %s1324_s19 = sshll.u32 %s2259_s30, 2 }
  0x6a   : > { %s175_s21 = scalar_lea.vmem %s2255_s3, %s1324_s19 }
  0x6b   : > { %1028 = vmatmul.bf16.gmra.mxu1 %v1404_v61  ;;  %1115 = vmatmul.bf16.gmra.mxu0 %v1416_v62 }
  0x6d   : > { %1192 = vmatmul.bf16.vlgmr.msrb.gmra.mxu3 %v1356_v2  ;;  %v1897_v2 = vld [vmem:[%s2254_s2] ss:$0 sm:$0xff] }
  0x6e   : > { %1163 = vmatmul.bf16.vlgmr.msrb.gmra.mxu2 %v1352_v63 }
  0x7b   : > { %1033 = vmatmul.bf16.gmra.mxu1 %v1440_v10  ;;  %1120 = vmatmul.bf16.gmra.mxu0 %v1452_v11 }
  0x7d   : > { %1197 = vmatmul.bf16.gmra.mxu3 %v1392_v15 }
  0x7e   : > { %1168 = vmatmul.bf16.gmra.mxu2 %v1388_v12 }
  0x8b   : > { %1134 = vmatmul.bf16.vlgmr.msra.gmra.mxu1 %v1348_v22  ;;  %1221 = vmatmul.bf16.vlgmr.msra.gmra.mxu0 %v1360_v23 }
  0x8d   : > { %1202 = vmatmul.bf16.gmra.mxu3 %v1428_v27 }
  0x8e   : > { %1173 = vmatmul.bf16.gmra.mxu2 %v1424_v24 }
  0x9b   : > { %1139 = vmatmul.bf16.gmra.mxu1 %v1384_v34  ;;  %1226 = vmatmul.bf16.gmra.mxu0 %v1396_v35 }
  0x9d   : > { %1207 = vmatmul.bf16.gmra.mxu3 %v1464_v39 }
  0x9e   : > { %1178 = vmatmul.bf16.gmra.mxu2 %v1460_v36 }
  0xa8   : > { %v1000_v48 = vpop.f32.mrf.mxu1  ;;  %v990_v49 = vpop.f32.mrf.mxu0 }
  0xa9   : > { %v991_v3 = vadd.f32 %v1897_v2, %v990_v49  ;;  %v1001_v37 = vadd.f32 %v1897_v2, %v1000_v48 }
  0xab   : > { %1144 = vmatmul.bf16.gmra.mxu1 %v1420_v46  ;;  %1231 = vmatmul.bf16.gmra.mxu0 %v1432_v47 }
  0xae   : > { %1236 = vmatmul.bf16.vlgmr.msra.gmra.mxu2 %v1468_v50 }
  0xb0   : > { %v1002_v52 = vpop.f32.mrf.mxu1  ;;  %v992_v53 = vpop.f32.mrf.mxu0 }
  0xb1   : > { %v1048_v51 = vpop.f32.mrf.mxu2  ;;  %v1077_v54 = vpop.f32.mrf.mxu3  ;;  %v993_v11 = vadd.f32 %v1897_v2, %v992_v53  ;;  %v1003_v46 = vadd.f32 %v1897_v2, %v1002_v52 }
  0xb8   : > { %v1005_v59 = vpop.f32.mrf.mxu1  ;;  %v995_v60 = vpop.f32.mrf.mxu0 }
  0xb9   : > { %v1050_v58 = vpop.f32.mrf.mxu2  ;;  %v1079_v61 = vpop.f32.mrf.mxu3  ;;  %v996_v20 = vadd.f32 %v1897_v2, %v995_v60  ;;  %v1006_v56 = vadd.f32 %v1897_v2, %v1005_v59 }
  0xbb   : > { %1149 = vmatmul.bf16.gmra.mxu1 %v1456_v57 }
  0xc0   : > { %v2229_v63 = vpop.f32.mrf.mxu1  ;;  %v997_v0 = vpop.f32.mrf.mxu0 }
  0xc1   : > { %v1053_v62 = vpop.f32.mrf.mxu2  ;;  %v1082_v1 = vpop.f32.mrf.mxu3  ;;  %v998_v28 = vadd.f32 %v1897_v2, %v997_v0  ;;  %v1008_v52 = vadd.f32 %v1897_v2, %v2229_v63 }
  0xc8   : > { %v1019_v5 = vpop.f32.mrf.mxu1  ;;  %v1106_v6 = vpop.f32.mrf.mxu0 }
  0xc9   : > { %v1055_v4 = vpop.f32.mrf.mxu2  ;;  %v1020_v7 = vadd.f32 %v1019_v5, %v991_v3  ;;  %v1084_v9 = vpop.f32.mrf.mxu3 }
  0xcb   : > { %v1049_v8 = vadd.f32 %v1048_v51, %v1020_v7 }
  0xcd   : > { %v1078_v10 = vadd.f32 %v1077_v54, %v1049_v8 }
  0xcf   : > { %v1107_v12 = vadd.f32 %v1106_v6, %v1078_v10 }
  0xd0   : > { %v1021_v14 = vpop.f32.mrf.mxu1  ;;  %v1108_v15 = vpop.f32.mrf.mxu0 }
  0xd1   : > { %v1058_v13 = vpop.f32.mrf.mxu2  ;;  %v1022_v16 = vadd.f32 %v1021_v14, %v993_v11  ;;  %v1087_v19 = vpop.f32.mrf.mxu3 }
  0xd3   : > { %v1051_v17 = vadd.f32 %v1050_v58, %v1022_v16 }
  0xd5   : > { %v1080_v18 = vadd.f32 %v1079_v61, %v1051_v17 }
  0xd7   : > { %v1109_v21 = vadd.f32 %v1108_v15, %v1080_v18 }
  0xd8   : > { %v1024_v23 = vpop.f32.mrf.mxu1  ;;  %v1111_v24 = vpop.f32.mrf.mxu0 }
  0xd9   : > { %v1060_v22 = vpop.f32.mrf.mxu2  ;;  %v1025_v25 = vadd.f32 %v1024_v23, %v996_v20  ;;  %v1089_v31 = vpop.f32.mrf.mxu3 }
  0xdb   : > { %v1054_v26 = vadd.f32 %v1053_v62, %v1025_v25 }
  0xdd   : > { %v1083_v27 = vadd.f32 %v1082_v1, %v1054_v26 }
  0xdf   : > { %v1112_v29 = vadd.f32 %v1111_v24, %v1083_v27 }
  0xe0   : > { %v1026_v32 = vpop.f32.mrf.mxu1  ;;  %v1113_v33 = vpop.f32.mrf.mxu0 }
  0xe1   : > { %v1063_v30 = vpop.f32.mrf.mxu2  ;;  %v1027_v34 = vadd.f32 %v1026_v32, %v998_v28  ;;  %v1092_v43 = vpop.f32.mrf.mxu3 }
  0xe3   : > { %v1056_v35 = vadd.f32 %v1055_v4, %v1027_v34 }
  0xe5   : > { %v1085_v36 = vadd.f32 %v1084_v9, %v1056_v35 }
  0xe7   : > { %v1114_v38 = vadd.f32 %v1113_v33, %v1085_v36 }
  0xe8   : > { %v1029_v40 = vpop.f32.mrf.mxu1  ;;  %v1116_v41 = vpop.f32.mrf.mxu0 }
  0xe9   : > { %v1065_v39 = vpop.f32.mrf.mxu2  ;;  %v1030_v42 = vadd.f32 %v1029_v40, %v1001_v37  ;;  %v2238_v55 = vpop.f32.mrf.mxu3 }
  0xeb   : > { %v1059_v44 = vadd.f32 %v1058_v13, %v1030_v42 }
  0xed   : > { %v1088_v45 = vadd.f32 %v1087_v19, %v1059_v44 }
  0xef   : > { %v2234_v47 = vadd.f32 %v1116_v41, %v1088_v45 }
  0xf0   : > { %v1031_v50 = vpop.f32.mrf.mxu1  ;;  %v2236_v51 = vpop.f32.mrf.mxu0 }
  0xf1   : > { %v1164_v49 = vpop.f32.mrf.mxu2  ;;  %v1032_v53 = vadd.f32 %v1031_v50, %v1003_v46  ;;  %v1193_v1 = vpop.f32.mrf.mxu3 }
  0xf3   : > { %v1061_v54 = vadd.f32 %v1060_v22, %v1032_v53 }
  0xf5   : > { %v1090_v48 = vadd.f32 %v1089_v31, %v1061_v54 }
  0xf8   : > { %v1034_v58 = vpop.f32.mrf.mxu1  ;;  %v1121_v60 = vpop.f32.mrf.mxu0 }
  0xf9   : > { %v1166_v57 = vpop.f32.mrf.mxu2  ;;  %v1035_v61 = vadd.f32 %v1034_v58, %v1006_v56  ;;  %v1195_v8 = vpop.f32.mrf.mxu3 }
  0xfb   : > { %v1064_v62 = vadd.f32 %v1063_v30, %v1035_v61 }
  0xfd   : > { %v1093_v0 = vadd.f32 %v1092_v43, %v1064_v62 }
  0xff   : > { %v1122_v54 = vadd.f32 %v1121_v60, %v1093_v0 }
 0x100   : > { %v1036_v4 = vpop.f32.mrf.mxu1  ;;  %v1123_v5 = vpop.f32.mrf.mxu0 }
 0x101   : > { %v1169_v3 = vpop.f32.mrf.mxu2  ;;  %v1037_v6 = vadd.f32 %v1036_v4, %v1008_v52  ;;  %v1198_v16 = vpop.f32.mrf.mxu3 }
 0x103   : > { %v1066_v7 = vadd.f32 %v1065_v39, %v1037_v6 }
 0x105   : > { %v1095_v52 = vadd.f32 %v2238_v55, %v1066_v7 }
 0x108   : > { %v1135_v9 = vpop.f32.mrf.mxu1  ;;  %v1222_v10 = vpop.f32.mrf.mxu0 }
 0x109   : > { %v1136_v11 = vadd.f32 %v1135_v9, %v1107_v12  ;;  %v1171_v13 = vpop.f32.mrf.mxu2  ;;  %v1200_v23 = vpop.f32.mrf.mxu3 }
 0x10b   : > { %v1165_v59 = vadd.f32 %v1164_v49, %v1136_v11 }
 0x10d   : > { %v1194_v19 = vadd.f32 %v1193_v1, %v1165_v59 }
 0x10f   : > { %v1223_v24 = vadd.f32 %v1222_v10, %v1194_v19 }
 0x110   : > { %v1137_v14 = vpop.f32.mrf.mxu1  ;;  %v1224_v15 = vpop.f32.mrf.mxu0 }
 0x111   : > { %v1174_v17 = vpop.f32.mrf.mxu2  ;;  %v1138_v20 = vadd.f32 %v1137_v14, %v1109_v21  ;;  %v1242_v12 = vmax.f32 %v1223_v24, 0.0  ;;  %v1203_v21 = vpop.f32.mrf.mxu3 }
 0x113   : > { %v1167_v25 = vadd.f32 %v1166_v57, %v1138_v20 }
 0x115   : > { %v1196_v31 = vadd.f32 %v1195_v8, %v1167_v25 }
 0x117   : > { %v1225_v37 = vadd.f32 %v1224_v15, %v1196_v31 }
 0x118   : > { %v1140_v18 = vpop.f32.mrf.mxu1  ;;  %v1227_v63 = vpop.f32.mrf.mxu0 }
 0x119   : > { %v1141_v22 = vadd.f32 %v1140_v18, %v1112_v29  ;;  %v1176_v27 = vpop.f32.mrf.mxu2  ;;  %v1243_v42 = vmax.f32 %v1225_v37, 0.0  ;;  %v1205_v45 = vpop.f32.mrf.mxu3 }
 0x11b   : > { %v1170_v2 = vadd.f32 %v1169_v3, %v1141_v22 }
 0x11d   : > { %v1199_v26 = vadd.f32 %v1198_v16, %v1170_v2 }
 0x11f   : > { %v1228_v28 = vadd.f32 %v1227_v63, %v1199_v26 }
 0x120   : > { %v1142_v30 = vpop.f32.mrf.mxu1  ;;  %v1229_v36 = vpop.f32.mrf.mxu0 }
 0x121   : > { %v1244_v32 = vmax.f32 %v1228_v28, 0.0  ;;  %v1143_v33 = vadd.f32 %v1142_v30, %v1114_v38  ;;  %v1179_v40 = vpop.f32.mrf.mxu2  ;;  %v1119_v38 = vadd.f32 %v2236_v51, %v1090_v48  ;;  %v1208_v1 = vpop.f32.mrf.mxu3 }
 0x123   : > { %v1250_v34 = vmax.f32 %v1242_v12, %v1244_v32  ;;  %v1172_v35 = vadd.f32 %v1171_v13, %v1143_v33 }
 0x125   : > { %v1201_v39 = vadd.f32 %v1200_v23, %v1172_v35 }
 0x127   : > { %v1230_v29 = vadd.f32 %v1229_v36, %v1201_v39 }
 0x128   : > { %v1145_v41 = vpop.f32.mrf.mxu1  ;;  %v1232_v56 = vpop.f32.mrf.mxu0 }
 0x129   : > { %v1245_v43 = vmax.f32 %v1230_v29, 0.0  ;;  %v1146_v49 = vadd.f32 %v1145_v41, %v2234_v47  ;;  %v1181_v50 = vpop.f32.mrf.mxu2  ;;  %v1124_v47 = vadd.f32 %v1123_v5, %v1095_v52  ;;  %v1210_v15 = vpop.f32.mrf.mxu3 }
 0x12b   : > { %v1251_v44 = vmax.f32 %v1243_v42, %v1245_v43  ;;  %v1175_v53 = vadd.f32 %v1174_v17, %v1146_v49 }
 0x12d   : > { %v1204_v58 = vadd.f32 %v1203_v21, %v1175_v53 }
 0x12f   : > { %v1233_v6 = vadd.f32 %v1232_v56, %v1204_v58 }
 0x130   : > { %v1147_v46 = vpop.f32.mrf.mxu1  ;;  %v1234_v13 = vpop.f32.mrf.mxu0 }
 0x131   : > { %v1148_v61 = vadd.f32 %v1147_v46, %v1119_v38  ;;  %v1237_v4 = vpop.f32.mrf.mxu2  ;;  %v1246_v48 = vmax.f32 %v1233_v6, 0.0 }
 0x133   : > { %v1177_v8 = vadd.f32 %v1176_v27, %v1148_v61 }
 0x135   : > { %v1206_v60 = vadd.f32 %v1205_v45, %v1177_v8 }
 0x137   : > { %v1235_v55 = vadd.f32 %v1234_v13, %v1206_v60 }
 0x138   : > { %v1150_v57 = vpop.f32.mrf.mxu1 }
 0x139   : > { %v1151_v62 = vadd.f32 %v1150_v57, %v1122_v54  ;;  %v1239_v17 = vpop.f32.mrf.mxu2  ;;  %v1247_v5 = vmax.f32 %v1235_v55, 0.0 }
 0x13b   : > { %v1180_v3 = vadd.f32 %v1179_v40, %v1151_v62 }
 0x13d   : > { %v1209_v9 = vadd.f32 %v1208_v1, %v1180_v3 }
 0x13f   : > { %v1238_v10 = vadd.f32 %v1237_v4, %v1209_v9 }
 0x140   : > { %v1152_v51 = vpop.f32.mrf.mxu1 }
 0x141   : > { %v1248_v0 = vmax.f32 %v1238_v10, 0.0  ;;  %v1153_v11 = vadd.f32 %v1152_v51, %v1124_v47 }
 0x143   : > { %v1252_v59 = vmax.f32 %v1246_v48, %v1248_v0  ;;  %v1182_v14 = vadd.f32 %v1181_v50, %v1153_v11 }
 0x145   : > { %v1254_v7 = vmax.f32 %v1250_v34, %v1252_v59  ;;  %v1211_v16 = vadd.f32 %v1210_v15, %v1182_v14 }
 0x147   : > { %v1240_v18 = vadd.f32 %v1239_v17, %v1211_v16 }
 0x149   : > { %v1249_v19 = vmax.f32 %v1240_v18, 0.0 }
 0x14b   : > { %v1253_v20 = vmax.f32 %v1247_v5, %v1249_v19 }
 0x14d   : > { %v1255_v22 = vmax.f32 %v1251_v44, %v1253_v20 }
 0x14f   : > { %v1870_v63 = vpack.c.bf16 %v1255_v22, %v1254_v7 }
 0x151   : > { %1871 = vst [vmem:[%s175_s21] sm:$0xff] %v1870_v63  }
 0x152 PF: > { %s13_s12 = sadd.s32 1, %s1904_s12  }
 0x153   : > { %p10_p5 = scmp.ge.s32.totalorder %s13_s12, 4  }
 0x155   :  { %12 = sbr.rel (!%p10_p5) target bundleno = 1 (0x1), region = 62 }

// kernel: net_forward.9
= control target key start
LH: loop header
LB: loop body
LE: loop exit
PB: predicated region body
PF: predicated region fallthrough
CT: control target
= control target key end

     0   :  { %s10408_s0 = inlined_call_operand.vmem [shape: bf16[2,2048], index: 0, kind: input, shape index: {}]   ;;  %s10409_s1 = inlined_call_operand.vmem [shape: bf16[2048,512], index: 1, kind: input, shape index: {}]   ;;  %s10410_s2 = inlined_call_operand.vmem [shape: f32[1,512], index: 2, kind: input, shape index: {}]   ;;  %s10411_s3 = inlined_call_operand.vmem [shape: bf16[512,128], index: 3, kind: input, shape index: {}]   ;;  %s10412_s4 = inlined_call_operand.vmem [shape: f32[1,128], index: 4, kind: input, shape index: {}]   ;;  %s10413_s5 = inlined_call_operand.hbm [shape: f32[2,128], index: 5, kind: output, shape index: {}]  }
   0x1   :  { %v4428_v0 = vld [vmem:[%s10409_s1 + $0xe0] sm:$0xf]  ;;  %v6520_v1 = vld [vmem:[%s10409_s1 + $0xec] sm:$0xf0] }
   0x2   :  { %v4556_v2 = vld [vmem:[%s10409_s1 + $0x1e0] sm:$0xf]  ;;  %v4429_v3 = vor.u32 %v6520_v1, %v4428_v0  ;;  %v6552_v4 = vld [vmem:[%s10409_s1 + $0x1ec] sm:$0xf0] }
   0x3   :  { %v4684_v5 = vld [vmem:[%s10409_s1 + $0x2e0] sm:$0xf]  ;;  %v6584_v6 = vld [vmem:[%s10409_s1 + $0x2ec] sm:$0xf0]  ;;  %v4557_v7 = vor.u32 %v6552_v4, %v4556_v2 }
   0x4   :  { %v4685_v8 = vor.u32 %v6584_v6, %v4684_v5  ;;  %v4812_v9 = vld [vmem:[%s10409_s1 + $0x3e0] sm:$0xf]  ;;  %v6616_v10 = vld [vmem:[%s10409_s1 + $0x3ec] sm:$0xf0]  ;;  %3141 = vmatpush.bf16.msra.mxu0 %v4429_v3 }
   0x5   :  { %v4412_v11 = vld [vmem:[%s10409_s1 + $0xc0] sm:$0xf]  ;;  %v4813_v12 = vor.u32 %v6616_v10, %v4812_v9  ;;  %v6516_v13 = vld [vmem:[%s10409_s1 + $0xcc] sm:$0xf0]  ;;  %3154 = vmatpush.bf16.msra.mxu1 %v4557_v7 }
   0x6   :  { %v4540_v14 = vld [vmem:[%s10409_s1 + $0x1c0] sm:$0xf]  ;;  %v6548_v15 = vld [vmem:[%s10409_s1 + $0x1cc] sm:$0xf0]  ;;  %3167 = vmatpush.bf16.msra.mxu2 %v4685_v8  ;;  %v4413_v16 = vor.u32 %v6516_v13, %v4412_v11 }
   0x7   :  { %v4541_v17 = vor.u32 %v6548_v15, %v4540_v14  ;;  %v4668_v18 = vld [vmem:[%s10409_s1 + $0x2c0] sm:$0xf]  ;;  %v6580_v19 = vld [vmem:[%s10409_s1 + $0x2cc] sm:$0xf0]  ;;  %3180 = vmatpush.bf16.msra.mxu3 %v4813_v12 }
   0x8   :  { %v4796_v20 = vld [vmem:[%s10409_s1 + $0x3c0] sm:$0xf]  ;;  %v4669_v21 = vor.u32 %v6580_v19, %v4668_v18  ;;  %v6612_v22 = vld [vmem:[%s10409_s1 + $0x3cc] sm:$0xf0]  ;;  %3142 = vmatpush.bf16.msra.mxu0 %v4413_v16 }
   0x9   :  { %v4396_v23 = vld [vmem:[%s10409_s1 + $0xa0] sm:$0xf]  ;;  %v6512_v24 = vld [vmem:[%s10409_s1 + $0xac] sm:$0xf0]  ;;  %v4797_v25 = vor.u32 %v6612_v22, %v4796_v20  ;;  %3155 = vmatpush.bf16.msra.mxu1 %v4541_v17 }
   0xa   :  { %v4524_v26 = vld [vmem:[%s10409_s1 + $0x1a0] sm:$0xf]  ;;  %v6544_v27 = vld [vmem:[%s10409_s1 + $0x1ac] sm:$0xf0]  ;;  %v4397_v29 = vor.u32 %v6512_v24, %v4396_v23  ;;  %3168 = vmatpush.bf16.msra.mxu2 %v4669_v21 }
   0xb   :  { %v4652_v28 = vld [vmem:[%s10409_s1 + $0x2a0] sm:$0xf]  ;;  %v6576_v30 = vld [vmem:[%s10409_s1 + $0x2ac] sm:$0xf0]  ;;  %v4525_v33 = vor.u32 %v6544_v27, %v4524_v26  ;;  %3181 = vmatpush.bf16.msra.mxu3 %v4797_v25 }
   0xc   :  { %v4780_v31 = vld [vmem:[%s10409_s1 + $0x3a0] sm:$0xf]  ;;  %v6608_v32 = vld [vmem:[%s10409_s1 + $0x3ac] sm:$0xf0]  ;;  %v4653_v34 = vor.u32 %v6576_v30, %v4652_v28  ;;  %3143 = vmatpush.bf16.msra.mxu0 %v4397_v29 }
   0xd   :  { %v4380_v35 = vld [vmem:[%s10409_s1 + $0x80] sm:$0xf]  ;;  %v6508_v36 = vld [vmem:[%s10409_s1 + $0x8c] sm:$0xf0]  ;;  %v4781_v38 = vor.u32 %v6608_v32, %v4780_v31  ;;  %3156 = vmatpush.bf16.msra.mxu1 %v4525_v33 }
   0xe   :  { %v4508_v37 = vld [vmem:[%s10409_s1 + $0x180] sm:$0xf]  ;;  %v6540_v39 = vld [vmem:[%s10409_s1 + $0x18c] sm:$0xf0]  ;;  %v4381_v44 = vor.u32 %v6508_v36, %v4380_v35  ;;  %3169 = vmatpush.bf16.msra.mxu2 %v4653_v34 }
   0xf   :  { %v4636_v40 = vld [vmem:[%s10409_s1 + $0x280] sm:$0xf]  ;;  %v6572_v41 = vld [vmem:[%s10409_s1 + $0x28c] sm:$0xf0]  ;;  %v4509_v45 = vor.u32 %v6540_v39, %v4508_v37  ;;  %3182 = vmatpush.bf16.msra.mxu3 %v4781_v38 }
  0x10   :  { %v4764_v42 = vld [vmem:[%s10409_s1 + $0x380] sm:$0xf]  ;;  %v6604_v43 = vld [vmem:[%s10409_s1 + $0x38c] sm:$0xf0]  ;;  %v4637_v46 = vor.u32 %v6572_v41, %v4636_v40  ;;  %3144 = vmatpush.bf16.msra.mxu0 %v4381_v44 }
  0x11   :  { %v4364_v47 = vld [vmem:[%s10409_s1 + $0x60] sm:$0xf]  ;;  %v6504_v48 = vld [vmem:[%s10409_s1 + $0x6c] sm:$0xf0]  ;;  %v4765_v50 = vor.u32 %v6604_v43, %v4764_v42  ;;  %3157 = vmatpush.bf16.msra.mxu1 %v4509_v45 }
  0x12   :  { %v4492_v49 = vld [vmem:[%s10409_s1 + $0x160] sm:$0xf]  ;;  %v6536_v51 = vld [vmem:[%s10409_s1 + $0x16c] sm:$0xf0]  ;;  %v4365_v56 = vor.u32 %v6504_v48, %v4364_v47  ;;  %3170 = vmatpush.bf16.msra.mxu2 %v4637_v46 }
  0x13   :  { %v4620_v52 = vld [vmem:[%s10409_s1 + $0x260] sm:$0xf]  ;;  %v6568_v53 = vld [vmem:[%s10409_s1 + $0x26c] sm:$0xf0]  ;;  %v4493_v57 = vor.u32 %v6536_v51, %v4492_v49  ;;  %3183 = vmatpush.bf16.msra.mxu3 %v4765_v50 }
  0x14   :  { %v4748_v54 = vld [vmem:[%s10409_s1 + $0x360] sm:$0xf]  ;;  %v6600_v55 = vld [vmem:[%s10409_s1 + $0x36c] sm:$0xf0]  ;;  %v4621_v58 = vor.u32 %v6568_v53, %v4620_v52  ;;  %3145 = vmatpush.bf16.msra.mxu0 %v4365_v56 }
  0x15   :  { %v4348_v59 = vld [vmem:[%s10409_s1 + $0x40] sm:$0xf]  ;;  %v6500_v60 = vld [vmem:[%s10409_s1 + $0x4c] sm:$0xf0]  ;;  %v4749_v62 = vor.u32 %v6600_v55, %v4748_v54  ;;  %3158 = vmatpush.bf16.msra.mxu1 %v4493_v57 }
  0x16   :  { %v4476_v61 = vld [vmem:[%s10409_s1 + $0x140] sm:$0xf]  ;;  %v6532_v63 = vld [vmem:[%s10409_s1 + $0x14c] sm:$0xf0]  ;;  %v4349_v4 = vor.u32 %v6500_v60, %v4348_v59  ;;  %3171 = vmatpush.bf16.msra.mxu2 %v4621_v58 }
  0x17   :  { %v4604_v0 = vld [vmem:[%s10409_s1 + $0x240] sm:$0xf]  ;;  %v6564_v1 = vld [vmem:[%s10409_s1 + $0x24c] sm:$0xf0]  ;;  %v4477_v5 = vor.u32 %v6532_v63, %v4476_v61  ;;  %3184 = vmatpush.bf16.msra.mxu3 %v4749_v62 }
  0x18   :  { %v4732_v2 = vld [vmem:[%s10409_s1 + $0x340] sm:$0xf]  ;;  %v6596_v3 = vld [vmem:[%s10409_s1 + $0x34c] sm:$0xf0]  ;;  %v4605_v6 = vor.u32 %v6564_v1, %v4604_v0  ;;  %3146 = vmatpush.bf16.msra.mxu0 %v4349_v4 }
  0x19   :  { %v4332_v7 = vld [vmem:[%s10409_s1 + $0x20] sm:$0xf]  ;;  %v6496_v8 = vld [vmem:[%s10409_s1 + $0x2c] sm:$0xf0]  ;;  %v4733_v10 = vor.u32 %v6596_v3, %v4732_v2  ;;  %3159 = vmatpush.bf16.msra.mxu1 %v4477_v5 }
  0x1a   :  { %v4460_v9 = vld [vmem:[%s10409_s1 + $0x120] sm:$0xf]  ;;  %v6528_v11 = vld [vmem:[%s10409_s1 + $0x12c] sm:$0xf0]  ;;  %v4333_v16 = vor.u32 %v6496_v8, %v4332_v7  ;;  %3172 = vmatpush.bf16.msra.mxu2 %v4605_v6 }
  0x1b   :  { %v4588_v12 = vld [vmem:[%s10409_s1 + $0x220] sm:$0xf]  ;;  %v6560_v13 = vld [vmem:[%s10409_s1 + $0x22c] sm:$0xf0]  ;;  %v4461_v19 = vor.u32 %v6528_v11, %v4460_v9  ;;  %3185 = vmatpush.bf16.msra.mxu3 %v4733_v10 }
  0x1c   :  { %v4716_v14 = vld [vmem:[%s10409_s1 + $0x320] sm:$0xf]  ;;  %v6592_v15 = vld [vmem:[%s10409_s1 + $0x32c] sm:$0xf0]  ;;  %v4589_v20 = vor.u32 %v6560_v13, %v4588_v12  ;;  %3147 = vmatpush.bf16.msra.mxu0 %v4333_v16 }
  0x1d   :  { %v4316_v17 = vld [vmem:[%s10409_s1] sm:$0xf]  ;;  %v6492_v18 = vld [vmem:[%s10409_s1 + $0xc] sm:$0xf0]  ;;  %v4717_v24 = vor.u32 %v6592_v15, %v4716_v14  ;;  %3160 = vmatpush.bf16.msra.mxu1 %v4461_v19 }
  0x1e   :  { %v4444_v21 = vld [vmem:[%s10409_s1 + $0x100] sm:$0xf]  ;;  %v6524_v22 = vld [vmem:[%s10409_s1 + $0x10c] sm:$0xf0]  ;;  %v4317_v31 = vor.u32 %v6492_v18, %v4316_v17  ;;  %3173 = vmatpush.bf16.msra.mxu2 %v4589_v20 }
  0x1f   :  { %v4572_v23 = vld [vmem:[%s10409_s1 + $0x200] sm:$0xf]  ;;  %v6556_v25 = vld [vmem:[%s10409_s1 + $0x20c] sm:$0xf0]  ;;  %v4445_v35 = vor.u32 %v6524_v22, %v4444_v21  ;;  %3186 = vmatpush.bf16.msra.mxu3 %v4717_v24 }
  0x20   :  { %v4700_v26 = vld [vmem:[%s10409_s1 + $0x300] sm:$0xf]  ;;  %v6588_v27 = vld [vmem:[%s10409_s1 + $0x30c] sm:$0xf0]  ;;  %v4573_v36 = vor.u32 %v6556_v25, %v4572_v23  ;;  %3148 = vmatpush.bf16.msra.mxu0 %v4317_v31 }
  0x21   :  { %v4940_v28 = vld [vmem:[%s10409_s1 + $0x4e0] sm:$0xf]  ;;  %v6648_v29 = vld [vmem:[%s10409_s1 + $0x4ec] sm:$0xf0]  ;;  %v4701_v39 = vor.u32 %v6588_v27, %v4700_v26  ;;  %3161 = vmatpush.bf16.msra.mxu1 %v4445_v35 }
  0x22   :  { %v5068_v30 = vld [vmem:[%s10409_s1 + $0x5e0] sm:$0xf]  ;;  %v6680_v32 = vld [vmem:[%s10409_s1 + $0x5ec] sm:$0xf0]  ;;  %v4941_v40 = vor.u32 %v6648_v29, %v4940_v28  ;;  %3174 = vmatpush.bf16.msra.mxu2 %v4573_v36 }
  0x23   :  { %v5196_v33 = vld [vmem:[%s10409_s1 + $0x6e0] sm:$0xf]  ;;  %v6712_v34 = vld [vmem:[%s10409_s1 + $0x6ec] sm:$0xf0]  ;;  %v5069_v41 = vor.u32 %v6680_v32, %v5068_v30  ;;  %3187 = vmatpush.bf16.msra.mxu3 %v4701_v39 }
  0x24   :  { %v5324_v37 = vld [vmem:[%s10409_s1 + $0x7e0] sm:$0xf]  ;;  %v6744_v38 = vld [vmem:[%s10409_s1 + $0x7ec] sm:$0xf0]  ;;  %v5197_v42 = vor.u32 %v6712_v34, %v5196_v33  ;;  %3193 = vmatpush.bf16.msrb.mxu0 %v4941_v40 }
  0x25   :  { %v4924_v43 = vld [vmem:[%s10409_s1 + $0x4c0] sm:$0xf]  ;;  %v6644_v44 = vld [vmem:[%s10409_s1 + $0x4cc] sm:$0xf0]  ;;  %v5325_v46 = vor.u32 %v6744_v38, %v5324_v37  ;;  %3206 = vmatpush.bf16.msrb.mxu1 %v5069_v41 }
  0x26   :  { %v5052_v45 = vld [vmem:[%s10409_s1 + $0x5c0] sm:$0xf]  ;;  %v6676_v47 = vld [vmem:[%s10409_s1 + $0x5cc] sm:$0xf0]  ;;  %v4925_v52 = vor.u32 %v6644_v44, %v4924_v43  ;;  %3219 = vmatpush.bf16.msrb.mxu2 %v5197_v42 }
  0x27   :  { %v5180_v48 = vld [vmem:[%s10409_s1 + $0x6c0] sm:$0xf]  ;;  %v6708_v49 = vld [vmem:[%s10409_s1 + $0x6cc] sm:$0xf0]  ;;  %v5053_v53 = vor.u32 %v6676_v47, %v5052_v45  ;;  %3232 = vmatpush.bf16.msrb.mxu3 %v5325_v46 }
  0x28   :  { %v5308_v50 = vld [vmem:[%s10409_s1 + $0x7c0] sm:$0xf]  ;;  %v6740_v51 = vld [vmem:[%s10409_s1 + $0x7cc] sm:$0xf0]  ;;  %v5181_v54 = vor.u32 %v6708_v49, %v5180_v48  ;;  %3194 = vmatpush.bf16.msrb.mxu0 %v4925_v52 }
  0x29   :  { %v4908_v55 = vld [vmem:[%s10409_s1 + $0x4a0] sm:$0xf]  ;;  %v6640_v56 = vld [vmem:[%s10409_s1 + $0x4ac] sm:$0xf0]  ;;  %v5309_v58 = vor.u32 %v6740_v51, %v5308_v50  ;;  %3207 = vmatpush.bf16.msrb.mxu1 %v5053_v53 }
  0x2a   :  { %v5036_v57 = vld [vmem:[%s10409_s1 + $0x5a0] sm:$0xf]  ;;  %v6672_v59 = vld [vmem:[%s10409_s1 + $0x5ac] sm:$0xf0]  ;;  %v4909_v0 = vor.u32 %v6640_v56, %v4908_v55  ;;  %3220 = vmatpush.bf16.msrb.mxu2 %v5181_v54 }
  0x2b   :  { %v5164_v60 = vld [vmem:[%s10409_s1 + $0x6a0] sm:$0xf]  ;;  %v6704_v61 = vld [vmem:[%s10409_s1 + $0x6ac] sm:$0xf0]  ;;  %v5037_v3 = vor.u32 %v6672_v59, %v5036_v57  ;;  %3233 = vmatpush.bf16.msrb.mxu3 %v5309_v58 }
  0x2c   :  { %v5292_v62 = vld [vmem:[%s10409_s1 + $0x7a0] sm:$0xf]  ;;  %v6736_v63 = vld [vmem:[%s10409_s1 + $0x7ac] sm:$0xf0]  ;;  %v5165_v4 = vor.u32 %v6704_v61, %v5164_v60  ;;  %3195 = vmatpush.bf16.msrb.mxu0 %v4909_v0  ;;  %v22_v61 = vld [vmem:[%s10408_s0 + $0x8] sm:$0xff] }
  0x2d   :  { %v4892_v1 = vld [vmem:[%s10409_s1 + $0x480] sm:$0xf]  ;;  %v6636_v5 = vld [vmem:[%s10409_s1 + $0x48c] sm:$0xf0]  ;;  %v5293_v7 = vor.u32 %v6736_v63, %v5292_v62  ;;  %3208 = vmatpush.bf16.msrb.mxu1 %v5037_v3 }
  0x2e   :  { %v21_v2 = vld [vmem:[%s10408_s0] sm:$0xff]  ;;  %v6668_v8 = vld [vmem:[%s10409_s1 + $0x58c] sm:$0xf0]  ;;  %v4893_v13 = vor.u32 %v6636_v5, %v4892_v1  ;;  %3221 = vmatpush.bf16.msrb.mxu2 %v5165_v4 }
  0x2f   :  { %v5020_v6 = vld [vmem:[%s10409_s1 + $0x580] sm:$0xf]  ;;  %546 = vst [vmem:[#allocation1] ss:$9 sm:$0xff] %v21_v2  ;;  %v6700_v10 = vld [vmem:[%s10409_s1 + $0x68c] sm:$0xf0]  ;;  %3234 = vmatpush.bf16.msrb.mxu3 %v5293_v7 }
  0x30   :  { %v5148_v9 = vld [vmem:[%s10409_s1 + $0x680] sm:$0xf]  ;;  %v6732_v12 = vld [vmem:[%s10409_s1 + $0x78c] sm:$0xf0]  ;;  %v5021_v14 = vor.u32 %v6668_v8, %v5020_v6  ;;  %3196 = vmatpush.bf16.msrb.mxu0 %v4893_v13 }
  0x31   :  { %v5276_v11 = vld [vmem:[%s10409_s1 + $0x780] sm:$0xf]  ;;  %v5149_v15 = vor.u32 %v6700_v10, %v5148_v9  ;;  %v6632_v17 = vld [vmem:[%s10409_s1 + $0x46c] sm:$0xf0] }
  0x32   :  { %v4876_v16 = vld [vmem:[%s10409_s1 + $0x460] sm:$0xf]  ;;  %v5277_v19 = vor.u32 %v6732_v12, %v5276_v11  ;;  %v6664_v20 = vld [vmem:[%s10409_s1 + $0x56c] sm:$0xf0]  ;;  %3209 = vmatpush.bf16.msrb.mxu1 %v5021_v14 }
  0x33   :  { %v5004_v18 = vld [vmem:[%s10409_s1 + $0x560] sm:$0xf]  ;;  %v6696_v22 = vld [vmem:[%s10409_s1 + $0x66c] sm:$0xf0]  ;;  %v4877_v26 = vor.u32 %v6632_v17, %v4876_v16  ;;  %3222 = vmatpush.bf16.msrb.mxu2 %v5149_v15 }
  0x34   :  { %v5132_v21 = vld [vmem:[%s10409_s1 + $0x660] sm:$0xf]  ;;  %v6728_v24 = vld [vmem:[%s10409_s1 + $0x76c] sm:$0xf0]  ;;  %v5005_v30 = vor.u32 %v6664_v20, %v5004_v18  ;;  %3235 = vmatpush.bf16.msrb.mxu3 %v5277_v19 }
  0x35   :  { %v5260_v23 = vld [vmem:[%s10409_s1 + $0x760] sm:$0xf]  ;;  %v5133_v31 = vor.u32 %v6696_v22, %v5132_v21  ;;  %v6628_v32 = vld [vmem:[%s10409_s1 + $0x44c] sm:$0xf0]  ;;  %3197 = vmatpush.bf16.msrb.mxu0 %v4877_v26 }
  0x36   :  { %v4860_v25 = vld [vmem:[%s10409_s1 + $0x440] sm:$0xf]  ;;  %v7437_v27 = vld [vmem:[#allocation1 + $0x12] sm:$0xff]  ;;  %v7449_v34 = vld [vmem:[#allocation1 + $0x9] sm:$0xff]  ;;  %v5261_v35 = vor.u32 %v6728_v24, %v5260_v23  ;;  %3210 = vmatpush.bf16.msrb.mxu1 %v5005_v30 }
  0x37   :  { %v7439_v28 = vld [vmem:[#allocation1] sm:$0xff]  ;;  %v6660_v36 = vld [vmem:[%s10409_s1 + $0x54c] sm:$0xf0]  ;;  %3175 = vmatmul.bf16.vlgmr.msra.gmra.mxu2 %v7437_v27  ;;  %v4861_v41 = vor.u32 %v6628_v32, %v4860_v25  ;;  %3162 = vmatmul.bf16.vlgmr.msra.gmra.mxu1 %v7449_v34  ;;  %v7512_v60 = vld [vmem:[#allocation1 + $0x36] sm:$0xff] }
  0x38   :  { %v7441_v29 = vld [vmem:[#allocation1 + $0x1b] sm:$0xff]  ;;  %v6692_v38 = vld [vmem:[%s10409_s1 + $0x64c] sm:$0xf0]  ;;  %3149 = vmatmul.bf16.vlgmr.msra.gmra.mxu0 %v7439_v28  ;;  %3223 = vmatpush.bf16.msrb.mxu2 %v5133_v31  ;;  %v7517_v0 = vld [vmem:[#allocation1 + $0x24] sm:$0xff] }
  0x39   :  { %v4988_v33 = vld [vmem:[%s10409_s1 + $0x540] sm:$0xf]  ;;  %v6724_v40 = vld [vmem:[%s10409_s1 + $0x74c] sm:$0xf0]  ;;  %3188 = vmatmul.bf16.vlgmr.msra.gmra.mxu3 %v7441_v29  ;;  %3198 = vmatpush.bf16.msrb.mxu0 %v4861_v41 }
  0x3a   :  { %v5116_v37 = vld [vmem:[%s10409_s1 + $0x640] sm:$0xf]  ;;  %v4989_v43 = vor.u32 %v6660_v36, %v4988_v33  ;;  %v6624_v45 = vld [vmem:[%s10409_s1 + $0x42c] sm:$0xf0]  ;;  %3236 = vmatpush.bf16.msrb.mxu3 %v5261_v35 }
  0x3b   :  { %v5244_v39 = vld [vmem:[%s10409_s1 + $0x740] sm:$0xf]  ;;  %v5117_v44 = vor.u32 %v6692_v38, %v5116_v37  ;;  %v6656_v47 = vld [vmem:[%s10409_s1 + $0x52c] sm:$0xf0] }
  0x3c   :  { %v4844_v42 = vld [vmem:[%s10409_s1 + $0x420] sm:$0xf]  ;;  %v5245_v48 = vor.u32 %v6724_v40, %v5244_v39  ;;  %v6688_v50 = vld [vmem:[%s10409_s1 + $0x62c] sm:$0xf0]  ;;  %3211 = vmatpush.bf16.msrb.mxu1 %v4989_v43 }
  0x3d   :  { %v4972_v46 = vld [vmem:[%s10409_s1 + $0x520] sm:$0xf]  ;;  %v6720_v52 = vld [vmem:[%s10409_s1 + $0x72c] sm:$0xf0]  ;;  %v4845_v55 = vor.u32 %v6624_v45, %v4844_v42  ;;  %3224 = vmatpush.bf16.msrb.mxu2 %v5117_v44 }
  0x3e   :  { %v5100_v49 = vld [vmem:[%s10409_s1 + $0x620] sm:$0xf]  ;;  %v6620_v54 = vld [vmem:[%s10409_s1 + $0x40c] sm:$0xf0]  ;;  %v4973_v62 = vor.u32 %v6656_v47, %v4972_v46  ;;  %3237 = vmatpush.bf16.msrb.mxu3 %v5245_v48 }
  0x3f   :  { %v5228_v51 = vld [vmem:[%s10409_s1 + $0x720] sm:$0xf]  ;;  %v6652_v57 = vld [vmem:[%s10409_s1 + $0x50c] sm:$0xf0]  ;;  %v5101_v63 = vor.u32 %v6688_v50, %v5100_v49  ;;  %3199 = vmatpush.bf16.msrb.mxu0 %v4845_v55 }
  0x40   :  { %v4828_v53 = vld [vmem:[%s10409_s1 + $0x400] sm:$0xf]  ;;  %v6684_v59 = vld [vmem:[%s10409_s1 + $0x60c] sm:$0xf0]  ;;  %v5229_v3 = vor.u32 %v6720_v52, %v5228_v51  ;;  %3212 = vmatpush.bf16.msrb.mxu1 %v4973_v62 }
  0x41   :  { %v4956_v56 = vld [vmem:[%s10409_s1 + $0x500] sm:$0xf]  ;;  %v7521_v2 = vld [vmem:[#allocation1 + $0x2d] sm:$0xff]  ;;  %v4829_v9 = vor.u32 %v6620_v54, %v4828_v53  ;;  %3225 = vmatpush.bf16.msrb.mxu2 %v5101_v63 }
  0x42   :  { %v5084_v58 = vld [vmem:[%s10409_s1 + $0x600] sm:$0xf]  ;;  %v6716_v5 = vld [vmem:[%s10409_s1 + $0x70c] sm:$0xf0]  ;;  %v4957_v13 = vor.u32 %v6652_v57, %v4956_v56  ;;  %3238 = vmatpush.bf16.msrb.mxu3 %v5229_v3 }
  0x43   :  { %v7519_v1 = vld [vmem:[#allocation1 + $0x3f] sm:$0xff]  ;;  %v6776_v7 = vld [vmem:[%s10409_s1 + $0x8ec] sm:$0xf0]  ;;  %v5085_v14 = vor.u32 %v6684_v59, %v5084_v58  ;;  %3200 = vmatpush.bf16.msrb.mxu0 %v4829_v9 }
  0x44   :  { %v5212_v4 = vld [vmem:[%s10409_s1 + $0x700] sm:$0xf]  ;;  %556 = vst [vmem:[#allocation1] ss:$9 sm:$0xff] %v22_v61  ;;  %v6808_v10 = vld [vmem:[%s10409_s1 + $0x9ec] sm:$0xf0]  ;;  %3213 = vmatpush.bf16.msrb.mxu1 %v4957_v13 }
  0x45   :  { %v5452_v6 = vld [vmem:[%s10409_s1 + $0x8e0] sm:$0xf]  ;;  %v6840_v12 = vld [vmem:[%s10409_s1 + $0xaec] sm:$0xf0]  ;;  %v5213_v17 = vor.u32 %v6716_v5, %v5212_v4  ;;  %3226 = vmatpush.bf16.msrb.mxu2 %v5085_v14 }
  0x46   :  { %v5580_v8 = vld [vmem:[%s10409_s1 + $0x9e0] sm:$0xf]  ;;  %v6872_v16 = vld [vmem:[%s10409_s1 + $0xbec] sm:$0xf0]  ;;  %v5453_v18 = vor.u32 %v6776_v7, %v5452_v6 }
  0x47   :  { %v5708_v11 = vld [vmem:[%s10409_s1 + $0xae0] sm:$0xf]  ;;  %v5581_v19 = vor.u32 %v6808_v10, %v5580_v8  ;;  %v6772_v22 = vld [vmem:[%s10409_s1 + $0x8cc] sm:$0xf0]  ;;  %3239 = vmatpush.bf16.msrb.mxu3 %v5213_v17  ;;  %3214 = vmatmul.bf16.vlgmr.msrb.gmra.mxu1 %v7521_v2 }
  0x48   :  { %v5836_v15 = vld [vmem:[%s10409_s1 + $0xbe0] sm:$0xf]  ;;  %v5709_v20 = vor.u32 %v6840_v12, %v5708_v11  ;;  %v6804_v25 = vld [vmem:[%s10409_s1 + $0x9cc] sm:$0xf0]  ;;  %3245 = vmatpush.bf16.msra.mxu0 %v5453_v18  ;;  %3227 = vmatmul.bf16.vlgmr.msrb.gmra.mxu2 %v7512_v60 }
  0x49   :  { %v5436_v21 = vld [vmem:[%s10409_s1 + $0x8c0] sm:$0xf]  ;;  %v5837_v24 = vor.u32 %v6872_v16, %v5836_v15  ;;  %v6836_v30 = vld [vmem:[%s10409_s1 + $0xacc] sm:$0xf0]  ;;  %3258 = vmatpush.bf16.msra.mxu1 %v5581_v19  ;;  %3201 = vmatmul.bf16.vlgmr.msrb.gmra.mxu0 %v7517_v0 }
  0x4a   :  { %v5564_v23 = vld [vmem:[%s10409_s1 + $0x9c0] sm:$0xf]  ;;  %v6868_v32 = vld [vmem:[%s10409_s1 + $0xbcc] sm:$0xf0]  ;;  %v5437_v33 = vor.u32 %v6772_v22, %v5436_v21  ;;  %3271 = vmatpush.bf16.msra.mxu2 %v5709_v20  ;;  %3240 = vmatmul.bf16.vlgmr.msrb.gmra.mxu3 %v7519_v1 }
  0x4b   :  { %v5692_v26 = vld [vmem:[%s10409_s1 + $0xac0] sm:$0xf]  ;;  %v5565_v35 = vor.u32 %v6804_v25, %v5564_v23  ;;  %v6768_v38 = vld [vmem:[%s10409_s1 + $0x8ac] sm:$0xf0]  ;;  %3284 = vmatpush.bf16.msra.mxu3 %v5837_v24 }
  0x4c   :  { %v5820_v31 = vld [vmem:[%s10409_s1 + $0xbc0] sm:$0xf]  ;;  %v5693_v36 = vor.u32 %v6836_v30, %v5692_v26  ;;  %v6800_v41 = vld [vmem:[%s10409_s1 + $0x9ac] sm:$0xf0]  ;;  %3246 = vmatpush.bf16.msra.mxu0 %v5437_v33 }
  0x4d   :  { %v5420_v37 = vld [vmem:[%s10409_s1 + $0x8a0] sm:$0xf]  ;;  %v5821_v40 = vor.u32 %v6868_v32, %v5820_v31  ;;  %v6832_v43 = vld [vmem:[%s10409_s1 + $0xaac] sm:$0xf0]  ;;  %3259 = vmatpush.bf16.msra.mxu1 %v5565_v35 }
  0x4e   :  { %v5548_v39 = vld [vmem:[%s10409_s1 + $0x9a0] sm:$0xf]  ;;  %v6864_v45 = vld [vmem:[%s10409_s1 + $0xbac] sm:$0xf0]  ;;  %v5421_v46 = vor.u32 %v6768_v38, %v5420_v37  ;;  %3272 = vmatpush.bf16.msra.mxu2 %v5693_v36 }
  0x4f   :  { %v5676_v42 = vld [vmem:[%s10409_s1 + $0xaa0] sm:$0xf]  ;;  %v5549_v47 = vor.u32 %v6800_v41, %v5548_v39  ;;  %v6764_v50 = vld [vmem:[%s10409_s1 + $0x88c] sm:$0xf0]  ;;  %3285 = vmatpush.bf16.msra.mxu3 %v5821_v40 }
  0x50   :  { %v5804_v44 = vld [vmem:[%s10409_s1 + $0xba0] sm:$0xf]  ;;  %v5677_v48 = vor.u32 %v6832_v43, %v5676_v42  ;;  %v6796_v53 = vld [vmem:[%s10409_s1 + $0x98c] sm:$0xf0]  ;;  %3247 = vmatpush.bf16.msra.mxu0 %v5421_v46 }
  0x51   :  { %v5404_v49 = vld [vmem:[%s10409_s1 + $0x880] sm:$0xf]  ;;  %v5805_v52 = vor.u32 %v6864_v45, %v5804_v44  ;;  %v6828_v55 = vld [vmem:[%s10409_s1 + $0xa8c] sm:$0xf0]  ;;  %3260 = vmatpush.bf16.msra.mxu1 %v5549_v47 }
  0x52   :  { %v5532_v51 = vld [vmem:[%s10409_s1 + $0x980] sm:$0xf]  ;;  %v6860_v57 = vld [vmem:[%s10409_s1 + $0xb8c] sm:$0xf0]  ;;  %v5405_v58 = vor.u32 %v6764_v50, %v5404_v49  ;;  %3273 = vmatpush.bf16.msra.mxu2 %v5677_v48 }
  0x53   :  { %v5660_v54 = vld [vmem:[%s10409_s1 + $0xa80] sm:$0xf]  ;;  %v5533_v59 = vor.u32 %v6796_v53, %v5532_v51  ;;  %v6760_v63 = vld [vmem:[%s10409_s1 + $0x86c] sm:$0xf0]  ;;  %3286 = vmatpush.bf16.msra.mxu3 %v5805_v52 }
  0x54   :  { %v5788_v56 = vld [vmem:[%s10409_s1 + $0xb80] sm:$0xf]  ;;  %v5661_v61 = vor.u32 %v6828_v55, %v5660_v54  ;;  %v6792_v5 = vld [vmem:[%s10409_s1 + $0x96c] sm:$0xf0]  ;;  %3248 = vmatpush.bf16.msra.mxu0 %v5405_v58 }
  0x55   :  { %v5388_v62 = vld [vmem:[%s10409_s1 + $0x860] sm:$0xf]  ;;  %v5789_v4 = vor.u32 %v6860_v57, %v5788_v56  ;;  %v6824_v7 = vld [vmem:[%s10409_s1 + $0xa6c] sm:$0xf0]  ;;  %3261 = vmatpush.bf16.msra.mxu1 %v5533_v59 }
  0x56   :  { %v5516_v3 = vld [vmem:[%s10409_s1 + $0x960] sm:$0xf]  ;;  %v6856_v9 = vld [vmem:[%s10409_s1 + $0xb6c] sm:$0xf0]  ;;  %v5389_v10 = vor.u32 %v6760_v63, %v5388_v62  ;;  %3274 = vmatpush.bf16.msra.mxu2 %v5661_v61 }
  0x57   :  { %v5644_v6 = vld [vmem:[%s10409_s1 + $0xa60] sm:$0xf]  ;;  %v5517_v11 = vor.u32 %v6792_v5, %v5516_v3  ;;  %v6756_v14 = vld [vmem:[%s10409_s1 + $0x84c] sm:$0xf0]  ;;  %3287 = vmatpush.bf16.msra.mxu3 %v5789_v4 }
  0x58   :  { %v5772_v8 = vld [vmem:[%s10409_s1 + $0xb60] sm:$0xf]  ;;  %v5645_v12 = vor.u32 %v6824_v7, %v5644_v6  ;;  %v6788_v17 = vld [vmem:[%s10409_s1 + $0x94c] sm:$0xf0]  ;;  %3249 = vmatpush.bf16.msra.mxu0 %v5389_v10 }
  0x59   :  { %v5372_v13 = vld [vmem:[%s10409_s1 + $0x840] sm:$0xf]  ;;  %v5773_v16 = vor.u32 %v6856_v9, %v5772_v8  ;;  %v6820_v19 = vld [vmem:[%s10409_s1 + $0xa4c] sm:$0xf0]  ;;  %3262 = vmatpush.bf16.msra.mxu1 %v5517_v11 }
  0x5a   :  { %v5500_v15 = vld [vmem:[%s10409_s1 + $0x940] sm:$0xf]  ;;  %v6852_v21 = vld [vmem:[%s10409_s1 + $0xb4c] sm:$0xf0]  ;;  %v5373_v22 = vor.u32 %v6756_v14, %v5372_v13  ;;  %3275 = vmatpush.bf16.msra.mxu2 %v5645_v12 }
  0x5b   :  { %v5628_v18 = vld [vmem:[%s10409_s1 + $0xa40] sm:$0xf]  ;;  %v5501_v23 = vor.u32 %v6788_v17, %v5500_v15  ;;  %v6752_v26 = vld [vmem:[%s10409_s1 + $0x82c] sm:$0xf0]  ;;  %3288 = vmatpush.bf16.msra.mxu3 %v5773_v16 }
  0x5c   :  { %v5756_v20 = vld [vmem:[%s10409_s1 + $0xb40] sm:$0xf]  ;;  %v5629_v24 = vor.u32 %v6820_v19, %v5628_v18  ;;  %v6784_v32 = vld [vmem:[%s10409_s1 + $0x92c] sm:$0xf0]  ;;  %3250 = vmatpush.bf16.msra.mxu0 %v5373_v22 }
  0x5d   :  { %v5356_v25 = vld [vmem:[%s10409_s1 + $0x820] sm:$0xf]  ;;  %v5757_v31 = vor.u32 %v6852_v21, %v5756_v20  ;;  %v6816_v35 = vld [vmem:[%s10409_s1 + $0xa2c] sm:$0xf0]  ;;  %3263 = vmatpush.bf16.msra.mxu1 %v5501_v23 }
  0x5e   :  { %v5484_v30 = vld [vmem:[%s10409_s1 + $0x920] sm:$0xf]  ;;  %v6848_v37 = vld [vmem:[%s10409_s1 + $0xb2c] sm:$0xf0]  ;;  %v5357_v38 = vor.u32 %v6752_v26, %v5356_v25  ;;  %3276 = vmatpush.bf16.msra.mxu2 %v5629_v24 }
  0x5f   :  { %v5612_v33 = vld [vmem:[%s10409_s1 + $0xa20] sm:$0xf]  ;;  %v6748_v40 = vld [vmem:[%s10409_s1 + $0x80c] sm:$0xf0]  ;;  %v5485_v41 = vor.u32 %v6784_v32, %v5484_v30  ;;  %3289 = vmatpush.bf16.msra.mxu3 %v5757_v31 }
  0x60   :  { %v5740_v36 = vld [vmem:[%s10409_s1 + $0xb20] sm:$0xf]  ;;  %v5613_v42 = vor.u32 %v6816_v35, %v5612_v33  ;;  %v6780_v44 = vld [vmem:[%s10409_s1 + $0x90c] sm:$0xf0]  ;;  %3251 = vmatpush.bf16.msra.mxu0 %v5357_v38 }
  0x61   :  { %v5340_v39 = vld [vmem:[%s10409_s1 + $0x800] sm:$0xf]  ;;  %v5741_v46 = vor.u32 %v6848_v37, %v5740_v36  ;;  %v6812_v47 = vld [vmem:[%s10409_s1 + $0xa0c] sm:$0xf0]  ;;  %3264 = vmatpush.bf16.msra.mxu1 %v5485_v41 }
  0x62   :  { %v5468_v43 = vld [vmem:[%s10409_s1 + $0x900] sm:$0xf]  ;;  %v6844_v49 = vld [vmem:[%s10409_s1 + $0xb0c] sm:$0xf0]  ;;  %v5341_v53 = vor.u32 %v6748_v40, %v5340_v39  ;;  %3277 = vmatpush.bf16.msra.mxu2 %v5613_v42 }
  0x63   :  { %v5596_v45 = vld [vmem:[%s10409_s1 + $0xa00] sm:$0xf]  ;;  %v6904_v51 = vld [vmem:[%s10409_s1 + $0xcec] sm:$0xf0]  ;;  %v5469_v57 = vor.u32 %v6780_v44, %v5468_v43  ;;  %3290 = vmatpush.bf16.msra.mxu3 %v5741_v46 }
  0x64   :  { %v5724_v48 = vld [vmem:[%s10409_s1 + $0xb00] sm:$0xf]  ;;  %v6936_v54 = vld [vmem:[%s10409_s1 + $0xdec] sm:$0xf0]  ;;  %v5597_v58 = vor.u32 %v6812_v47, %v5596_v45  ;;  %3252 = vmatpush.bf16.msra.mxu0 %v5341_v53 }
  0x65   :  { %v5964_v50 = vld [vmem:[%s10409_s1 + $0xce0] sm:$0xf]  ;;  %v6968_v56 = vld [vmem:[%s10409_s1 + $0xeec] sm:$0xf0]  ;;  %v5725_v62 = vor.u32 %v6844_v49, %v5724_v48  ;;  %3265 = vmatpush.bf16.msra.mxu1 %v5469_v57 }
  0x66   :  { %v6092_v52 = vld [vmem:[%s10409_s1 + $0xde0] sm:$0xf]  ;;  %v7000_v61 = vld [vmem:[%s10409_s1 + $0xfec] sm:$0xf0]  ;;  %v5965_v63 = vor.u32 %v6904_v51, %v5964_v50  ;;  %3278 = vmatpush.bf16.msra.mxu2 %v5597_v58 }
  0x67   :  { %v6220_v55 = vld [vmem:[%s10409_s1 + $0xee0] sm:$0xf]  ;;  %v6093_v3 = vor.u32 %v6936_v54, %v6092_v52  ;;  %v6900_v6 = vld [vmem:[%s10409_s1 + $0xccc] sm:$0xf0]  ;;  %3291 = vmatpush.bf16.msra.mxu3 %v5725_v62 }
  0x68   :  { %v6348_v59 = vld [vmem:[%s10409_s1 + $0xfe0] sm:$0xf]  ;;  %v6221_v4 = vor.u32 %v6968_v56, %v6220_v55  ;;  %v6932_v9 = vld [vmem:[%s10409_s1 + $0xdcc] sm:$0xf0]  ;;  %3297 = vmatpush.bf16.msrb.mxu0 %v5965_v63 }
  0x69   :  { %v5948_v5 = vld [vmem:[%s10409_s1 + $0xcc0] sm:$0xf]  ;;  %v6349_v8 = vor.u32 %v7000_v61, %v6348_v59  ;;  %v6964_v11 = vld [vmem:[%s10409_s1 + $0xecc] sm:$0xf0]  ;;  %3310 = vmatpush.bf16.msrb.mxu1 %v6093_v3 }
  0x6a   :  { %v6076_v7 = vld [vmem:[%s10409_s1 + $0xdc0] sm:$0xf]  ;;  %v6996_v14 = vld [vmem:[%s10409_s1 + $0xfcc] sm:$0xf0]  ;;  %v5949_v18 = vor.u32 %v6900_v6, %v5948_v5  ;;  %3323 = vmatpush.bf16.msrb.mxu2 %v6221_v4 }
  0x6b   :  { %v6204_v10 = vld [vmem:[%s10409_s1 + $0xec0] sm:$0xf]  ;;  %v559_v15 = vld [vmem:[#allocation1 + $0x12] sm:$0xff]  ;;  %v558_v16 = vld [vmem:[#allocation1 + $0x9] sm:$0xff]  ;;  %v6077_v19 = vor.u32 %v6932_v9, %v6076_v7  ;;  %3336 = vmatpush.bf16.msrb.mxu3 %v6349_v8 }
  0x6c   :  { %v557_v12 = vld [vmem:[#allocation1] sm:$0xff]  ;;  %v6205_v20 = vor.u32 %v6964_v11, %v6204_v10  ;;  %v6896_v22 = vld [vmem:[%s10409_s1 + $0xcac] sm:$0xf0]  ;;  %3279 = vmatmul.bf16.vlgmr.msra.gmra.mxu2 %v559_v15  ;;  %3266 = vmatmul.bf16.vlgmr.msra.gmra.mxu1 %v558_v16 }
  0x6d   :  { %v6332_v13 = vld [vmem:[%s10409_s1 + $0xfc0] sm:$0xf]  ;;  %3253 = vmatmul.bf16.vlgmr.msra.gmra.mxu0 %v557_v12  ;;  %v6928_v25 = vld [vmem:[%s10409_s1 + $0xdac] sm:$0xf0]  ;;  %3311 = vmatpush.bf16.msrb.mxu1 %v6077_v19 }
  0x6e   :  { %v560_v17 = vld [vmem:[#allocation1 + $0x1b] sm:$0xff]  ;;  %v6333_v24 = vor.u32 %v6996_v14, %v6332_v13  ;;  %v6960_v30 = vld [vmem:[%s10409_s1 + $0xeac] sm:$0xf0]  ;;  %3298 = vmatpush.bf16.msrb.mxu0 %v5949_v18  ;;  %3324 = vmatpush.bf16.msrb.mxu2 %v6205_v20 }
  0x6f   :  { %v5932_v21 = vld [vmem:[%s10409_s1 + $0xca0] sm:$0xf]  ;;  %v6992_v32 = vld [vmem:[%s10409_s1 + $0xfac] sm:$0xf0]  ;;  %3292 = vmatmul.bf16.vlgmr.msra.gmra.mxu3 %v560_v17 }
  0x70   :  { %v6060_v23 = vld [vmem:[%s10409_s1 + $0xda0] sm:$0xf]  ;;  %v5933_v33 = vor.u32 %v6896_v22, %v5932_v21  ;;  %v6892_v38 = vld [vmem:[%s10409_s1 + $0xc8c] sm:$0xf0]  ;;  %3337 = vmatpush.bf16.msrb.mxu3 %v6333_v24 }
  0x71   :  { %v6188_v26 = vld [vmem:[%s10409_s1 + $0xea0] sm:$0xf]  ;;  %v6061_v36 = vor.u32 %v6928_v25, %v6060_v23  ;;  %v6924_v40 = vld [vmem:[%s10409_s1 + $0xd8c] sm:$0xf0] }
  0x72   :  { %v6316_v31 = vld [vmem:[%s10409_s1 + $0xfa0] sm:$0xf]  ;;  %v6189_v37 = vor.u32 %v6960_v30, %v6188_v26  ;;  %v6956_v43 = vld [vmem:[%s10409_s1 + $0xe8c] sm:$0xf0] }
  0x73   :  { %v5916_v35 = vld [vmem:[%s10409_s1 + $0xc80] sm:$0xf]  ;;  %v6317_v41 = vor.u32 %v6992_v32, %v6316_v31  ;;  %v6988_v45 = vld [vmem:[%s10409_s1 + $0xf8c] sm:$0xf0] }
  0x74   :  { %v6044_v39 = vld [vmem:[%s10409_s1 + $0xd80] sm:$0xf] }
  0x75   :  { %v6172_v42 = vld [vmem:[%s10409_s1 + $0xe80] sm:$0xf] }
  0x76   :  { %v6300_v44 = vld [vmem:[%s10409_s1 + $0xf80] sm:$0xf] }
  0x77   :  { %10 = vsyncpa [#allocation3], 0  ;;  %3299 = vmatpush.bf16.msrb.mxu0 %v5933_v33  ;;  %v5917_v46 = vor.u32 %v6892_v38, %v5916_v35  ;;  %3312 = vmatpush.bf16.msrb.mxu1 %v6061_v36  ;;  %v6045_v47 = vor.u32 %v6924_v40, %v6044_v39  ;;  %v6173_v48 = vor.u32 %v6956_v43, %v6172_v42  ;;  %v5900_v49 = vld [vmem:[%s10409_s1 + $0xc60] sm:$0xf]  ;;  %v6888_v50 = vld [vmem:[%s10409_s1 + $0xc6c] sm:$0xf0] }
  0x78   :  { %3325 = vmatpush.bf16.msrb.mxu2 %v6189_v37  ;;  %v6028_v51 = vld [vmem:[%s10409_s1 + $0xd60] sm:$0xf]  ;;  %3338 = vmatpush.bf16.msrb.mxu3 %v6317_v41  ;;  %v6301_v52 = vor.u32 %v6988_v45, %v6300_v44  ;;  %v6920_v53 = vld [vmem:[%s10409_s1 + $0xd6c] sm:$0xf0]  ;;  %v5901_v58 = vor.u32 %v6888_v50, %v5900_v49  ;;  %v6518_v38 = vld [vmem:[%s10409_s1 + $0xe4] sm:$0xf] }
  0x79   :  { %v6156_v54 = vld [vmem:[%s10409_s1 + $0xe60] sm:$0xf]  ;;  %v6952_v55 = vld [vmem:[%s10409_s1 + $0xe6c] sm:$0xf0]  ;;  %v6029_v59 = vor.u32 %v6920_v53, %v6028_v51  ;;  %v4430_v39 = vld [vmem:[%s10409_s1 + $0xf0] sm:$0xf0] }
  0x7a   :  { %v6284_v56 = vld [vmem:[%s10409_s1 + $0xf60] sm:$0xf]  ;;  %v6984_v57 = vld [vmem:[%s10409_s1 + $0xf6c] sm:$0xf0]  ;;  %v6157_v61 = vor.u32 %v6952_v55, %v6156_v54  ;;  %v6550_v40 = vld [vmem:[%s10409_s1 + $0x1e4] sm:$0xf]  ;;  %v4433_v50 = vor.u32 %v6518_v38, %v4430_v39 }
  0x7b   :  { %3300 = vmatpush.bf16.msrb.mxu0 %v5917_v46  ;;  %3313 = vmatpush.bf16.msrb.mxu1 %v6045_v47  ;;  %v5884_v62 = vld [vmem:[%s10409_s1 + $0xc40] sm:$0xf]  ;;  %v6884_v63 = vld [vmem:[%s10409_s1 + $0xc4c] sm:$0xf0]  ;;  %v6285_v4 = vor.u32 %v6984_v57, %v6284_v56  ;;  %v4558_v42 = vld [vmem:[%s10409_s1 + $0x1f0] sm:$0xf0] }
  0x7c   :  { %3326 = vmatpush.bf16.msrb.mxu2 %v6173_v48  ;;  %v6012_v3 = vld [vmem:[%s10409_s1 + $0xd40] sm:$0xf]  ;;  %3339 = vmatpush.bf16.msrb.mxu3 %v6301_v52  ;;  %v6916_v5 = vld [vmem:[%s10409_s1 + $0xd4c] sm:$0xf0]  ;;  %v5885_v10 = vor.u32 %v6884_v63, %v5884_v62  ;;  %v6582_v43 = vld [vmem:[%s10409_s1 + $0x2e4] sm:$0xf]  ;;  %v4561_v51 = vor.u32 %v6550_v40, %v4558_v42 }
  0x7d   :  { %v6140_v6 = vld [vmem:[%s10409_s1 + $0xe40] sm:$0xf]  ;;  %v6948_v7 = vld [vmem:[%s10409_s1 + $0xe4c] sm:$0xf0]  ;;  %v6013_v11 = vor.u32 %v6916_v5, %v6012_v3  ;;  %v4686_v44 = vld [vmem:[%s10409_s1 + $0x2f0] sm:$0xf0] }
  0x7e   :  { %v6268_v8 = vld [vmem:[%s10409_s1 + $0xf40] sm:$0xf]  ;;  %v6980_v9 = vld [vmem:[%s10409_s1 + $0xf4c] sm:$0xf0]  ;;  %v6141_v12 = vor.u32 %v6948_v7, %v6140_v6  ;;  %v6614_v47 = vld [vmem:[%s10409_s1 + $0x3e4] sm:$0xf]  ;;  %v4689_v52 = vor.u32 %v6582_v43, %v4686_v44 }
  0x7f   :  { %3301 = vmatpush.bf16.msrb.mxu0 %v5901_v58  ;;  %3314 = vmatpush.bf16.msrb.mxu1 %v6029_v59  ;;  %v5868_v13 = vld [vmem:[%s10409_s1 + $0xc20] sm:$0xf]  ;;  %v6880_v14 = vld [vmem:[%s10409_s1 + $0xc2c] sm:$0xf0]  ;;  %v6269_v16 = vor.u32 %v6980_v9, %v6268_v8  ;;  %v4814_v48 = vld [vmem:[%s10409_s1 + $0x3f0] sm:$0xf0] }
  0x80   :  { %3327 = vmatpush.bf16.msrb.mxu2 %v6157_v61  ;;  %v5996_v15 = vld [vmem:[%s10409_s1 + $0xd20] sm:$0xf]  ;;  %3340 = vmatpush.bf16.msrb.mxu3 %v6285_v4  ;;  %v6912_v17 = vld [vmem:[%s10409_s1 + $0xd2c] sm:$0xf0]  ;;  %v5869_v22 = vor.u32 %v6880_v14, %v5868_v13  ;;  %v6514_v53 = vld [vmem:[%s10409_s1 + $0xc4] sm:$0xf]  ;;  %v4817_v56 = vor.u32 %v6614_v47, %v4814_v48 }
  0x81   :  { %v6124_v18 = vld [vmem:[%s10409_s1 + $0xe20] sm:$0xf]  ;;  %v6944_v19 = vld [vmem:[%s10409_s1 + $0xe2c] sm:$0xf0]  ;;  %v5997_v25 = vor.u32 %v6912_v17, %v5996_v15  ;;  %v4414_v54 = vld [vmem:[%s10409_s1 + $0xd0] sm:$0xf0] }
  0x82   :  { %v6252_v20 = vld [vmem:[%s10409_s1 + $0xf20] sm:$0xf]  ;;  %v6976_v21 = vld [vmem:[%s10409_s1 + $0xf2c] sm:$0xf0]  ;;  %v6125_v26 = vor.u32 %v6944_v19, %v6124_v18  ;;  %v6546_v55 = vld [vmem:[%s10409_s1 + $0x1c4] sm:$0xf]  ;;  %v4417_v6 = vor.u32 %v6514_v53, %v4414_v54 }
  0x83   :  { %3302 = vmatpush.bf16.msrb.mxu0 %v5885_v10  ;;  %v5852_v23 = vld [vmem:[%s10409_s1 + $0xc00] sm:$0xf]  ;;  %v6876_v24 = vld [vmem:[%s10409_s1 + $0xc0c] sm:$0xf0]  ;;  %3315 = vmatpush.bf16.msrb.mxu1 %v6013_v11  ;;  %v6253_v33 = vor.u32 %v6976_v21, %v6252_v20  ;;  %v4542_v57 = vld [vmem:[%s10409_s1 + $0x1d0] sm:$0xf0] }
  0x84   :  { %3328 = vmatpush.bf16.msrb.mxu2 %v6141_v12  ;;  %v5980_v30 = vld [vmem:[%s10409_s1 + $0xd00] sm:$0xf]  ;;  %v6908_v31 = vld [vmem:[%s10409_s1 + $0xd0c] sm:$0xf0]  ;;  %3341 = vmatpush.bf16.msrb.mxu3 %v6269_v16  ;;  %v5853_v41 = vor.u32 %v6876_v24, %v5852_v23  ;;  %v6578_v58 = vld [vmem:[%s10409_s1 + $0x2c4] sm:$0xf]  ;;  %v4545_v7 = vor.u32 %v6546_v55, %v4542_v57 }
  0x85   :  { %v6108_v32 = vld [vmem:[%s10409_s1 + $0xe00] sm:$0xf]  ;;  %v6940_v35 = vld [vmem:[%s10409_s1 + $0xe0c] sm:$0xf0]  ;;  %v5981_v45 = vor.u32 %v6908_v31, %v5980_v30  ;;  %v4670_v59 = vld [vmem:[%s10409_s1 + $0x2d0] sm:$0xf0] }
  0x86   :  { %v6236_v36 = vld [vmem:[%s10409_s1 + $0xf00] sm:$0xf]  ;;  %v6972_v37 = vld [vmem:[%s10409_s1 + $0xf0c] sm:$0xf0]  ;;  %v6109_v46 = vor.u32 %v6940_v35, %v6108_v32  ;;  %v561_v61 = vld [vmem:[#allocation1 + $0x24] sm:$0xff]  ;;  %v4673_v8 = vor.u32 %v6578_v58, %v4670_v59  ;;  %s7088_s27 = smov [#allocation2]  }
  0x87   :  { %3303 = vmatpush.bf16.msrb.mxu0 %v5869_v22  ;;  %3316 = vmatpush.bf16.msrb.mxu1 %v5997_v25  ;;  %v6237_v49 = vor.u32 %v6972_v37, %v6236_v36  ;;  %v6610_v62 = vld [vmem:[%s10409_s1 + $0x3c4] sm:$0xf]  ;;  %v4798_v63 = vld [vmem:[%s10409_s1 + $0x3d0] sm:$0xf0]  ;;  %s4303_s0 = sshll.u32 %s7088_s27, 4  ;;  %s4305_s30 = sshll.u32 %s10413_s5, 4  ;;  %s4304_s0 = int_to_ptr.vmem [resolvable:$true] %s4303_s0  ;;  %s4306_s30 = int_to_ptr.hbm [resolvable:$true] %s4305_s30 }
  0x88   :  { %3329 = vmatpush.bf16.msrb.mxu2 %v6125_v26  ;;  %3342 = vmatpush.bf16.msrb.mxu3 %v6253_v33  ;;  %v563_v3 = vld [vmem:[#allocation1 + $0x36] sm:$0xff]  ;;  %v562_v4 = vld [vmem:[#allocation1 + $0x2d] sm:$0xff]  ;;  %v564_v5 = vld [vmem:[#allocation1 + $0x3f] sm:$0xff]  ;;  %v4801_v12 = vor.u32 %v6610_v62, %v4798_v63 }
  0x89   :  { %v6510_v9 = vld [vmem:[%s10409_s1 + $0xa4] sm:$0xf]  ;;  %v4398_v10 = vld [vmem:[%s10409_s1 + $0xb0] sm:$0xf0] }
  0x8a   :  { %v6542_v11 = vld [vmem:[%s10409_s1 + $0x1a4] sm:$0xf]  ;;  %v4526_v13 = vld [vmem:[%s10409_s1 + $0x1b0] sm:$0xf0]  ;;  %v4401_v18 = vor.u32 %v6510_v9, %v4398_v10 }
  0x8b   :  { %3304 = vmatpush.bf16.msrb.mxu0 %v5853_v41  ;;  %3317 = vmatpush.bf16.msrb.mxu1 %v5981_v45  ;;  %v6574_v14 = vld [vmem:[%s10409_s1 + $0x2a4] sm:$0xf]  ;;  %v4654_v15 = vld [vmem:[%s10409_s1 + $0x2b0] sm:$0xf0]  ;;  %v4529_v19 = vor.u32 %v6542_v11, %v4526_v13 }
  0x8c   :  { %3330 = vmatpush.bf16.msrb.mxu2 %v6109_v46  ;;  %3343 = vmatpush.bf16.msrb.mxu3 %v6237_v49  ;;  %v6606_v16 = vld [vmem:[%s10409_s1 + $0x3a4] sm:$0xf]  ;;  %v4782_v17 = vld [vmem:[%s10409_s1 + $0x3b0] sm:$0xf0]  ;;  %v4657_v20 = vor.u32 %v6574_v14, %v4654_v15 }
  0x8d   :  { %v6506_v21 = vld [vmem:[%s10409_s1 + $0x84] sm:$0xf]  ;;  %v4382_v22 = vld [vmem:[%s10409_s1 + $0x90] sm:$0xf0]  ;;  %v4785_v24 = vor.u32 %v6606_v16, %v4782_v17 }
  0x8e   :  { %3305 = vmatmul.bf16.vlgmr.msrb.gmra.mxu0 %v561_v61  ;;  %3318 = vmatmul.bf16.vlgmr.msrb.gmra.mxu1 %v562_v4  ;;  %v6538_v23 = vld [vmem:[%s10409_s1 + $0x184] sm:$0xf]  ;;  %v4510_v25 = vld [vmem:[%s10409_s1 + $0x190] sm:$0xf0]  ;;  %v4385_v33 = vor.u32 %v6506_v21, %v4382_v22 }
  0x8f   :  { %3349 = vmatpush.bf16.msra.mxu0 %v4433_v50  ;;  %3362 = vmatpush.bf16.msra.mxu1 %v4561_v51  ;;  %v6570_v26 = vld [vmem:[%s10409_s1 + $0x284] sm:$0xf]  ;;  %v4638_v30 = vld [vmem:[%s10409_s1 + $0x290] sm:$0xf0]  ;;  %v4513_v35 = vor.u32 %v6538_v23, %v4510_v25 }
  0x90   :  { %3375 = vmatpush.bf16.msra.mxu2 %v4689_v52  ;;  %3388 = vmatpush.bf16.msra.mxu3 %v4817_v56  ;;  %v6602_v31 = vld [vmem:[%s10409_s1 + $0x384] sm:$0xf]  ;;  %v4766_v32 = vld [vmem:[%s10409_s1 + $0x390] sm:$0xf0]  ;;  %v4641_v36 = vor.u32 %v6570_v26, %v4638_v30 }
  0x91   :  { %3331 = vmatmul.bf16.vlgmr.msrb.gmra.mxu2 %v563_v3  ;;  %3344 = vmatmul.bf16.vlgmr.msrb.gmra.mxu3 %v564_v5  ;;  %v6502_v37 = vld [vmem:[%s10409_s1 + $0x64] sm:$0xf]  ;;  %v4366_v38 = vld [vmem:[%s10409_s1 + $0x70] sm:$0xf0]  ;;  %v4769_v40 = vor.u32 %v6602_v31, %v4766_v32 }
  0x92   :  { %v6534_v39 = vld [vmem:[%s10409_s1 + $0x164] sm:$0xf]  ;;  %v4494_v41 = vld [vmem:[%s10409_s1 + $0x170] sm:$0xf0]  ;;  %v4369_v46 = vor.u32 %v6502_v37, %v4366_v38 }
  0x93   :  { %3350 = vmatpush.bf16.msra.mxu0 %v4417_v6  ;;  %3363 = vmatpush.bf16.msra.mxu1 %v4545_v7  ;;  %v6566_v42 = vld [vmem:[%s10409_s1 + $0x264] sm:$0xf]  ;;  %v4622_v43 = vld [vmem:[%s10409_s1 + $0x270] sm:$0xf0]  ;;  %v4497_v47 = vor.u32 %v6534_v39, %v4494_v41 }
  0x94   :  { %3376 = vmatpush.bf16.msra.mxu2 %v4673_v8  ;;  %3389 = vmatpush.bf16.msra.mxu3 %v4801_v12  ;;  %v6598_v44 = vld [vmem:[%s10409_s1 + $0x364] sm:$0xf]  ;;  %v4750_v45 = vld [vmem:[%s10409_s1 + $0x370] sm:$0xf0]  ;;  %v4625_v48 = vor.u32 %v6566_v42, %v4622_v43 }
  0x95   :  { %v6498_v49 = vld [vmem:[%s10409_s1 + $0x44] sm:$0xf]  ;;  %v4350_v50 = vld [vmem:[%s10409_s1 + $0x50] sm:$0xf0]  ;;  %v4753_v52 = vor.u32 %v6598_v44, %v4750_v45 }
  0x96   :  { %v6530_v51 = vld [vmem:[%s10409_s1 + $0x144] sm:$0xf]  ;;  %v4478_v53 = vld [vmem:[%s10409_s1 + $0x150] sm:$0xf0]  ;;  %v4353_v58 = vor.u32 %v6498_v49, %v4350_v50 }
  0x97   :  { %3351 = vmatpush.bf16.msra.mxu0 %v4401_v18  ;;  %3364 = vmatpush.bf16.msra.mxu1 %v4529_v19  ;;  %v6562_v54 = vld [vmem:[%s10409_s1 + $0x244] sm:$0xf]  ;;  %v4606_v55 = vld [vmem:[%s10409_s1 + $0x250] sm:$0xf0]  ;;  %v4481_v59 = vor.u32 %v6530_v51, %v4478_v53 }
  0x98   :  { %3377 = vmatpush.bf16.msra.mxu2 %v4657_v20  ;;  %3390 = vmatpush.bf16.msra.mxu3 %v4785_v24  ;;  %v6594_v56 = vld [vmem:[%s10409_s1 + $0x344] sm:$0xf]  ;;  %v4734_v57 = vld [vmem:[%s10409_s1 + $0x350] sm:$0xf0]  ;;  %v4609_v61 = vor.u32 %v6562_v54, %v4606_v55 }
  0x99   :  { %v6494_v62 = vld [vmem:[%s10409_s1 + $0x24] sm:$0xf]  ;;  %v4334_v63 = vld [vmem:[%s10409_s1 + $0x30] sm:$0xf0]  ;;  %v4737_v4 = vor.u32 %v6594_v56, %v4734_v57 }
  0x9a   :  { %v6526_v3 = vld [vmem:[%s10409_s1 + $0x124] sm:$0xf]  ;;  %v4462_v5 = vld [vmem:[%s10409_s1 + $0x130] sm:$0xf0]  ;;  %v4337_v10 = vor.u32 %v6494_v62, %v4334_v63 }
  0x9b   :  { %3352 = vmatpush.bf16.msra.mxu0 %v4385_v33  ;;  %3365 = vmatpush.bf16.msra.mxu1 %v4513_v35  ;;  %v6558_v6 = vld [vmem:[%s10409_s1 + $0x224] sm:$0xf]  ;;  %v4590_v7 = vld [vmem:[%s10409_s1 + $0x230] sm:$0xf0]  ;;  %v4465_v13 = vor.u32 %v6526_v3, %v4462_v5 }
  0x9c   :  { %3378 = vmatpush.bf16.msra.mxu2 %v4641_v36  ;;  %3391 = vmatpush.bf16.msra.mxu3 %v4769_v40  ;;  %v6590_v8 = vld [vmem:[%s10409_s1 + $0x324] sm:$0xf]  ;;  %v4718_v9 = vld [vmem:[%s10409_s1 + $0x330] sm:$0xf0]  ;;  %v4593_v14 = vor.u32 %v6558_v6, %v4590_v7 }
  0x9d   :  { %v6490_v11 = vld [vmem:[%s10409_s1 + $0x4] sm:$0xf]  ;;  %v4318_v12 = vld [vmem:[%s10409_s1 + $0x10] sm:$0xf0]  ;;  %v4721_v18 = vor.u32 %v6590_v8, %v4718_v9 }
  0x9e   :  { %v6522_v15 = vld [vmem:[%s10409_s1 + $0x104] sm:$0xf]  ;;  %v4446_v16 = vld [vmem:[%s10409_s1 + $0x110] sm:$0xf0]  ;;  %v4321_v25 = vor.u32 %v6490_v11, %v4318_v12 }
  0x9f   :  { %3353 = vmatpush.bf16.msra.mxu0 %v4369_v46  ;;  %3366 = vmatpush.bf16.msra.mxu1 %v4497_v47  ;;  %v6554_v17 = vld [vmem:[%s10409_s1 + $0x204] sm:$0xf]  ;;  %v4574_v19 = vld [vmem:[%s10409_s1 + $0x210] sm:$0xf0]  ;;  %v4449_v32 = vor.u32 %v6522_v15, %v4446_v16 }
  0xa0   :  { %3379 = vmatpush.bf16.msra.mxu2 %v4625_v48  ;;  %3392 = vmatpush.bf16.msra.mxu3 %v4753_v52  ;;  %v6586_v20 = vld [vmem:[%s10409_s1 + $0x304] sm:$0xf]  ;;  %v4702_v21 = vld [vmem:[%s10409_s1 + $0x310] sm:$0xf0]  ;;  %v4577_v33 = vor.u32 %v6554_v17, %v4574_v19 }
  0xa1   :  { %v6646_v22 = vld [vmem:[%s10409_s1 + $0x4e4] sm:$0xf]  ;;  %v4942_v23 = vld [vmem:[%s10409_s1 + $0x4f0] sm:$0xf0]  ;;  %v4705_v37 = vor.u32 %v6586_v20, %v4702_v21 }
  0xa2   :  { %v6678_v24 = vld [vmem:[%s10409_s1 + $0x5e4] sm:$0xf]  ;;  %v5070_v26 = vld [vmem:[%s10409_s1 + $0x5f0] sm:$0xf0]  ;;  %v4945_v38 = vor.u32 %v6646_v22, %v4942_v23 }
  0xa3   :  { %3354 = vmatpush.bf16.msra.mxu0 %v4353_v58  ;;  %3367 = vmatpush.bf16.msra.mxu1 %v4481_v59  ;;  %v6710_v30 = vld [vmem:[%s10409_s1 + $0x6e4] sm:$0xf]  ;;  %v5198_v31 = vld [vmem:[%s10409_s1 + $0x6f0] sm:$0xf0]  ;;  %v5073_v39 = vor.u32 %v6678_v24, %v5070_v26 }
  0xa4   :  { %3380 = vmatpush.bf16.msra.mxu2 %v4609_v61  ;;  %3393 = vmatpush.bf16.msra.mxu3 %v4737_v4  ;;  %v6742_v35 = vld [vmem:[%s10409_s1 + $0x7e4] sm:$0xf]  ;;  %v5326_v36 = vld [vmem:[%s10409_s1 + $0x7f0] sm:$0xf0]  ;;  %v5201_v40 = vor.u32 %v6710_v30, %v5198_v31 }
  0xa5   :  { %v6642_v41 = vld [vmem:[%s10409_s1 + $0x4c4] sm:$0xf]  ;;  %v4926_v42 = vld [vmem:[%s10409_s1 + $0x4d0] sm:$0xf0]  ;;  %v5329_v44 = vor.u32 %v6742_v35, %v5326_v36 }
  0xa6   :  { %v6674_v43 = vld [vmem:[%s10409_s1 + $0x5c4] sm:$0xf]  ;;  %v5054_v45 = vld [vmem:[%s10409_s1 + $0x5d0] sm:$0xf0]  ;;  %v4929_v50 = vor.u32 %v6642_v41, %v4926_v42 }
  0xa7   :  { %3355 = vmatpush.bf16.msra.mxu0 %v4337_v10  ;;  %3368 = vmatpush.bf16.msra.mxu1 %v4465_v13  ;;  %v6706_v46 = vld [vmem:[%s10409_s1 + $0x6c4] sm:$0xf]  ;;  %v5182_v47 = vld [vmem:[%s10409_s1 + $0x6d0] sm:$0xf0]  ;;  %v5057_v51 = vor.u32 %v6674_v43, %v5054_v45 }
  0xa8   :  { %3381 = vmatpush.bf16.msra.mxu2 %v4593_v14  ;;  %3394 = vmatpush.bf16.msra.mxu3 %v4721_v18  ;;  %v6738_v48 = vld [vmem:[%s10409_s1 + $0x7c4] sm:$0xf]  ;;  %v5310_v49 = vld [vmem:[%s10409_s1 + $0x7d0] sm:$0xf0]  ;;  %v5185_v52 = vor.u32 %v6706_v46, %v5182_v47 }
  0xa9   :  { %v6638_v53 = vld [vmem:[%s10409_s1 + $0x4a4] sm:$0xf]  ;;  %v4910_v54 = vld [vmem:[%s10409_s1 + $0x4b0] sm:$0xf0]  ;;  %v5313_v56 = vor.u32 %v6738_v48, %v5310_v49 }
  0xaa   :  { %v6670_v55 = vld [vmem:[%s10409_s1 + $0x5a4] sm:$0xf]  ;;  %v5038_v57 = vld [vmem:[%s10409_s1 + $0x5b0] sm:$0xf0]  ;;  %v4913_v63 = vor.u32 %v6638_v53, %v4910_v54 }
  0xab   :  { %3356 = vmatpush.bf16.msra.mxu0 %v4321_v25  ;;  %3369 = vmatpush.bf16.msra.mxu1 %v4449_v32  ;;  %v6702_v58 = vld [vmem:[%s10409_s1 + $0x6a4] sm:$0xf]  ;;  %v5166_v59 = vld [vmem:[%s10409_s1 + $0x6b0] sm:$0xf0]  ;;  %v5041_v3 = vor.u32 %v6670_v55, %v5038_v57 }
  0xac   :  { %3382 = vmatpush.bf16.msra.mxu2 %v4577_v33  ;;  %3395 = vmatpush.bf16.msra.mxu3 %v4705_v37  ;;  %v6734_v61 = vld [vmem:[%s10409_s1 + $0x7a4] sm:$0xf]  ;;  %v5294_v62 = vld [vmem:[%s10409_s1 + $0x7b0] sm:$0xf0]  ;;  %v5169_v4 = vor.u32 %v6702_v58, %v5166_v59 }
  0xad   :  { %v6634_v5 = vld [vmem:[%s10409_s1 + $0x484] sm:$0xf]  ;;  %v4894_v6 = vld [vmem:[%s10409_s1 + $0x490] sm:$0xf0]  ;;  %v5297_v8 = vor.u32 %v6734_v61, %v5294_v62 }
  0xae   :  { %3357 = vmatmul.bf16.vlgmr.msra.gmra.mxu0 %v7439_v28  ;;  %3370 = vmatmul.bf16.vlgmr.msra.gmra.mxu1 %v7449_v34  ;;  %v6666_v7 = vld [vmem:[%s10409_s1 + $0x584] sm:$0xf]  ;;  %v5022_v9 = vld [vmem:[%s10409_s1 + $0x590] sm:$0xf0]  ;;  %v4897_v14 = vor.u32 %v6634_v5, %v4894_v6 }
  0xaf   :  { %3401 = vmatpush.bf16.msrb.mxu0 %v4945_v38  ;;  %3414 = vmatpush.bf16.msrb.mxu1 %v5073_v39  ;;  %v6698_v10 = vld [vmem:[%s10409_s1 + $0x684] sm:$0xf]  ;;  %v5150_v11 = vld [vmem:[%s10409_s1 + $0x690] sm:$0xf0]  ;;  %v5025_v15 = vor.u32 %v6666_v7, %v5022_v9 }
  0xb0   :  { %3427 = vmatpush.bf16.msrb.mxu2 %v5201_v40  ;;  %3440 = vmatpush.bf16.msrb.mxu3 %v5329_v44  ;;  %v6730_v12 = vld [vmem:[%s10409_s1 + $0x784] sm:$0xf]  ;;  %v5278_v13 = vld [vmem:[%s10409_s1 + $0x790] sm:$0xf0]  ;;  %v5153_v16 = vor.u32 %v6698_v10, %v5150_v11  ;;  %v535_v40 = vld [vmem:[%s10410_s2] sm:$0xf] }
  0xb1   :  { %3383 = vmatmul.bf16.vlgmr.msra.gmra.mxu2 %v7437_v27  ;;  %3396 = vmatmul.bf16.vlgmr.msra.gmra.mxu3 %v7441_v29  ;;  %v6630_v17 = vld [vmem:[%s10409_s1 + $0x464] sm:$0xf]  ;;  %v4878_v18 = vld [vmem:[%s10409_s1 + $0x470] sm:$0xf0]  ;;  %v5281_v20 = vor.u32 %v6730_v12, %v5278_v13  ;;  %v537_v49 = vperm.slane %v535_v40, 0 }
  0xb2   :  { %v6662_v19 = vld [vmem:[%s10409_s1 + $0x564] sm:$0xf]  ;;  %v5006_v21 = vld [vmem:[%s10409_s1 + $0x570] sm:$0xf0]  ;;  %v4881_v26 = vor.u32 %v6630_v17, %v4878_v18 }
  0xb3   :  { %3402 = vmatpush.bf16.msrb.mxu0 %v4929_v50  ;;  %3415 = vmatpush.bf16.msrb.mxu1 %v5057_v51  ;;  %v6694_v22 = vld [vmem:[%s10409_s1 + $0x664] sm:$0xf]  ;;  %v5134_v23 = vld [vmem:[%s10409_s1 + $0x670] sm:$0xf0]  ;;  %v5009_v31 = vor.u32 %v6662_v19, %v5006_v21 }
  0xb4   :  { %3428 = vmatpush.bf16.msrb.mxu2 %v5185_v52  ;;  %3441 = vmatpush.bf16.msrb.mxu3 %v5313_v56  ;;  %v6726_v24 = vld [vmem:[%s10409_s1 + $0x764] sm:$0xf]  ;;  %v5262_v25 = vld [vmem:[%s10409_s1 + $0x770] sm:$0xf0]  ;;  %v5137_v32 = vor.u32 %v6694_v22, %v5134_v23  ;;  %v3163_v6 = vpop.f32.mrf.mxu1 }
  0xb5   :  { %v6626_v30 = vld [vmem:[%s10409_s1 + $0x444] sm:$0xf]  ;;  %v4862_v33 = vld [vmem:[%s10409_s1 + $0x450] sm:$0xf0]  ;;  %v5265_v37 = vor.u32 %v6726_v24, %v5262_v25  ;;  %v3150_v59 = vpop.f32.mrf.mxu0 }
  0xb6   :  { %v6658_v35 = vld [vmem:[%s10409_s1 + $0x544] sm:$0xf]  ;;  %v4990_v36 = vld [vmem:[%s10409_s1 + $0x550] sm:$0xf0]  ;;  %v4865_v43 = vor.u32 %v6626_v30, %v4862_v33  ;;  %v3151_v5 = vadd.f32 %v3150_v59, %v537_v49 }
  0xb7   :  { %3403 = vmatpush.bf16.msrb.mxu0 %v4913_v63  ;;  %3416 = vmatpush.bf16.msrb.mxu1 %v5041_v3  ;;  %v6690_v38 = vld [vmem:[%s10409_s1 + $0x644] sm:$0xf]  ;;  %v5118_v39 = vld [vmem:[%s10409_s1 + $0x650] sm:$0xf0]  ;;  %v4993_v45 = vor.u32 %v6658_v35, %v4990_v36 }
  0xb8   :  { %3429 = vmatpush.bf16.msrb.mxu2 %v5169_v4  ;;  %3442 = vmatpush.bf16.msrb.mxu3 %v5297_v8  ;;  %v6722_v41 = vld [vmem:[%s10409_s1 + $0x744] sm:$0xf]  ;;  %v5246_v42 = vld [vmem:[%s10409_s1 + $0x750] sm:$0xf0]  ;;  %v5121_v46 = vor.u32 %v6690_v38, %v5118_v39 }
  0xb9   :  { %v6622_v44 = vld [vmem:[%s10409_s1 + $0x424] sm:$0xf]  ;;  %v4846_v47 = vld [vmem:[%s10409_s1 + $0x430] sm:$0xf0]  ;;  %v5249_v50 = vor.u32 %v6722_v41, %v5246_v42 }
  0xba   :  { %v6654_v48 = vld [vmem:[%s10409_s1 + $0x524] sm:$0xf]  ;;  %v4974_v51 = vld [vmem:[%s10409_s1 + $0x530] sm:$0xf0]  ;;  %v4849_v56 = vor.u32 %v6622_v44, %v4846_v47  ;;  %v3176_v23 = vpop.f32.mrf.mxu2 }
  0xbb   :  { %3404 = vmatpush.bf16.msrb.mxu0 %v4897_v14  ;;  %3417 = vmatpush.bf16.msrb.mxu1 %v5025_v15  ;;  %v6686_v52 = vld [vmem:[%s10409_s1 + $0x624] sm:$0xf]  ;;  %v5102_v53 = vld [vmem:[%s10409_s1 + $0x630] sm:$0xf0]  ;;  %v4977_v61 = vor.u32 %v6654_v48, %v4974_v51  ;;  %v3164_v14 = vadd.f32 %v3163_v6, %v3151_v5 }
  0xbc   :  { %3430 = vmatpush.bf16.msrb.mxu2 %v5153_v16  ;;  %3443 = vmatpush.bf16.msrb.mxu3 %v5281_v20  ;;  %v6718_v54 = vld [vmem:[%s10409_s1 + $0x724] sm:$0xf]  ;;  %v5230_v55 = vld [vmem:[%s10409_s1 + $0x730] sm:$0xf0]  ;;  %v5105_v62 = vor.u32 %v6686_v52, %v5102_v53  ;;  %v3189_v30 = vpop.f32.mrf.mxu3 }
  0xbd   :  { %v6618_v57 = vld [vmem:[%s10409_s1 + $0x404] sm:$0xf]  ;;  %v4830_v58 = vld [vmem:[%s10409_s1 + $0x410] sm:$0xf0]  ;;  %v5233_v7 = vor.u32 %v6718_v54, %v5230_v55  ;;  %v3152_v42 = vpop.f32.mrf.mxu0 }
  0xbe   :  { %v6650_v63 = vld [vmem:[%s10409_s1 + $0x504] sm:$0xf]  ;;  %v4958_v3 = vld [vmem:[%s10409_s1 + $0x510] sm:$0xf0]  ;;  %v4833_v15 = vor.u32 %v6618_v57, %v4830_v58 }
  0xbf   :  { %3405 = vmatpush.bf16.msrb.mxu0 %v4881_v26  ;;  %3418 = vmatpush.bf16.msrb.mxu1 %v5009_v31  ;;  %v6682_v4 = vld [vmem:[%s10409_s1 + $0x604] sm:$0xf]  ;;  %v5086_v8 = vld [vmem:[%s10409_s1 + $0x610] sm:$0xf0]  ;;  %v4961_v19 = vor.u32 %v6650_v63, %v4958_v3  ;;  %v3177_v26 = vadd.f32 %v3176_v23, %v3164_v14 }
  0xc0   :  { %3431 = vmatpush.bf16.msrb.mxu2 %v5137_v32  ;;  %3444 = vmatpush.bf16.msrb.mxu3 %v5265_v37  ;;  %v6714_v9 = vld [vmem:[%s10409_s1 + $0x704] sm:$0xf]  ;;  %v5214_v10 = vld [vmem:[%s10409_s1 + $0x710] sm:$0xf0]  ;;  %v5089_v20 = vor.u32 %v6682_v4, %v5086_v8 }
  0xc1   :  { %v6774_v11 = vld [vmem:[%s10409_s1 + $0x8e4] sm:$0xf]  ;;  %v5454_v12 = vld [vmem:[%s10409_s1 + $0x8f0] sm:$0xf0]  ;;  %v5217_v24 = vor.u32 %v6714_v9, %v5214_v10  ;;  %v3190_v41 = vadd.f32 %v3189_v30, %v3177_v26 }
  0xc2   :  { %v6806_v13 = vld [vmem:[%s10409_s1 + $0x9e4] sm:$0xf]  ;;  %v5582_v16 = vld [vmem:[%s10409_s1 + $0x9f0] sm:$0xf0]  ;;  %v5457_v25 = vor.u32 %v6774_v11, %v5454_v12  ;;  %v3178_v58 = vpop.f32.mrf.mxu2 }
  0xc3   :  { %3406 = vmatpush.bf16.msrb.mxu0 %v4865_v43  ;;  %3419 = vmatpush.bf16.msrb.mxu1 %v4993_v45  ;;  %v6838_v17 = vld [vmem:[%s10409_s1 + $0xae4] sm:$0xf]  ;;  %v5710_v18 = vld [vmem:[%s10409_s1 + $0xaf0] sm:$0xf0]  ;;  %v5585_v31 = vor.u32 %v6806_v13, %v5582_v16  ;;  %v3165_v45 = vpop.f32.mrf.mxu1 }
  0xc4   :  { %3432 = vmatpush.bf16.msrb.mxu2 %v5121_v46  ;;  %3445 = vmatpush.bf16.msrb.mxu3 %v5249_v50  ;;  %v6870_v21 = vld [vmem:[%s10409_s1 + $0xbe4] sm:$0xf]  ;;  %v5838_v22 = vld [vmem:[%s10409_s1 + $0xbf0] sm:$0xf0]  ;;  %v5713_v32 = vor.u32 %v6838_v17, %v5710_v18 }
  0xc5   :  { %v6770_v33 = vld [vmem:[%s10409_s1 + $0x8c4] sm:$0xf]  ;;  %v5438_v35 = vld [vmem:[%s10409_s1 + $0x8d0] sm:$0xf0]  ;;  %v5841_v37 = vor.u32 %v6870_v21, %v5838_v22 }
  0xc6   :  { %v6802_v36 = vld [vmem:[%s10409_s1 + $0x9c4] sm:$0xf]  ;;  %v5566_v38 = vld [vmem:[%s10409_s1 + $0x9d0] sm:$0xf0]  ;;  %v5441_v46 = vor.u32 %v6770_v33, %v5438_v35  ;;  %v3202_v13 = vpop.f32.mrf.mxu0 }
  0xc7   :  { %3407 = vmatpush.bf16.msrb.mxu0 %v4849_v56  ;;  %3420 = vmatpush.bf16.msrb.mxu1 %v4977_v61  ;;  %v6834_v39 = vld [vmem:[%s10409_s1 + $0xac4] sm:$0xf]  ;;  %v5694_v40 = vld [vmem:[%s10409_s1 + $0xad0] sm:$0xf0]  ;;  %v5569_v47 = vor.u32 %v6802_v36, %v5566_v38  ;;  %v3191_v61 = vpop.f32.mrf.mxu3 }
  0xc8   :  { %3433 = vmatpush.bf16.msrb.mxu2 %v5105_v62  ;;  %3446 = vmatpush.bf16.msrb.mxu3 %v5233_v7  ;;  %v6866_v43 = vld [vmem:[%s10409_s1 + $0xbc4] sm:$0xf]  ;;  %v5822_v44 = vld [vmem:[%s10409_s1 + $0xbd0] sm:$0xf0]  ;;  %v5697_v48 = vor.u32 %v6834_v39, %v5694_v40 }
  0xc9   :  { %v6766_v49 = vld [vmem:[%s10409_s1 + $0x8a4] sm:$0xf]  ;;  %v5422_v50 = vld [vmem:[%s10409_s1 + $0x8b0] sm:$0xf0]  ;;  %v5825_v52 = vor.u32 %v6866_v43, %v5822_v44 }
  0xca   :  { %v6798_v51 = vld [vmem:[%s10409_s1 + $0x9a4] sm:$0xf]  ;;  %v5550_v53 = vld [vmem:[%s10409_s1 + $0x9b0] sm:$0xf0]  ;;  %v5425_v59 = vor.u32 %v6766_v49, %v5422_v50 }
  0xcb   :  { %3408 = vmatpush.bf16.msrb.mxu0 %v4833_v15  ;;  %3421 = vmatpush.bf16.msrb.mxu1 %v4961_v19  ;;  %v6830_v54 = vld [vmem:[%s10409_s1 + $0xaa4] sm:$0xf]  ;;  %v5678_v55 = vld [vmem:[%s10409_s1 + $0xab0] sm:$0xf0]  ;;  %v5553_v62 = vor.u32 %v6798_v51, %v5550_v53  ;;  %v3203_v19 = vadd.f32 %v3202_v13, %v3190_v41  ;;  %v3228_v38 = vpop.f32.mrf.mxu2 }
  0xcc   :  { %3434 = vmatpush.bf16.msrb.mxu2 %v5089_v20  ;;  %3447 = vmatpush.bf16.msrb.mxu3 %v5217_v24  ;;  %v6862_v56 = vld [vmem:[%s10409_s1 + $0xba4] sm:$0xf]  ;;  %v5806_v57 = vld [vmem:[%s10409_s1 + $0xbb0] sm:$0xf0]  ;;  %v5681_v63 = vor.u32 %v6830_v54, %v5678_v55  ;;  %v3215_v20 = vpop.f32.mrf.mxu1 }
  0xcd   :  { %v6762_v3 = vld [vmem:[%s10409_s1 + $0x884] sm:$0xf]  ;;  %v5406_v4 = vld [vmem:[%s10409_s1 + $0x890] sm:$0xf0]  ;;  %v5809_v6 = vor.u32 %v6862_v56, %v5806_v57  ;;  %v3216_v30 = vadd.f32 %v3215_v20, %v3203_v19 }
  0xce   :  { %3409 = vmatmul.bf16.vlgmr.msrb.gmra.mxu0 %v7517_v0  ;;  %3422 = vmatmul.bf16.vlgmr.msrb.gmra.mxu1 %v7521_v2  ;;  %v6794_v5 = vld [vmem:[%s10409_s1 + $0x984] sm:$0xf]  ;;  %v5534_v7 = vld [vmem:[%s10409_s1 + $0x990] sm:$0xf0]  ;;  %v5409_v12 = vor.u32 %v6762_v3, %v5406_v4  ;;  %v3204_v49 = vpop.f32.mrf.mxu0 }
  0xcf   :  { %3453 = vmatpush.bf16.msra.mxu0 %v5457_v25  ;;  %3466 = vmatpush.bf16.msra.mxu1 %v5585_v31  ;;  %v6826_v8 = vld [vmem:[%s10409_s1 + $0xa84] sm:$0xf]  ;;  %v5662_v9 = vld [vmem:[%s10409_s1 + $0xa90] sm:$0xf0]  ;;  %v5537_v14 = vor.u32 %v6794_v5, %v5534_v7  ;;  %v3229_v43 = vadd.f32 %v3228_v38, %v3216_v30  ;;  %v3241_v44 = vpop.f32.mrf.mxu3 }
  0xd0   :  { %3479 = vmatpush.bf16.msra.mxu2 %v5713_v32  ;;  %3492 = vmatpush.bf16.msra.mxu3 %v5841_v37  ;;  %v6858_v10 = vld [vmem:[%s10409_s1 + $0xb84] sm:$0xf]  ;;  %v5790_v11 = vld [vmem:[%s10409_s1 + $0xb90] sm:$0xf0]  ;;  %v5665_v15 = vor.u32 %v6826_v8, %v5662_v9 }
  0xd1   :  { %3435 = vmatmul.bf16.vlgmr.msrb.gmra.mxu2 %v7512_v60  ;;  %3448 = vmatmul.bf16.vlgmr.msrb.gmra.mxu3 %v7519_v1  ;;  %v6758_v16 = vld [vmem:[%s10409_s1 + $0x864] sm:$0xf]  ;;  %v5390_v17 = vld [vmem:[%s10409_s1 + $0x870] sm:$0xf0]  ;;  %v5793_v21 = vor.u32 %v6858_v10, %v5790_v11 }
  0xd2   :  { %v6790_v18 = vld [vmem:[%s10409_s1 + $0x964] sm:$0xf]  ;;  %v5518_v22 = vld [vmem:[%s10409_s1 + $0x970] sm:$0xf0]  ;;  %v5393_v31 = vor.u32 %v6758_v16, %v5390_v17 }
  0xd3   :  { %3454 = vmatpush.bf16.msra.mxu0 %v5441_v46  ;;  %3467 = vmatpush.bf16.msra.mxu1 %v5569_v47  ;;  %v6822_v23 = vld [vmem:[%s10409_s1 + $0xa64] sm:$0xf]  ;;  %v5646_v24 = vld [vmem:[%s10409_s1 + $0xa70] sm:$0xf0]  ;;  %v5521_v32 = vor.u32 %v6790_v18, %v5518_v22  ;;  %v3230_v10 = vpop.f32.mrf.mxu2 }
  0xd4   :  { %3480 = vmatpush.bf16.msra.mxu2 %v5697_v48  ;;  %3493 = vmatpush.bf16.msra.mxu3 %v5825_v52  ;;  %v6854_v25 = vld [vmem:[%s10409_s1 + $0xb64] sm:$0xf]  ;;  %v5774_v26 = vld [vmem:[%s10409_s1 + $0xb70] sm:$0xf0]  ;;  %v5649_v33 = vor.u32 %v6822_v23, %v5646_v24  ;;  %v8456_v48 = vadd.f32 %v3241_v44, %v3229_v43  ;;  %v3217_v55 = vpop.f32.mrf.mxu1 }
  0xd5   :  { %v6754_v35 = vld [vmem:[%s10409_s1 + $0x844] sm:$0xf]  ;;  %v5374_v36 = vld [vmem:[%s10409_s1 + $0x850] sm:$0xf0]  ;;  %v5777_v39 = vor.u32 %v6854_v25, %v5774_v26 }
  0xd6   :  { %v6786_v37 = vld [vmem:[%s10409_s1 + $0x944] sm:$0xf]  ;;  %v5502_v40 = vld [vmem:[%s10409_s1 + $0x950] sm:$0xf0]  ;;  %v5377_v47 = vor.u32 %v6754_v35, %v5374_v36 }
  0xd7   :  { %3455 = vmatpush.bf16.msra.mxu0 %v5425_v59  ;;  %3468 = vmatpush.bf16.msra.mxu1 %v5553_v62  ;;  %v6818_v41 = vld [vmem:[%s10409_s1 + $0xa44] sm:$0xf]  ;;  %v5630_v42 = vld [vmem:[%s10409_s1 + $0xa50] sm:$0xf0]  ;;  %v5505_v50 = vor.u32 %v6786_v37, %v5502_v40 }
  0xd8   :  { %3481 = vmatpush.bf16.msra.mxu2 %v5681_v63  ;;  %3494 = vmatpush.bf16.msra.mxu3 %v5809_v6  ;;  %v6850_v45 = vld [vmem:[%s10409_s1 + $0xb44] sm:$0xf]  ;;  %v5758_v46 = vld [vmem:[%s10409_s1 + $0xb50] sm:$0xf0]  ;;  %v5633_v51 = vor.u32 %v6818_v41, %v5630_v42 }
  0xd9   :  { %v6750_v52 = vld [vmem:[%s10409_s1 + $0x824] sm:$0xf]  ;;  %v5358_v53 = vld [vmem:[%s10409_s1 + $0x830] sm:$0xf0]  ;;  %v5761_v56 = vor.u32 %v6850_v45, %v5758_v46 }
  0xda   :  { %v6782_v54 = vld [vmem:[%s10409_s1 + $0x924] sm:$0xf]  ;;  %v5486_v57 = vld [vmem:[%s10409_s1 + $0x930] sm:$0xf0]  ;;  %v5361_v63 = vor.u32 %v6750_v52, %v5358_v53 }
  0xdb   :  { %3456 = vmatpush.bf16.msra.mxu0 %v5409_v12  ;;  %3469 = vmatpush.bf16.msra.mxu1 %v5537_v14  ;;  %v6814_v58 = vld [vmem:[%s10409_s1 + $0xa24] sm:$0xf]  ;;  %v5614_v59 = vld [vmem:[%s10409_s1 + $0xa30] sm:$0xf0]  ;;  %v5489_v5 = vor.u32 %v6782_v54, %v5486_v57  ;;  %v7038_v57 = vld [vmem:[#allocation1 + $0x9] sm:$0xff] }
  0xdc   :  { %3482 = vmatpush.bf16.msra.mxu2 %v5665_v15  ;;  %3495 = vmatpush.bf16.msra.mxu3 %v5793_v21  ;;  %v6846_v61 = vld [vmem:[%s10409_s1 + $0xb24] sm:$0xf]  ;;  %v5742_v62 = vld [vmem:[%s10409_s1 + $0xb30] sm:$0xf0]  ;;  %v5617_v6 = vor.u32 %v6814_v58, %v5614_v59  ;;  %v3243_v15 = vpop.f32.mrf.mxu3 }
  0xdd   :  { %v6746_v3 = vld [vmem:[%s10409_s1 + $0x804] sm:$0xf]  ;;  %v5342_v4 = vld [vmem:[%s10409_s1 + $0x810] sm:$0xf0]  ;;  %v5745_v11 = vor.u32 %v6846_v61, %v5742_v62  ;;  %v7039_v61 = vld [vmem:[#allocation1 + $0x1b] sm:$0xff] }
  0xde   :  { %v6778_v7 = vld [vmem:[%s10409_s1 + $0x904] sm:$0xf]  ;;  %v5470_v8 = vld [vmem:[%s10409_s1 + $0x910] sm:$0xf0]  ;;  %v5345_v19 = vor.u32 %v6746_v3, %v5342_v4 }
  0xdf   :  { %3457 = vmatpush.bf16.msra.mxu0 %v5393_v31  ;;  %3470 = vmatpush.bf16.msra.mxu1 %v5521_v32  ;;  %v6810_v9 = vld [vmem:[%s10409_s1 + $0xa04] sm:$0xf]  ;;  %v5598_v12 = vld [vmem:[%s10409_s1 + $0xa10] sm:$0xf0]  ;;  %v5473_v23 = vor.u32 %v6778_v7, %v5470_v8 }
  0xe0   :  { %3483 = vmatpush.bf16.msra.mxu2 %v5649_v33  ;;  %3496 = vmatpush.bf16.msra.mxu3 %v5777_v39  ;;  %v6842_v13 = vld [vmem:[%s10409_s1 + $0xb04] sm:$0xf]  ;;  %v5726_v14 = vld [vmem:[%s10409_s1 + $0xb10] sm:$0xf0]  ;;  %v5601_v24 = vor.u32 %v6810_v9, %v5598_v12 }
  0xe1   :  { %v6902_v16 = vld [vmem:[%s10409_s1 + $0xce4] sm:$0xf]  ;;  %v5966_v17 = vld [vmem:[%s10409_s1 + $0xcf0] sm:$0xf0]  ;;  %v5729_v30 = vor.u32 %v6842_v13, %v5726_v14 }
  0xe2   :  { %v6934_v18 = vld [vmem:[%s10409_s1 + $0xde4] sm:$0xf]  ;;  %v6094_v20 = vld [vmem:[%s10409_s1 + $0xdf0] sm:$0xf0]  ;;  %v5969_v31 = vor.u32 %v6902_v16, %v5966_v17 }
  0xe3   :  { %3458 = vmatpush.bf16.msra.mxu0 %v5377_v47  ;;  %3471 = vmatpush.bf16.msra.mxu1 %v5505_v50  ;;  %v6966_v21 = vld [vmem:[%s10409_s1 + $0xee4] sm:$0xf]  ;;  %v6222_v22 = vld [vmem:[%s10409_s1 + $0xef0] sm:$0xf0]  ;;  %v6097_v32 = vor.u32 %v6934_v18, %v6094_v20 }
  0xe4   :  { %3484 = vmatpush.bf16.msra.mxu2 %v5633_v51  ;;  %3497 = vmatpush.bf16.msra.mxu3 %v5761_v56  ;;  %v6998_v25 = vld [vmem:[%s10409_s1 + $0xfe4] sm:$0xf]  ;;  %v6350_v26 = vld [vmem:[%s10409_s1 + $0xff0] sm:$0xf0]  ;;  %v6225_v33 = vor.u32 %v6966_v21, %v6222_v22 }
  0xe5   :  { %v6898_v35 = vld [vmem:[%s10409_s1 + $0xcc4] sm:$0xf]  ;;  %v5950_v36 = vld [vmem:[%s10409_s1 + $0xcd0] sm:$0xf0]  ;;  %v6353_v38 = vor.u32 %v6998_v25, %v6350_v26 }
  0xe6   :  { %v6930_v37 = vld [vmem:[%s10409_s1 + $0xdc4] sm:$0xf]  ;;  %v6078_v39 = vld [vmem:[%s10409_s1 + $0xdd0] sm:$0xf0]  ;;  %v5953_v44 = vor.u32 %v6898_v35, %v5950_v36 }
  0xe7   :  { %3459 = vmatpush.bf16.msra.mxu0 %v5361_v63  ;;  %3472 = vmatpush.bf16.msra.mxu1 %v5489_v5  ;;  %v6962_v40 = vld [vmem:[%s10409_s1 + $0xec4] sm:$0xf]  ;;  %v6206_v41 = vld [vmem:[%s10409_s1 + $0xed0] sm:$0xf0]  ;;  %v6081_v45 = vor.u32 %v6930_v37, %v6078_v39 }
  0xe8   :  { %3485 = vmatpush.bf16.msra.mxu2 %v5617_v6  ;;  %3498 = vmatpush.bf16.msra.mxu3 %v5745_v11  ;;  %v6994_v42 = vld [vmem:[%s10409_s1 + $0xfc4] sm:$0xf]  ;;  %v6334_v43 = vld [vmem:[%s10409_s1 + $0xfd0] sm:$0xf0]  ;;  %v6209_v46 = vor.u32 %v6962_v40, %v6206_v41 }
  0xe9   :  { %v6894_v47 = vld [vmem:[%s10409_s1 + $0xca4] sm:$0xf]  ;;  %v5934_v49 = vld [vmem:[%s10409_s1 + $0xcb0] sm:$0xf0]  ;;  %v6337_v52 = vor.u32 %v6994_v42, %v6334_v43  ;;  %v3267_v16 = vpop.f32.mrf.mxu1 }
  0xea   :  { %v6926_v50 = vld [vmem:[%s10409_s1 + $0xda4] sm:$0xf]  ;;  %v6062_v53 = vld [vmem:[%s10409_s1 + $0xdb0] sm:$0xf0]  ;;  %v5937_v62 = vor.u32 %v6894_v47, %v5934_v49  ;;  %v3254_v11 = vpop.f32.mrf.mxu0 }
  0xeb   :  { %3460 = vmatpush.bf16.msra.mxu0 %v5345_v19  ;;  %3473 = vmatpush.bf16.msra.mxu1 %v5473_v23  ;;  %v7036_v51 = vld [vmem:[#allocation1] sm:$0xff]  ;;  %v6190_v55 = vld [vmem:[%s10409_s1 + $0xeb0] sm:$0xf0]  ;;  %v6065_v63 = vor.u32 %v6926_v50, %v6062_v53  ;;  %v3255_v14 = vadd.f32 %v3254_v11, %v8456_v48 }
  0xec   :  { %3486 = vmatpush.bf16.msra.mxu2 %v5601_v24  ;;  %3499 = vmatpush.bf16.msra.mxu3 %v5729_v30  ;;  %v6958_v54 = vld [vmem:[%s10409_s1 + $0xea4] sm:$0xf]  ;;  %v7037_v56 = vld [vmem:[#allocation1 + $0x12] sm:$0xff] }
  0xed   :  { %v6990_v58 = vld [vmem:[%s10409_s1 + $0xfa4] sm:$0xf]  ;;  %v6318_v59 = vld [vmem:[%s10409_s1 + $0xfb0] sm:$0xf0]  ;;  %v6193_v3 = vor.u32 %v6958_v54, %v6190_v55  ;;  %v3268_v22 = vadd.f32 %v3267_v16, %v3255_v14  ;;  %v4436_v16 = vld [vmem:[%s10409_s1 + $0xe8] sm:$0xf] }
  0xee   :  { %3461 = vmatmul.bf16.vlgmr.msra.gmra.mxu0 %v7036_v51  ;;  %3474 = vmatmul.bf16.vlgmr.msra.gmra.mxu1 %v7038_v57  ;;  %v6890_v4 = vld [vmem:[%s10409_s1 + $0xc84] sm:$0xf]  ;;  %v5918_v5 = vld [vmem:[%s10409_s1 + $0xc90] sm:$0xf0]  ;;  %v6321_v7 = vor.u32 %v6990_v58, %v6318_v59 }
  0xef   :  { %3505 = vmatpush.bf16.msrb.mxu0 %v5969_v31  ;;  %3518 = vmatpush.bf16.msrb.mxu1 %v6097_v32  ;;  %v6922_v6 = vld [vmem:[%s10409_s1 + $0xd84] sm:$0xf]  ;;  %v6046_v8 = vld [vmem:[%s10409_s1 + $0xd90] sm:$0xf0]  ;;  %v5921_v15 = vor.u32 %v6890_v4, %v5918_v5  ;;  %v3280_v39 = vpop.f32.mrf.mxu2 }
  0xf0   :  { %3531 = vmatpush.bf16.msrb.mxu2 %v6225_v33  ;;  %3544 = vmatpush.bf16.msrb.mxu3 %v6353_v38  ;;  %v6954_v9 = vld [vmem:[%s10409_s1 + $0xe84] sm:$0xf]  ;;  %v6174_v10 = vld [vmem:[%s10409_s1 + $0xe90] sm:$0xf0]  ;;  %v6049_v17 = vor.u32 %v6922_v6, %v6046_v8  ;;  %v3281_v43 = vadd.f32 %v3280_v39, %v3268_v22  ;;  %v6585_v22 = vld [vmem:[%s10409_s1 + $0x2f4] sm:$0xf0] }
  0xf1   :  { %3487 = vmatmul.bf16.vlgmr.msra.gmra.mxu2 %v7037_v56  ;;  %3500 = vmatmul.bf16.vlgmr.msra.gmra.mxu3 %v7039_v61  ;;  %v6986_v12 = vld [vmem:[%s10409_s1 + $0xf84] sm:$0xf]  ;;  %v6302_v13 = vld [vmem:[%s10409_s1 + $0xf90] sm:$0xf0]  ;;  %v6177_v18 = vor.u32 %v6954_v9, %v6174_v10  ;;  %v3269_v50 = vpop.f32.mrf.mxu1  ;;  %v6549_v39 = vld [vmem:[%s10409_s1 + $0x1d4] sm:$0xf0] }
  0xf2   :  { %v6886_v19 = vld [vmem:[%s10409_s1 + $0xc64] sm:$0xf]  ;;  %v5902_v20 = vld [vmem:[%s10409_s1 + $0xc70] sm:$0xf0]  ;;  %v6305_v48 = vor.u32 %v6986_v12, %v6302_v13  ;;  %v3256_v47 = vpop.f32.mrf.mxu0  ;;  %v4532_v50 = vld [vmem:[%s10409_s1 + $0x1a8] sm:$0xf] }
  0xf3   :  { %3506 = vmatpush.bf16.msrb.mxu0 %v5953_v44  ;;  %3519 = vmatpush.bf16.msrb.mxu1 %v6081_v45  ;;  %v6918_v21 = vld [vmem:[%s10409_s1 + $0xd64] sm:$0xf]  ;;  %v6030_v23 = vld [vmem:[%s10409_s1 + $0xd70] sm:$0xf0]  ;;  %v5905_v31 = vor.u32 %v6886_v19, %v5902_v20  ;;  %v3293_v44 = vpop.f32.mrf.mxu3  ;;  %v4404_v47 = vld [vmem:[%s10409_s1 + $0xa8] sm:$0xf] }
  0xf4   :  { %3532 = vmatpush.bf16.msrb.mxu2 %v6209_v46  ;;  %3545 = vmatpush.bf16.msrb.mxu3 %v6337_v52  ;;  %v6950_v24 = vld [vmem:[%s10409_s1 + $0xe64] sm:$0xf]  ;;  %v6158_v25 = vld [vmem:[%s10409_s1 + $0xe70] sm:$0xf0]  ;;  %v6033_v32 = vor.u32 %v6918_v21, %v6030_v23  ;;  %v8651_v51 = vadd.f32 %v3293_v44, %v3281_v43  ;;  %v6553_v21 = vld [vmem:[%s10409_s1 + $0x1f4] sm:$0xf0] }
  0xf5   :  { %v6982_v26 = vld [vmem:[%s10409_s1 + $0xf64] sm:$0xf]  ;;  %v6286_v30 = vld [vmem:[%s10409_s1 + $0xf70] sm:$0xf0]  ;;  %v6161_v33 = vor.u32 %v6950_v24, %v6158_v25  ;;  %v4820_v25 = vld [vmem:[%s10409_s1 + $0x3e8] sm:$0xf] }
  0xf6   :  { %v6882_v35 = vld [vmem:[%s10409_s1 + $0xc44] sm:$0xf]  ;;  %v5886_v36 = vld [vmem:[%s10409_s1 + $0xc50] sm:$0xf0]  ;;  %v6289_v38 = vor.u32 %v6982_v26, %v6286_v30  ;;  %v6617_v26 = vld [vmem:[%s10409_s1 + $0x3f4] sm:$0xf0] }
  0xf7   :  { %3507 = vmatpush.bf16.msrb.mxu0 %v5937_v62  ;;  %3520 = vmatpush.bf16.msrb.mxu1 %v6065_v63  ;;  %v6914_v37 = vld [vmem:[%s10409_s1 + $0xd44] sm:$0xf]  ;;  %v6014_v40 = vld [vmem:[%s10409_s1 + $0xd50] sm:$0xf0]  ;;  %v5889_v49 = vor.u32 %v6882_v35, %v5886_v36  ;;  %v4420_v35 = vld [vmem:[%s10409_s1 + $0xc8] sm:$0xf] }
  0xf8   :  { %3533 = vmatpush.bf16.msrb.mxu2 %v6193_v3  ;;  %3546 = vmatpush.bf16.msrb.mxu3 %v6321_v7  ;;  %v6946_v41 = vld [vmem:[%s10409_s1 + $0xe44] sm:$0xf]  ;;  %v6142_v42 = vld [vmem:[%s10409_s1 + $0xe50] sm:$0xf0]  ;;  %v6017_v52 = vor.u32 %v6914_v37, %v6014_v40  ;;  %v6517_v36 = vld [vmem:[%s10409_s1 + $0xd4] sm:$0xf0] }
  0xf9   :  { %v6978_v45 = vld [vmem:[%s10409_s1 + $0xf44] sm:$0xf]  ;;  %v6270_v46 = vld [vmem:[%s10409_s1 + $0xf50] sm:$0xf0]  ;;  %v6145_v53 = vor.u32 %v6946_v41, %v6142_v42  ;;  %v4548_v37 = vld [vmem:[%s10409_s1 + $0x1c8] sm:$0xf]  ;;  %v4421_v44 = vor.u32 %v6517_v36, %v4420_v35 }
  0xfa   :  { %v6878_v54 = vld [vmem:[%s10409_s1 + $0xc24] sm:$0xf]  ;;  %v5870_v55 = vld [vmem:[%s10409_s1 + $0xc30] sm:$0xf0]  ;;  %v6273_v57 = vor.u32 %v6978_v45, %v6270_v46  ;;  %v4676_v40 = vld [vmem:[%s10409_s1 + $0x2c8] sm:$0xf]  ;;  %v4549_v45 = vor.u32 %v6549_v39, %v4548_v37 }
  0xfb   :  { %3508 = vmatpush.bf16.msrb.mxu0 %v5921_v15  ;;  %3521 = vmatpush.bf16.msrb.mxu1 %v6049_v17  ;;  %v6910_v56 = vld [vmem:[%s10409_s1 + $0xd24] sm:$0xf]  ;;  %v5998_v58 = vld [vmem:[%s10409_s1 + $0xd30] sm:$0xf0]  ;;  %v5873_v3 = vor.u32 %v6878_v54, %v5870_v55  ;;  %v3282_v15 = vpop.f32.mrf.mxu2  ;;  %v6521_v17 = vld [vmem:[%s10409_s1 + $0xf4] sm:$0xf0]  ;;  %v3295_v19 = vpop.f32.mrf.mxu3 }
  0xfc   :  { %3534 = vmatpush.bf16.msrb.mxu2 %v6177_v18  ;;  %3547 = vmatpush.bf16.msrb.mxu3 %v6305_v48  ;;  %v6942_v59 = vld [vmem:[%s10409_s1 + $0xe24] sm:$0xf]  ;;  %v6126_v61 = vld [vmem:[%s10409_s1 + $0xe30] sm:$0xf0]  ;;  %v6001_v6 = vor.u32 %v6910_v56, %v5998_v58  ;;  %v4564_v18 = vld [vmem:[%s10409_s1 + $0x1e8] sm:$0xf] }
  0xfd   :  { %v6974_v62 = vld [vmem:[%s10409_s1 + $0xf24] sm:$0xf]  ;;  %v6254_v63 = vld [vmem:[%s10409_s1 + $0xf30] sm:$0xf0]  ;;  %v6129_v7 = vor.u32 %v6942_v59, %v6126_v61  ;;  %v4692_v48 = vld [vmem:[%s10409_s1 + $0x2e8] sm:$0xf] }
  0xfe   :  { %v6874_v4 = vld [vmem:[%s10409_s1 + $0xc04] sm:$0xf]  ;;  %v5854_v5 = vld [vmem:[%s10409_s1 + $0xc10] sm:$0xf0]  ;;  %v6257_v11 = vor.u32 %v6974_v62, %v6254_v63  ;;  %v6581_v41 = vld [vmem:[%s10409_s1 + $0x2d4] sm:$0xf0] }
  0xff   :  { %3509 = vmatpush.bf16.msrb.mxu0 %v5905_v31  ;;  %3522 = vmatpush.bf16.msrb.mxu1 %v6033_v32  ;;  %v6906_v8 = vld [vmem:[%s10409_s1 + $0xd04] sm:$0xf]  ;;  %v5982_v9 = vld [vmem:[%s10409_s1 + $0xd10] sm:$0xf0]  ;;  %v5857_v20 = vor.u32 %v6874_v4, %v5854_v5  ;;  %v4437_v31 = vor.u32 %v6521_v17, %v4436_v16  ;;  %v4565_v32 = vor.u32 %v6553_v21, %v4564_v18  ;;  %v4804_v42 = vld [vmem:[%s10409_s1 + $0x3c8] sm:$0xf] }
 0x100   :  { %3535 = vmatpush.bf16.msrb.mxu2 %v6161_v33  ;;  %3548 = vmatpush.bf16.msrb.mxu3 %v6289_v38  ;;  %v6938_v10 = vld [vmem:[%s10409_s1 + $0xe04] sm:$0xf]  ;;  %v6110_v12 = vld [vmem:[%s10409_s1 + $0xe10] sm:$0xf0]  ;;  %v5985_v23 = vor.u32 %v6906_v8, %v5982_v9  ;;  %v4693_v33 = vor.u32 %v6585_v22, %v4692_v48  ;;  %v4821_v38 = vor.u32 %v6617_v26, %v4820_v25  ;;  %v6613_v43 = vld [vmem:[%s10409_s1 + $0x3d4] sm:$0xf0] }
 0x101   :  { %v6970_v13 = vld [vmem:[%s10409_s1 + $0xf04] sm:$0xf]  ;;  %v6238_v14 = vld [vmem:[%s10409_s1 + $0xf10] sm:$0xf0]  ;;  %v6113_v24 = vor.u32 %v6938_v10, %v6110_v12  ;;  %v4677_v46 = vor.u32 %v6581_v41, %v4676_v40  ;;  %v6545_v54 = vld [vmem:[%s10409_s1 + $0x1b4] sm:$0xf0] }
 0x102   :  { %v6241_v30 = vor.u32 %v6970_v13, %v6238_v14  ;;  %v4660_v55 = vld [vmem:[%s10409_s1 + $0x2a8] sm:$0xf]  ;;  %v6577_v56 = vld [vmem:[%s10409_s1 + $0x2b4] sm:$0xf0]  ;;  %v7042_v58 = vld [vmem:[#allocation1 + $0x2d] sm:$0xff] }
 0x103   :  { %3510 = vmatpush.bf16.msrb.mxu0 %v5889_v49  ;;  %3523 = vmatpush.bf16.msrb.mxu1 %v6017_v52  ;;  %v6513_v49 = vld [vmem:[%s10409_s1 + $0xb4] sm:$0xf0]  ;;  %v7040_v52 = vld [vmem:[#allocation1 + $0x24] sm:$0xff]  ;;  %v4661_v4 = vor.u32 %v6577_v56, %v4660_v55 }
 0x104   :  { %3536 = vmatpush.bf16.msrb.mxu2 %v6145_v53  ;;  %3549 = vmatpush.bf16.msrb.mxu3 %v6273_v57  ;;  %v4805_v53 = vor.u32 %v6613_v43, %v4804_v42  ;;  %v7041_v57 = vld [vmem:[#allocation1 + $0x36] sm:$0xff]  ;;  %v4788_v59 = vld [vmem:[%s10409_s1 + $0x3a8] sm:$0xf]  ;;  %v7043_v62 = vld [vmem:[#allocation1 + $0x3f] sm:$0xff]  ;;  %v4405_v63 = vor.u32 %v6513_v49, %v4404_v47 }
 0x105   :  { %v6609_v61 = vld [vmem:[%s10409_s1 + $0x3b4] sm:$0xf0]  ;;  %v4388_v5 = vld [vmem:[%s10409_s1 + $0x88] sm:$0xf] }
 0x106   :  { %v4789_v8 = vor.u32 %v6609_v61, %v4788_v59  ;;  %v6541_v9 = vld [vmem:[%s10409_s1 + $0x194] sm:$0xf0]  ;;  %v4644_v10 = vld [vmem:[%s10409_s1 + $0x288] sm:$0xf] }
 0x107   :  { %3511 = vmatpush.bf16.msrb.mxu0 %v5873_v3  ;;  %3524 = vmatpush.bf16.msrb.mxu1 %v6001_v6  ;;  %v4533_v3 = vor.u32 %v6545_v54, %v4532_v50  ;;  %v6509_v6 = vld [vmem:[%s10409_s1 + $0x94] sm:$0xf0]  ;;  %v4772_v13 = vld [vmem:[%s10409_s1 + $0x388] sm:$0xf] }
 0x108   :  { %3537 = vmatpush.bf16.msrb.mxu2 %v6129_v7  ;;  %3550 = vmatpush.bf16.msrb.mxu3 %v6257_v11  ;;  %v4516_v7 = vld [vmem:[%s10409_s1 + $0x188] sm:$0xf]  ;;  %v6573_v11 = vld [vmem:[%s10409_s1 + $0x294] sm:$0xf0]  ;;  %v4389_v16 = vor.u32 %v6509_v6, %v4388_v5 }
 0x109   :  { %v6605_v14 = vld [vmem:[%s10409_s1 + $0x394] sm:$0xf0]  ;;  %v4517_v18 = vor.u32 %v6541_v9, %v4516_v7  ;;  %v4645_v19 = vor.u32 %v6573_v11, %v4644_v10  ;;  %v4500_v48 = vld [vmem:[%s10409_s1 + $0x168] sm:$0xf] }
 0x10a   :  { %v6505_v21 = vld [vmem:[%s10409_s1 + $0x74] sm:$0xf0]  ;;  %v4756_v26 = vld [vmem:[%s10409_s1 + $0x368] sm:$0xf] }
 0x10b   :  { %3512 = vmatpush.bf16.msrb.mxu0 %v5857_v20  ;;  %3525 = vmatpush.bf16.msrb.mxu1 %v5985_v23  ;;  %v3306_v12 = vpop.f32.mrf.mxu0  ;;  %v3319_v17 = vpop.f32.mrf.mxu1  ;;  %v4372_v20 = vld [vmem:[%s10409_s1 + $0x68] sm:$0xf]  ;;  %v6537_v23 = vld [vmem:[%s10409_s1 + $0x174] sm:$0xf0] }
 0x10c   :  { %3538 = vmatpush.bf16.msrb.mxu2 %v6113_v24  ;;  %3551 = vmatpush.bf16.msrb.mxu3 %v6241_v30  ;;  %v3307_v15 = vadd.f32 %v3306_v12, %v8651_v51  ;;  %v4773_v51 = vor.u32 %v6605_v14, %v4772_v13  ;;  %v4628_v24 = vld [vmem:[%s10409_s1 + $0x268] sm:$0xf]  ;;  %v6569_v25 = vld [vmem:[%s10409_s1 + $0x274] sm:$0xf0] }
 0x10d   :  { %v6601_v30 = vld [vmem:[%s10409_s1 + $0x374] sm:$0xf0]  ;;  %v4356_v35 = vld [vmem:[%s10409_s1 + $0x48] sm:$0xf] }
 0x10e   :  { %3513 = vmatmul.bf16.vlgmr.msrb.gmra.mxu0 %v7040_v52  ;;  %3526 = vmatmul.bf16.vlgmr.msrb.gmra.mxu1 %v7042_v58  ;;  %v3320_v22 = vadd.f32 %v3319_v17, %v3307_v15  ;;  %v6501_v36 = vld [vmem:[%s10409_s1 + $0x54] sm:$0xf0]  ;;  %v4484_v37 = vld [vmem:[%s10409_s1 + $0x148] sm:$0xf] }
 0x10f   :  { %3557 = vmatpush.bf16.msra.mxu0 %v4437_v31  ;;  %3570 = vmatpush.bf16.msra.mxu1 %v4565_v32  ;;  %v4373_v31 = vor.u32 %v6505_v21, %v4372_v20  ;;  %v4501_v32 = vor.u32 %v6537_v23, %v4500_v48  ;;  %v6533_v40 = vld [vmem:[%s10409_s1 + $0x154] sm:$0xf0]  ;;  %v4612_v41 = vld [vmem:[%s10409_s1 + $0x248] sm:$0xf]  ;;  %v4357_v49 = vor.u32 %v6501_v36, %v4356_v35 }
 0x110   :  { %3583 = vmatpush.bf16.msra.mxu2 %v4693_v33  ;;  %3596 = vmatpush.bf16.msra.mxu3 %v4821_v38  ;;  %v4629_v33 = vor.u32 %v6569_v25, %v4628_v24  ;;  %v4757_v38 = vor.u32 %v6601_v30, %v4756_v26  ;;  %v6565_v42 = vld [vmem:[%s10409_s1 + $0x254] sm:$0xf0]  ;;  %v4340_v55 = vld [vmem:[%s10409_s1 + $0x28] sm:$0xf] }
 0x111   :  { %3539 = vmatmul.bf16.vlgmr.msrb.gmra.mxu2 %v7041_v57  ;;  %3552 = vmatmul.bf16.vlgmr.msrb.gmra.mxu3 %v7043_v62  ;;  %v4613_v54 = vor.u32 %v6565_v42, %v4612_v41  ;;  %v6497_v56 = vld [vmem:[%s10409_s1 + $0x34] sm:$0xf0]  ;;  %v4468_v57 = vld [vmem:[%s10409_s1 + $0x128] sm:$0xf] }
 0x112   :  { %v6529_v59 = vld [vmem:[%s10409_s1 + $0x134] sm:$0xf0]  ;;  %v4596_v61 = vld [vmem:[%s10409_s1 + $0x228] sm:$0xf] }
 0x113   :  { %3558 = vmatpush.bf16.msra.mxu0 %v4421_v44  ;;  %3571 = vmatpush.bf16.msra.mxu1 %v4549_v45  ;;  %v4740_v45 = vld [vmem:[%s10409_s1 + $0x348] sm:$0xf]  ;;  %v3308_v47 = vpop.f32.mrf.mxu0  ;;  %v3321_v50 = vpop.f32.mrf.mxu1  ;;  %v6561_v62 = vld [vmem:[%s10409_s1 + $0x234] sm:$0xf0]  ;;  %v4469_v7 = vor.u32 %v6529_v59, %v4468_v57 }
 0x114   :  { %3584 = vmatpush.bf16.msra.mxu2 %v4677_v46  ;;  %3597 = vmatpush.bf16.msra.mxu3 %v4805_v53  ;;  %v3332_v39 = vpop.f32.mrf.mxu2  ;;  %v3345_v44 = vpop.f32.mrf.mxu3  ;;  %v6597_v46 = vld [vmem:[%s10409_s1 + $0x354] sm:$0xf0]  ;;  %v4485_v53 = vor.u32 %v6533_v40, %v4484_v37  ;;  %v4324_v5 = vld [vmem:[%s10409_s1 + $0x8] sm:$0xf] }
 0x115   :  { %v3333_v43 = vadd.f32 %v3332_v39, %v3320_v22  ;;  %v4741_v58 = vor.u32 %v6597_v46, %v4740_v45  ;;  %v6493_v6 = vld [vmem:[%s10409_s1 + $0x14] sm:$0xf0]  ;;  %v4452_v9 = vld [vmem:[%s10409_s1 + $0x108] sm:$0xf] }
 0x116   :  { %v6525_v10 = vld [vmem:[%s10409_s1 + $0x114] sm:$0xf0]  ;;  %v4580_v11 = vld [vmem:[%s10409_s1 + $0x208] sm:$0xf]  ;;  %v4325_v21 = vor.u32 %v6493_v6, %v4324_v5  ;;  %v7044_v5 = vld [vmem:[%s10410_s2] sm:$0xf] }
 0x117   :  { %3559 = vmatpush.bf16.msra.mxu0 %v4405_v63  ;;  %3572 = vmatpush.bf16.msra.mxu1 %v4533_v3  ;;  %v8846_v52 = vadd.f32 %v3345_v44, %v3333_v43  ;;  %v4724_v63 = vld [vmem:[%s10409_s1 + $0x328] sm:$0xf]  ;;  %v6593_v3 = vld [vmem:[%s10409_s1 + $0x334] sm:$0xf0]  ;;  %v4453_v23 = vor.u32 %v6525_v10, %v4452_v9  ;;  %v538_v6 = vperm.slane %v7044_v5, 1 }
 0x118   :  { %3585 = vmatpush.bf16.msra.mxu2 %v4661_v4  ;;  %3598 = vmatpush.bf16.msra.mxu3 %v4789_v8  ;;  %v4341_v4 = vor.u32 %v6497_v56, %v4340_v55  ;;  %v4597_v8 = vor.u32 %v6561_v62, %v4596_v61  ;;  %v4725_v12 = vor.u32 %v6593_v3, %v4724_v63  ;;  %v6557_v13 = vld [vmem:[%s10409_s1 + $0x214] sm:$0xf0]  ;;  %v4708_v14 = vld [vmem:[%s10409_s1 + $0x308] sm:$0xf] }
 0x119   :  { %v6589_v15 = vld [vmem:[%s10409_s1 + $0x314] sm:$0xf0]  ;;  %v4948_v17 = vld [vmem:[%s10409_s1 + $0x4e8] sm:$0xf]  ;;  %v4581_v24 = vor.u32 %v6557_v13, %v4580_v11 }
 0x11a   :  { %v6681_v48 = vld [vmem:[%s10409_s1 + $0x5f4] sm:$0xf0]  ;;  %v5332_v25 = vld [vmem:[%s10409_s1 + $0x7e8] sm:$0xf]  ;;  %v4709_v30 = vor.u32 %v6589_v15, %v4708_v14 }
 0x11b   :  { %3560 = vmatpush.bf16.msra.mxu0 %v4389_v16  ;;  %3573 = vmatpush.bf16.msra.mxu1 %v4517_v18  ;;  %v6649_v18 = vld [vmem:[%s10409_s1 + $0x4f4] sm:$0xf0]  ;;  %v4932_v35 = vld [vmem:[%s10409_s1 + $0x4c8] sm:$0xf] }
 0x11c   :  { %3586 = vmatpush.bf16.msra.mxu2 %v4645_v19  ;;  %3599 = vmatpush.bf16.msra.mxu3 %v4773_v51  ;;  %v3334_v16 = vpop.f32.mrf.mxu2  ;;  %v5076_v19 = vld [vmem:[%s10409_s1 + $0x5e8] sm:$0xf]  ;;  %v3347_v20 = vpop.f32.mrf.mxu3  ;;  %v6713_v22 = vld [vmem:[%s10409_s1 + $0x6f4] sm:$0xf0] }
 0x11d   :  { %v5204_v51 = vld [vmem:[%s10409_s1 + $0x6e8] sm:$0xf]  ;;  %v6745_v26 = vld [vmem:[%s10409_s1 + $0x7f4] sm:$0xf0] }
 0x11e   :  { %v6645_v36 = vld [vmem:[%s10409_s1 + $0x4d4] sm:$0xf0]  ;;  %v5060_v37 = vld [vmem:[%s10409_s1 + $0x5c8] sm:$0xf] }
 0x11f   :  { %3561 = vmatpush.bf16.msra.mxu0 %v4373_v31  ;;  %3574 = vmatpush.bf16.msra.mxu1 %v4501_v32  ;;  %v4949_v31 = vor.u32 %v6649_v18, %v4948_v17  ;;  %v5077_v32 = vor.u32 %v6681_v48, %v5076_v19  ;;  %v6677_v39 = vld [vmem:[%s10409_s1 + $0x5d4] sm:$0xf0]  ;;  %v5188_v40 = vld [vmem:[%s10409_s1 + $0x6c8] sm:$0xf]  ;;  %v4933_v44 = vor.u32 %v6645_v36, %v4932_v35 }
 0x120   :  { %3587 = vmatpush.bf16.msra.mxu2 %v4629_v33  ;;  %3600 = vmatpush.bf16.msra.mxu3 %v4757_v38  ;;  %v5205_v33 = vor.u32 %v6713_v22, %v5204_v51  ;;  %v5333_v38 = vor.u32 %v6745_v26, %v5332_v25  ;;  %v6709_v41 = vld [vmem:[%s10409_s1 + $0x6d4] sm:$0xf0]  ;;  %v5316_v42 = vld [vmem:[%s10409_s1 + $0x7c8] sm:$0xf]  ;;  %v5061_v45 = vor.u32 %v6677_v39, %v5060_v37 }
 0x121   :  { %v6741_v43 = vld [vmem:[%s10409_s1 + $0x7d4] sm:$0xf0]  ;;  %v5189_v46 = vor.u32 %v6709_v41, %v5188_v40  ;;  %v4916_v47 = vld [vmem:[%s10409_s1 + $0x4a8] sm:$0xf] }
 0x122   :  { %v5044_v50 = vld [vmem:[%s10409_s1 + $0x5a8] sm:$0xf]  ;;  %v6705_v56 = vld [vmem:[%s10409_s1 + $0x6b4] sm:$0xf0] }
 0x123   :  { %3562 = vmatpush.bf16.msra.mxu0 %v4357_v49  ;;  %3575 = vmatpush.bf16.msra.mxu1 %v4485_v53  ;;  %v6641_v49 = vld [vmem:[%s10409_s1 + $0x4b4] sm:$0xf0]  ;;  %v5317_v53 = vor.u32 %v6741_v43, %v5316_v42  ;;  %v5172_v55 = vld [vmem:[%s10409_s1 + $0x6a8] sm:$0xf] }
 0x124   :  { %3588 = vmatpush.bf16.msra.mxu2 %v4613_v54  ;;  %3601 = vmatpush.bf16.msra.mxu3 %v4741_v58  ;;  %v6673_v54 = vld [vmem:[%s10409_s1 + $0x5b4] sm:$0xf0]  ;;  %v5300_v57 = vld [vmem:[%s10409_s1 + $0x7a8] sm:$0xf]  ;;  %v4917_v59 = vor.u32 %v6641_v49, %v4916_v47  ;;  %v5173_v63 = vor.u32 %v6705_v56, %v5172_v55 }
 0x125   :  { %v6737_v58 = vld [vmem:[%s10409_s1 + $0x7b4] sm:$0xf0]  ;;  %v4900_v61 = vld [vmem:[%s10409_s1 + $0x488] sm:$0xf]  ;;  %v5045_v62 = vor.u32 %v6673_v54, %v5044_v50 }
 0x126   :  { %v6637_v3 = vld [vmem:[%s10409_s1 + $0x494] sm:$0xf0]  ;;  %v5156_v9 = vld [vmem:[%s10409_s1 + $0x688] sm:$0xf] }
 0x127   :  { %3563 = vmatpush.bf16.msra.mxu0 %v4341_v4  ;;  %3576 = vmatpush.bf16.msra.mxu1 %v4469_v7  ;;  %v5028_v4 = vld [vmem:[%s10409_s1 + $0x588] sm:$0xf]  ;;  %v5301_v7 = vor.u32 %v6737_v58, %v5300_v57  ;;  %v6701_v10 = vld [vmem:[%s10409_s1 + $0x694] sm:$0xf0]  ;;  %v4901_v13 = vor.u32 %v6637_v3, %v4900_v61 }
 0x128   :  { %3589 = vmatpush.bf16.msra.mxu2 %v4597_v8  ;;  %3602 = vmatpush.bf16.msra.mxu3 %v4725_v12  ;;  %v6669_v8 = vld [vmem:[%s10409_s1 + $0x594] sm:$0xf0]  ;;  %v5284_v11 = vld [vmem:[%s10409_s1 + $0x788] sm:$0xf]  ;;  %v5157_v16 = vor.u32 %v6701_v10, %v5156_v9 }
 0x129   :  { %v6733_v12 = vld [vmem:[%s10409_s1 + $0x794] sm:$0xf0]  ;;  %v5029_v15 = vor.u32 %v6669_v8, %v5028_v4  ;;  %v4884_v17 = vld [vmem:[%s10409_s1 + $0x468] sm:$0xf] }
 0x12a   :  { %v6633_v18 = vld [vmem:[%s10409_s1 + $0x474] sm:$0xf0]  ;;  %v5012_v19 = vld [vmem:[%s10409_s1 + $0x568] sm:$0xf]  ;;  %v5285_v48 = vor.u32 %v6733_v12, %v5284_v11 }
 0x12b   :  { %3564 = vmatpush.bf16.msra.mxu0 %v4325_v21  ;;  %3577 = vmatpush.bf16.msra.mxu1 %v4453_v23  ;;  %v3358_v14 = vpop.f32.mrf.mxu0  ;;  %v3371_v21 = vpop.f32.mrf.mxu1  ;;  %v6665_v51 = vld [vmem:[%s10409_s1 + $0x574] sm:$0xf0]  ;;  %v5140_v22 = vld [vmem:[%s10409_s1 + $0x668] sm:$0xf] }
 0x12c   :  { %3590 = vmatpush.bf16.msra.mxu2 %v4581_v24  ;;  %3603 = vmatpush.bf16.msra.mxu3 %v4709_v30  ;;  %v3359_v20 = vadd.f32 %v3358_v14, %v538_v6  ;;  %v6697_v23 = vld [vmem:[%s10409_s1 + $0x674] sm:$0xf0]  ;;  %v5268_v24 = vld [vmem:[%s10409_s1 + $0x768] sm:$0xf]  ;;  %v4885_v30 = vor.u32 %v6633_v18, %v4884_v17 }
 0x12d   :  { %v6729_v25 = vld [vmem:[%s10409_s1 + $0x774] sm:$0xf0]  ;;  %v4996_v36 = vld [vmem:[%s10409_s1 + $0x548] sm:$0xf] }
 0x12e   :  { %3565 = vmatmul.bf16.vlgmr.msra.gmra.mxu0 %v7439_v28  ;;  %3578 = vmatmul.bf16.vlgmr.msra.gmra.mxu1 %v7449_v34  ;;  %v3372_v26 = vadd.f32 %v3371_v21, %v3359_v20  ;;  %v6629_v35 = vld [vmem:[%s10409_s1 + $0x454] sm:$0xf0]  ;;  %v5124_v40 = vld [vmem:[%s10409_s1 + $0x648] sm:$0xf] }
 0x12f   :  { %3609 = vmatpush.bf16.msrb.mxu0 %v4949_v31  ;;  %3622 = vmatpush.bf16.msrb.mxu1 %v5077_v32  ;;  %v5013_v31 = vor.u32 %v6665_v51, %v5012_v19  ;;  %v5141_v32 = vor.u32 %v6697_v23, %v5140_v22  ;;  %v6661_v39 = vld [vmem:[%s10409_s1 + $0x554] sm:$0xf0]  ;;  %v4852_v54 = vld [vmem:[%s10409_s1 + $0x428] sm:$0xf] }
 0x130   :  { %3635 = vmatpush.bf16.msrb.mxu2 %v5205_v33  ;;  %3648 = vmatpush.bf16.msrb.mxu3 %v5333_v38  ;;  %v4868_v33 = vld [vmem:[%s10409_s1 + $0x448] sm:$0xf]  ;;  %v5269_v38 = vor.u32 %v6729_v25, %v5268_v24  ;;  %v6693_v41 = vld [vmem:[%s10409_s1 + $0x654] sm:$0xf0]  ;;  %v4997_v50 = vor.u32 %v6661_v39, %v4996_v36 }
 0x131   :  { %3591 = vmatmul.bf16.vlgmr.msra.gmra.mxu2 %v7437_v27  ;;  %3604 = vmatmul.bf16.vlgmr.msra.gmra.mxu3 %v7441_v29  ;;  %v6625_v55 = vld [vmem:[%s10409_s1 + $0x434] sm:$0xf0]  ;;  %v4980_v56 = vld [vmem:[%s10409_s1 + $0x528] sm:$0xf] }
 0x132   :  { %v5108_v61 = vld [vmem:[%s10409_s1 + $0x628] sm:$0xf]  ;;  %v6721_v3 = vld [vmem:[%s10409_s1 + $0x734] sm:$0xf0]  ;;  %v4853_v4 = vor.u32 %v6625_v55, %v4852_v54 }
 0x133   :  { %3610 = vmatpush.bf16.msrb.mxu0 %v4933_v44  ;;  %3623 = vmatpush.bf16.msrb.mxu1 %v5061_v45  ;;  %v5252_v44 = vld [vmem:[%s10409_s1 + $0x748] sm:$0xf]  ;;  %v6725_v45 = vld [vmem:[%s10409_s1 + $0x754] sm:$0xf0]  ;;  %v3360_v49 = vpop.f32.mrf.mxu0  ;;  %v3373_v57 = vpop.f32.mrf.mxu1 }
 0x134   :  { %3636 = vmatpush.bf16.msrb.mxu2 %v5189_v46  ;;  %3649 = vmatpush.bf16.msrb.mxu3 %v5317_v53  ;;  %v3384_v37 = vpop.f32.mrf.mxu2  ;;  %v3397_v43 = vpop.f32.mrf.mxu3  ;;  %v4869_v46 = vor.u32 %v6629_v35, %v4868_v33  ;;  %v5125_v53 = vor.u32 %v6693_v41, %v5124_v40  ;;  %v5253_v58 = vor.u32 %v6725_v45, %v5252_v44  ;;  %v4836_v5 = vld [vmem:[%s10409_s1 + $0x408] sm:$0xf]  ;;  %v6621_v6 = vld [vmem:[%s10409_s1 + $0x414] sm:$0xf0] }
 0x135   :  { %v3385_v42 = vadd.f32 %v3384_v37, %v3372_v26  ;;  %v4964_v9 = vld [vmem:[%s10409_s1 + $0x508] sm:$0xf]  ;;  %v6653_v10 = vld [vmem:[%s10409_s1 + $0x514] sm:$0xf0]  ;;  %v4837_v21 = vor.u32 %v6621_v6, %v4836_v5 }
 0x136   :  { %v5092_v11 = vld [vmem:[%s10409_s1 + $0x608] sm:$0xf]  ;;  %v6685_v14 = vld [vmem:[%s10409_s1 + $0x614] sm:$0xf0]  ;;  %v4965_v23 = vor.u32 %v6653_v10, %v4964_v9 }
 0x137   :  { %3611 = vmatpush.bf16.msrb.mxu0 %v4917_v59  ;;  %3624 = vmatpush.bf16.msrb.mxu1 %v5045_v62  ;;  %v9047_v47 = vadd.f32 %v3397_v43, %v3385_v42  ;;  %v6657_v59 = vld [vmem:[%s10409_s1 + $0x534] sm:$0xf0]  ;;  %v5460_v18 = vld [vmem:[%s10409_s1 + $0x8e8] sm:$0xf]  ;;  %v5093_v24 = vor.u32 %v6685_v14, %v5092_v11 }
 0x138   :  { %3637 = vmatpush.bf16.msrb.mxu2 %v5173_v63  ;;  %3650 = vmatpush.bf16.msrb.mxu3 %v5301_v7  ;;  %v6689_v62 = vld [vmem:[%s10409_s1 + $0x634] sm:$0xf0]  ;;  %v5236_v63 = vld [vmem:[%s10409_s1 + $0x728] sm:$0xf]  ;;  %v4981_v7 = vor.u32 %v6657_v59, %v4980_v56 }
 0x139   :  { %v5109_v8 = vor.u32 %v6689_v62, %v5108_v61  ;;  %v6777_v19 = vld [vmem:[%s10409_s1 + $0x8f4] sm:$0xf0]  ;;  %v5588_v20 = vld [vmem:[%s10409_s1 + $0x9e8] sm:$0xf] }
 0x13a   :  { %v5716_v51 = vld [vmem:[%s10409_s1 + $0xae8] sm:$0xf]  ;;  %v6841_v22 = vld [vmem:[%s10409_s1 + $0xaf4] sm:$0xf0] }
 0x13b   :  { %3612 = vmatpush.bf16.msrb.mxu0 %v4901_v13  ;;  %3625 = vmatpush.bf16.msrb.mxu1 %v5029_v15  ;;  %v5237_v13 = vor.u32 %v6721_v3, %v5236_v63  ;;  %v5220_v15 = vld [vmem:[%s10409_s1 + $0x708] sm:$0xf]  ;;  %v6873_v26 = vld [vmem:[%s10409_s1 + $0xbf4] sm:$0xf0]  ;;  %v5717_v33 = vor.u32 %v6841_v22, %v5716_v51 }
 0x13c   :  { %3638 = vmatpush.bf16.msrb.mxu2 %v5157_v16  ;;  %3651 = vmatpush.bf16.msrb.mxu3 %v5285_v48  ;;  %v3386_v12 = vpop.f32.mrf.mxu2  ;;  %v6717_v16 = vld [vmem:[%s10409_s1 + $0x714] sm:$0xf0]  ;;  %v3399_v17 = vpop.f32.mrf.mxu3  ;;  %v5844_v25 = vld [vmem:[%s10409_s1 + $0xbe8] sm:$0xf] }
 0x13d   :  { %v6809_v48 = vld [vmem:[%s10409_s1 + $0x9f4] sm:$0xf0]  ;;  %v5444_v35 = vld [vmem:[%s10409_s1 + $0x8c8] sm:$0xf] }
 0x13e   :  { %v6773_v36 = vld [vmem:[%s10409_s1 + $0x8d4] sm:$0xf0]  ;;  %v5572_v37 = vld [vmem:[%s10409_s1 + $0x9c8] sm:$0xf] }
 0x13f   :  { %3613 = vmatpush.bf16.msrb.mxu0 %v4885_v30  ;;  %3626 = vmatpush.bf16.msrb.mxu1 %v5013_v31  ;;  %v5221_v30 = vor.u32 %v6717_v16, %v5220_v15  ;;  %v5461_v31 = vor.u32 %v6777_v19, %v5460_v18  ;;  %v6805_v39 = vld [vmem:[%s10409_s1 + $0x9d4] sm:$0xf0]  ;;  %v5700_v40 = vld [vmem:[%s10409_s1 + $0xac8] sm:$0xf]  ;;  %v5445_v44 = vor.u32 %v6773_v36, %v5444_v35 }
 0x140   :  { %3639 = vmatpush.bf16.msrb.mxu2 %v5141_v32  ;;  %3652 = vmatpush.bf16.msrb.mxu3 %v5269_v38  ;;  %v5589_v32 = vor.u32 %v6809_v48, %v5588_v20  ;;  %v5845_v38 = vor.u32 %v6873_v26, %v5844_v25  ;;  %v6837_v41 = vld [vmem:[%s10409_s1 + $0xad4] sm:$0xf0]  ;;  %v5828_v42 = vld [vmem:[%s10409_s1 + $0xbc8] sm:$0xf]  ;;  %v5573_v45 = vor.u32 %v6805_v39, %v5572_v37 }
 0x141   :  { %v6869_v43 = vld [vmem:[%s10409_s1 + $0xbd4] sm:$0xf0]  ;;  %v5428_v49 = vld [vmem:[%s10409_s1 + $0x8a8] sm:$0xf] }
 0x142   :  { %v5829_v54 = vor.u32 %v6869_v43, %v5828_v42  ;;  %v6801_v55 = vld [vmem:[%s10409_s1 + $0x9b4] sm:$0xf0]  ;;  %v5684_v56 = vld [vmem:[%s10409_s1 + $0xaa8] sm:$0xf] }
 0x143   :  { %3614 = vmatpush.bf16.msrb.mxu0 %v4869_v46  ;;  %3627 = vmatpush.bf16.msrb.mxu1 %v4997_v50  ;;  %v5701_v46 = vor.u32 %v6837_v41, %v5700_v40  ;;  %v6769_v50 = vld [vmem:[%s10409_s1 + $0x8b4] sm:$0xf0]  ;;  %v5412_v3 = vld [vmem:[%s10409_s1 + $0x888] sm:$0xf] }
 0x144   :  { %3640 = vmatpush.bf16.msrb.mxu2 %v5125_v53  ;;  %3653 = vmatpush.bf16.msrb.mxu3 %v5253_v58  ;;  %v5556_v53 = vld [vmem:[%s10409_s1 + $0x9a8] sm:$0xf]  ;;  %v6833_v57 = vld [vmem:[%s10409_s1 + $0xab4] sm:$0xf0]  ;;  %v5429_v61 = vor.u32 %v6769_v50, %v5428_v49 }
 0x145   :  { %v5812_v58 = vld [vmem:[%s10409_s1 + $0xba8] sm:$0xf]  ;;  %v6865_v59 = vld [vmem:[%s10409_s1 + $0xbb4] sm:$0xf0]  ;;  %v5557_v62 = vor.u32 %v6801_v55, %v5556_v53  ;;  %v5685_v63 = vor.u32 %v6833_v57, %v5684_v56 }
 0x146   :  { %v5540_v5 = vld [vmem:[%s10409_s1 + $0x988] sm:$0xf]  ;;  %v5813_v6 = vor.u32 %v6865_v59, %v5812_v58  ;;  %v6829_v9 = vld [vmem:[%s10409_s1 + $0xa94] sm:$0xf0] }
 0x147   :  { %3615 = vmatpush.bf16.msrb.mxu0 %v4853_v4  ;;  %3628 = vmatpush.bf16.msrb.mxu1 %v4981_v7  ;;  %v6765_v4 = vld [vmem:[%s10409_s1 + $0x894] sm:$0xf0]  ;;  %v5796_v10 = vld [vmem:[%s10409_s1 + $0xb88] sm:$0xf] }
 0x148   :  { %3641 = vmatpush.bf16.msrb.mxu2 %v5109_v8  ;;  %3654 = vmatpush.bf16.msrb.mxu3 %v5237_v13  ;;  %v6797_v7 = vld [vmem:[%s10409_s1 + $0x994] sm:$0xf0]  ;;  %v5668_v8 = vld [vmem:[%s10409_s1 + $0xa88] sm:$0xf]  ;;  %v5413_v12 = vor.u32 %v6765_v4, %v5412_v3 }
 0x149   :  { %v6861_v11 = vld [vmem:[%s10409_s1 + $0xb94] sm:$0xf0]  ;;  %v5541_v14 = vor.u32 %v6797_v7, %v5540_v5  ;;  %v5669_v15 = vor.u32 %v6829_v9, %v5668_v8  ;;  %v5396_v16 = vld [vmem:[%s10409_s1 + $0x868] sm:$0xf] }
 0x14a   :  { %v6761_v17 = vld [vmem:[%s10409_s1 + $0x874] sm:$0xf0]  ;;  %v5524_v18 = vld [vmem:[%s10409_s1 + $0x968] sm:$0xf] }
 0x14b   :  { %3616 = vmatpush.bf16.msrb.mxu0 %v4837_v21  ;;  %3629 = vmatpush.bf16.msrb.mxu1 %v4965_v23  ;;  %v3410_v13 = vpop.f32.mrf.mxu0  ;;  %v3423_v20 = vpop.f32.mrf.mxu1  ;;  %v5797_v21 = vor.u32 %v6861_v11, %v5796_v10  ;;  %v6793_v48 = vld [vmem:[%s10409_s1 + $0x974] sm:$0xf0]  ;;  %v5652_v51 = vld [vmem:[%s10409_s1 + $0xa68] sm:$0xf]  ;;  %v5397_v25 = vor.u32 %v6761_v17, %v5396_v16 }
 0x14c   :  { %3642 = vmatpush.bf16.msrb.mxu2 %v5093_v24  ;;  %3655 = vmatpush.bf16.msrb.mxu3 %v5221_v30  ;;  %v3411_v19 = vadd.f32 %v3410_v13, %v9047_v47  ;;  %v6825_v22 = vld [vmem:[%s10409_s1 + $0xa74] sm:$0xf0]  ;;  %v5780_v23 = vld [vmem:[%s10409_s1 + $0xb68] sm:$0xf]  ;;  %v5525_v26 = vor.u32 %v6793_v48, %v5524_v18 }
 0x14d   :  { %v6857_v47 = vld [vmem:[%s10409_s1 + $0xb74] sm:$0xf0]  ;;  %v5653_v30 = vor.u32 %v6825_v22, %v5652_v51  ;;  %v5764_v42 = vld [vmem:[%s10409_s1 + $0xb48] sm:$0xf] }
 0x14e   :  { %3617 = vmatmul.bf16.vlgmr.msrb.gmra.mxu0 %v7517_v0  ;;  %3630 = vmatmul.bf16.vlgmr.msrb.gmra.mxu1 %v7521_v2  ;;  %v3424_v24 = vadd.f32 %v3423_v20, %v3411_v19  ;;  %v5781_v36 = vor.u32 %v6857_v47, %v5780_v23  ;;  %v6789_v37 = vld [vmem:[%s10409_s1 + $0x954] sm:$0xf0]  ;;  %v5364_v53 = vld [vmem:[%s10409_s1 + $0x828] sm:$0xf] }
 0x14f   :  { %3661 = vmatpush.bf16.msra.mxu0 %v5461_v31  ;;  %3674 = vmatpush.bf16.msra.mxu1 %v5589_v32  ;;  %v5380_v31 = vld [vmem:[%s10409_s1 + $0x848] sm:$0xf]  ;;  %v6757_v32 = vld [vmem:[%s10409_s1 + $0x854] sm:$0xf0] }
 0x150   :  { %3687 = vmatpush.bf16.msra.mxu2 %v5717_v33  ;;  %3700 = vmatpush.bf16.msra.mxu3 %v5845_v38  ;;  %v5508_v33 = vld [vmem:[%s10409_s1 + $0x948] sm:$0xf]  ;;  %v6821_v39 = vld [vmem:[%s10409_s1 + $0xa54] sm:$0xf0] }
 0x151   :  { %3643 = vmatmul.bf16.vlgmr.msrb.gmra.mxu2 %v7512_v60  ;;  %3656 = vmatmul.bf16.vlgmr.msrb.gmra.mxu3 %v7519_v1  ;;  %v5636_v38 = vld [vmem:[%s10409_s1 + $0xa48] sm:$0xf]  ;;  %v6853_v43 = vld [vmem:[%s10409_s1 + $0xb54] sm:$0xf0]  ;;  %v5509_v49 = vor.u32 %v6789_v37, %v5508_v33 }
 0x152   :  { %v5637_v50 = vor.u32 %v6821_v39, %v5636_v38  ;;  %v5492_v55 = vld [vmem:[%s10409_s1 + $0x928] sm:$0xf]  ;;  %v5765_v57 = vor.u32 %v6853_v43, %v5764_v42  ;;  %v6785_v58 = vld [vmem:[%s10409_s1 + $0x934] sm:$0xf0] }
 0x153   :  { %3662 = vmatpush.bf16.msra.mxu0 %v5445_v44  ;;  %3675 = vmatpush.bf16.msra.mxu1 %v5573_v45  ;;  %v5381_v44 = vor.u32 %v6757_v32, %v5380_v31  ;;  %v3425_v56 = vpop.f32.mrf.mxu1  ;;  %v5620_v59 = vld [vmem:[%s10409_s1 + $0xa28] sm:$0xf]  ;;  %v6749_v5 = vld [vmem:[%s10409_s1 + $0x814] sm:$0xf0] }
 0x154   :  { %3688 = vmatpush.bf16.msra.mxu2 %v5701_v46  ;;  %3701 = vmatpush.bf16.msra.mxu3 %v5829_v54  ;;  %v3436_v35 = vpop.f32.mrf.mxu2  ;;  %v3449_v41 = vpop.f32.mrf.mxu3  ;;  %v6753_v54 = vld [vmem:[%s10409_s1 + $0x834] sm:$0xf0]  ;;  %v5348_v4 = vld [vmem:[%s10409_s1 + $0x808] sm:$0xf] }
 0x155   :  { %v3437_v40 = vadd.f32 %v3436_v35, %v3424_v24  ;;  %v3412_v46 = vpop.f32.mrf.mxu0  ;;  %v5365_v3 = vor.u32 %v6753_v54, %v5364_v53  ;;  %v5476_v8 = vld [vmem:[%s10409_s1 + $0x908] sm:$0xf]  ;;  %v6781_v9 = vld [vmem:[%s10409_s1 + $0x914] sm:$0xf0]  ;;  %v5349_v20 = vor.u32 %v6749_v5, %v5348_v4  ;;  %v7045_v53 = vld [vmem:[#allocation1] sm:$0xff] }
 0x156   :  { %v5604_v10 = vld [vmem:[%s10409_s1 + $0xa08] sm:$0xf]  ;;  %v6813_v13 = vld [vmem:[%s10409_s1 + $0xa14] sm:$0xf0]  ;;  %v5477_v22 = vor.u32 %v6781_v9, %v5476_v8 }
 0x157   :  { %3663 = vmatpush.bf16.msra.mxu0 %v5429_v61  ;;  %3676 = vmatpush.bf16.msra.mxu1 %v5557_v62  ;;  %v9246_v45 = vadd.f32 %v3449_v41, %v3437_v40  ;;  %v6817_v61 = vld [vmem:[%s10409_s1 + $0xa34] sm:$0xf0]  ;;  %v5748_v62 = vld [vmem:[%s10409_s1 + $0xb28] sm:$0xf]  ;;  %v5605_v23 = vor.u32 %v6813_v13, %v5604_v10 }
 0x158   :  { %3689 = vmatpush.bf16.msra.mxu2 %v5685_v63  ;;  %3702 = vmatpush.bf16.msra.mxu3 %v5813_v6  ;;  %v6849_v63 = vld [vmem:[%s10409_s1 + $0xb34] sm:$0xf0]  ;;  %v5493_v6 = vor.u32 %v6785_v58, %v5492_v55  ;;  %v5621_v7 = vor.u32 %v6817_v61, %v5620_v59  ;;  %v5972_v17 = vld [vmem:[%s10409_s1 + $0xce8] sm:$0xf] }
 0x159   :  { %v6905_v18 = vld [vmem:[%s10409_s1 + $0xcf4] sm:$0xf0]  ;;  %v6100_v19 = vld [vmem:[%s10409_s1 + $0xde8] sm:$0xf] }
 0x15a   :  { %v6228_v48 = vld [vmem:[%s10409_s1 + $0xee8] sm:$0xf]  ;;  %v6969_v51 = vld [vmem:[%s10409_s1 + $0xef4] sm:$0xf0] }
 0x15b   :  { %3664 = vmatpush.bf16.msra.mxu0 %v5413_v12  ;;  %3677 = vmatpush.bf16.msra.mxu1 %v5541_v14  ;;  %v5749_v12 = vor.u32 %v6849_v63, %v5748_v62  ;;  %v5732_v14 = vld [vmem:[%s10409_s1 + $0xb08] sm:$0xf]  ;;  %v7001_v24 = vld [vmem:[%s10409_s1 + $0xff4] sm:$0xf0]  ;;  %v6229_v31 = vor.u32 %v6969_v51, %v6228_v48 }
 0x15c   :  { %3690 = vmatpush.bf16.msra.mxu2 %v5669_v15  ;;  %3703 = vmatpush.bf16.msra.mxu3 %v5797_v21  ;;  %v3438_v11 = vpop.f32.mrf.mxu2  ;;  %v6845_v15 = vld [vmem:[%s10409_s1 + $0xb14] sm:$0xf0]  ;;  %v3451_v16 = vpop.f32.mrf.mxu3  ;;  %v6356_v47 = vld [vmem:[%s10409_s1 + $0xfe8] sm:$0xf] }
 0x15d   :  { %v6937_v21 = vld [vmem:[%s10409_s1 + $0xdf4] sm:$0xf0]  ;;  %v5956_v32 = vld [vmem:[%s10409_s1 + $0xcc8] sm:$0xf] }
 0x15e   :  { %v6901_v33 = vld [vmem:[%s10409_s1 + $0xcd4] sm:$0xf0]  ;;  %v6084_v35 = vld [vmem:[%s10409_s1 + $0xdc8] sm:$0xf] }
 0x15f   :  { %3665 = vmatpush.bf16.msra.mxu0 %v5397_v25  ;;  %3678 = vmatpush.bf16.msra.mxu1 %v5525_v26  ;;  %v5733_v25 = vor.u32 %v6845_v15, %v5732_v14  ;;  %v5973_v26 = vor.u32 %v6905_v18, %v5972_v17  ;;  %v6933_v37 = vld [vmem:[%s10409_s1 + $0xdd4] sm:$0xf0]  ;;  %v6212_v38 = vld [vmem:[%s10409_s1 + $0xec8] sm:$0xf]  ;;  %v5957_v42 = vor.u32 %v6901_v33, %v5956_v32 }
 0x160   :  { %3691 = vmatpush.bf16.msra.mxu2 %v5653_v30  ;;  %3704 = vmatpush.bf16.msra.mxu3 %v5781_v36  ;;  %v6101_v30 = vor.u32 %v6937_v21, %v6100_v19  ;;  %v6357_v36 = vor.u32 %v7001_v24, %v6356_v47  ;;  %v6965_v39 = vld [vmem:[%s10409_s1 + $0xed4] sm:$0xf0]  ;;  %v6340_v40 = vld [vmem:[%s10409_s1 + $0xfc8] sm:$0xf]  ;;  %v6085_v43 = vor.u32 %v6933_v37, %v6084_v35 }
 0x161   :  { %v6997_v41 = vld [vmem:[%s10409_s1 + $0xfd4] sm:$0xf0]  ;;  %v5940_v46 = vld [vmem:[%s10409_s1 + $0xca8] sm:$0xf] }
 0x162   :  { %v6341_v54 = vor.u32 %v6997_v41, %v6340_v40  ;;  %v6929_v55 = vld [vmem:[%s10409_s1 + $0xdb4] sm:$0xf0]  ;;  %v6196_v56 = vld [vmem:[%s10409_s1 + $0xea8] sm:$0xf] }
 0x163   :  { %3666 = vmatpush.bf16.msra.mxu0 %v5381_v44  ;;  %3679 = vmatpush.bf16.msra.mxu1 %v5509_v49  ;;  %v6213_v44 = vor.u32 %v6965_v39, %v6212_v38  ;;  %v6897_v49 = vld [vmem:[%s10409_s1 + $0xcb4] sm:$0xf0]  ;;  %v7047_v59 = vld [vmem:[#allocation1 + $0x9] sm:$0xff] }
 0x164   :  { %3692 = vmatpush.bf16.msra.mxu2 %v5637_v50  ;;  %3705 = vmatpush.bf16.msra.mxu3 %v5765_v57  ;;  %v6068_v50 = vld [vmem:[%s10409_s1 + $0xda8] sm:$0xf]  ;;  %v6961_v57 = vld [vmem:[%s10409_s1 + $0xeb4] sm:$0xf0] }
 0x165   :  { %v7046_v58 = vld [vmem:[#allocation1 + $0x12] sm:$0xff]  ;;  %v6324_v61 = vld [vmem:[%s10409_s1 + $0xfa8] sm:$0xf]  ;;  %v7048_v63 = vld [vmem:[#allocation1 + $0x1b] sm:$0xff]  ;;  %v6069_v4 = vor.u32 %v6929_v55, %v6068_v50  ;;  %v6197_v5 = vor.u32 %v6961_v57, %v6196_v56 }
 0x166   :  { %v6993_v62 = vld [vmem:[%s10409_s1 + $0xfb4] sm:$0xf0]  ;;  %v6052_v8 = vld [vmem:[%s10409_s1 + $0xd88] sm:$0xf] }
 0x167   :  { %3667 = vmatpush.bf16.msra.mxu0 %v5365_v3  ;;  %3680 = vmatpush.bf16.msra.mxu1 %v5493_v6  ;;  %v5941_v3 = vor.u32 %v6897_v49, %v5940_v46  ;;  %v5924_v6 = vld [vmem:[%s10409_s1 + $0xc88] sm:$0xf]  ;;  %v6325_v9 = vor.u32 %v6993_v62, %v6324_v61  ;;  %v6925_v10 = vld [vmem:[%s10409_s1 + $0xd94] sm:$0xf0] }
 0x168   :  { %3693 = vmatpush.bf16.msra.mxu2 %v5621_v7  ;;  %3706 = vmatpush.bf16.msra.mxu3 %v5749_v12  ;;  %v6893_v7 = vld [vmem:[%s10409_s1 + $0xc94] sm:$0xf0]  ;;  %v6180_v11 = vld [vmem:[%s10409_s1 + $0xe88] sm:$0xf]  ;;  %v6053_v19 = vor.u32 %v6925_v10, %v6052_v8 }
 0x169   :  { %v6957_v12 = vld [vmem:[%s10409_s1 + $0xe94] sm:$0xf0]  ;;  %v6308_v14 = vld [vmem:[%s10409_s1 + $0xf88] sm:$0xf]  ;;  %v5925_v17 = vor.u32 %v6893_v7, %v5924_v6 }
 0x16a   :  { %v6989_v15 = vld [vmem:[%s10409_s1 + $0xf94] sm:$0xf0]  ;;  %v5908_v21 = vld [vmem:[%s10409_s1 + $0xc68] sm:$0xf] }
 0x16b   :  { %3668 = vmatpush.bf16.msra.mxu0 %v5349_v20  ;;  %3681 = vmatpush.bf16.msra.mxu1 %v5477_v22  ;;  %v3462_v13 = vpop.f32.mrf.mxu0  ;;  %v3475_v18 = vpop.f32.mrf.mxu1  ;;  %v6181_v20 = vor.u32 %v6957_v12, %v6180_v11  ;;  %v6889_v48 = vld [vmem:[%s10409_s1 + $0xc74] sm:$0xf0]  ;;  %v6036_v51 = vld [vmem:[%s10409_s1 + $0xd68] sm:$0xf] }
 0x16c   :  { %3694 = vmatpush.bf16.msra.mxu2 %v5605_v23  ;;  %3707 = vmatpush.bf16.msra.mxu3 %v5733_v25  ;;  %v3463_v16 = vadd.f32 %v3462_v13, %v9246_v45  ;;  %v6309_v45 = vor.u32 %v6989_v15, %v6308_v14  ;;  %v6921_v23 = vld [vmem:[%s10409_s1 + $0xd74] sm:$0xf0]  ;;  %v6164_v47 = vld [vmem:[%s10409_s1 + $0xe68] sm:$0xf] }
 0x16d   :  { %v6953_v24 = vld [vmem:[%s10409_s1 + $0xe74] sm:$0xf0]  ;;  %v6292_v25 = vld [vmem:[%s10409_s1 + $0xf68] sm:$0xf] }
 0x16e   :  { %3669 = vmatmul.bf16.vlgmr.msra.gmra.mxu0 %v7045_v53  ;;  %3682 = vmatmul.bf16.vlgmr.msra.gmra.mxu1 %v7047_v59  ;;  %v3476_v22 = vadd.f32 %v3475_v18, %v3463_v16  ;;  %v6165_v32 = vor.u32 %v6953_v24, %v6164_v47  ;;  %v5892_v33 = vld [vmem:[%s10409_s1 + $0xc48] sm:$0xf]  ;;  %v6885_v35 = vld [vmem:[%s10409_s1 + $0xc54] sm:$0xf0] }
 0x16f   :  { %3713 = vmatpush.bf16.msrb.mxu0 %v5973_v26  ;;  %3726 = vmatpush.bf16.msrb.mxu1 %v6101_v30  ;;  %v6985_v26 = vld [vmem:[%s10409_s1 + $0xf74] sm:$0xf0]  ;;  %v5909_v30 = vor.u32 %v6889_v48, %v5908_v21  ;;  %v6148_v40 = vld [vmem:[%s10409_s1 + $0xe48] sm:$0xf]  ;;  %v5893_v50 = vor.u32 %v6885_v35, %v5892_v33  ;;  %v6551_v21 = vld [vmem:[%s10409_s1 + $0x1ec] sm:$0xf] }
 0x170   :  { %3739 = vmatpush.bf16.msrb.mxu2 %v6229_v31  ;;  %3752 = vmatpush.bf16.msrb.mxu3 %v6357_v36  ;;  %v6037_v31 = vor.u32 %v6921_v23, %v6036_v51  ;;  %v6020_v36 = vld [vmem:[%s10409_s1 + $0xd48] sm:$0xf]  ;;  %v6293_v37 = vor.u32 %v6985_v26, %v6292_v25  ;;  %v6917_v39 = vld [vmem:[%s10409_s1 + $0xd54] sm:$0xf0]  ;;  %v4694_v23 = vld [vmem:[%s10409_s1 + $0x2f8] sm:$0xf0] }
 0x171   :  { %3695 = vmatmul.bf16.vlgmr.msra.gmra.mxu2 %v7046_v58  ;;  %3708 = vmatmul.bf16.vlgmr.msra.gmra.mxu3 %v7048_v63  ;;  %v6949_v41 = vld [vmem:[%s10409_s1 + $0xe54] sm:$0xf0]  ;;  %v6021_v55 = vor.u32 %v6917_v39, %v6020_v36  ;;  %v5876_v57 = vld [vmem:[%s10409_s1 + $0xc28] sm:$0xf]  ;;  %v6615_v25 = vld [vmem:[%s10409_s1 + $0x3ec] sm:$0xf] }
 0x172   :  { %v6981_v46 = vld [vmem:[%s10409_s1 + $0xf54] sm:$0xf0]  ;;  %v6149_v56 = vor.u32 %v6949_v41, %v6148_v40  ;;  %v6004_v59 = vld [vmem:[%s10409_s1 + $0xd28] sm:$0xf]  ;;  %v4822_v26 = vld [vmem:[%s10409_s1 + $0x3f8] sm:$0xf0] }
 0x173   :  { %3714 = vmatpush.bf16.msrb.mxu0 %v5957_v42  ;;  %3727 = vmatpush.bf16.msrb.mxu1 %v6085_v43  ;;  %v3464_v49 = vpop.f32.mrf.mxu0  ;;  %v3477_v53 = vpop.f32.mrf.mxu1  ;;  %v6881_v58 = vld [vmem:[%s10409_s1 + $0xc34] sm:$0xf0]  ;;  %v6132_v63 = vld [vmem:[%s10409_s1 + $0xe28] sm:$0xf]  ;;  %v6515_v35 = vld [vmem:[%s10409_s1 + $0xcc] sm:$0xf] }
 0x174   :  { %3740 = vmatpush.bf16.msrb.mxu2 %v6213_v44  ;;  %3753 = vmatpush.bf16.msrb.mxu3 %v6341_v54  ;;  %v3488_v38 = vpop.f32.mrf.mxu2  ;;  %v3501_v43 = vpop.f32.mrf.mxu3  ;;  %v6276_v44 = vld [vmem:[%s10409_s1 + $0xf48] sm:$0xf]  ;;  %v6913_v62 = vld [vmem:[%s10409_s1 + $0xd34] sm:$0xf0]  ;;  %v5877_v6 = vor.u32 %v6881_v58, %v5876_v57  ;;  %v4422_v36 = vld [vmem:[%s10409_s1 + $0xd8] sm:$0xf0] }
 0x175   :  { %v3489_v42 = vadd.f32 %v3488_v38, %v3476_v22  ;;  %v6277_v61 = vor.u32 %v6981_v46, %v6276_v44  ;;  %v5860_v7 = vld [vmem:[%s10409_s1 + $0xc08] sm:$0xf]  ;;  %v6877_v8 = vld [vmem:[%s10409_s1 + $0xc14] sm:$0xf0]  ;;  %v6583_v22 = vld [vmem:[%s10409_s1 + $0x2ec] sm:$0xf]  ;;  %v4825_v38 = vor.u32 %v6615_v25, %v4822_v26  ;;  %v4425_v44 = vor.u32 %v6515_v35, %v4422_v36 }
 0x176   :  { %v5988_v11 = vld [vmem:[%s10409_s1 + $0xd08] sm:$0xf]  ;;  %v6909_v12 = vld [vmem:[%s10409_s1 + $0xd14] sm:$0xf0]  ;;  %v5861_v51 = vor.u32 %v6877_v8, %v5860_v7  ;;  %v4697_v33 = vor.u32 %v6583_v22, %v4694_v23  ;;  %v4550_v39 = vld [vmem:[%s10409_s1 + $0x1d8] sm:$0xf0] }
 0x177   :  { %3715 = vmatpush.bf16.msrb.mxu0 %v5941_v3  ;;  %3728 = vmatpush.bf16.msrb.mxu1 %v6069_v4  ;;  %v9441_v54 = vadd.f32 %v3501_v43, %v3489_v42  ;;  %v6945_v3 = vld [vmem:[%s10409_s1 + $0xe34] sm:$0xf0]  ;;  %v6260_v4 = vld [vmem:[%s10409_s1 + $0xf28] sm:$0xf]  ;;  %v5989_v47 = vor.u32 %v6909_v12, %v5988_v11  ;;  %v6579_v40 = vld [vmem:[%s10409_s1 + $0x2cc] sm:$0xf] }
 0x178   :  { %3741 = vmatpush.bf16.msrb.mxu2 %v6197_v5  ;;  %3754 = vmatpush.bf16.msrb.mxu3 %v6325_v9  ;;  %v6977_v5 = vld [vmem:[%s10409_s1 + $0xf34] sm:$0xf0]  ;;  %v6005_v9 = vor.u32 %v6913_v62, %v6004_v59  ;;  %v6133_v10 = vor.u32 %v6945_v3, %v6132_v63  ;;  %v6116_v13 = vld [vmem:[%s10409_s1 + $0xe08] sm:$0xf]  ;;  %v4678_v41 = vld [vmem:[%s10409_s1 + $0x2d8] sm:$0xf0] }
 0x179   :  { %v6261_v14 = vor.u32 %v6977_v5, %v6260_v4  ;;  %v6941_v15 = vld [vmem:[%s10409_s1 + $0xe14] sm:$0xf0]  ;;  %v6244_v16 = vld [vmem:[%s10409_s1 + $0xf08] sm:$0xf]  ;;  %v6611_v42 = vld [vmem:[%s10409_s1 + $0x3cc] sm:$0xf]  ;;  %v4681_v49 = vor.u32 %v6579_v40, %v4678_v41 }
 0x17a   :  { %v6117_v24 = vor.u32 %v6941_v15, %v6116_v13  ;;  %v4806_v43 = vld [vmem:[%s10409_s1 + $0x3d8] sm:$0xf0]  ;;  %v6575_v59 = vld [vmem:[%s10409_s1 + $0x2ac] sm:$0xf] }
 0x17b   :  { %3716 = vmatpush.bf16.msrb.mxu0 %v5925_v17  ;;  %3729 = vmatpush.bf16.msrb.mxu1 %v6053_v19  ;;  %v6973_v17 = vld [vmem:[%s10409_s1 + $0xf14] sm:$0xf0]  ;;  %v6519_v19 = vld [vmem:[%s10409_s1 + $0xec] sm:$0xf]  ;;  %v4406_v53 = vld [vmem:[%s10409_s1 + $0xb8] sm:$0xf0]  ;;  %v4809_v57 = vor.u32 %v6611_v42, %v4806_v43 }
 0x17c   :  { %3742 = vmatpush.bf16.msrb.mxu2 %v6181_v20  ;;  %3755 = vmatpush.bf16.msrb.mxu3 %v6309_v45  ;;  %v3490_v18 = vpop.f32.mrf.mxu2  ;;  %v4438_v20 = vld [vmem:[%s10409_s1 + $0xf8] sm:$0xf0]  ;;  %v3503_v48 = vpop.f32.mrf.mxu3  ;;  %v7051_v63 = vld [vmem:[#allocation1 + $0x2d] sm:$0xff] }
 0x17d   :  { %v4566_v45 = vld [vmem:[%s10409_s1 + $0x1f8] sm:$0xf0]  ;;  %v6607_v3 = vld [vmem:[%s10409_s1 + $0x3ac] sm:$0xf] }
 0x17e   :  { %v4534_v58 = vld [vmem:[%s10409_s1 + $0x1b8] sm:$0xf0]  ;;  %v6539_v11 = vld [vmem:[%s10409_s1 + $0x18c] sm:$0xf] }
 0x17f   :  { %3717 = vmatpush.bf16.msrb.mxu0 %v5909_v30  ;;  %3730 = vmatpush.bf16.msrb.mxu1 %v6037_v31  ;;  %v6245_v30 = vor.u32 %v6973_v17, %v6244_v16  ;;  %v4441_v31 = vor.u32 %v6519_v19, %v4438_v20  ;;  %v7050_v62 = vld [vmem:[#allocation1 + $0x36] sm:$0xff]  ;;  %v7052_v5 = vld [vmem:[#allocation1 + $0x3f] sm:$0xff]  ;;  %v6603_v17 = vld [vmem:[%s10409_s1 + $0x38c] sm:$0xf] }
 0x180   :  { %3743 = vmatpush.bf16.msrb.mxu2 %v6165_v32  ;;  %3756 = vmatpush.bf16.msrb.mxu3 %v6293_v37  ;;  %v4569_v32 = vor.u32 %v6551_v21, %v4566_v45  ;;  %v6547_v37 = vld [vmem:[%s10409_s1 + $0x1cc] sm:$0xf]  ;;  %v4790_v4 = vld [vmem:[%s10409_s1 + $0x3b8] sm:$0xf0] }
 0x181   :  { %v4553_v46 = vor.u32 %v6547_v37, %v4550_v39  ;;  %v4793_v12 = vor.u32 %v6607_v3, %v4790_v4  ;;  %v4518_v13 = vld [vmem:[%s10409_s1 + $0x198] sm:$0xf0]  ;;  %v6503_v45 = vld [vmem:[%s10409_s1 + $0x6c] sm:$0xf] }
 0x182   :  { %v4646_v15 = vld [vmem:[%s10409_s1 + $0x298] sm:$0xf0]  ;;  %v4521_v48 = vor.u32 %v6539_v11, %v4518_v13  ;;  %v6535_v23 = vld [vmem:[%s10409_s1 + $0x16c] sm:$0xf] }
 0x183   :  { %3718 = vmatpush.bf16.msrb.mxu0 %v5893_v50  ;;  %3731 = vmatpush.bf16.msrb.mxu1 %v6021_v55  ;;  %v6511_v50 = vld [vmem:[%s10409_s1 + $0xac] sm:$0xf]  ;;  %v4774_v18 = vld [vmem:[%s10409_s1 + $0x398] sm:$0xf0] }
 0x184   :  { %3744 = vmatpush.bf16.msrb.mxu2 %v6149_v56  ;;  %3757 = vmatpush.bf16.msrb.mxu3 %v6277_v61  ;;  %v6543_v55 = vld [vmem:[%s10409_s1 + $0x1ac] sm:$0xf]  ;;  %v7049_v56 = vld [vmem:[#allocation1 + $0x24] sm:$0xff]  ;;  %v4662_v61 = vld [vmem:[%s10409_s1 + $0x2b8] sm:$0xf0] }
 0x185   :  { %v4537_v7 = vor.u32 %v6543_v55, %v4534_v58  ;;  %v4665_v8 = vor.u32 %v6575_v59, %v4662_v61  ;;  %v4374_v22 = vld [vmem:[%s10409_s1 + $0x78] sm:$0xf0]  ;;  %v6567_v25 = vld [vmem:[%s10409_s1 + $0x26c] sm:$0xf] }
 0x186   :  { %v4630_v26 = vld [vmem:[%s10409_s1 + $0x278] sm:$0xf0]  ;;  %v6499_v36 = vld [vmem:[%s10409_s1 + $0x4c] sm:$0xf] }
 0x187   :  { %3719 = vmatpush.bf16.msrb.mxu0 %v5877_v6  ;;  %3732 = vmatpush.bf16.msrb.mxu1 %v6005_v9  ;;  %v4409_v6 = vor.u32 %v6511_v50, %v4406_v53  ;;  %v6507_v9 = vld [vmem:[%s10409_s1 + $0x8c] sm:$0xf]  ;;  %v4633_v35 = vor.u32 %v6567_v25, %v4630_v26  ;;  %v4358_v37 = vld [vmem:[%s10409_s1 + $0x58] sm:$0xf0] }
 0x188   :  { %3745 = vmatpush.bf16.msrb.mxu2 %v6133_v10  ;;  %3758 = vmatpush.bf16.msrb.mxu3 %v6261_v14  ;;  %v4390_v10 = vld [vmem:[%s10409_s1 + $0x98] sm:$0xf0]  ;;  %v6571_v14 = vld [vmem:[%s10409_s1 + $0x28c] sm:$0xf]  ;;  %v4361_v55 = vor.u32 %v6499_v36, %v4358_v37 }
 0x189   :  { %v4393_v20 = vor.u32 %v6507_v9, %v4390_v10  ;;  %v4486_v41 = vld [vmem:[%s10409_s1 + $0x158] sm:$0xf0]  ;;  %v6563_v42 = vld [vmem:[%s10409_s1 + $0x24c] sm:$0xf] }
 0x18a   :  { %v4614_v43 = vld [vmem:[%s10409_s1 + $0x258] sm:$0xf0]  ;;  %v6495_v61 = vld [vmem:[%s10409_s1 + $0x2c] sm:$0xf] }
 0x18b   :  { %3720 = vmatpush.bf16.msrb.mxu0 %v5861_v51  ;;  %3733 = vmatpush.bf16.msrb.mxu1 %v5989_v47  ;;  %v3514_v16 = vpop.f32.mrf.mxu0  ;;  %v3527_v21 = vpop.f32.mrf.mxu1  ;;  %v4649_v51 = vor.u32 %v6571_v14, %v4646_v15  ;;  %v4742_v50 = vld [vmem:[%s10409_s1 + $0x358] sm:$0xf0]  ;;  %v4617_v59 = vor.u32 %v6563_v42, %v4614_v43  ;;  %v6491_v10 = vld [vmem:[%s10409_s1 + $0xc] sm:$0xf] }
 0x18c   :  { %3746 = vmatpush.bf16.msrb.mxu2 %v6117_v24  ;;  %3759 = vmatpush.bf16.msrb.mxu3 %v6245_v30  ;;  %v3515_v19 = vadd.f32 %v3514_v16, %v9441_v54  ;;  %v4777_v54 = vor.u32 %v6603_v17, %v4774_v18  ;;  %v4502_v24 = vld [vmem:[%s10409_s1 + $0x178] sm:$0xf0]  ;;  %v6599_v30 = vld [vmem:[%s10409_s1 + $0x36c] sm:$0xf] }
 0x18d   :  { %v4470_v4 = vld [vmem:[%s10409_s1 + $0x138] sm:$0xf0]  ;;  %v6523_v14 = vld [vmem:[%s10409_s1 + $0x10c] sm:$0xf] }
 0x18e   :  { %3721 = vmatmul.bf16.vlgmr.msrb.gmra.mxu0 %v7049_v56  ;;  %3734 = vmatmul.bf16.vlgmr.msrb.gmra.mxu1 %v7051_v63  ;;  %v3528_v47 = vadd.f32 %v3527_v21, %v3515_v19  ;;  %v6527_v63 = vld [vmem:[%s10409_s1 + $0x12c] sm:$0xf]  ;;  %v4326_v11 = vld [vmem:[%s10409_s1 + $0x18] sm:$0xf0] }
 0x18f   :  { %3765 = vmatpush.bf16.msra.mxu0 %v4441_v31  ;;  %3778 = vmatpush.bf16.msra.mxu1 %v4569_v32  ;;  %v4758_v31 = vld [vmem:[%s10409_s1 + $0x378] sm:$0xf0]  ;;  %v4377_v32 = vor.u32 %v6503_v45, %v4374_v22  ;;  %v6555_v16 = vld [vmem:[%s10409_s1 + $0x20c] sm:$0xf] }
 0x190   :  { %3791 = vmatpush.bf16.msra.mxu2 %v4697_v33  ;;  %3804 = vmatpush.bf16.msra.mxu3 %v4825_v38  ;;  %v4505_v33 = vor.u32 %v6535_v23, %v4502_v24  ;;  %v6531_v38 = vld [vmem:[%s10409_s1 + $0x14c] sm:$0xf]  ;;  %v4761_v39 = vor.u32 %v6599_v30, %v4758_v31  ;;  %v4454_v15 = vld [vmem:[%s10409_s1 + $0x118] sm:$0xf0]  ;;  %v4329_v23 = vor.u32 %v6491_v10, %v4326_v11 }
 0x191   :  { %3747 = vmatmul.bf16.vlgmr.msrb.gmra.mxu2 %v7050_v62  ;;  %3760 = vmatmul.bf16.vlgmr.msrb.gmra.mxu3 %v7052_v5  ;;  %v4489_v58 = vor.u32 %v6531_v38, %v4486_v41  ;;  %v4342_v62 = vld [vmem:[%s10409_s1 + $0x38] sm:$0xf0]  ;;  %v6559_v5 = vld [vmem:[%s10409_s1 + $0x22c] sm:$0xf]  ;;  %v4457_v25 = vor.u32 %v6523_v14, %v4454_v15 }
 0x192   :  { %v4345_v9 = vor.u32 %v6495_v61, %v4342_v62  ;;  %v4582_v18 = vld [vmem:[%s10409_s1 + $0x218] sm:$0xf0]  ;;  %v6587_v19 = vld [vmem:[%s10409_s1 + $0x30c] sm:$0xf] }
 0x193   :  { %3766 = vmatpush.bf16.msra.mxu0 %v4425_v44  ;;  %3779 = vmatpush.bf16.msra.mxu1 %v4553_v46  ;;  %v3516_v53 = vpop.f32.mrf.mxu0  ;;  %v3529_v56 = vpop.f32.mrf.mxu1  ;;  %v6679_v45 = vld [vmem:[%s10409_s1 + $0x5ec] sm:$0xf]  ;;  %v5206_v24 = vld [vmem:[%s10409_s1 + $0x6f8] sm:$0xf0]  ;;  %v4585_v26 = vor.u32 %v6555_v16, %v4582_v18 }
 0x194   :  { %3792 = vmatpush.bf16.msra.mxu2 %v4681_v49  ;;  %3805 = vmatpush.bf16.msra.mxu3 %v4809_v57  ;;  %v3540_v40 = vpop.f32.mrf.mxu2  ;;  %v3553_v46 = vpop.f32.mrf.mxu3  ;;  %v6595_v49 = vld [vmem:[%s10409_s1 + $0x34c] sm:$0xf]  ;;  %v5334_v31 = vld [vmem:[%s10409_s1 + $0x7f8] sm:$0xf0] }
 0x195   :  { %v3541_v44 = vadd.f32 %v3540_v40, %v3528_v47  ;;  %v4745_v3 = vor.u32 %v6595_v49, %v4742_v50  ;;  %v6711_v47 = vld [vmem:[%s10409_s1 + $0x6ec] sm:$0xf]  ;;  %v4934_v38 = vld [vmem:[%s10409_s1 + $0x4d8] sm:$0xf0] }
 0x196   :  { %v6743_v30 = vld [vmem:[%s10409_s1 + $0x7ec] sm:$0xf]  ;;  %v5209_v36 = vor.u32 %v6711_v47, %v5206_v24  ;;  %v5062_v41 = vld [vmem:[%s10409_s1 + $0x5d8] sm:$0xf0] }
 0x197   :  { %3767 = vmatpush.bf16.msra.mxu0 %v4409_v6  ;;  %3780 = vmatpush.bf16.msra.mxu1 %v4537_v7  ;;  %v9636_v57 = vadd.f32 %v3553_v46, %v3541_v44  ;;  %v4598_v6 = vld [vmem:[%s10409_s1 + $0x238] sm:$0xf0]  ;;  %v6591_v7 = vld [vmem:[%s10409_s1 + $0x32c] sm:$0xf]  ;;  %v5337_v40 = vor.u32 %v6743_v30, %v5334_v31 }
 0x198   :  { %3793 = vmatpush.bf16.msra.mxu2 %v4665_v8  ;;  %3806 = vmatpush.bf16.msra.mxu3 %v4793_v12  ;;  %v4726_v8 = vld [vmem:[%s10409_s1 + $0x338] sm:$0xf0]  ;;  %v4473_v12 = vor.u32 %v6527_v63, %v4470_v4  ;;  %v4601_v13 = vor.u32 %v6559_v5, %v4598_v6  ;;  %v6643_v37 = vld [vmem:[%s10409_s1 + $0x4cc] sm:$0xf] }
 0x199   :  { %v4729_v17 = vor.u32 %v6591_v7, %v4726_v8  ;;  %v6707_v42 = vld [vmem:[%s10409_s1 + $0x6cc] sm:$0xf]  ;;  %v5190_v43 = vld [vmem:[%s10409_s1 + $0x6d8] sm:$0xf0]  ;;  %v4937_v49 = vor.u32 %v6643_v37, %v4934_v38 }
 0x19a   :  { %v6739_v44 = vld [vmem:[%s10409_s1 + $0x7cc] sm:$0xf]  ;;  %v5318_v46 = vld [vmem:[%s10409_s1 + $0x7d8] sm:$0xf0]  ;;  %v5193_v53 = vor.u32 %v6707_v42, %v5190_v43 }
 0x19b   :  { %3768 = vmatpush.bf16.msra.mxu0 %v4393_v20  ;;  %3781 = vmatpush.bf16.msra.mxu1 %v4521_v48  ;;  %v4710_v20 = vld [vmem:[%s10409_s1 + $0x318] sm:$0xf0]  ;;  %v6647_v48 = vld [vmem:[%s10409_s1 + $0x4ec] sm:$0xf] }
 0x19c   :  { %3794 = vmatpush.bf16.msra.mxu2 %v4649_v51  ;;  %3807 = vmatpush.bf16.msra.mxu3 %v4777_v54  ;;  %v3542_v21 = vpop.f32.mrf.mxu2  ;;  %v4950_v51 = vld [vmem:[%s10409_s1 + $0x4f8] sm:$0xf0]  ;;  %v3555_v22 = vpop.f32.mrf.mxu3  ;;  %v6703_v62 = vld [vmem:[%s10409_s1 + $0x6ac] sm:$0xf] }
 0x19d   :  { %v5078_v54 = vld [vmem:[%s10409_s1 + $0x5f8] sm:$0xf0]  ;;  %v6635_v6 = vld [vmem:[%s10409_s1 + $0x48c] sm:$0xf] }
 0x19e   :  { %v4918_v56 = vld [vmem:[%s10409_s1 + $0x4b8] sm:$0xf0]  ;;  %v6699_v11 = vld [vmem:[%s10409_s1 + $0x68c] sm:$0xf] }
 0x19f   :  { %3769 = vmatpush.bf16.msra.mxu0 %v4377_v32  ;;  %3782 = vmatpush.bf16.msra.mxu1 %v4505_v33  ;;  %v4713_v32 = vor.u32 %v6587_v19, %v4710_v20  ;;  %v4953_v33 = vor.u32 %v6647_v48, %v4950_v51  ;;  %v5046_v61 = vld [vmem:[%s10409_s1 + $0x5b8] sm:$0xf0]  ;;  %v6631_v19 = vld [vmem:[%s10409_s1 + $0x46c] sm:$0xf] }
 0x1a0   :  { %3795 = vmatpush.bf16.msra.mxu2 %v4633_v35  ;;  %3808 = vmatpush.bf16.msra.mxu3 %v4761_v39  ;;  %v5081_v35 = vor.u32 %v6679_v45, %v5078_v54  ;;  %v6675_v39 = vld [vmem:[%s10409_s1 + $0x5cc] sm:$0xf]  ;;  %v5174_v63 = vld [vmem:[%s10409_s1 + $0x6b8] sm:$0xf0] }
 0x1a1   :  { %v5065_v50 = vor.u32 %v6675_v39, %v5062_v41  ;;  %v5302_v4 = vld [vmem:[%s10409_s1 + $0x7b8] sm:$0xf0]  ;;  %v5177_v7 = vor.u32 %v6703_v62, %v5174_v63  ;;  %v6663_v21 = vld [vmem:[%s10409_s1 + $0x56c] sm:$0xf] }
 0x1a2   :  { %v4902_v8 = vld [vmem:[%s10409_s1 + $0x498] sm:$0xf0]  ;;  %v6727_v47 = vld [vmem:[%s10409_s1 + $0x76c] sm:$0xf] }
 0x1a3   :  { %3770 = vmatpush.bf16.msra.mxu0 %v4361_v55  ;;  %3783 = vmatpush.bf16.msra.mxu1 %v4489_v58  ;;  %v6639_v55 = vld [vmem:[%s10409_s1 + $0x4ac] sm:$0xf]  ;;  %v5030_v10 = vld [vmem:[%s10409_s1 + $0x598] sm:$0xf0]  ;;  %v4905_v15 = vor.u32 %v6635_v6, %v4902_v8 }
 0x1a4   :  { %3796 = vmatpush.bf16.msra.mxu2 %v4617_v59  ;;  %3809 = vmatpush.bf16.msra.mxu3 %v4745_v3  ;;  %v6671_v58 = vld [vmem:[%s10409_s1 + $0x5ac] sm:$0xf]  ;;  %v5321_v59 = vor.u32 %v6739_v44, %v5318_v46  ;;  %v4921_v5 = vor.u32 %v6639_v55, %v4918_v56  ;;  %v5286_v14 = vld [vmem:[%s10409_s1 + $0x798] sm:$0xf0] }
 0x1a5   :  { %v6735_v3 = vld [vmem:[%s10409_s1 + $0x7ac] sm:$0xf]  ;;  %v4886_v20 = vld [vmem:[%s10409_s1 + $0x478] sm:$0xf0] }
 0x1a6   :  { %v5014_v22 = vld [vmem:[%s10409_s1 + $0x578] sm:$0xf0]  ;;  %v6691_v39 = vld [vmem:[%s10409_s1 + $0x64c] sm:$0xf] }
 0x1a7   :  { %3771 = vmatpush.bf16.msra.mxu0 %v4345_v9  ;;  %3784 = vmatpush.bf16.msra.mxu1 %v4473_v12  ;;  %v5158_v12 = vld [vmem:[%s10409_s1 + $0x698] sm:$0xf0]  ;;  %v5017_v30 = vor.u32 %v6663_v21, %v5014_v22  ;;  %v6723_v43 = vld [vmem:[%s10409_s1 + $0x74c] sm:$0xf] }
 0x1a8   :  { %3797 = vmatpush.bf16.msra.mxu2 %v4601_v13  ;;  %3810 = vmatpush.bf16.msra.mxu3 %v4729_v17  ;;  %v6731_v13 = vld [vmem:[%s10409_s1 + $0x78c] sm:$0xf]  ;;  %v5161_v18 = vor.u32 %v6699_v11, %v5158_v12  ;;  %v5142_v54 = vld [vmem:[%s10409_s1 + $0x678] sm:$0xf0] }
 0x1a9   :  { %v5289_v45 = vor.u32 %v6731_v13, %v5286_v14  ;;  %v5270_v24 = vld [vmem:[%s10409_s1 + $0x778] sm:$0xf0]  ;;  %v6623_v56 = vld [vmem:[%s10409_s1 + $0x42c] sm:$0xf] }
 0x1aa   :  { %v5273_v37 = vor.u32 %v6727_v47, %v5270_v24  ;;  %v4998_v38 = vld [vmem:[%s10409_s1 + $0x558] sm:$0xf0]  ;;  %v6683_v11 = vld [vmem:[%s10409_s1 + $0x60c] sm:$0xf] }
 0x1ab   :  { %3772 = vmatpush.bf16.msra.mxu0 %v4329_v23  ;;  %3785 = vmatpush.bf16.msra.mxu1 %v4457_v25  ;;  %v3566_v16 = vpop.f32.mrf.mxu0  ;;  %v3579_v51 = vpop.f32.mrf.mxu1  ;;  %v6695_v23 = vld [vmem:[%s10409_s1 + $0x66c] sm:$0xf]  ;;  %v5254_v44 = vld [vmem:[%s10409_s1 + $0x758] sm:$0xf0] }
 0x1ac   :  { %3798 = vmatpush.bf16.msra.mxu2 %v4585_v26  ;;  %3811 = vmatpush.bf16.msra.mxu3 %v4713_v32  ;;  %v4889_v26 = vor.u32 %v6631_v19, %v4886_v20  ;;  %v5145_v31 = vor.u32 %v6695_v23, %v5142_v54  ;;  %v6627_v32 = vld [vmem:[%s10409_s1 + $0x44c] sm:$0xf]  ;;  %v5257_v62 = vor.u32 %v6723_v43, %v5254_v44  ;;  %v4982_v63 = vld [vmem:[%s10409_s1 + $0x538] sm:$0xf0] }
 0x1ad   :  { %v5238_v6 = vld [vmem:[%s10409_s1 + $0x738] sm:$0xf0]  ;;  %v6807_v20 = vld [vmem:[%s10409_s1 + $0x9ec] sm:$0xf] }
 0x1ae   :  { %3773 = vmatmul.bf16.vlgmr.msra.gmra.mxu0 %v7439_v28  ;;  %3786 = vmatmul.bf16.vlgmr.msra.gmra.mxu1 %v7449_v34  ;;  %v6667_v28 = vld [vmem:[%s10409_s1 + $0x58c] sm:$0xf]  ;;  %v5305_v34 = vor.u32 %v6735_v3, %v5302_v4  ;;  %v5110_v4 = vld [vmem:[%s10409_s1 + $0x638] sm:$0xf0] }
 0x1af   :  { %3817 = vmatpush.bf16.msrb.mxu0 %v4953_v33  ;;  %3830 = vmatpush.bf16.msrb.mxu1 %v5081_v35  ;;  %v5033_v17 = vor.u32 %v6667_v28, %v5030_v10  ;;  %v4870_v33 = vld [vmem:[%s10409_s1 + $0x458] sm:$0xf0]  ;;  %v6659_v35 = vld [vmem:[%s10409_s1 + $0x54c] sm:$0xf] }
 0x1b0   :  { %3843 = vmatpush.bf16.msrb.mxu2 %v5209_v36  ;;  %3856 = vmatpush.bf16.msrb.mxu3 %v5337_v40  ;;  %v5126_v40 = vld [vmem:[%s10409_s1 + $0x658] sm:$0xf0]  ;;  %v4873_v46 = vor.u32 %v6627_v32, %v4870_v33  ;;  %v6687_v3 = vld [vmem:[%s10409_s1 + $0x62c] sm:$0xf] }
 0x1b1   :  { %3799 = vmatmul.bf16.vlgmr.msra.gmra.mxu2 %v7437_v27  ;;  %3812 = vmatmul.bf16.vlgmr.msra.gmra.mxu3 %v7441_v29  ;;  %v5049_v27 = vor.u32 %v6671_v58, %v5046_v61  ;;  %v9774_v29 = vld [vmem:[%s10410_s2] sm:$0xf]  ;;  %v5129_v55 = vor.u32 %v6691_v39, %v5126_v40  ;;  %v4854_v58 = vld [vmem:[%s10409_s1 + $0x438] sm:$0xf0]  ;;  %v6871_v54 = vld [vmem:[%s10409_s1 + $0xbec] sm:$0xf] }
 0x1b2   :  { %v539_v9 = vperm.slane %v9774_v29, 2  ;;  %v4838_v8 = vld [vmem:[%s10409_s1 + $0x418] sm:$0xf0]  ;;  %v6803_v33 = vld [vmem:[%s10409_s1 + $0x9cc] sm:$0xf] }
 0x1b3   :  { %3818 = vmatpush.bf16.msrb.mxu0 %v4937_v49  ;;  %3831 = vmatpush.bf16.msrb.mxu1 %v5065_v50  ;;  %v3568_v50 = vpop.f32.mrf.mxu0  ;;  %v3581_v61 = vpop.f32.mrf.mxu1  ;;  %v4966_v10 = vld [vmem:[%s10409_s1 + $0x518] sm:$0xf0]  ;;  %v6867_v39 = vld [vmem:[%s10409_s1 + $0xbcc] sm:$0xf] }
 0x1b4   :  { %3844 = vmatpush.bf16.msrb.mxu2 %v5193_v53  ;;  %3857 = vmatpush.bf16.msrb.mxu3 %v5321_v59  ;;  %v3567_v48 = vadd.f32 %v3566_v16, %v539_v9  ;;  %v3592_v36 = vpop.f32.mrf.mxu2  ;;  %v3605_v42 = vpop.f32.mrf.mxu3  ;;  %v5001_v53 = vor.u32 %v6659_v35, %v4998_v38  ;;  %v6655_v59 = vld [vmem:[%s10409_s1 + $0x52c] sm:$0xf]  ;;  %v5113_v9 = vor.u32 %v6687_v3, %v5110_v4  ;;  %v5094_v14 = vld [vmem:[%s10409_s1 + $0x618] sm:$0xf0] }
 0x1b5   :  { %v4985_v28 = vor.u32 %v6655_v59, %v4982_v63  ;;  %v5222_v16 = vld [vmem:[%s10409_s1 + $0x718] sm:$0xf0]  ;;  %v5097_v23 = vor.u32 %v6683_v11, %v5094_v14  ;;  %v6767_v44 = vld [vmem:[%s10409_s1 + $0x8ac] sm:$0xf] }
 0x1b6   :  { %v3580_v25 = vadd.f32 %v3579_v51, %v3567_v48  ;;  %v5462_v19 = vld [vmem:[%s10409_s1 + $0x8f8] sm:$0xf0]  ;;  %v6839_v51 = vld [vmem:[%s10409_s1 + $0xaec] sm:$0xf] }
 0x1b7   :  { %3819 = vmatpush.bf16.msrb.mxu0 %v4921_v5  ;;  %3832 = vmatpush.bf16.msrb.mxu1 %v5049_v27  ;;  %v6719_v5 = vld [vmem:[%s10409_s1 + $0x72c] sm:$0xf]  ;;  %v4857_v27 = vor.u32 %v6623_v56, %v4854_v58  ;;  %v5590_v48 = vld [vmem:[%s10409_s1 + $0x9f8] sm:$0xf0] }
 0x1b8   :  { %3845 = vmatpush.bf16.msrb.mxu2 %v5177_v7  ;;  %3858 = vmatpush.bf16.msrb.mxu3 %v5305_v34  ;;  %v3593_v41 = vadd.f32 %v3592_v36, %v3580_v25  ;;  %v6619_v7 = vld [vmem:[%s10409_s1 + $0x40c] sm:$0xf]  ;;  %v5241_v13 = vor.u32 %v6719_v5, %v5238_v6  ;;  %v5846_v47 = vld [vmem:[%s10409_s1 + $0xbf8] sm:$0xf0] }
 0x1b9   :  { %v6651_v34 = vld [vmem:[%s10409_s1 + $0x50c] sm:$0xf]  ;;  %v4841_v21 = vor.u32 %v6619_v7, %v4838_v8  ;;  %v5446_v32 = vld [vmem:[%s10409_s1 + $0x8d8] sm:$0xf0]  ;;  %v5849_v35 = vor.u32 %v6871_v54, %v5846_v47 }
 0x1ba   :  { %v9840_v49 = vadd.f32 %v3605_v42, %v3593_v41  ;;  %v4969_v22 = vor.u32 %v6651_v34, %v4966_v10  ;;  %v5574_v36 = vld [vmem:[%s10409_s1 + $0x9d8] sm:$0xf0]  ;;  %v6799_v50 = vld [vmem:[%s10409_s1 + $0x9ac] sm:$0xf] }
 0x1bb   :  { %3820 = vmatpush.bf16.msrb.mxu0 %v4905_v15  ;;  %3833 = vmatpush.bf16.msrb.mxu1 %v5033_v17  ;;  %v6715_v15 = vld [vmem:[%s10409_s1 + $0x70c] sm:$0xf]  ;;  %v5702_v38 = vld [vmem:[%s10409_s1 + $0xad8] sm:$0xf0]  ;;  %v5577_v42 = vor.u32 %v6803_v33, %v5574_v36 }
 0x1bc   :  { %3846 = vmatpush.bf16.msrb.mxu2 %v5161_v18  ;;  %3859 = vmatpush.bf16.msrb.mxu3 %v5289_v45  ;;  %v3594_v12 = vpop.f32.mrf.mxu2  ;;  %v3607_v17 = vpop.f32.mrf.mxu3  ;;  %v6775_v18 = vld [vmem:[%s10409_s1 + $0x8ec] sm:$0xf]  ;;  %v5718_v45 = vld [vmem:[%s10409_s1 + $0xaf8] sm:$0xf0]  ;;  %v5225_v24 = vor.u32 %v6715_v15, %v5222_v16 }
 0x1bd   :  { %v5465_v25 = vor.u32 %v6775_v18, %v5462_v19  ;;  %v5830_v40 = vld [vmem:[%s10409_s1 + $0xbd8] sm:$0xf0]  ;;  %v6831_v56 = vld [vmem:[%s10409_s1 + $0xaac] sm:$0xf] }
 0x1be   :  { %v5686_v58 = vld [vmem:[%s10409_s1 + $0xab8] sm:$0xf0]  ;;  %v6863_v59 = vld [vmem:[%s10409_s1 + $0xbac] sm:$0xf] }
 0x1bf   :  { %3821 = vmatpush.bf16.msrb.mxu0 %v4889_v26  ;;  %3834 = vmatpush.bf16.msrb.mxu1 %v5017_v30  ;;  %v5593_v26 = vor.u32 %v6807_v20, %v5590_v48  ;;  %v5721_v30 = vor.u32 %v6839_v51, %v5718_v45  ;;  %v5689_v63 = vor.u32 %v6831_v56, %v5686_v58  ;;  %v6763_v3 = vld [vmem:[%s10409_s1 + $0x88c] sm:$0xf]  ;;  %v5414_v4 = vld [vmem:[%s10409_s1 + $0x898] sm:$0xf0] }
 0x1c0   :  { %3847 = vmatpush.bf16.msrb.mxu2 %v5145_v31  ;;  %3860 = vmatpush.bf16.msrb.mxu3 %v5273_v37  ;;  %v6771_v31 = vld [vmem:[%s10409_s1 + $0x8cc] sm:$0xf]  ;;  %v5670_v6 = vld [vmem:[%s10409_s1 + $0xa98] sm:$0xf0]  ;;  %v5417_v8 = vor.u32 %v6763_v3, %v5414_v4 }
 0x1c1   :  { %v6835_v37 = vld [vmem:[%s10409_s1 + $0xacc] sm:$0xf]  ;;  %v5449_v41 = vor.u32 %v6771_v31, %v5446_v32  ;;  %v5798_v7 = vld [vmem:[%s10409_s1 + $0xb98] sm:$0xf0] }
 0x1c2   :  { %v5705_v43 = vor.u32 %v6835_v37, %v5702_v38  ;;  %v6827_v5 = vld [vmem:[%s10409_s1 + $0xa8c] sm:$0xf]  ;;  %v5398_v11 = vld [vmem:[%s10409_s1 + $0x878] sm:$0xf0] }
 0x1c3   :  { %3822 = vmatpush.bf16.msrb.mxu0 %v4873_v46  ;;  %3835 = vmatpush.bf16.msrb.mxu1 %v5001_v53  ;;  %v5430_v46 = vld [vmem:[%s10409_s1 + $0x8b8] sm:$0xf0]  ;;  %v5833_v53 = vor.u32 %v6867_v39, %v5830_v40  ;;  %v5673_v34 = vor.u32 %v6827_v5, %v5670_v6  ;;  %v6759_v10 = vld [vmem:[%s10409_s1 + $0x86c] sm:$0xf] }
 0x1c4   :  { %3848 = vmatpush.bf16.msrb.mxu2 %v5129_v55  ;;  %3861 = vmatpush.bf16.msrb.mxu3 %v5257_v62  ;;  %v5558_v55 = vld [vmem:[%s10409_s1 + $0x9b8] sm:$0xf0]  ;;  %v5433_v61 = vor.u32 %v6767_v44, %v5430_v46  ;;  %v6791_v12 = vld [vmem:[%s10409_s1 + $0x96c] sm:$0xf]  ;;  %v5401_v20 = vor.u32 %v6759_v10, %v5398_v11 }
 0x1c5   :  { %v5561_v62 = vor.u32 %v6799_v50, %v5558_v55  ;;  %v5526_v15 = vld [vmem:[%s10409_s1 + $0x978] sm:$0xf0]  ;;  %v6823_v16 = vld [vmem:[%s10409_s1 + $0xa6c] sm:$0xf] }
 0x1c6   :  { %v5654_v17 = vld [vmem:[%s10409_s1 + $0xa78] sm:$0xf0]  ;;  %v6855_v18 = vld [vmem:[%s10409_s1 + $0xb6c] sm:$0xf] }
 0x1c7   :  { %3823 = vmatpush.bf16.msrb.mxu0 %v4857_v27  ;;  %3836 = vmatpush.bf16.msrb.mxu1 %v4985_v28  ;;  %v6859_v27 = vld [vmem:[%s10409_s1 + $0xb8c] sm:$0xf]  ;;  %v5782_v19 = vld [vmem:[%s10409_s1 + $0xb78] sm:$0xf0]  ;;  %v5657_v48 = vor.u32 %v6823_v16, %v5654_v17 }
 0x1c8   :  { %3849 = vmatpush.bf16.msrb.mxu2 %v5113_v9  ;;  %3862 = vmatpush.bf16.msrb.mxu3 %v5241_v13  ;;  %v5801_v14 = vor.u32 %v6859_v27, %v5798_v7  ;;  %v6755_v51 = vld [vmem:[%s10409_s1 + $0x84c] sm:$0xf]  ;;  %v5382_v45 = vld [vmem:[%s10409_s1 + $0x858] sm:$0xf0]  ;;  %v5785_v54 = vor.u32 %v6855_v18, %v5782_v19 }
 0x1c9   :  { %v5510_v47 = vld [vmem:[%s10409_s1 + $0x958] sm:$0xf0]  ;;  %v5385_v32 = vor.u32 %v6755_v51, %v5382_v45  ;;  %v6751_v37 = vld [vmem:[%s10409_s1 + $0x82c] sm:$0xf] }
 0x1ca   :  { %v5766_v31 = vld [vmem:[%s10409_s1 + $0xb58] sm:$0xf0]  ;;  %v6783_v39 = vld [vmem:[%s10409_s1 + $0x92c] sm:$0xf] }
 0x1cb   :  { %3824 = vmatpush.bf16.msrb.mxu0 %v4841_v21  ;;  %3837 = vmatpush.bf16.msrb.mxu1 %v4969_v22  ;;  %v9990_v28 = vpop.f32.mrf.mxu0  ;;  %v10001_v13 = vpop.f32.mrf.mxu1  ;;  %v5529_v21 = vor.u32 %v6791_v12, %v5526_v15  ;;  %v6787_v22 = vld [vmem:[%s10409_s1 + $0x94c] sm:$0xf]  ;;  %v5366_v38 = vld [vmem:[%s10409_s1 + $0x838] sm:$0xf0] }
 0x1cc   :  { %3850 = vmatpush.bf16.msrb.mxu2 %v5097_v23  ;;  %3863 = vmatpush.bf16.msrb.mxu3 %v5225_v24  ;;  %v6819_v24 = vld [vmem:[%s10409_s1 + $0xa4c] sm:$0xf]  ;;  %v5622_v44 = vld [vmem:[%s10409_s1 + $0xa38] sm:$0xf0] }
 0x1cd   :  { %v6847_v46 = vld [vmem:[%s10409_s1 + $0xb2c] sm:$0xf]  ;;  %v5750_v50 = vld [vmem:[%s10409_s1 + $0xb38] sm:$0xf0] }
 0x1ce   :  { %3825 = vmatmul.bf16.vlgmr.msrb.gmra.mxu0 %v7517_v0  ;;  %3838 = vmatmul.bf16.vlgmr.msrb.gmra.mxu1 %v7521_v2  ;;  %v6795_v0 = vld [vmem:[%s10409_s1 + $0x98c] sm:$0xf]  ;;  %v5542_v2 = vld [vmem:[%s10409_s1 + $0x998] sm:$0xf0]  ;;  %v5753_v3 = vor.u32 %v6847_v46, %v5750_v50 }
 0x1cf   :  { %3869 = vmatpush.bf16.msra.mxu0 %v5465_v25  ;;  %3882 = vmatpush.bf16.msra.mxu1 %v5593_v26  ;;  %v5545_v9 = vor.u32 %v6795_v0, %v5542_v2  ;;  %v5638_v25 = vld [vmem:[%s10409_s1 + $0xa58] sm:$0xf0]  ;;  %v6747_v55 = vld [vmem:[%s10409_s1 + $0x80c] sm:$0xf] }
 0x1d0   :  { %3895 = vmatpush.bf16.msra.mxu2 %v5721_v30  ;;  %3908 = vmatpush.bf16.msra.mxu3 %v5849_v35  ;;  %v6851_v30 = vld [vmem:[%s10409_s1 + $0xb4c] sm:$0xf]  ;;  %v5513_v35 = vor.u32 %v6787_v22, %v5510_v47  ;;  %v5641_v36 = vor.u32 %v6819_v24, %v5638_v25  ;;  %v5350_v56 = vld [vmem:[%s10409_s1 + $0x818] sm:$0xf0] }
 0x1d1   :  { %3851 = vmatmul.bf16.vlgmr.msrb.gmra.mxu2 %v7512_v60  ;;  %v5814_v60 = vld [vmem:[%s10409_s1 + $0xbb8] sm:$0xf0]  ;;  %3864 = vmatmul.bf16.vlgmr.msrb.gmra.mxu3 %v7519_v1  ;;  %v6843_v0 = vld [vmem:[%s10409_s1 + $0xb0c] sm:$0xf]  ;;  %v5353_v7 = vor.u32 %v6747_v55, %v5350_v56 }
 0x1d2   :  { %v5817_v1 = vor.u32 %v6863_v59, %v5814_v60  ;;  %v6779_v60 = vld [vmem:[%s10409_s1 + $0x90c] sm:$0xf]  ;;  %v5606_v4 = vld [vmem:[%s10409_s1 + $0xa18] sm:$0xf0] }
 0x1d3   :  { %3870 = vmatpush.bf16.msra.mxu0 %v5449_v41  ;;  %3883 = vmatpush.bf16.msra.mxu1 %v5577_v42  ;;  %v3620_v33 = vpop.f32.mrf.mxu0  ;;  %v3633_v40 = vpop.f32.mrf.mxu1  ;;  %v5769_v41 = vor.u32 %v6851_v30, %v5766_v31  ;;  %v5494_v42 = vld [vmem:[%s10409_s1 + $0x938] sm:$0xf0]  ;;  %v6903_v5 = vld [vmem:[%s10409_s1 + $0xcec] sm:$0xf] }
 0x1d4   :  { %3896 = vmatpush.bf16.msra.mxu2 %v5705_v43  ;;  %3909 = vmatpush.bf16.msra.mxu3 %v5833_v53  ;;  %v10027_v23 = vpop.f32.mrf.mxu2  ;;  %v10038_v26 = vpop.f32.mrf.mxu3  ;;  %v6815_v43 = vld [vmem:[%s10409_s1 + $0xa2c] sm:$0xf]  ;;  %v5369_v53 = vor.u32 %v6751_v37, %v5366_v38  ;;  %v5497_v58 = vor.u32 %v6783_v39, %v5494_v42  ;;  %v5974_v6 = vld [vmem:[%s10409_s1 + $0xcf8] sm:$0xf0]  ;;  %v7055_v40 = vld [vmem:[#allocation1 + $0x12] sm:$0xff] }
 0x1d5   :  { %v5625_v59 = vor.u32 %v6815_v43, %v5622_v44  ;;  %v6935_v27 = vld [vmem:[%s10409_s1 + $0xdec] sm:$0xf]  ;;  %v5977_v16 = vor.u32 %v6903_v5, %v5974_v6  ;;  %v6086_v51 = vld [vmem:[%s10409_s1 + $0xdd8] sm:$0xf0] }
 0x1d6   :  { %v6999_v12 = vld [vmem:[%s10409_s1 + $0xfec] sm:$0xf]  ;;  %v6214_v22 = vld [vmem:[%s10409_s1 + $0xed8] sm:$0xf0] }
 0x1d7   :  { %3871 = vmatpush.bf16.msra.mxu0 %v5433_v61  ;;  %3884 = vmatpush.bf16.msra.mxu1 %v5561_v62  ;;  %v5478_v61 = vld [vmem:[%s10409_s1 + $0x918] sm:$0xf0]  ;;  %v6811_v62 = vld [vmem:[%s10409_s1 + $0xa0c] sm:$0xf] }
 0x1d8   :  { %3897 = vmatpush.bf16.msra.mxu2 %v5689_v63  ;;  %3910 = vmatpush.bf16.msra.mxu3 %v5817_v1  ;;  %v5734_v1 = vld [vmem:[%s10409_s1 + $0xb18] sm:$0xf0]  ;;  %v5481_v10 = vor.u32 %v6779_v60, %v5478_v61  ;;  %v5609_v11 = vor.u32 %v6811_v62, %v5606_v4  ;;  %v6899_v19 = vld [vmem:[%s10409_s1 + $0xccc] sm:$0xf] }
 0x1d9   :  { %v5737_v15 = vor.u32 %v6843_v0, %v5734_v1  ;;  %v6963_v45 = vld [vmem:[%s10409_s1 + $0xecc] sm:$0xf]  ;;  %v6342_v47 = vld [vmem:[%s10409_s1 + $0xfd8] sm:$0xf0] }
 0x1da   :  { %v6217_v30 = vor.u32 %v6963_v45, %v6214_v22  ;;  %v6895_v31 = vld [vmem:[%s10409_s1 + $0xcac] sm:$0xf]  ;;  %v6070_v37 = vld [vmem:[%s10409_s1 + $0xdb8] sm:$0xf0] }
 0x1db   :  { %3872 = vmatpush.bf16.msra.mxu0 %v5417_v8  ;;  %3885 = vmatpush.bf16.msra.mxu1 %v5545_v9  ;;  %v6102_v8 = vld [vmem:[%s10409_s1 + $0xdf8] sm:$0xf0]  ;;  %v6967_v9 = vld [vmem:[%s10409_s1 + $0xeec] sm:$0xf] }
 0x1dc   :  { %3898 = vmatpush.bf16.msra.mxu2 %v5673_v34  ;;  %3911 = vmatpush.bf16.msra.mxu3 %v5801_v14  ;;  %v3646_v63 = vpop.f32.mrf.mxu2  ;;  %v3659_v2 = vpop.f32.mrf.mxu3  ;;  %v6230_v34 = vld [vmem:[%s10409_s1 + $0xef8] sm:$0xf0]  ;;  %v6105_v17 = vor.u32 %v6935_v27, %v6102_v8  ;;  %v6927_v33 = vld [vmem:[%s10409_s1 + $0xdac] sm:$0xf] }
 0x1dd   :  { %v6358_v14 = vld [vmem:[%s10409_s1 + $0xff8] sm:$0xf0]  ;;  %v6233_v18 = vor.u32 %v6967_v9, %v6230_v34  ;;  %v6959_v38 = vld [vmem:[%s10409_s1 + $0xeac] sm:$0xf]  ;;  %v6073_v50 = vor.u32 %v6927_v33, %v6070_v37 }
 0x1de   :  { %v6198_v39 = vld [vmem:[%s10409_s1 + $0xeb8] sm:$0xf0]  ;;  %v6991_v42 = vld [vmem:[%s10409_s1 + $0xfac] sm:$0xf] }
 0x1df   :  { %3873 = vmatpush.bf16.msra.mxu0 %v5401_v20  ;;  %3886 = vmatpush.bf16.msra.mxu1 %v5529_v21  ;;  %v5958_v20 = vld [vmem:[%s10409_s1 + $0xcd8] sm:$0xf0]  ;;  %v6931_v21 = vld [vmem:[%s10409_s1 + $0xdcc] sm:$0xf] }
 0x1e0   :  { %3899 = vmatpush.bf16.msra.mxu2 %v5657_v48  ;;  %3912 = vmatpush.bf16.msra.mxu3 %v5785_v54  ;;  %v6361_v48 = vor.u32 %v6999_v12, %v6358_v14  ;;  %v6995_v54 = vld [vmem:[%s10409_s1 + $0xfcc] sm:$0xf]  ;;  %v5961_v24 = vor.u32 %v6899_v19, %v5958_v20  ;;  %v6089_v25 = vor.u32 %v6931_v21, %v6086_v51  ;;  %v6326_v43 = vld [vmem:[%s10409_s1 + $0xfb8] sm:$0xf0] }
 0x1e1   :  { %v7057_v44 = vld [vmem:[#allocation1 + $0x1b] sm:$0xff]  ;;  %v6891_v55 = vld [vmem:[%s10409_s1 + $0xc8c] sm:$0xf] }
 0x1e2   :  { %v5926_v56 = vld [vmem:[%s10409_s1 + $0xc98] sm:$0xf0]  ;;  %v6955_v61 = vld [vmem:[%s10409_s1 + $0xe8c] sm:$0xf] }
 0x1e3   :  { %3874 = vmatpush.bf16.msra.mxu0 %v5385_v32  ;;  %3887 = vmatpush.bf16.msra.mxu1 %v5513_v35  ;;  %v5942_v32 = vld [vmem:[%s10409_s1 + $0xcb8] sm:$0xf0]  ;;  %v7054_v35 = vld [vmem:[#allocation1] sm:$0xff]  ;;  %v5929_v0 = vor.u32 %v6891_v55, %v5926_v56  ;;  %v6887_v6 = vld [vmem:[%s10409_s1 + $0xc6c] sm:$0xf] }
 0x1e4   :  { %3900 = vmatpush.bf16.msra.mxu2 %v5641_v36  ;;  %3913 = vmatpush.bf16.msra.mxu3 %v5769_v41  ;;  %v6345_v36 = vor.u32 %v6995_v54, %v6342_v47  ;;  %v7056_v41 = vld [vmem:[#allocation1 + $0x9] sm:$0xff]  ;;  %v5945_v46 = vor.u32 %v6895_v31, %v5942_v32  ;;  %v6054_v60 = vld [vmem:[%s10409_s1 + $0xd98] sm:$0xf0] }
 0x1e5   :  { %v6182_v62 = vld [vmem:[%s10409_s1 + $0xe98] sm:$0xf0]  ;;  %v6951_v34 = vld [vmem:[%s10409_s1 + $0xe6c] sm:$0xf] }
 0x1e6   :  { %v6310_v4 = vld [vmem:[%s10409_s1 + $0xf98] sm:$0xf0]  ;;  %v6185_v5 = vor.u32 %v6955_v61, %v6182_v62  ;;  %v6915_v20 = vld [vmem:[%s10409_s1 + $0xd4c] sm:$0xf] }
 0x1e7   :  { %3875 = vmatpush.bf16.msra.mxu0 %v5369_v53  ;;  %3888 = vmatpush.bf16.msra.mxu1 %v5497_v58  ;;  %v6201_v53 = vor.u32 %v6959_v38, %v6198_v39  ;;  %v6923_v58 = vld [vmem:[%s10409_s1 + $0xd8c] sm:$0xf]  ;;  %v5910_v27 = vld [vmem:[%s10409_s1 + $0xc78] sm:$0xf0] }
 0x1e8   :  { %3901 = vmatpush.bf16.msra.mxu2 %v5625_v59  ;;  %3914 = vmatpush.bf16.msra.mxu3 %v5753_v3  ;;  %v6329_v59 = vor.u32 %v6991_v42, %v6326_v43  ;;  %v6987_v3 = vld [vmem:[%s10409_s1 + $0xf8c] sm:$0xf]  ;;  %v6057_v2 = vor.u32 %v6923_v58, %v6054_v60  ;;  %v6038_v9 = vld [vmem:[%s10409_s1 + $0xd78] sm:$0xf0]  ;;  %v5913_v14 = vor.u32 %v6887_v6, %v5910_v27 }
 0x1e9   :  { %v6313_v8 = vor.u32 %v6987_v3, %v6310_v4  ;;  %v6294_v12 = vld [vmem:[%s10409_s1 + $0xf78] sm:$0xf0]  ;;  %v6979_v22 = vld [vmem:[%s10409_s1 + $0xf4c] sm:$0xf] }
 0x1ea   :  { %v5894_v19 = vld [vmem:[%s10409_s1 + $0xc58] sm:$0xf0]  ;;  %v6879_v33 = vld [vmem:[%s10409_s1 + $0xc2c] sm:$0xf] }
 0x1eb   :  { %3876 = vmatpush.bf16.msra.mxu0 %v5353_v7  ;;  %3889 = vmatpush.bf16.msra.mxu1 %v5481_v10  ;;  %v10184_v63 = vpop.f32.mrf.mxu0  ;;  %v10192_v1 = vpop.f32.mrf.mxu1  ;;  %v6919_v7 = vld [vmem:[%s10409_s1 + $0xd6c] sm:$0xf]  ;;  %v6166_v10 = vld [vmem:[%s10409_s1 + $0xe78] sm:$0xf0] }
 0x1ec   :  { %3902 = vmatpush.bf16.msra.mxu2 %v5609_v11  ;;  %3915 = vmatpush.bf16.msra.mxu3 %v5737_v15  ;;  %v6983_v11 = vld [vmem:[%s10409_s1 + $0xf6c] sm:$0xf]  ;;  %v3619_v15 = vadd.f32 %v9990_v28, %v9840_v49  ;;  %v6022_v49 = vld [vmem:[%s10409_s1 + $0xd58] sm:$0xf0] }
 0x1ed   :  { %v6297_v21 = vor.u32 %v6983_v11, %v6294_v12  ;;  %v6947_v28 = vld [vmem:[%s10409_s1 + $0xe4c] sm:$0xf]  ;;  %v6150_v51 = vld [vmem:[%s10409_s1 + $0xe58] sm:$0xf0]  ;;  %v6025_v31 = vor.u32 %v6915_v20, %v6022_v49  ;;  %v7058_v11 = vld [vmem:[#allocation1 + $0x24] sm:$0xff] }
 0x1ee   :  { %3877 = vmatmul.bf16.vlgmr.msra.gmra.mxu0 %v7054_v35  ;;  %3890 = vmatmul.bf16.vlgmr.msra.gmra.mxu1 %v7056_v41  ;;  %v6278_v54 = vld [vmem:[%s10409_s1 + $0xf58] sm:$0xf0]  ;;  %v6153_v32 = vor.u32 %v6947_v28, %v6150_v51  ;;  %v6943_v38 = vld [vmem:[%s10409_s1 + $0xe2c] sm:$0xf]  ;;  %v7014_v28 = vld [vmem:[%s10411_s3 + $0x60] sm:$0xff] }
 0x1ef   :  { %3921 = vmatpush.bf16.msrb.mxu0 %v5977_v16  ;;  %3934 = vmatpush.bf16.msrb.mxu1 %v6105_v17  ;;  %v6041_v16 = vor.u32 %v6919_v7, %v6038_v9  ;;  %v6169_v17 = vor.u32 %v6951_v34, %v6166_v10  ;;  %v5878_v35 = vld [vmem:[%s10409_s1 + $0xc38] sm:$0xf0]  ;;  %v6281_v37 = vor.u32 %v6979_v22, %v6278_v54  ;;  %v6907_v55 = vld [vmem:[%s10409_s1 + $0xd0c] sm:$0xf]  ;;  %v7008_v9 = vld [vmem:[%s10411_s3 + $0x30] sm:$0xff] }
 0x1f0   :  { %3947 = vmatpush.bf16.msrb.mxu2 %v6233_v18  ;;  %3960 = vmatpush.bf16.msrb.mxu3 %v6361_v48  ;;  %v6883_v18 = vld [vmem:[%s10409_s1 + $0xc4c] sm:$0xf]  ;;  %v6134_v39 = vld [vmem:[%s10409_s1 + $0xe38] sm:$0xf0]  ;;  %v5881_v42 = vor.u32 %v6879_v33, %v5878_v35  ;;  %v7024_v10 = vld [vmem:[%s10411_s3 + $0xb0] sm:$0xff] }
 0x1f1   :  { %3903 = vmatmul.bf16.vlgmr.msra.gmra.mxu2 %v7055_v40  ;;  %3916 = vmatmul.bf16.vlgmr.msra.gmra.mxu3 %v7057_v44  ;;  %v6975_v40 = vld [vmem:[%s10409_s1 + $0xf2c] sm:$0xf]  ;;  %v6262_v41 = vld [vmem:[%s10409_s1 + $0xf38] sm:$0xf0]  ;;  %v7022_v51 = vld [vmem:[%s10411_s3 + $0xa0] sm:$0xff] }
 0x1f2   :  { %v6265_v56 = vor.u32 %v6975_v40, %v6262_v41  ;;  %v6939_v58 = vld [vmem:[%s10409_s1 + $0xe0c] sm:$0xf]  ;;  %v6246_v62 = vld [vmem:[%s10409_s1 + $0xf18] sm:$0xf0]  ;;  %v7012_v35 = vld [vmem:[%s10411_s3 + $0x50] sm:$0xff] }
 0x1f3   :  { %3922 = vmatpush.bf16.msrb.mxu0 %v5961_v24  ;;  %3935 = vmatpush.bf16.msrb.mxu1 %v6089_v25  ;;  %v3672_v47 = vpop.f32.mrf.mxu0  ;;  %v5897_v24 = vor.u32 %v6883_v18, %v5894_v19  ;;  %v3685_v25 = vpop.f32.mrf.mxu1  ;;  %v6971_v61 = vld [vmem:[%s10409_s1 + $0xf0c] sm:$0xf]  ;;  %v7009_v27 = vld [vmem:[%s10411_s3 + $0x38] sm:$0xff]  ;;  %v3974_v41 = vmul.f32 316.22775, %v9636_v57 }
 0x1f4   :  { %3948 = vmatpush.bf16.msrb.mxu2 %v6217_v30  ;;  %3961 = vmatpush.bf16.msrb.mxu3 %v6345_v36  ;;  %v10229_v48 = vpop.f32.mrf.mxu2  ;;  %v10240_v45 = vpop.f32.mrf.mxu3  ;;  %v3632_v30 = vadd.f32 %v10001_v13, %v3619_v15  ;;  %v6911_v36 = vld [vmem:[%s10409_s1 + $0xd2c] sm:$0xf]  ;;  %v6006_v13 = vld [vmem:[%s10409_s1 + $0xd38] sm:$0xf0]  ;;  %v6249_v6 = vor.u32 %v6971_v61, %v6246_v62 }
 0x1f5   :  { %v6009_v44 = vor.u32 %v6911_v36, %v6006_v13  ;;  %v7059_v12 = vld [vmem:[#allocation1 + $0x2d] sm:$0xff]  ;;  %v7060_v15 = vld [vmem:[#allocation1 + $0x36] sm:$0xff]  ;;  %v3978_v57 = vmax.f32 %v3974_v41, 0.0 }
 0x1f6   :  { %v3645_v43 = vadd.f32 %v10027_v23, %v3632_v30  ;;  %v5990_v23 = vld [vmem:[%s10409_s1 + $0xd18] sm:$0xf0]  ;;  %v7023_v18 = vld [vmem:[%s10411_s3 + $0xa8] sm:$0xff]  ;;  %v7020_v36 = vld [vmem:[%s10411_s3 + $0x90] sm:$0xff] }
 0x1f7   :  { %3923 = vmatpush.bf16.msrb.mxu0 %v5945_v46  ;;  %3936 = vmatpush.bf16.msrb.mxu1 %v6073_v50  ;;  %v6137_v46 = vor.u32 %v6943_v38, %v6134_v39  ;;  %v6875_v50 = vld [vmem:[%s10409_s1 + $0xc0c] sm:$0xf]  ;;  %v7013_v54 = vld [vmem:[%s10411_s3 + $0x58] sm:$0xff]  ;;  %v3973_v38 = vmul.f32 316.22775, %v8846_v52  ;;  %v7002_v52 = vld [vmem:[%s10411_s3] sm:$0xff] }
 0x1f8   :  { %3949 = vmatpush.bf16.msrb.mxu2 %v6201_v53  ;;  %3962 = vmatpush.bf16.msrb.mxu3 %v6329_v59  ;;  %v5862_v53 = vld [vmem:[%s10409_s1 + $0xc18] sm:$0xf0]  ;;  %v7003_v13 = vld [vmem:[%s10411_s3 + $0x8] sm:$0xff] }
 0x1f9   :  { %v6118_v59 = vld [vmem:[%s10409_s1 + $0xe18] sm:$0xf0]  ;;  %v5865_v4 = vor.u32 %v6875_v50, %v5862_v53  ;;  %v7011_v39 = vld [vmem:[%s10411_s3 + $0x48] sm:$0xff]  ;;  %v7010_v50 = vld [vmem:[%s10411_s3 + $0x40] sm:$0xff] }
 0x1fa   :  { %v7021_v47 = vld [vmem:[%s10411_s3 + $0x98] sm:$0xff]  ;;  %v7019_v40 = vld [vmem:[%s10411_s3 + $0x88] sm:$0xff]  ;;  %v7018_v53 = vld [vmem:[%s10411_s3 + $0x80] sm:$0xff] }
 0x1fb   :  { %3924 = vmatpush.bf16.msrb.mxu0 %v5929_v0  ;;  %3937 = vmatpush.bf16.msrb.mxu1 %v6057_v2  ;;  %v3658_v0 = vadd.f32 %v10038_v26, %v3645_v43  ;;  %v5993_v2 = vor.u32 %v6907_v55, %v5990_v23  ;;  %v7025_v26 = vld [vmem:[%s10411_s3 + $0xb8] sm:$0xff]  ;;  %v3982_v23 = vpack.c.bf16 %v3978_v57, %v3978_v57 }
 0x1fc   :  { %3950 = vmatpush.bf16.msrb.mxu2 %v6185_v5  ;;  %3963 = vmatpush.bf16.msrb.mxu3 %v6313_v8  ;;  %v3698_v60 = vpop.f32.mrf.mxu2  ;;  %v3711_v3 = vpop.f32.mrf.mxu3  ;;  %v6121_v5 = vor.u32 %v6939_v58, %v6118_v59  ;;  %v7017_v8 = vld [vmem:[%s10411_s3 + $0x78] sm:$0xff]  ;;  %v540_v59 = vperm.slane %v9774_v29, 3 }
 0x1fd   :  { %v3671_v7 = vadd.f32 %v10184_v63, %v3658_v0  ;;  %v7016_v63 = vld [vmem:[%s10411_s3 + $0x70] sm:$0xff]  ;;  %v7033_v29 = vld [vmem:[%s10411_s3 + $0xf8] sm:$0xff] }
 0x1ff   :  { %3925 = vmatpush.bf16.msrb.mxu0 %v5913_v14  ;;  %3938 = vmatpush.bf16.msrb.mxu1 %v6041_v16  ;;  %v3684_v34 = vadd.f32 %v10192_v1, %v3671_v7  ;;  %v7061_v16 = vld [vmem:[#allocation1 + $0x3f] sm:$0xff]  ;;  %v7007_v1 = vld [vmem:[%s10411_s3 + $0x28] sm:$0xff] }
 0x200   :  { %3951 = vmatpush.bf16.msrb.mxu2 %v6169_v17  ;;  %3964 = vmatpush.bf16.msrb.mxu3 %v6297_v21  ;;  %v7015_v17 = vld [vmem:[%s10411_s3 + $0x68] sm:$0xff]  ;;  %v7006_v21 = vld [vmem:[%s10411_s3 + $0x20] sm:$0xff] }
 0x201   :  { %v3697_v14 = vadd.f32 %v10229_v48, %v3684_v34 }
 0x203   :  { %3926 = vmatpush.bf16.msrb.mxu0 %v5897_v24  ;;  %3939 = vmatpush.bf16.msrb.mxu1 %v6025_v31  ;;  %v3710_v19 = vadd.f32 %v10240_v45, %v3697_v14  ;;  %v7005_v45 = vld [vmem:[%s10411_s3 + $0x18] sm:$0xff] }
 0x204   :  { %3952 = vmatpush.bf16.msrb.mxu2 %v6153_v32  ;;  %3965 = vmatpush.bf16.msrb.mxu3 %v6281_v37  ;;  %v7004_v32 = vld [vmem:[%s10411_s3 + $0x10] sm:$0xff] }
 0x207   :  { %3927 = vmatpush.bf16.msrb.mxu0 %v5881_v42  ;;  %3940 = vmatpush.bf16.msrb.mxu1 %v6009_v44 }
 0x208   :  { %3953 = vmatpush.bf16.msrb.mxu2 %v6137_v46  ;;  %3966 = vmatpush.bf16.msrb.mxu3 %v6265_v56  ;;  %v3977_v46 = vmax.f32 %v3973_v38, 0.0 }
 0x20a   :  { %v3981_v56 = vpack.c.bf16 %v3977_v46, %v3977_v46 }
 0x20b   :  { %3928 = vmatpush.bf16.msrb.mxu0 %v5865_v4  ;;  %3941 = vmatpush.bf16.msrb.mxu1 %v5993_v2  ;;  %v3722_v20 = vpop.f32.mrf.mxu0  ;;  %v3735_v48 = vpop.f32.mrf.mxu1 }
 0x20c   :  { %3954 = vmatpush.bf16.msrb.mxu2 %v6121_v5  ;;  %3967 = vmatpush.bf16.msrb.mxu3 %v6249_v6  ;;  %v3723_v49 = vadd.f32 %v3722_v20, %v3710_v19  ;;  %v7028_v20 = vld [vmem:[%s10411_s3 + $0xd0] sm:$0xff] }
 0x20e   :  { %3929 = vmatmul.bf16.vlgmr.msrb.gmra.mxu0 %v7058_v11  ;;  %3942 = vmatmul.bf16.vlgmr.msrb.gmra.mxu1 %v7059_v12  ;;  %v3736_v22 = vadd.f32 %v3735_v48, %v3723_v49  ;;  %v7032_v12 = vld [vmem:[%s10411_s3 + $0xf0] sm:$0xff]  ;;  %v7027_v49 = vld [vmem:[%s10411_s3 + $0xc8] sm:$0xff] }
 0x20f   :  { %4245 = vmatpush.bf16.msra.mxu0 %v7009_v27  ;;  %4258 = vmatpush.bf16.msra.mxu1 %v7017_v8 }
 0x210   :  { %4271 = vmatpush.bf16.msra.mxu2 %v7025_v26  ;;  %3968 = vmatmul.bf16.vlgmr.msrb.gmra.mxu3 %v7061_v16  ;;  %v7031_v16 = vld [vmem:[%s10411_s3 + $0xe8] sm:$0xff] }
 0x211   :  { %3955 = vmatmul.bf16.vlgmr.msrb.gmra.mxu2 %v7060_v15  ;;  %4284 = vmatpush.bf16.msra.mxu3 %v7033_v29 }
 0x213   :  { %4246 = vmatpush.bf16.msra.mxu0 %v7008_v9  ;;  %4259 = vmatpush.bf16.msra.mxu1 %v7016_v63  ;;  %v3724_v31 = vpop.f32.mrf.mxu0  ;;  %v3737_v33 = vpop.f32.mrf.mxu1 }
 0x214   :  { %4272 = vmatpush.bf16.msra.mxu2 %v7024_v10  ;;  %v3748_v24 = vpop.f32.mrf.mxu2  ;;  %v3761_v30 = vpop.f32.mrf.mxu3 }
 0x215   :  { %v3749_v25 = vadd.f32 %v3748_v24, %v3736_v22  ;;  %4285 = vmatpush.bf16.msra.mxu3 %v7032_v12 }
 0x217   :  { %4247 = vmatpush.bf16.msra.mxu0 %v7007_v1  ;;  %4260 = vmatpush.bf16.msra.mxu1 %v7015_v17  ;;  %v3762_v37 = vadd.f32 %v3761_v30, %v3749_v25  ;;  %v7030_v1 = vld [vmem:[%s10411_s3 + $0xe0] sm:$0xff]  ;;  %v7029_v17 = vld [vmem:[%s10411_s3 + $0xd8] sm:$0xff] }
 0x218   :  { %4273 = vmatpush.bf16.msra.mxu2 %v7023_v18 }
 0x219   :  { %v3975_v42 = vmul.f32 316.22775, %v3762_v37  ;;  %4286 = vmatpush.bf16.msra.mxu3 %v7031_v16 }
 0x21b   :  { %4248 = vmatpush.bf16.msra.mxu0 %v7006_v21  ;;  %4261 = vmatpush.bf16.msra.mxu1 %v7014_v28  ;;  %v3979_v55 = vmax.f32 %v3975_v42, 0.0 }
 0x21c   :  { %4274 = vmatpush.bf16.msra.mxu2 %v7022_v51  ;;  %v3750_v43 = vpop.f32.mrf.mxu2  ;;  %v3763_v44 = vpop.f32.mrf.mxu3 }
 0x21d   :  { %v3983_v58 = vpack.c.bf16 %v3979_v55, %v3979_v55  ;;  %4287 = vmatpush.bf16.msra.mxu3 %v7030_v1  ;;  %v7035_v55 = vld [vmem:[%s10412_s4] ss:$0 sm:$0xff] }
 0x21f   :  { %4249 = vmatpush.bf16.msra.mxu0 %v7005_v45  ;;  %4262 = vmatpush.bf16.msra.mxu1 %v7013_v54  ;;  %v7026_v54 = vld [vmem:[%s10411_s3 + $0xc0] sm:$0xff] }
 0x220   :  { %4275 = vmatpush.bf16.msra.mxu2 %v7021_v47 }
 0x221   :  { %4288 = vmatpush.bf16.msra.mxu3 %v7029_v17 }
 0x223   :  { %4250 = vmatpush.bf16.msra.mxu0 %v7004_v32  ;;  %4263 = vmatpush.bf16.msra.mxu1 %v7012_v35 }
 0x224   :  { %4276 = vmatpush.bf16.msra.mxu2 %v7020_v36 }
 0x225   :  { %4289 = vmatpush.bf16.msra.mxu3 %v7028_v20 }
 0x227   :  { %4251 = vmatpush.bf16.msra.mxu0 %v7003_v13  ;;  %4264 = vmatpush.bf16.msra.mxu1 %v7011_v39 }
 0x228   :  { %4277 = vmatpush.bf16.msra.mxu2 %v7019_v40 }
 0x229   :  { %4290 = vmatpush.bf16.msra.mxu3 %v7027_v49 }
 0x22b   :  { %4252 = vmatpush.bf16.msra.mxu0 %v7002_v52  ;;  %4265 = vmatpush.bf16.msra.mxu1 %v7010_v50  ;;  %v3774_v60 = vpop.f32.mrf.mxu0  ;;  %v3787_v62 = vpop.f32.mrf.mxu1 }
 0x22c   :  { %4278 = vmatpush.bf16.msra.mxu2 %v7018_v53  ;;  %v3775_v61 = vadd.f32 %v3774_v60, %v540_v59 }
 0x22d   :  { %4291 = vmatpush.bf16.msra.mxu3 %v7026_v54 }
 0x22e   :  { %4253 = vmatmul.bf16.vlgmr.msra.gmra.mxu0 %v3981_v56  ;;  %4266 = vmatmul.bf16.vlgmr.msra.gmra.mxu1 %v3982_v23  ;;  %v3788_v3 = vadd.f32 %v3787_v62, %v3775_v61 }
 0x22f   :  { %4279 = vmatmul.bf16.vlgmr.msra.gmra.mxu2 %v3983_v58 }
 0x233   :  { %v3776_v6 = vpop.f32.mrf.mxu0  ;;  %v3789_v27 = vpop.f32.mrf.mxu1 }
 0x234   :  { %v3800_v4 = vpop.f32.mrf.mxu2  ;;  %v3813_v2 = vpop.f32.mrf.mxu3 }
 0x235   :  { %v3801_v0 = vadd.f32 %v3800_v4, %v3788_v3 }
 0x237   :  { %v3814_v5 = vadd.f32 %v3813_v2, %v3801_v0 }
 0x23c   :  { %v3802_v7 = vpop.f32.mrf.mxu2  ;;  %v3815_v8 = vpop.f32.mrf.mxu3 }
 0x24b   :  { %v3826_v26 = vpop.f32.mrf.mxu0  ;;  %v3839_v9 = vpop.f32.mrf.mxu1 }
 0x24c   :  { %v3827_v21 = vadd.f32 %v3826_v26, %v3814_v5 }
 0x24e   :  { %v3840_v22 = vadd.f32 %v3839_v9, %v3827_v21 }
 0x253   :  { %v3828_v10 = vpop.f32.mrf.mxu0  ;;  %v3841_v11 = vpop.f32.mrf.mxu1 }
 0x254   :  { %v3852_v34 = vpop.f32.mrf.mxu2  ;;  %v3865_v63 = vpop.f32.mrf.mxu3 }
 0x255   :  { %v3853_v47 = vadd.f32 %v3852_v34, %v3840_v22 }
 0x257   :  { %v3866_v30 = vadd.f32 %v3865_v63, %v3853_v47 }
 0x25c   :  { %v3854_v14 = vpop.f32.mrf.mxu2  ;;  %v3867_v15 = vpop.f32.mrf.mxu3 }
 0x26b   :  { %v3878_v18 = vpop.f32.mrf.mxu0  ;;  %v3891_v19 = vpop.f32.mrf.mxu1 }
 0x26c   :  { %v3879_v31 = vadd.f32 %v3878_v18, %v3866_v30 }
 0x26e   :  { %v3892_v32 = vadd.f32 %v3891_v19, %v3879_v31 }
 0x273   :  { %v3880_v51 = vpop.f32.mrf.mxu0  ;;  %v3893_v45 = vpop.f32.mrf.mxu1 }
 0x274   :  { %v3904_v48 = vpop.f32.mrf.mxu2  ;;  %v3917_v28 = vpop.f32.mrf.mxu3 }
 0x275   :  { %v3905_v33 = vadd.f32 %v3904_v48, %v3892_v32 }
 0x277   :  { %v3918_v35 = vadd.f32 %v3917_v28, %v3905_v33 }
 0x27c   :  { %v3906_v24 = vpop.f32.mrf.mxu2  ;;  %v3919_v25 = vpop.f32.mrf.mxu3 }
 0x28b   :  { %v3930_v36 = vpop.f32.mrf.mxu0  ;;  %v3943_v37 = vpop.f32.mrf.mxu1 }
 0x28c   :  { %v3931_v13 = vadd.f32 %v3930_v36, %v3918_v35 }
 0x28e   :  { %v3944_v38 = vadd.f32 %v3943_v37, %v3931_v13 }
 0x293   :  { %v3969_v40 = vpop.f32.mrf.mxu3  ;;  %v3932_v42 = vpop.f32.mrf.mxu0 }
 0x294   :  { %v3956_v39 = vpop.f32.mrf.mxu2  ;;  %v3945_v43 = vpop.f32.mrf.mxu1 }
 0x295   :  { %v3957_v41 = vadd.f32 %v3956_v39, %v3944_v38 }
 0x297   :  { %v3970_v44 = vadd.f32 %v3969_v40, %v3957_v41 }
 0x299   :  { %v3976_v52 = vmul.f32 316.22775, %v3970_v44 }
 0x29b   :  { %v3980_v46 = vmax.f32 %v3976_v52, 0.0  ;;  %v3971_v53 = vpop.f32.mrf.mxu3 }
 0x29c   :  { %v3958_v50 = vpop.f32.mrf.mxu2 }
 0x29d   :  { %v3984_v57 = vpack.c.bf16 %v3980_v46, %v3980_v46 }
 0x29f   :  { %4292 = vmatmul.bf16.vlgmr.msra.gmra.mxu3 %v3984_v57 }
 0x2ab   :  { %v4254_v56 = vpop.f32.mrf.mxu0  ;;  %v4267_v58 = vpop.f32.mrf.mxu1 }
 0x2ac   :  { %v4255_v23 = vadd.f32 %v7035_v55, %v4254_v56 }
 0x2ae   :  { %v4268_v59 = vadd.f32 %v4267_v58, %v4255_v23 }
 0x2b2   :  { %v4280_v60 = vpop.f32.mrf.mxu2 }
 0x2b3   :  { %v4281_v61 = vadd.f32 %v4280_v60, %v4268_v59  ;;  %v4256_v62 = vpop.f32.mrf.mxu0  ;;  %v4269_v3 = vpop.f32.mrf.mxu1 }
 0x2ba   :  { %v4282_v4 = vpop.f32.mrf.mxu2 }
 0x322   :  { %v4293_v0 = vpop.f32.mrf.mxu3 }
 0x323   :  { %v4294_v2 = vadd.f32 %v4293_v0, %v4281_v61 }
 0x325   :  { %4297 = vst [vmem:[#allocation2] sm:$0x3] %v4294_v2 }
 0x326   :  { %4308 = dma.vmem_to_hbm [thread:$0]  %s4304_s0, 32, %s4306_s30, [#allocation3]  }
 0x32a   :  { %v4295_v5 = vpop.f32.mrf.mxu3 }
 0x32b   :  { %7086 = dma.done.wait [#allocation3], 32  }
 0x32c   :  { %7087 = vsyncadd [#allocation3], 4294967264 }
 0x32d   :  { %4313 = vsyncpa [#allocation3], 1 }

</bundles_post_ra>
